<compile_context>
chip_gen: v6e
topology: v6e:2x2x1
jax: 0.10.0
libtpu: 0.0.40
codegen_flags: <defaults>
</compile_context>

<pallas_src>
import jax
import jax.numpy as jnp
from jax.experimental import pallas as pl
from jax.experimental.pallas import tpu as pltpu


# ----------------------------------------------------------------------------- kernels
def _stage1_kernel(x_ref, wc1_ref, b1_ref, wr1_ref, wr2_ref, wt1_ref, bt1_ref,
                   out_ref, pad_in, pad_hid):
    """conv3x3(pad=1,+bias) -> residual stack -> ReLU -> polyphase ConvT1 -> ReLU.

    One batch element, NHWC, everything resident in VMEM.
      x_ref   : (1, H, W, Cin)
      wc1_ref : (9, Cin, Ch)        per-tap conv1 weights, tap = ky*3+kx
      b1_ref  : (1, Ch)
      wr1_ref : (L, 9, Ch, Cr)      per-tap residual 3x3 weights
      wr2_ref : (L, Cr, Ch)         residual 1x1 weights
      wt1_ref : (4, 4, Ch, C1)      [phase=2*py+px, tap=2*dy+dx] deconv1 weights (pre-flipped)
      bt1_ref : (1, C1)
      out_ref : (1, 4, H*W, C1)     phase-separated deconv1 output (post-ReLU)
      pad_in  : VMEM (H+2, W+2, Cin) scratch
      pad_hid : VMEM (H+2, W+2, Ch)  scratch
    """
    _, H, W, _ = x_ref.shape
    Ch = b1_ref.shape[-1]
    L = wr1_ref.shape[0]
    HW = H * W

    # Zero the padded scratch buffers once per grid step; only the interior is
    # rewritten afterwards, so the 1-pixel zero border persists.
    pad_in[...] = jnp.zeros_like(pad_in)
    pad_hid[...] = jnp.zeros_like(pad_hid)

    offs3 = [(ky, kx) for ky in range(3) for kx in range(3)]

    def pad1(pad_ref, x3d):
        h, w, _ = x3d.shape
        pad_ref[1:h + 1, 1:w + 1, :] = x3d
        return pad_ref[...]

    def conv(xp, offs, get_w):
        # sum over taps of (H*W, Cin) @ (Cin, Cout) MXU matmuls, f32 accumulation
        acc = None
        for t, (oy, ox) in enumerate(offs):
            win = xp[oy:oy + H, ox:ox + W, :].reshape(HW, xp.shape[-1])
            d = jnp.dot(win, get_w(t), preferred_element_type=jnp.float32)
            acc = d if acc is None else acc + d
        return acc

    # _conv_1: Conv2d(Cin -> Ch, k=3, s=1, p=1) + bias
    x = conv(pad1(pad_in, x_ref[0]), offs3, lambda t: wc1_ref[t]) + b1_ref[...]

    # ResidualStack: x = x + conv1x1(relu(conv3x3(relu(x)))), L layers
    for i in range(L):
        t3 = jnp.maximum(x, 0.0).reshape(H, W, Ch)
        h = conv(pad1(pad_hid, t3), offs3, lambda t, i=i: wr1_ref[i, t])
        x = x + jnp.dot(jnp.maximum(h, 0.0), wr2_ref[i],
                        preferred_element_type=jnp.float32)

    # trailing ReLU of the residual stack
    y = jnp.maximum(x, 0.0).reshape(H, W, Ch)

    # _conv_trans_1 (k=4, s=2, p=1) + ReLU, as 4 polyphase 2x2-tap stride-1 convs
    yp = pad1(pad_hid, y)
    for ph in range(4):
        py, px = ph // 2, ph % 2
        offs = [(py + dy, px + dx) for dy in range(2) for dx in range(2)]
        o = conv(yp, offs, lambda t, ph=ph: wt1_ref[ph, t]) + bt1_ref[...]
        out_ref[0, ph] = jnp.maximum(o, 0.0)


def _stage2_kernel(y_ref, wt2_ref, bt2_ref, out_ref, pad):
    """Polyphase ConvTranspose2d(k=4, s=2, p=1); one batch element, NHWC.

      y_ref   : (1, H, W, C)      (already post-ReLU)
      wt2_ref : (4, 4, C, Co)     [phase, tap] pre-flipped weights
      bt2_ref : (1, Co)
      out_ref : (1, 4, H*W, Co)   phase-separated output
      pad     : VMEM (H+2, W+2, C) scratch
    """
    _, H, W, C = y_ref.shape
    HW = H * W

    pad[...] = jnp.zeros_like(pad)
    pad[1:H + 1, 1:W + 1, :] = y_ref[0]
    yp = pad[...]

    for ph in range(4):
        py, px = ph // 2, ph % 2
        acc = None
        for t, (dy, dx) in enumerate([(a, b) for a in range(2) for b in range(2)]):
            win = yp[py + dy:py + dy + H, px + dx:px + dx + W, :].reshape(HW, C)
            d = jnp.dot(win, wt2_ref[ph, t], preferred_element_type=jnp.float32)
            acc = d if acc is None else acc + d
        out_ref[0, ph] = acc + bt2_ref[...]


# ----------------------------------------------------------------------------- wrappers
def _full_spec(a):
    nd = a.ndim
    return pl.BlockSpec(a.shape, lambda n, nd=nd: (0,) * nd)


def _run_stage1(x_nhwc, wc1, b1, wr1, wr2, wt1, bt1):
    N, H, W, Cin = x_nhwc.shape
    Ch = b1.shape[-1]
    C1 = wt1.shape[-1]
    return pl.pallas_call(
        _stage1_kernel,
        out_shape=jax.ShapeDtypeStruct((N, 4, H * W, C1), jnp.float32),
        grid=(N,),
        in_specs=[
            pl.BlockSpec((1, H, W, Cin), lambda n: (n, 0, 0, 0)),
            _full_spec(wc1), _full_spec(b1),
            _full_spec(wr1), _full_spec(wr2),
            _full_spec(wt1), _full_spec(bt1),
        ],
        out_specs=pl.BlockSpec((1, 4, H * W, C1), lambda n: (n, 0, 0, 0)),
        scratch_shapes=[
            pltpu.VMEM((H + 2, W + 2, Cin), jnp.float32),
            pltpu.VMEM((H + 2, W + 2, Ch), jnp.float32),
        ],
        compiler_params=pltpu.CompilerParams(dimension_semantics=("parallel",)),
    )(x_nhwc, wc1, b1, wr1, wr2, wt1, bt1)


def _run_stage2(y_nhwc, wt2, bt2):
    N, H, W, C = y_nhwc.shape
    Co = wt2.shape[-1]
    return pl.pallas_call(
        _stage2_kernel,
        out_shape=jax.ShapeDtypeStruct((N, 4, H * W, Co), jnp.float32),
        grid=(N,),
        in_specs=[
            pl.BlockSpec((1, H, W, C), lambda n: (n, 0, 0, 0)),
            _full_spec(wt2), _full_spec(bt2),
        ],
        out_specs=pl.BlockSpec((1, 4, H * W, Co), lambda n: (n, 0, 0, 0)),
        scratch_shapes=[pltpu.VMEM((H + 2, W + 2, C), jnp.float32)],
        compiler_params=pltpu.CompilerParams(dimension_semantics=("parallel",)),
    )(y_nhwc, wt2, bt2)


# ----------------------------------------------------------------------------- weight prep (one-time)
def _prep_conv_w(w):
    """PyTorch Conv2d weight (Cout, Cin, K, K) -> per-tap (K*K, Cin, Cout), tap = ky*K+kx."""
    Cout, Cin, K, _ = w.shape
    return jnp.transpose(w, (2, 3, 1, 0)).reshape(K * K, Cin, Cout)


def _prep_deconv_w(w_t):
    """PyTorch ConvTranspose2d(k=4,s=2,p=1) weight (Cin, Cout, 4, 4) -> polyphase
    per-tap matrices (4, 4, Cin, Cout): [phase=2*py+px, tap=2*dy+dx, ci, co].

    Output phase (py, px) equals a stride-1 conv over the pad-1 input with window
    offsets (py+dy, px+dx) and the spatially flipped kernel taps ky=2*dy+py, kx=2*dx+px.
    """
    Cin, Cout, K, _ = w_t.shape
    assert K == 4
    wf = jnp.transpose(w_t[:, :, ::-1, ::-1], (2, 3, 0, 1))   # Wf[ky, kx, ci, co]
    wp = wf.reshape(2, 2, 2, 2, Cin, Cout)                    # (dy, py, dx, px, ci, co)
    wp = jnp.transpose(wp, (1, 3, 0, 2, 4, 5))                # (py, px, dy, dx, ci, co)
    return wp.reshape(4, 4, Cin, Cout)


def prepare_decoder_params(params, num_residual_layers):
    """One-time repack of PyTorch-layout params into kernel-ready layouts."""
    return {
        "wc1": _prep_conv_w(params["conv1_w"]),
        "b1": params["conv1_b"].reshape(1, -1),
        "wr1": jnp.stack([_prep_conv_w(params[f"res{i}_w1"])
                          for i in range(num_residual_layers)]),
        "wr2": jnp.stack([_prep_conv_w(params[f"res{i}_w2"])[0]
                          for i in range(num_residual_layers)]),
        "wt1": _prep_deconv_w(params["ct1_w"]),
        "bt1": params["ct1_b"].reshape(1, -1),
        "wt2": _prep_deconv_w(params["ct2_w"]),
        "bt2": params["ct2_b"].reshape(1, -1),
    }


# ----------------------------------------------------------------------------- decoder
def init_decoder_params(key, in_channels, num_hiddens, num_residual_layers,
                        num_residual_hiddens):
    n_keys = 6 + 2 * num_residual_layers
    keys = jax.random.split(key, n_keys)
    s = 0.1
    p = {}
    p["conv1_w"] = s * jax.random.normal(keys[0], (num_hiddens, in_channels, 3, 3), jnp.float32)
    p["conv1_b"] = s * jax.random.normal(keys[1], (num_hiddens,), jnp.float32)
    for i in range(num_residual_layers):
        p[f"res{i}_w1"] = s * jax.random.normal(
            keys[2 + 2 * i], (num_residual_hiddens, num_hiddens, 3, 3), jnp.float32)
        p[f"res{i}_w2"] = s * jax.random.normal(
            keys[3 + 2 * i], (num_hiddens, num_residual_hiddens, 1, 1), jnp.float32)
    p["ct1_w"] = s * jax.random.normal(keys[-4], (num_hiddens, num_hiddens // 2, 4, 4), jnp.float32)
    p["ct1_b"] = s * jax.random.normal(keys[-3], (num_hiddens // 2,), jnp.float32)
    p["ct2_w"] = s * jax.random.normal(keys[-2], (num_hiddens // 2, 3, 4, 4), jnp.float32)
    p["ct2_b"] = s * jax.random.normal(keys[-1], (3,), jnp.float32)
    return p


def decoder_forward(x_nchw, p):
    """Matches Decoder.forward: conv3x3 -> ResidualStack -> ConvT -> ReLU -> ConvT (NCHW in/out)."""
    N, _, H, W = x_nchw.shape
    x = jnp.transpose(x_nchw, (0, 2, 3, 1))                    # NCHW -> NHWC (tiny)

    # stage 1: conv1 + residual stack + ConvTranspose_1 + ReLU (phase-separated output)
    ph1 = _run_stage1(x, p["wc1"], p["b1"], p["wr1"], p["wr2"], p["wt1"], p["bt1"])
    C1 = p["wt1"].shape[-1]
    # interleave the 4 output phases -> full-res NHWC (one tiny XLA transpose)
    y1 = (ph1.reshape(N, 2, 2, H, W, C1)
             .transpose(0, 3, 1, 4, 2, 5)
             .reshape(N, 2 * H, 2 * W, C1))

    # stage 2: ConvTranspose_2 (phase-separated output)
    ph2 = _run_stage2(y1, p["wt2"], p["bt2"])
    Co = p["wt2"].shape[-1]
    H2, W2 = 2 * H, 2 * W
    # interleave phases and emit NCHW directly
    out = (ph2.reshape(N, 2, 2, H2, W2, Co)
              .transpose(0, 5, 3, 1, 4, 2)
              .reshape(N, Co, 2 * H2, 2 * W2))
    return out


# ----------------------------------------------------------------------------- main
if __name__ == "__main__":
    batch = 2
    in_channels = 4
    num_hiddens = 32
    num_residual_layers = 2
    num_residual_hiddens = 8
    spatial = 8  # decoder upsamples 4x -> 32x32 output

    key = jax.random.PRNGKey(0)
    k_x, k_p = jax.random.split(key)
    x = jax.random.normal(k_x, (batch, in_channels, spatial, spatial), jnp.float32)
    params = init_decoder_params(k_p, in_channels, num_hiddens,
                                 num_residual_layers, num_residual_hiddens)

    # One-time weight repack (flip/transpose/pack) outside the per-call forward.
    prepped = prepare_decoder_params(params, num_residual_layers)

    fwd = jax.jit(decoder_forward)
    out = jax.block_until_ready(fwd(x, prepped))

    assert out.shape == (batch, 3, 4 * spatial, 4 * spatial), out.shape
    assert bool(jnp.all(jnp.isfinite(out)))
    print("KERNEL_OK")
</pallas_src>

<mosaic_0001>
module attributes {stable_mosaic.version = 11 : i64} {
  func.func @_stage2_kernel(%arg0: i32, %arg1: memref<1x16x16x16xf32, #tpu.memory_space<vmem>>, %arg2: memref<4x4x16x3xf32, #tpu.memory_space<vmem>>, %arg3: memref<1x3xf32, #tpu.memory_space<vmem>>, %arg4: memref<1x4x256x3xf32, #tpu.memory_space<vmem>>, %arg5: memref<18x18x16xf32, #tpu.memory_space<vmem>>) attributes {dimension_semantics = [#tpu.dimension_semantics<parallel>], iteration_bounds = array<i64: 2>, scalar_prefetch = 0 : i64, scratch_operands = 1 : i64, tpu.core_type = #tpu.core_type<tc>, window_params = [{transform_indices = @transform_0, window_bounds = array<i64: 1, 16, 16, 16>}, {pipeline_mode = #tpu.pipeline_mode<synchronous>, transform_indices = @transform_1, window_bounds = array<i64: 4, 4, 16, 3>}, {pipeline_mode = #tpu.pipeline_mode<synchronous>, transform_indices = @transform_2, window_bounds = array<i64: 1, 3>}, {transform_indices = @transform_3, window_bounds = array<i64: 1, 4, 256, 3>}]} {
    %cst = arith.constant 0.000000e+00 : f32
    %0 = vector.broadcast %cst : f32 to vector<18x18x16xf32>
    %c0 = arith.constant 0 : index
    %c0_0 = arith.constant 0 : index
    %c0_1 = arith.constant 0 : index
    %1 = vector.load %arg5[%c0, %c0_0, %c0_1] : memref<18x18x16xf32, #tpu.memory_space<vmem>>, vector<18x18x16xf32>
    tpu.vector_store %arg5[%c0, %c0_0, %c0_1], %0 {strides = array<i32>} : memref<18x18x16xf32, #tpu.memory_space<vmem>>, vector<18x18x16xf32>,
    %c0_2 = arith.constant 0 : index
    %c0_3 = arith.constant 0 : index
    %c0_4 = arith.constant 0 : index
    %c0_5 = arith.constant 0 : index
    %2 = vector.load %arg1[%c0_2, %c0_3, %c0_4, %c0_5] : memref<1x16x16x16xf32, #tpu.memory_space<vmem>>, vector<1x16x16x16xf32>
    %3 = vector.shape_cast %2 : vector<1x16x16x16xf32> to vector<16x16x16xf32>
    %c1 = arith.constant 1 : index
    %c1_6 = arith.constant 1 : index
    %c0_7 = arith.constant 0 : index
    %4 = vector.load %arg5[%c1, %c1_6, %c0_7] : memref<18x18x16xf32, #tpu.memory_space<vmem>>, vector<16x16x16xf32>
    tpu.vector_store %arg5[%c1, %c1_6, %c0_7], %3 {strides = array<i32>} : memref<18x18x16xf32, #tpu.memory_space<vmem>>, vector<16x16x16xf32>,
    %c0_8 = arith.constant 0 : index
    %c0_9 = arith.constant 0 : index
    %c0_10 = arith.constant 0 : index
    %5 = vector.load %arg5[%c0_8, %c0_9, %c0_10] : memref<18x18x16xf32, #tpu.memory_space<vmem>>, vector<18x18x16xf32>
    %6 = vector.extract_strided_slice %5 {offsets = [0, 0, 0], sizes = [16, 16, 16], strides = [1, 1, 1]} : vector<18x18x16xf32> to vector<16x16x16xf32>
    %7 = vector.shape_cast %6 : vector<16x16x16xf32> to vector<256x16xf32>
    %c0_11 = arith.constant 0 : index
    %c0_12 = arith.constant 0 : index
    %c0_13 = arith.constant 0 : index
    %c0_14 = arith.constant 0 : index
    %8 = vector.load %arg2[%c0_11, %c0_12, %c0_13, %c0_14] : memref<4x4x16x3xf32, #tpu.memory_space<vmem>>, vector<1x1x16x3xf32>
    %9 = vector.shape_cast %8 : vector<1x1x16x3xf32> to vector<16x3xf32>
    %cst_15 = arith.constant dense<0.000000e+00> : vector<256x3xf32>
    %10 = tpu.matmul %7, %9, %cst_15 {dimension_numbers = #tpu.dot_dimension_numbers<[1], [0], [0], [1], [0, 0, 1, 1], [], []>} : vector<256x16xf32>, vector<16x3xf32>, vector<256x3xf32> -> vector<256x3xf32>
    %11 = vector.extract_strided_slice %5 {offsets = [0, 1, 0], sizes = [16, 16, 16], strides = [1, 1, 1]} : vector<18x18x16xf32> to vector<16x16x16xf32>
    %12 = vector.shape_cast %11 : vector<16x16x16xf32> to vector<256x16xf32>
    %c0_16 = arith.constant 0 : index
    %c1_17 = arith.constant 1 : index
    %c0_18 = arith.constant 0 : index
    %c0_19 = arith.constant 0 : index
    %13 = vector.load %arg2[%c0_16, %c1_17, %c0_18, %c0_19] : memref<4x4x16x3xf32, #tpu.memory_space<vmem>>, vector<1x1x16x3xf32>
    %14 = vector.shape_cast %13 : vector<1x1x16x3xf32> to vector<16x3xf32>
    %cst_20 = arith.constant dense<0.000000e+00> : vector<256x3xf32>
    %15 = tpu.matmul %12, %14, %cst_20 {dimension_numbers = #tpu.dot_dimension_numbers<[1], [0], [0], [1], [0, 0, 1, 1], [], []>} : vector<256x16xf32>, vector<16x3xf32>, vector<256x3xf32> -> vector<256x3xf32>
    %16 = arith.addf %10, %15 : vector<256x3xf32>
    %17 = vector.extract_strided_slice %5 {offsets = [1, 0, 0], sizes = [16, 16, 16], strides = [1, 1, 1]} : vector<18x18x16xf32> to vector<16x16x16xf32>
    %18 = vector.shape_cast %17 : vector<16x16x16xf32> to vector<256x16xf32>
    %c0_21 = arith.constant 0 : index
    %c2 = arith.constant 2 : index
    %c0_22 = arith.constant 0 : index
    %c0_23 = arith.constant 0 : index
    %19 = vector.load %arg2[%c0_21, %c2, %c0_22, %c0_23] : memref<4x4x16x3xf32, #tpu.memory_space<vmem>>, vector<1x1x16x3xf32>
    %20 = vector.shape_cast %19 : vector<1x1x16x3xf32> to vector<16x3xf32>
    %cst_24 = arith.constant dense<0.000000e+00> : vector<256x3xf32>
    %21 = tpu.matmul %18, %20, %cst_24 {dimension_numbers = #tpu.dot_dimension_numbers<[1], [0], [0], [1], [0, 0, 1, 1], [], []>} : vector<256x16xf32>, vector<16x3xf32>, vector<256x3xf32> -> vector<256x3xf32>
    %22 = arith.addf %16, %21 : vector<256x3xf32>
    %23 = vector.extract_strided_slice %5 {offsets = [1, 1, 0], sizes = [16, 16, 16], strides = [1, 1, 1]} : vector<18x18x16xf32> to vector<16x16x16xf32>
    %24 = vector.shape_cast %23 : vector<16x16x16xf32> to vector<256x16xf32>
    %c0_25 = arith.constant 0 : index
    %c3 = arith.constant 3 : index
    %c0_26 = arith.constant 0 : index
    %c0_27 = arith.constant 0 : index
    %25 = vector.load %arg2[%c0_25, %c3, %c0_26, %c0_27] : memref<4x4x16x3xf32, #tpu.memory_space<vmem>>, vector<1x1x16x3xf32>
    %26 = vector.shape_cast %25 : vector<1x1x16x3xf32> to vector<16x3xf32>
    %cst_28 = arith.constant dense<0.000000e+00> : vector<256x3xf32>
    %27 = tpu.matmul %24, %26, %cst_28 {dimension_numbers = #tpu.dot_dimension_numbers<[1], [0], [0], [1], [0, 0, 1, 1], [], []>} : vector<256x16xf32>, vector<16x3xf32>, vector<256x3xf32> -> vector<256x3xf32>
    %28 = arith.addf %22, %27 : vector<256x3xf32>
    %c0_29 = arith.constant 0 : index
    %c0_30 = arith.constant 0 : index
    %29 = vector.load %arg3[%c0_29, %c0_30] : memref<1x3xf32, #tpu.memory_space<vmem>>, vector<1x3xf32>
    %30 = vector.broadcast %29 : vector<1x3xf32> to vector<256x3xf32>
    %31 = arith.addf %28, %30 : vector<256x3xf32>
    %c0_31 = arith.constant 0 : index
    %c0_32 = arith.constant 0 : index
    %c0_33 = arith.constant 0 : index
    %c0_34 = arith.constant 0 : index
    %32 = vector.load %arg4[%c0_31, %c0_32, %c0_33, %c0_34] : memref<1x4x256x3xf32, #tpu.memory_space<vmem>>, vector<1x1x256x3xf32>
    %33 = vector.shape_cast %32 : vector<1x1x256x3xf32> to vector<256x3xf32>
    %34 = vector.shape_cast %31 : vector<256x3xf32> to vector<1x1x256x3xf32>
    tpu.vector_store %arg4[%c0_31, %c0_32, %c0_33, %c0_34], %34 {strides = array<i32>} : memref<1x4x256x3xf32, #tpu.memory_space<vmem>>, vector<1x1x256x3xf32>,
    %35 = vector.extract_strided_slice %5 {offsets = [0, 1, 0], sizes = [16, 16, 16], strides = [1, 1, 1]} : vector<18x18x16xf32> to vector<16x16x16xf32>
    %36 = vector.shape_cast %35 : vector<16x16x16xf32> to vector<256x16xf32>
    %c1_35 = arith.constant 1 : index
    %c0_36 = arith.constant 0 : index
    %c0_37 = arith.constant 0 : index
    %c0_38 = arith.constant 0 : index
    %37 = vector.load %arg2[%c1_35, %c0_36, %c0_37, %c0_38] : memref<4x4x16x3xf32, #tpu.memory_space<vmem>>, vector<1x1x16x3xf32>
    %38 = vector.shape_cast %37 : vector<1x1x16x3xf32> to vector<16x3xf32>
    %cst_39 = arith.constant dense<0.000000e+00> : vector<256x3xf32>
    %39 = tpu.matmul %36, %38, %cst_39 {dimension_numbers = #tpu.dot_dimension_numbers<[1], [0], [0], [1], [0, 0, 1, 1], [], []>} : vector<256x16xf32>, vector<16x3xf32>, vector<256x3xf32> -> vector<256x3xf32>
    %40 = vector.extract_strided_slice %5 {offsets = [0, 2, 0], sizes = [16, 16, 16], strides = [1, 1, 1]} : vector<18x18x16xf32> to vector<16x16x16xf32>
    %41 = vector.shape_cast %40 : vector<16x16x16xf32> to vector<256x16xf32>
    %c1_40 = arith.constant 1 : index
    %c1_41 = arith.constant 1 : index
    %c0_42 = arith.constant 0 : index
    %c0_43 = arith.constant 0 : index
    %42 = vector.load %arg2[%c1_40, %c1_41, %c0_42, %c0_43] : memref<4x4x16x3xf32, #tpu.memory_space<vmem>>, vector<1x1x16x3xf32>
    %43 = vector.shape_cast %42 : vector<1x1x16x3xf32> to vector<16x3xf32>
    %cst_44 = arith.constant dense<0.000000e+00> : vector<256x3xf32>
    %44 = tpu.matmul %41, %43, %cst_44 {dimension_numbers = #tpu.dot_dimension_numbers<[1], [0], [0], [1], [0, 0, 1, 1], [], []>} : vector<256x16xf32>, vector<16x3xf32>, vector<256x3xf32> -> vector<256x3xf32>
    %45 = arith.addf %39, %44 : vector<256x3xf32>
    %46 = vector.extract_strided_slice %5 {offsets = [1, 1, 0], sizes = [16, 16, 16], strides = [1, 1, 1]} : vector<18x18x16xf32> to vector<16x16x16xf32>
    %47 = vector.shape_cast %46 : vector<16x16x16xf32> to vector<256x16xf32>
    %c1_45 = arith.constant 1 : index
    %c2_46 = arith.constant 2 : index
    %c0_47 = arith.constant 0 : index
    %c0_48 = arith.constant 0 : index
    %48 = vector.load %arg2[%c1_45, %c2_46, %c0_47, %c0_48] : memref<4x4x16x3xf32, #tpu.memory_space<vmem>>, vector<1x1x16x3xf32>
    %49 = vector.shape_cast %48 : vector<1x1x16x3xf32> to vector<16x3xf32>
    %cst_49 = arith.constant dense<0.000000e+00> : vector<256x3xf32>
    %50 = tpu.matmul %47, %49, %cst_49 {dimension_numbers = #tpu.dot_dimension_numbers<[1], [0], [0], [1], [0, 0, 1, 1], [], []>} : vector<256x16xf32>, vector<16x3xf32>, vector<256x3xf32> -> vector<256x3xf32>
    %51 = arith.addf %45, %50 : vector<256x3xf32>
    %52 = vector.extract_strided_slice %5 {offsets = [1, 2, 0], sizes = [16, 16, 16], strides = [1, 1, 1]} : vector<18x18x16xf32> to vector<16x16x16xf32>
    %53 = vector.shape_cast %52 : vector<16x16x16xf32> to vector<256x16xf32>
    %c1_50 = arith.constant 1 : index
    %c3_51 = arith.constant 3 : index
    %c0_52 = arith.constant 0 : index
    %c0_53 = arith.constant 0 : index
    %54 = vector.load %arg2[%c1_50, %c3_51, %c0_52, %c0_53] : memref<4x4x16x3xf32, #tpu.memory_space<vmem>>, vector<1x1x16x3xf32>
    %55 = vector.shape_cast %54 : vector<1x1x16x3xf32> to vector<16x3xf32>
    %cst_54 = arith.constant dense<0.000000e+00> : vector<256x3xf32>
    %56 = tpu.matmul %53, %55, %cst_54 {dimension_numbers = #tpu.dot_dimension_numbers<[1], [0], [0], [1], [0, 0, 1, 1], [], []>} : vector<256x16xf32>, vector<16x3xf32>, vector<256x3xf32> -> vector<256x3xf32>
    %57 = arith.addf %51, %56 : vector<256x3xf32>
    %c0_55 = arith.constant 0 : index
    %c0_56 = arith.constant 0 : index
    %58 = vector.load %arg3[%c0_55, %c0_56] : memref<1x3xf32, #tpu.memory_space<vmem>>, vector<1x3xf32>
    %59 = vector.broadcast %58 : vector<1x3xf32> to vector<256x3xf32>
    %60 = arith.addf %57, %59 : vector<256x3xf32>
    %c0_57 = arith.constant 0 : index
    %c1_58 = arith.constant 1 : index
    %c0_59 = arith.constant 0 : index
    %c0_60 = arith.constant 0 : index
    %61 = vector.load %arg4[%c0_57, %c1_58, %c0_59, %c0_60] : memref<1x4x256x3xf32, #tpu.memory_space<vmem>>, vector<1x1x256x3xf32>
    %62 = vector.shape_cast %61 : vector<1x1x256x3xf32> to vector<256x3xf32>
    %63 = vector.shape_cast %60 : vector<256x3xf32> to vector<1x1x256x3xf32>
    tpu.vector_store %arg4[%c0_57, %c1_58, %c0_59, %c0_60], %63 {strides = array<i32>} : memref<1x4x256x3xf32, #tpu.memory_space<vmem>>, vector<1x1x256x3xf32>,
    %64 = vector.extract_strided_slice %5 {offsets = [1, 0, 0], sizes = [16, 16, 16], strides = [1, 1, 1]} : vector<18x18x16xf32> to vector<16x16x16xf32>
    %65 = vector.shape_cast %64 : vector<16x16x16xf32> to vector<256x16xf32>
    %c2_61 = arith.constant 2 : index
    %c0_62 = arith.constant 0 : index
    %c0_63 = arith.constant 0 : index
    %c0_64 = arith.constant 0 : index
    %66 = vector.load %arg2[%c2_61, %c0_62, %c0_63, %c0_64] : memref<4x4x16x3xf32, #tpu.memory_space<vmem>>, vector<1x1x16x3xf32>
    %67 = vector.shape_cast %66 : vector<1x1x16x3xf32> to vector<16x3xf32>
    %cst_65 = arith.constant dense<0.000000e+00> : vector<256x3xf32>
    %68 = tpu.matmul %65, %67, %cst_65 {dimension_numbers = #tpu.dot_dimension_numbers<[1], [0], [0], [1], [0, 0, 1, 1], [], []>} : vector<256x16xf32>, vector<16x3xf32>, vector<256x3xf32> -> vector<256x3xf32>
    %69 = vector.extract_strided_slice %5 {offsets = [1, 1, 0], sizes = [16, 16, 16], strides = [1, 1, 1]} : vector<18x18x16xf32> to vector<16x16x16xf32>
    %70 = vector.shape_cast %69 : vector<16x16x16xf32> to vector<256x16xf32>
    %c2_66 = arith.constant 2 : index
    %c1_67 = arith.constant 1 : index
    %c0_68 = arith.constant 0 : index
    %c0_69 = arith.constant 0 : index
    %71 = vector.load %arg2[%c2_66, %c1_67, %c0_68, %c0_69] : memref<4x4x16x3xf32, #tpu.memory_space<vmem>>, vector<1x1x16x3xf32>
    %72 = vector.shape_cast %71 : vector<1x1x16x3xf32> to vector<16x3xf32>
    %cst_70 = arith.constant dense<0.000000e+00> : vector<256x3xf32>
    %73 = tpu.matmul %70, %72, %cst_70 {dimension_numbers = #tpu.dot_dimension_numbers<[1], [0], [0], [1], [0, 0, 1, 1], [], []>} : vector<256x16xf32>, vector<16x3xf32>, vector<256x3xf32> -> vector<256x3xf32>
    %74 = arith.addf %68, %73 : vector<256x3xf32>
    %75 = vector.extract_strided_slice %5 {offsets = [2, 0, 0], sizes = [16, 16, 16], strides = [1, 1, 1]} : vector<18x18x16xf32> to vector<16x16x16xf32>
    %76 = vector.shape_cast %75 : vector<16x16x16xf32> to vector<256x16xf32>
    %c2_71 = arith.constant 2 : index
    %c2_72 = arith.constant 2 : index
    %c0_73 = arith.constant 0 : index
    %c0_74 = arith.constant 0 : index
    %77 = vector.load %arg2[%c2_71, %c2_72, %c0_73, %c0_74] : memref<4x4x16x3xf32, #tpu.memory_space<vmem>>, vector<1x1x16x3xf32>
    %78 = vector.shape_cast %77 : vector<1x1x16x3xf32> to vector<16x3xf32>
    %cst_75 = arith.constant dense<0.000000e+00> : vector<256x3xf32>
    %79 = tpu.matmul %76, %78, %cst_75 {dimension_numbers = #tpu.dot_dimension_numbers<[1], [0], [0], [1], [0, 0, 1, 1], [], []>} : vector<256x16xf32>, vector<16x3xf32>, vector<256x3xf32> -> vector<256x3xf32>
    %80 = arith.addf %74, %79 : vector<256x3xf32>
    %81 = vector.extract_strided_slice %5 {offsets = [2, 1, 0], sizes = [16, 16, 16], strides = [1, 1, 1]} : vector<18x18x16xf32> to vector<16x16x16xf32>
    %82 = vector.shape_cast %81 : vector<16x16x16xf32> to vector<256x16xf32>
    %c2_76 = arith.constant 2 : index
    %c3_77 = arith.constant 3 : index
    %c0_78 = arith.constant 0 : index
    %c0_79 = arith.constant 0 : index
    %83 = vector.load %arg2[%c2_76, %c3_77, %c0_78, %c0_79] : memref<4x4x16x3xf32, #tpu.memory_space<vmem>>, vector<1x1x16x3xf32>
    %84 = vector.shape_cast %83 : vector<1x1x16x3xf32> to vector<16x3xf32>
    %cst_80 = arith.constant dense<0.000000e+00> : vector<256x3xf32>
    %85 = tpu.matmul %82, %84, %cst_80 {dimension_numbers = #tpu.dot_dimension_numbers<[1], [0], [0], [1], [0, 0, 1, 1], [], []>} : vector<256x16xf32>, vector<16x3xf32>, vector<256x3xf32> -> vector<256x3xf32>
    %86 = arith.addf %80, %85 : vector<256x3xf32>
    %c0_81 = arith.constant 0 : index
    %c0_82 = arith.constant 0 : index
    %87 = vector.load %arg3[%c0_81, %c0_82] : memref<1x3xf32, #tpu.memory_space<vmem>>, vector<1x3xf32>
    %88 = vector.broadcast %87 : vector<1x3xf32> to vector<256x3xf32>
    %89 = arith.addf %86, %88 : vector<256x3xf32>
    %c0_83 = arith.constant 0 : index
    %c2_84 = arith.constant 2 : index
    %c0_85 = arith.constant 0 : index
    %c0_86 = arith.constant 0 : index
    %90 = vector.load %arg4[%c0_83, %c2_84, %c0_85, %c0_86] : memref<1x4x256x3xf32, #tpu.memory_space<vmem>>, vector<1x1x256x3xf32>
    %91 = vector.shape_cast %90 : vector<1x1x256x3xf32> to vector<256x3xf32>
    %92 = vector.shape_cast %89 : vector<256x3xf32> to vector<1x1x256x3xf32>
    tpu.vector_store %arg4[%c0_83, %c2_84, %c0_85, %c0_86], %92 {strides = array<i32>} : memref<1x4x256x3xf32, #tpu.memory_space<vmem>>, vector<1x1x256x3xf32>,
    %93 = vector.extract_strided_slice %5 {offsets = [1, 1, 0], sizes = [16, 16, 16], strides = [1, 1, 1]} : vector<18x18x16xf32> to vector<16x16x16xf32>
    %94 = vector.shape_cast %93 : vector<16x16x16xf32> to vector<256x16xf32>
    %c3_87 = arith.constant 3 : index
    %c0_88 = arith.constant 0 : index
    %c0_89 = arith.constant 0 : index
    %c0_90 = arith.constant 0 : index
    %95 = vector.load %arg2[%c3_87, %c0_88, %c0_89, %c0_90] : memref<4x4x16x3xf32, #tpu.memory_space<vmem>>, vector<1x1x16x3xf32>
    %96 = vector.shape_cast %95 : vector<1x1x16x3xf32> to vector<16x3xf32>
    %cst_91 = arith.constant dense<0.000000e+00> : vector<256x3xf32>
    %97 = tpu.matmul %94, %96, %cst_91 {dimension_numbers = #tpu.dot_dimension_numbers<[1], [0], [0], [1], [0, 0, 1, 1], [], []>} : vector<256x16xf32>, vector<16x3xf32>, vector<256x3xf32> -> vector<256x3xf32>
    %98 = vector.extract_strided_slice %5 {offsets = [1, 2, 0], sizes = [16, 16, 16], strides = [1, 1, 1]} : vector<18x18x16xf32> to vector<16x16x16xf32>
    %99 = vector.shape_cast %98 : vector<16x16x16xf32> to vector<256x16xf32>
    %c3_92 = arith.constant 3 : index
    %c1_93 = arith.constant 1 : index
    %c0_94 = arith.constant 0 : index
    %c0_95 = arith.constant 0 : index
    %100 = vector.load %arg2[%c3_92, %c1_93, %c0_94, %c0_95] : memref<4x4x16x3xf32, #tpu.memory_space<vmem>>, vector<1x1x16x3xf32>
    %101 = vector.shape_cast %100 : vector<1x1x16x3xf32> to vector<16x3xf32>
    %cst_96 = arith.constant dense<0.000000e+00> : vector<256x3xf32>
    %102 = tpu.matmul %99, %101, %cst_96 {dimension_numbers = #tpu.dot_dimension_numbers<[1], [0], [0], [1], [0, 0, 1, 1], [], []>} : vector<256x16xf32>, vector<16x3xf32>, vector<256x3xf32> -> vector<256x3xf32>
    %103 = arith.addf %97, %102 : vector<256x3xf32>
    %104 = vector.extract_strided_slice %5 {offsets = [2, 1, 0], sizes = [16, 16, 16], strides = [1, 1, 1]} : vector<18x18x16xf32> to vector<16x16x16xf32>
    %105 = vector.shape_cast %104 : vector<16x16x16xf32> to vector<256x16xf32>
    %c3_97 = arith.constant 3 : index
    %c2_98 = arith.constant 2 : index
    %c0_99 = arith.constant 0 : index
    %c0_100 = arith.constant 0 : index
    %106 = vector.load %arg2[%c3_97, %c2_98, %c0_99, %c0_100] : memref<4x4x16x3xf32, #tpu.memory_space<vmem>>, vector<1x1x16x3xf32>
    %107 = vector.shape_cast %106 : vector<1x1x16x3xf32> to vector<16x3xf32>
    %cst_101 = arith.constant dense<0.000000e+00> : vector<256x3xf32>
    %108 = tpu.matmul %105, %107, %cst_101 {dimension_numbers = #tpu.dot_dimension_numbers<[1], [0], [0], [1], [0, 0, 1, 1], [], []>} : vector<256x16xf32>, vector<16x3xf32>, vector<256x3xf32> -> vector<256x3xf32>
    %109 = arith.addf %103, %108 : vector<256x3xf32>
    %110 = vector.extract_strided_slice %5 {offsets = [2, 2, 0], sizes = [16, 16, 16], strides = [1, 1, 1]} : vector<18x18x16xf32> to vector<16x16x16xf32>
    %111 = vector.shape_cast %110 : vector<16x16x16xf32> to vector<256x16xf32>
    %c3_102 = arith.constant 3 : index
    %c3_103 = arith.constant 3 : index
    %c0_104 = arith.constant 0 : index
    %c0_105 = arith.constant 0 : index
    %112 = vector.load %arg2[%c3_102, %c3_103, %c0_104, %c0_105] : memref<4x4x16x3xf32, #tpu.memory_space<vmem>>, vector<1x1x16x3xf32>
    %113 = vector.shape_cast %112 : vector<1x1x16x3xf32> to vector<16x3xf32>
    %cst_106 = arith.constant dense<0.000000e+00> : vector<256x3xf32>
    %114 = tpu.matmul %111, %113, %cst_106 {dimension_numbers = #tpu.dot_dimension_numbers<[1], [0], [0], [1], [0, 0, 1, 1], [], []>} : vector<256x16xf32>, vector<16x3xf32>, vector<256x3xf32> -> vector<256x3xf32>
    %115 = arith.addf %109, %114 : vector<256x3xf32>
    %c0_107 = arith.constant 0 : index
    %c0_108 = arith.constant 0 : index
    %116 = vector.load %arg3[%c0_107, %c0_108] : memref<1x3xf32, #tpu.memory_space<vmem>>, vector<1x3xf32>
    %117 = vector.broadcast %116 : vector<1x3xf32> to vector<256x3xf32>
    %118 = arith.addf %115, %117 : vector<256x3xf32>
    %c0_109 = arith.constant 0 : index
    %c3_110 = arith.constant 3 : index
    %c0_111 = arith.constant 0 : index
    %c0_112 = arith.constant 0 : index
    %119 = vector.load %arg4[%c0_109, %c3_110, %c0_111, %c0_112] : memref<1x4x256x3xf32, #tpu.memory_space<vmem>>, vector<1x1x256x3xf32>
    %120 = vector.shape_cast %119 : vector<1x1x256x3xf32> to vector<256x3xf32>
    %121 = vector.shape_cast %118 : vector<256x3xf32> to vector<1x1x256x3xf32>
    tpu.vector_store %arg4[%c0_109, %c3_110, %c0_111, %c0_112], %121 {strides = array<i32>} : memref<1x4x256x3xf32, #tpu.memory_space<vmem>>, vector<1x1x256x3xf32>,
    return
  }
  func.func @transform_0(%arg0: i32) -> (i32, i32, i32, i32) {
    %c0_i32 = arith.constant 0 : i32
    %c0_i32_0 = arith.constant 0 : i32
    %c0_i32_1 = arith.constant 0 : i32
    %c0_i32_2 = arith.constant 0 : i32
    return %arg0, %c0_i32, %c0_i32_0, %c0_i32_1 : i32, i32, i32, i32
  }
  func.func @transform_1(%arg0: i32) -> (i32, i32, i32, i32) {
    %c0_i32 = arith.constant 0 : i32
    %c0_i32_0 = arith.constant 0 : i32
    %c0_i32_1 = arith.constant 0 : i32
    %c0_i32_2 = arith.constant 0 : i32
    %c0_i32_3 = arith.constant 0 : i32
    return %c0_i32, %c0_i32_0, %c0_i32_1, %c0_i32_2 : i32, i32, i32, i32
  }
  func.func @transform_2(%arg0: i32) -> (i32, i32) {
    %c0_i32 = arith.constant 0 : i32
    %c0_i32_0 = arith.constant 0 : i32
    %c0_i32_1 = arith.constant 0 : i32
    return %c0_i32, %c0_i32_0 : i32, i32
  }
  func.func @transform_3(%arg0: i32) -> (i32, i32, i32, i32) {
    %c0_i32 = arith.constant 0 : i32
    %c0_i32_0 = arith.constant 0 : i32
    %c0_i32_1 = arith.constant 0 : i32
    %c0_i32_2 = arith.constant 0 : i32
    return %arg0, %c0_i32, %c0_i32_0, %c0_i32_1 : i32, i32, i32, i32
  }
}

module attributes {stable_mosaic.version = 11 : i64} {
  func.func @_stage1_kernel(%arg0: i32, %arg1: memref<1x8x8x4xf32, #tpu.memory_space<vmem>>, %arg2: memref<9x4x32xf32, #tpu.memory_space<vmem>>, %arg3: memref<1x32xf32, #tpu.memory_space<vmem>>, %arg4: memref<2x9x32x8xf32, #tpu.memory_space<vmem>>, %arg5: memref<2x8x32xf32, #tpu.memory_space<vmem>>, %arg6: memref<4x4x32x16xf32, #tpu.memory_space<vmem>>, %arg7: memref<1x16xf32, #tpu.memory_space<vmem>>, %arg8: memref<1x4x64x16xf32, #tpu.memory_space<vmem>>, %arg9: memref<10x10x4xf32, #tpu.memory_space<vmem>>, %arg10: memref<10x10x32xf32, #tpu.memory_space<vmem>>) attributes {dimension_semantics = [#tpu.dimension_semantics<parallel>], iteration_bounds = array<i64: 2>, scalar_prefetch = 0 : i64, scratch_operands = 2 : i64, tpu.core_type = #tpu.core_type<tc>, window_params = [{transform_indices = @transform_0, window_bounds = array<i64: 1, 8, 8, 4>}, {pipeline_mode = #tpu.pipeline_mode<synchronous>, transform_indices = @transform_1, window_bounds = array<i64: 9, 4, 32>}, {pipeline_mode = #tpu.pipeline_mode<synchronous>, transform_indices = @transform_2, window_bounds = array<i64: 1, 32>}, {pipeline_mode = #tpu.pipeline_mode<synchronous>, transform_indices = @transform_3, window_bounds = array<i64: 2, 9, 32, 8>}, {pipeline_mode = #tpu.pipeline_mode<synchronous>, transform_indices = @transform_4, window_bounds = array<i64: 2, 8, 32>}, {pipeline_mode = #tpu.pipeline_mode<synchronous>, transform_indices = @transform_5, window_bounds = array<i64: 4, 4, 32, 16>}, {pipeline_mode = #tpu.pipeline_mode<synchronous>, transform_indices = @transform_6, window_bounds = array<i64: 1, 16>}, {transform_indices = @transform_7, window_bounds = array<i64: 1, 4, 64, 16>}]} {
    %cst = arith.constant 0.000000e+00 : f32
    %0 = vector.broadcast %cst : f32 to vector<10x10x4xf32>
    %c0 = arith.constant 0 : index
    %c0_0 = arith.constant 0 : index
    %c0_1 = arith.constant 0 : index
    %1 = vector.load %arg9[%c0, %c0_0, %c0_1] : memref<10x10x4xf32, #tpu.memory_space<vmem>>, vector<10x10x4xf32>
    tpu.vector_store %arg9[%c0, %c0_0, %c0_1], %0 {strides = array<i32>} : memref<10x10x4xf32, #tpu.memory_space<vmem>>, vector<10x10x4xf32>,
    %cst_2 = arith.constant 0.000000e+00 : f32
    %2 = vector.broadcast %cst_2 : f32 to vector<10x10x32xf32>
    %c0_3 = arith.constant 0 : index
    %c0_4 = arith.constant 0 : index
    %c0_5 = arith.constant 0 : index
    %3 = vector.load %arg10[%c0_3, %c0_4, %c0_5] : memref<10x10x32xf32, #tpu.memory_space<vmem>>, vector<10x10x32xf32>
    tpu.vector_store %arg10[%c0_3, %c0_4, %c0_5], %2 {strides = array<i32>} : memref<10x10x32xf32, #tpu.memory_space<vmem>>, vector<10x10x32xf32>,
    %c0_6 = arith.constant 0 : index
    %c0_7 = arith.constant 0 : index
    %c0_8 = arith.constant 0 : index
    %c0_9 = arith.constant 0 : index
    %4 = vector.load %arg1[%c0_6, %c0_7, %c0_8, %c0_9] : memref<1x8x8x4xf32, #tpu.memory_space<vmem>>, vector<1x8x8x4xf32>
    %5 = vector.shape_cast %4 : vector<1x8x8x4xf32> to vector<8x8x4xf32>
    %c1 = arith.constant 1 : index
    %c1_10 = arith.constant 1 : index
    %c0_11 = arith.constant 0 : index
    %6 = vector.load %arg9[%c1, %c1_10, %c0_11] : memref<10x10x4xf32, #tpu.memory_space<vmem>>, vector<8x8x4xf32>
    tpu.vector_store %arg9[%c1, %c1_10, %c0_11], %5 {strides = array<i32>} : memref<10x10x4xf32, #tpu.memory_space<vmem>>, vector<8x8x4xf32>,
    %c0_12 = arith.constant 0 : index
    %c0_13 = arith.constant 0 : index
    %c0_14 = arith.constant 0 : index
    %7 = vector.load %arg9[%c0_12, %c0_13, %c0_14] : memref<10x10x4xf32, #tpu.memory_space<vmem>>, vector<10x10x4xf32>
    %8 = vector.extract_strided_slice %7 {offsets = [0, 0, 0], sizes = [8, 8, 4], strides = [1, 1, 1]} : vector<10x10x4xf32> to vector<8x8x4xf32>
    %9 = vector.shape_cast %8 : vector<8x8x4xf32> to vector<64x4xf32>
    %c0_15 = arith.constant 0 : index
    %c0_16 = arith.constant 0 : index
    %c0_17 = arith.constant 0 : index
    %10 = vector.load %arg2[%c0_15, %c0_16, %c0_17] : memref<9x4x32xf32, #tpu.memory_space<vmem>>, vector<1x4x32xf32>
    %11 = vector.shape_cast %10 : vector<1x4x32xf32> to vector<4x32xf32>
    %cst_18 = arith.constant dense<0.000000e+00> : vector<64x32xf32>
    %12 = tpu.matmul %9, %11, %cst_18 {dimension_numbers = #tpu.dot_dimension_numbers<[1], [0], [0], [1], [0, 0, 1, 1], [], []>} : vector<64x4xf32>, vector<4x32xf32>, vector<64x32xf32> -> vector<64x32xf32>
    %13 = vector.extract_strided_slice %7 {offsets = [0, 1, 0], sizes = [8, 8, 4], strides = [1, 1, 1]} : vector<10x10x4xf32> to vector<8x8x4xf32>
    %14 = vector.shape_cast %13 : vector<8x8x4xf32> to vector<64x4xf32>
    %c1_19 = arith.constant 1 : index
    %c0_20 = arith.constant 0 : index
    %c0_21 = arith.constant 0 : index
    %15 = vector.load %arg2[%c1_19, %c0_20, %c0_21] : memref<9x4x32xf32, #tpu.memory_space<vmem>>, vector<1x4x32xf32>
    %16 = vector.shape_cast %15 : vector<1x4x32xf32> to vector<4x32xf32>
    %cst_22 = arith.constant dense<0.000000e+00> : vector<64x32xf32>
    %17 = tpu.matmul %14, %16, %cst_22 {dimension_numbers = #tpu.dot_dimension_numbers<[1], [0], [0], [1], [0, 0, 1, 1], [], []>} : vector<64x4xf32>, vector<4x32xf32>, vector<64x32xf32> -> vector<64x32xf32>
    %18 = arith.addf %12, %17 : vector<64x32xf32>
    %19 = vector.extract_strided_slice %7 {offsets = [0, 2, 0], sizes = [8, 8, 4], strides = [1, 1, 1]} : vector<10x10x4xf32> to vector<8x8x4xf32>
    %20 = vector.shape_cast %19 : vector<8x8x4xf32> to vector<64x4xf32>
    %c2 = arith.constant 2 : index
    %c0_23 = arith.constant 0 : index
    %c0_24 = arith.constant 0 : index
    %21 = vector.load %arg2[%c2, %c0_23, %c0_24] : memref<9x4x32xf32, #tpu.memory_space<vmem>>, vector<1x4x32xf32>
    %22 = vector.shape_cast %21 : vector<1x4x32xf32> to vector<4x32xf32>
    %cst_25 = arith.constant dense<0.000000e+00> : vector<64x32xf32>
    %23 = tpu.matmul %20, %22, %cst_25 {dimension_numbers = #tpu.dot_dimension_numbers<[1], [0], [0], [1], [0, 0, 1, 1], [], []>} : vector<64x4xf32>, vector<4x32xf32>, vector<64x32xf32> -> vector<64x32xf32>
    %24 = arith.addf %18, %23 : vector<64x32xf32>
    %25 = vector.extract_strided_slice %7 {offsets = [1, 0, 0], sizes = [8, 8, 4], strides = [1, 1, 1]} : vector<10x10x4xf32> to vector<8x8x4xf32>
    %26 = vector.shape_cast %25 : vector<8x8x4xf32> to vector<64x4xf32>
    %c3 = arith.constant 3 : index
    %c0_26 = arith.constant 0 : index
    %c0_27 = arith.constant 0 : index
    %27 = vector.load %arg2[%c3, %c0_26, %c0_27] : memref<9x4x32xf32, #tpu.memory_space<vmem>>, vector<1x4x32xf32>
    %28 = vector.shape_cast %27 : vector<1x4x32xf32> to vector<4x32xf32>
    %cst_28 = arith.constant dense<0.000000e+00> : vector<64x32xf32>
    %29 = tpu.matmul %26, %28, %cst_28 {dimension_numbers = #tpu.dot_dimension_numbers<[1], [0], [0], [1], [0, 0, 1, 1], [], []>} : vector<64x4xf32>, vector<4x32xf32>, vector<64x32xf32> -> vector<64x32xf32>
    %30 = arith.addf %24, %29 : vector<64x32xf32>
    %31 = vector.extract_strided_slice %7 {offsets = [1, 1, 0], sizes = [8, 8, 4], strides = [1, 1, 1]} : vector<10x10x4xf32> to vector<8x8x4xf32>
    %32 = vector.shape_cast %31 : vector<8x8x4xf32> to vector<64x4xf32>
    %c4 = arith.constant 4 : index
    %c0_29 = arith.constant 0 : index
    %c0_30 = arith.constant 0 : index
    %33 = vector.load %arg2[%c4, %c0_29, %c0_30] : memref<9x4x32xf32, #tpu.memory_space<vmem>>, vector<1x4x32xf32>
    %34 = vector.shape_cast %33 : vector<1x4x32xf32> to vector<4x32xf32>
    %cst_31 = arith.constant dense<0.000000e+00> : vector<64x32xf32>
    %35 = tpu.matmul %32, %34, %cst_31 {dimension_numbers = #tpu.dot_dimension_numbers<[1], [0], [0], [1], [0, 0, 1, 1], [], []>} : vector<64x4xf32>, vector<4x32xf32>, vector<64x32xf32> -> vector<64x32xf32>
    %36 = arith.addf %30, %35 : vector<64x32xf32>
    %37 = vector.extract_strided_slice %7 {offsets = [1, 2, 0], sizes = [8, 8, 4], strides = [1, 1, 1]} : vector<10x10x4xf32> to vector<8x8x4xf32>
    %38 = vector.shape_cast %37 : vector<8x8x4xf32> to vector<64x4xf32>
    %c5 = arith.constant 5 : index
    %c0_32 = arith.constant 0 : index
    %c0_33 = arith.constant 0 : index
    %39 = vector.load %arg2[%c5, %c0_32, %c0_33] : memref<9x4x32xf32, #tpu.memory_space<vmem>>, vector<1x4x32xf32>
    %40 = vector.shape_cast %39 : vector<1x4x32xf32> to vector<4x32xf32>
    %cst_34 = arith.constant dense<0.000000e+00> : vector<64x32xf32>
    %41 = tpu.matmul %38, %40, %cst_34 {dimension_numbers = #tpu.dot_dimension_numbers<[1], [0], [0], [1], [0, 0, 1, 1], [], []>} : vector<64x4xf32>, vector<4x32xf32>, vector<64x32xf32> -> vector<64x32xf32>
    %42 = arith.addf %36, %41 : vector<64x32xf32>
    %43 = vector.extract_strided_slice %7 {offsets = [2, 0, 0], sizes = [8, 8, 4], strides = [1, 1, 1]} : vector<10x10x4xf32> to vector<8x8x4xf32>
    %44 = vector.shape_cast %43 : vector<8x8x4xf32> to vector<64x4xf32>
    %c6 = arith.constant 6 : index
    %c0_35 = arith.constant 0 : index
    %c0_36 = arith.constant 0 : index
    %45 = vector.load %arg2[%c6, %c0_35, %c0_36] : memref<9x4x32xf32, #tpu.memory_space<vmem>>, vector<1x4x32xf32>
    %46 = vector.shape_cast %45 : vector<1x4x32xf32> to vector<4x32xf32>
    %cst_37 = arith.constant dense<0.000000e+00> : vector<64x32xf32>
    %47 = tpu.matmul %44, %46, %cst_37 {dimension_numbers = #tpu.dot_dimension_numbers<[1], [0], [0], [1], [0, 0, 1, 1], [], []>} : vector<64x4xf32>, vector<4x32xf32>, vector<64x32xf32> -> vector<64x32xf32>
    %48 = arith.addf %42, %47 : vector<64x32xf32>
    %49 = vector.extract_strided_slice %7 {offsets = [2, 1, 0], sizes = [8, 8, 4], strides = [1, 1, 1]} : vector<10x10x4xf32> to vector<8x8x4xf32>
    %50 = vector.shape_cast %49 : vector<8x8x4xf32> to vector<64x4xf32>
    %c7 = arith.constant 7 : index
    %c0_38 = arith.constant 0 : index
    %c0_39 = arith.constant 0 : index
    %51 = vector.load %arg2[%c7, %c0_38, %c0_39] : memref<9x4x32xf32, #tpu.memory_space<vmem>>, vector<1x4x32xf32>
    %52 = vector.shape_cast %51 : vector<1x4x32xf32> to vector<4x32xf32>
    %cst_40 = arith.constant dense<0.000000e+00> : vector<64x32xf32>
    %53 = tpu.matmul %50, %52, %cst_40 {dimension_numbers = #tpu.dot_dimension_numbers<[1], [0], [0], [1], [0, 0, 1, 1], [], []>} : vector<64x4xf32>, vector<4x32xf32>, vector<64x32xf32> -> vector<64x32xf32>
    %54 = arith.addf %48, %53 : vector<64x32xf32>
    %55 = vector.extract_strided_slice %7 {offsets = [2, 2, 0], sizes = [8, 8, 4], strides = [1, 1, 1]} : vector<10x10x4xf32> to vector<8x8x4xf32>
    %56 = vector.shape_cast %55 : vector<8x8x4xf32> to vector<64x4xf32>
    %c8 = arith.constant 8 : index
    %c0_41 = arith.constant 0 : index
    %c0_42 = arith.constant 0 : index
    %57 = vector.load %arg2[%c8, %c0_41, %c0_42] : memref<9x4x32xf32, #tpu.memory_space<vmem>>, vector<1x4x32xf32>
    %58 = vector.shape_cast %57 : vector<1x4x32xf32> to vector<4x32xf32>
    %cst_43 = arith.constant dense<0.000000e+00> : vector<64x32xf32>
    %59 = tpu.matmul %56, %58, %cst_43 {dimension_numbers = #tpu.dot_dimension_numbers<[1], [0], [0], [1], [0, 0, 1, 1], [], []>} : vector<64x4xf32>, vector<4x32xf32>, vector<64x32xf32> -> vector<64x32xf32>
    %60 = arith.addf %54, %59 : vector<64x32xf32>
    %c0_44 = arith.constant 0 : index
    %c0_45 = arith.constant 0 : index
    %61 = vector.load %arg3[%c0_44, %c0_45] : memref<1x32xf32, #tpu.memory_space<vmem>>, vector<1x32xf32>
    %62 = vector.broadcast %61 : vector<1x32xf32> to vector<64x32xf32>
    %63 = arith.addf %60, %62 : vector<64x32xf32>
    %cst_46 = arith.constant 0.000000e+00 : f32
    %64 = vector.broadcast %cst_46 : f32 to vector<64x32xf32>
    %65 = arith.maximumf %63, %64 : vector<64x32xf32>
    %66 = vector.shape_cast %65 : vector<64x32xf32> to vector<8x8x32xf32>
    %c1_47 = arith.constant 1 : index
    %c1_48 = arith.constant 1 : index
    %c0_49 = arith.constant 0 : index
    %67 = vector.load %arg10[%c1_47, %c1_48, %c0_49] : memref<10x10x32xf32, #tpu.memory_space<vmem>>, vector<8x8x32xf32>
    tpu.vector_store %arg10[%c1_47, %c1_48, %c0_49], %66 {strides = array<i32>} : memref<10x10x32xf32, #tpu.memory_space<vmem>>, vector<8x8x32xf32>,
    %c0_50 = arith.constant 0 : index
    %c0_51 = arith.constant 0 : index
    %c0_52 = arith.constant 0 : index
    %68 = vector.load %arg10[%c0_50, %c0_51, %c0_52] : memref<10x10x32xf32, #tpu.memory_space<vmem>>, vector<10x10x32xf32>
    %69 = vector.extract_strided_slice %68 {offsets = [0, 0, 0], sizes = [8, 8, 32], strides = [1, 1, 1]} : vector<10x10x32xf32> to vector<8x8x32xf32>
    %70 = vector.shape_cast %69 : vector<8x8x32xf32> to vector<64x32xf32>
    %c0_53 = arith.constant 0 : index
    %c0_54 = arith.constant 0 : index
    %c0_55 = arith.constant 0 : index
    %c0_56 = arith.constant 0 : index
    %71 = vector.load %arg4[%c0_53, %c0_54, %c0_55, %c0_56] : memref<2x9x32x8xf32, #tpu.memory_space<vmem>>, vector<1x1x32x8xf32>
    %72 = vector.shape_cast %71 : vector<1x1x32x8xf32> to vector<32x8xf32>
    %cst_57 = arith.constant dense<0.000000e+00> : vector<64x8xf32>
    %73 = tpu.matmul %70, %72, %cst_57 {dimension_numbers = #tpu.dot_dimension_numbers<[1], [0], [0], [1], [0, 0, 1, 1], [], []>} : vector<64x32xf32>, vector<32x8xf32>, vector<64x8xf32> -> vector<64x8xf32>
    %74 = vector.extract_strided_slice %68 {offsets = [0, 1, 0], sizes = [8, 8, 32], strides = [1, 1, 1]} : vector<10x10x32xf32> to vector<8x8x32xf32>
    %75 = vector.shape_cast %74 : vector<8x8x32xf32> to vector<64x32xf32>
    %c0_58 = arith.constant 0 : index
    %c1_59 = arith.constant 1 : index
    %c0_60 = arith.constant 0 : index
    %c0_61 = arith.constant 0 : index
    %76 = vector.load %arg4[%c0_58, %c1_59, %c0_60, %c0_61] : memref<2x9x32x8xf32, #tpu.memory_space<vmem>>, vector<1x1x32x8xf32>
    %77 = vector.shape_cast %76 : vector<1x1x32x8xf32> to vector<32x8xf32>
    %cst_62 = arith.constant dense<0.000000e+00> : vector<64x8xf32>
    %78 = tpu.matmul %75, %77, %cst_62 {dimension_numbers = #tpu.dot_dimension_numbers<[1], [0], [0], [1], [0, 0, 1, 1], [], []>} : vector<64x32xf32>, vector<32x8xf32>, vector<64x8xf32> -> vector<64x8xf32>
    %79 = arith.addf %73, %78 : vector<64x8xf32>
    %80 = vector.extract_strided_slice %68 {offsets = [0, 2, 0], sizes = [8, 8, 32], strides = [1, 1, 1]} : vector<10x10x32xf32> to vector<8x8x32xf32>
    %81 = vector.shape_cast %80 : vector<8x8x32xf32> to vector<64x32xf32>
    %c0_63 = arith.constant 0 : index
    %c2_64 = arith.constant 2 : index
    %c0_65 = arith.constant 0 : index
    %c0_66 = arith.constant 0 : index
    %82 = vector.load %arg4[%c0_63, %c2_64, %c0_65, %c0_66] : memref<2x9x32x8xf32, #tpu.memory_space<vmem>>, vector<1x1x32x8xf32>
    %83 = vector.shape_cast %82 : vector<1x1x32x8xf32> to vector<32x8xf32>
    %cst_67 = arith.constant dense<0.000000e+00> : vector<64x8xf32>
    %84 = tpu.matmul %81, %83, %cst_67 {dimension_numbers = #tpu.dot_dimension_numbers<[1], [0], [0], [1], [0, 0, 1, 1], [], []>} : vector<64x32xf32>, vector<32x8xf32>, vector<64x8xf32> -> vector<64x8xf32>
    %85 = arith.addf %79, %84 : vector<64x8xf32>
    %86 = vector.extract_strided_slice %68 {offsets = [1, 0, 0], sizes = [8, 8, 32], strides = [1, 1, 1]} : vector<10x10x32xf32> to vector<8x8x32xf32>
    %87 = vector.shape_cast %86 : vector<8x8x32xf32> to vector<64x32xf32>
    %c0_68 = arith.constant 0 : index
    %c3_69 = arith.constant 3 : index
    %c0_70 = arith.constant 0 : index
    %c0_71 = arith.constant 0 : index
    %88 = vector.load %arg4[%c0_68, %c3_69, %c0_70, %c0_71] : memref<2x9x32x8xf32, #tpu.memory_space<vmem>>, vector<1x1x32x8xf32>
    %89 = vector.shape_cast %88 : vector<1x1x32x8xf32> to vector<32x8xf32>
    %cst_72 = arith.constant dense<0.000000e+00> : vector<64x8xf32>
    %90 = tpu.matmul %87, %89, %cst_72 {dimension_numbers = #tpu.dot_dimension_numbers<[1], [0], [0], [1], [0, 0, 1, 1], [], []>} : vector<64x32xf32>, vector<32x8xf32>, vector<64x8xf32> -> vector<64x8xf32>
    %91 = arith.addf %85, %90 : vector<64x8xf32>
    %92 = vector.extract_strided_slice %68 {offsets = [1, 1, 0], sizes = [8, 8, 32], strides = [1, 1, 1]} : vector<10x10x32xf32> to vector<8x8x32xf32>
    %93 = vector.shape_cast %92 : vector<8x8x32xf32> to vector<64x32xf32>
    %c0_73 = arith.constant 0 : index
    %c4_74 = arith.constant 4 : index
    %c0_75 = arith.constant 0 : index
    %c0_76 = arith.constant 0 : index
    %94 = vector.load %arg4[%c0_73, %c4_74, %c0_75, %c0_76] : memref<2x9x32x8xf32, #tpu.memory_space<vmem>>, vector<1x1x32x8xf32>
    %95 = vector.shape_cast %94 : vector<1x1x32x8xf32> to vector<32x8xf32>
    %cst_77 = arith.constant dense<0.000000e+00> : vector<64x8xf32>
    %96 = tpu.matmul %93, %95, %cst_77 {dimension_numbers = #tpu.dot_dimension_numbers<[1], [0], [0], [1], [0, 0, 1, 1], [], []>} : vector<64x32xf32>, vector<32x8xf32>, vector<64x8xf32> -> vector<64x8xf32>
    %97 = arith.addf %91, %96 : vector<64x8xf32>
    %98 = vector.extract_strided_slice %68 {offsets = [1, 2, 0], sizes = [8, 8, 32], strides = [1, 1, 1]} : vector<10x10x32xf32> to vector<8x8x32xf32>
    %99 = vector.shape_cast %98 : vector<8x8x32xf32> to vector<64x32xf32>
    %c0_78 = arith.constant 0 : index
    %c5_79 = arith.constant 5 : index
    %c0_80 = arith.constant 0 : index
    %c0_81 = arith.constant 0 : index
    %100 = vector.load %arg4[%c0_78, %c5_79, %c0_80, %c0_81] : memref<2x9x32x8xf32, #tpu.memory_space<vmem>>, vector<1x1x32x8xf32>
    %101 = vector.shape_cast %100 : vector<1x1x32x8xf32> to vector<32x8xf32>
    %cst_82 = arith.constant dense<0.000000e+00> : vector<64x8xf32>
    %102 = tpu.matmul %99, %101, %cst_82 {dimension_numbers = #tpu.dot_dimension_numbers<[1], [0], [0], [1], [0, 0, 1, 1], [], []>} : vector<64x32xf32>, vector<32x8xf32>, vector<64x8xf32> -> vector<64x8xf32>
    %103 = arith.addf %97, %102 : vector<64x8xf32>
    %104 = vector.extract_strided_slice %68 {offsets = [2, 0, 0], sizes = [8, 8, 32], strides = [1, 1, 1]} : vector<10x10x32xf32> to vector<8x8x32xf32>
    %105 = vector.shape_cast %104 : vector<8x8x32xf32> to vector<64x32xf32>
    %c0_83 = arith.constant 0 : index
    %c6_84 = arith.constant 6 : index
    %c0_85 = arith.constant 0 : index
    %c0_86 = arith.constant 0 : index
    %106 = vector.load %arg4[%c0_83, %c6_84, %c0_85, %c0_86] : memref<2x9x32x8xf32, #tpu.memory_space<vmem>>, vector<1x1x32x8xf32>
    %107 = vector.shape_cast %106 : vector<1x1x32x8xf32> to vector<32x8xf32>
    %cst_87 = arith.constant dense<0.000000e+00> : vector<64x8xf32>
    %108 = tpu.matmul %105, %107, %cst_87 {dimension_numbers = #tpu.dot_dimension_numbers<[1], [0], [0], [1], [0, 0, 1, 1], [], []>} : vector<64x32xf32>, vector<32x8xf32>, vector<64x8xf32> -> vector<64x8xf32>
    %109 = arith.addf %103, %108 : vector<64x8xf32>
    %110 = vector.extract_strided_slice %68 {offsets = [2, 1, 0], sizes = [8, 8, 32], strides = [1, 1, 1]} : vector<10x10x32xf32> to vector<8x8x32xf32>
    %111 = vector.shape_cast %110 : vector<8x8x32xf32> to vector<64x32xf32>
    %c0_88 = arith.constant 0 : index
    %c7_89 = arith.constant 7 : index
    %c0_90 = arith.constant 0 : index
    %c0_91 = arith.constant 0 : index
    %112 = vector.load %arg4[%c0_88, %c7_89, %c0_90, %c0_91] : memref<2x9x32x8xf32, #tpu.memory_space<vmem>>, vector<1x1x32x8xf32>
    %113 = vector.shape_cast %112 : vector<1x1x32x8xf32> to vector<32x8xf32>
    %cst_92 = arith.constant dense<0.000000e+00> : vector<64x8xf32>
    %114 = tpu.matmul %111, %113, %cst_92 {dimension_numbers = #tpu.dot_dimension_numbers<[1], [0], [0], [1], [0, 0, 1, 1], [], []>} : vector<64x32xf32>, vector<32x8xf32>, vector<64x8xf32> -> vector<64x8xf32>
    %115 = arith.addf %109, %114 : vector<64x8xf32>
    %116 = vector.extract_strided_slice %68 {offsets = [2, 2, 0], sizes = [8, 8, 32], strides = [1, 1, 1]} : vector<10x10x32xf32> to vector<8x8x32xf32>
    %117 = vector.shape_cast %116 : vector<8x8x32xf32> to vector<64x32xf32>
    %c0_93 = arith.constant 0 : index
    %c8_94 = arith.constant 8 : index
    %c0_95 = arith.constant 0 : index
    %c0_96 = arith.constant 0 : index
    %118 = vector.load %arg4[%c0_93, %c8_94, %c0_95, %c0_96] : memref<2x9x32x8xf32, #tpu.memory_space<vmem>>, vector<1x1x32x8xf32>
    %119 = vector.shape_cast %118 : vector<1x1x32x8xf32> to vector<32x8xf32>
    %cst_97 = arith.constant dense<0.000000e+00> : vector<64x8xf32>
    %120 = tpu.matmul %117, %119, %cst_97 {dimension_numbers = #tpu.dot_dimension_numbers<[1], [0], [0], [1], [0, 0, 1, 1], [], []>} : vector<64x32xf32>, vector<32x8xf32>, vector<64x8xf32> -> vector<64x8xf32>
    %121 = arith.addf %115, %120 : vector<64x8xf32>
    %cst_98 = arith.constant 0.000000e+00 : f32
    %122 = vector.broadcast %cst_98 : f32 to vector<64x8xf32>
    %123 = arith.maximumf %121, %122 : vector<64x8xf32>
    %c0_99 = arith.constant 0 : index
    %c0_100 = arith.constant 0 : index
    %c0_101 = arith.constant 0 : index
    %124 = vector.load %arg5[%c0_99, %c0_100, %c0_101] : memref<2x8x32xf32, #tpu.memory_space<vmem>>, vector<1x8x32xf32>
    %125 = vector.shape_cast %124 : vector<1x8x32xf32> to vector<8x32xf32>
    %cst_102 = arith.constant dense<0.000000e+00> : vector<64x32xf32>
    %126 = tpu.matmul %123, %125, %cst_102 {dimension_numbers = #tpu.dot_dimension_numbers<[1], [0], [0], [1], [0, 0, 1, 1], [], []>} : vector<64x8xf32>, vector<8x32xf32>, vector<64x32xf32> -> vector<64x32xf32>
    %127 = arith.addf %63, %126 : vector<64x32xf32>
    %cst_103 = arith.constant 0.000000e+00 : f32
    %128 = vector.broadcast %cst_103 : f32 to vector<64x32xf32>
    %129 = arith.maximumf %127, %128 : vector<64x32xf32>
    %130 = vector.shape_cast %129 : vector<64x32xf32> to vector<8x8x32xf32>
    %c1_104 = arith.constant 1 : index
    %c1_105 = arith.constant 1 : index
    %c0_106 = arith.constant 0 : index
    %131 = vector.load %arg10[%c1_104, %c1_105, %c0_106] : memref<10x10x32xf32, #tpu.memory_space<vmem>>, vector<8x8x32xf32>
    tpu.vector_store %arg10[%c1_104, %c1_105, %c0_106], %130 {strides = array<i32>} : memref<10x10x32xf32, #tpu.memory_space<vmem>>, vector<8x8x32xf32>,
    %c0_107 = arith.constant 0 : index
    %c0_108 = arith.constant 0 : index
    %c0_109 = arith.constant 0 : index
    %132 = vector.load %arg10[%c0_107, %c0_108, %c0_109] : memref<10x10x32xf32, #tpu.memory_space<vmem>>, vector<10x10x32xf32>
    %133 = vector.extract_strided_slice %132 {offsets = [0, 0, 0], sizes = [8, 8, 32], strides = [1, 1, 1]} : vector<10x10x32xf32> to vector<8x8x32xf32>
    %134 = vector.shape_cast %133 : vector<8x8x32xf32> to vector<64x32xf32>
    %c1_110 = arith.constant 1 : index
    %c0_111 = arith.constant 0 : index
    %c0_112 = arith.constant 0 : index
    %c0_113 = arith.constant 0 : index
    %135 = vector.load %arg4[%c1_110, %c0_111, %c0_112, %c0_113] : memref<2x9x32x8xf32, #tpu.memory_space<vmem>>, vector<1x1x32x8xf32>
    %136 = vector.shape_cast %135 : vector<1x1x32x8xf32> to vector<32x8xf32>
    %cst_114 = arith.constant dense<0.000000e+00> : vector<64x8xf32>
    %137 = tpu.matmul %134, %136, %cst_114 {dimension_numbers = #tpu.dot_dimension_numbers<[1], [0], [0], [1], [0, 0, 1, 1], [], []>} : vector<64x32xf32>, vector<32x8xf32>, vector<64x8xf32> -> vector<64x8xf32>
    %138 = vector.extract_strided_slice %132 {offsets = [0, 1, 0], sizes = [8, 8, 32], strides = [1, 1, 1]} : vector<10x10x32xf32> to vector<8x8x32xf32>
    %139 = vector.shape_cast %138 : vector<8x8x32xf32> to vector<64x32xf32>
    %c1_115 = arith.constant 1 : index
    %c1_116 = arith.constant 1 : index
    %c0_117 = arith.constant 0 : index
    %c0_118 = arith.constant 0 : index
    %140 = vector.load %arg4[%c1_115, %c1_116, %c0_117, %c0_118] : memref<2x9x32x8xf32, #tpu.memory_space<vmem>>, vector<1x1x32x8xf32>
    %141 = vector.shape_cast %140 : vector<1x1x32x8xf32> to vector<32x8xf32>
    %cst_119 = arith.constant dense<0.000000e+00> : vector<64x8xf32>
    %142 = tpu.matmul %139, %141, %cst_119 {dimension_numbers = #tpu.dot_dimension_numbers<[1], [0], [0], [1], [0, 0, 1, 1], [], []>} : vector<64x32xf32>, vector<32x8xf32>, vector<64x8xf32> -> vector<64x8xf32>
    %143 = arith.addf %137, %142 : vector<64x8xf32>
    %144 = vector.extract_strided_slice %132 {offsets = [0, 2, 0], sizes = [8, 8, 32], strides = [1, 1, 1]} : vector<10x10x32xf32> to vector<8x8x32xf32>
    %145 = vector.shape_cast %144 : vector<8x8x32xf32> to vector<64x32xf32>
    %c1_120 = arith.constant 1 : index
    %c2_121 = arith.constant 2 : index
    %c0_122 = arith.constant 0 : index
    %c0_123 = arith.constant 0 : index
    %146 = vector.load %arg4[%c1_120, %c2_121, %c0_122, %c0_123] : memref<2x9x32x8xf32, #tpu.memory_space<vmem>>, vector<1x1x32x8xf32>
    %147 = vector.shape_cast %146 : vector<1x1x32x8xf32> to vector<32x8xf32>
    %cst_124 = arith.constant dense<0.000000e+00> : vector<64x8xf32>
    %148 = tpu.matmul %145, %147, %cst_124 {dimension_numbers = #tpu.dot_dimension_numbers<[1], [0], [0], [1], [0, 0, 1, 1], [], []>} : vector<64x32xf32>, vector<32x8xf32>, vector<64x8xf32> -> vector<64x8xf32>
    %149 = arith.addf %143, %148 : vector<64x8xf32>
    %150 = vector.extract_strided_slice %132 {offsets = [1, 0, 0], sizes = [8, 8, 32], strides = [1, 1, 1]} : vector<10x10x32xf32> to vector<8x8x32xf32>
    %151 = vector.shape_cast %150 : vector<8x8x32xf32> to vector<64x32xf32>
    %c1_125 = arith.constant 1 : index
    %c3_126 = arith.constant 3 : index
    %c0_127 = arith.constant 0 : index
    %c0_128 = arith.constant 0 : index
    %152 = vector.load %arg4[%c1_125, %c3_126, %c0_127, %c0_128] : memref<2x9x32x8xf32, #tpu.memory_space<vmem>>, vector<1x1x32x8xf32>
    %153 = vector.shape_cast %152 : vector<1x1x32x8xf32> to vector<32x8xf32>
    %cst_129 = arith.constant dense<0.000000e+00> : vector<64x8xf32>
    %154 = tpu.matmul %151, %153, %cst_129 {dimension_numbers = #tpu.dot_dimension_numbers<[1], [0], [0], [1], [0, 0, 1, 1], [], []>} : vector<64x32xf32>, vector<32x8xf32>, vector<64x8xf32> -> vector<64x8xf32>
    %155 = arith.addf %149, %154 : vector<64x8xf32>
    %156 = vector.extract_strided_slice %132 {offsets = [1, 1, 0], sizes = [8, 8, 32], strides = [1, 1, 1]} : vector<10x10x32xf32> to vector<8x8x32xf32>
    %157 = vector.shape_cast %156 : vector<8x8x32xf32> to vector<64x32xf32>
    %c1_130 = arith.constant 1 : index
    %c4_131 = arith.constant 4 : index
    %c0_132 = arith.constant 0 : index
    %c0_133 = arith.constant 0 : index
    %158 = vector.load %arg4[%c1_130, %c4_131, %c0_132, %c0_133] : memref<2x9x32x8xf32, #tpu.memory_space<vmem>>, vector<1x1x32x8xf32>
    %159 = vector.shape_cast %158 : vector<1x1x32x8xf32> to vector<32x8xf32>
    %cst_134 = arith.constant dense<0.000000e+00> : vector<64x8xf32>
    %160 = tpu.matmul %157, %159, %cst_134 {dimension_numbers = #tpu.dot_dimension_numbers<[1], [0], [0], [1], [0, 0, 1, 1], [], []>} : vector<64x32xf32>, vector<32x8xf32>, vector<64x8xf32> -> vector<64x8xf32>
    %161 = arith.addf %155, %160 : vector<64x8xf32>
    %162 = vector.extract_strided_slice %132 {offsets = [1, 2, 0], sizes = [8, 8, 32], strides = [1, 1, 1]} : vector<10x10x32xf32> to vector<8x8x32xf32>
    %163 = vector.shape_cast %162 : vector<8x8x32xf32> to vector<64x32xf32>
    %c1_135 = arith.constant 1 : index
    %c5_136 = arith.constant 5 : index
    %c0_137 = arith.constant 0 : index
    %c0_138 = arith.constant 0 : index
    %164 = vector.load %arg4[%c1_135, %c5_136, %c0_137, %c0_138] : memref<2x9x32x8xf32, #tpu.memory_space<vmem>>, vector<1x1x32x8xf32>
    %165 = vector.shape_cast %164 : vector<1x1x32x8xf32> to vector<32x8xf32>
    %cst_139 = arith.constant dense<0.000000e+00> : vector<64x8xf32>
    %166 = tpu.matmul %163, %165, %cst_139 {dimension_numbers = #tpu.dot_dimension_numbers<[1], [0], [0], [1], [0, 0, 1, 1], [], []>} : vector<64x32xf32>, vector<32x8xf32>, vector<64x8xf32> -> vector<64x8xf32>
    %167 = arith.addf %161, %166 : vector<64x8xf32>
    %168 = vector.extract_strided_slice %132 {offsets = [2, 0, 0], sizes = [8, 8, 32], strides = [1, 1, 1]} : vector<10x10x32xf32> to vector<8x8x32xf32>
    %169 = vector.shape_cast %168 : vector<8x8x32xf32> to vector<64x32xf32>
    %c1_140 = arith.constant 1 : index
    %c6_141 = arith.constant 6 : index
    %c0_142 = arith.constant 0 : index
    %c0_143 = arith.constant 0 : index
    %170 = vector.load %arg4[%c1_140, %c6_141, %c0_142, %c0_143] : memref<2x9x32x8xf32, #tpu.memory_space<vmem>>, vector<1x1x32x8xf32>
    %171 = vector.shape_cast %170 : vector<1x1x32x8xf32> to vector<32x8xf32>
    %cst_144 = arith.constant dense<0.000000e+00> : vector<64x8xf32>
    %172 = tpu.matmul %169, %171, %cst_144 {dimension_numbers = #tpu.dot_dimension_numbers<[1], [0], [0], [1], [0, 0, 1, 1], [], []>} : vector<64x32xf32>, vector<32x8xf32>, vector<64x8xf32> -> vector<64x8xf32>
    %173 = arith.addf %167, %172 : vector<64x8xf32>
    %174 = vector.extract_strided_slice %132 {offsets = [2, 1, 0], sizes = [8, 8, 32], strides = [1, 1, 1]} : vector<10x10x32xf32> to vector<8x8x32xf32>
    %175 = vector.shape_cast %174 : vector<8x8x32xf32> to vector<64x32xf32>
    %c1_145 = arith.constant 1 : index
    %c7_146 = arith.constant 7 : index
    %c0_147 = arith.constant 0 : index
    %c0_148 = arith.constant 0 : index
    %176 = vector.load %arg4[%c1_145, %c7_146, %c0_147, %c0_148] : memref<2x9x32x8xf32, #tpu.memory_space<vmem>>, vector<1x1x32x8xf32>
    %177 = vector.shape_cast %176 : vector<1x1x32x8xf32> to vector<32x8xf32>
    %cst_149 = arith.constant dense<0.000000e+00> : vector<64x8xf32>
    %178 = tpu.matmul %175, %177, %cst_149 {dimension_numbers = #tpu.dot_dimension_numbers<[1], [0], [0], [1], [0, 0, 1, 1], [], []>} : vector<64x32xf32>, vector<32x8xf32>, vector<64x8xf32> -> vector<64x8xf32>
    %179 = arith.addf %173, %178 : vector<64x8xf32>
    %180 = vector.extract_strided_slice %132 {offsets = [2, 2, 0], sizes = [8, 8, 32], strides = [1, 1, 1]} : vector<10x10x32xf32> to vector<8x8x32xf32>
    %181 = vector.shape_cast %180 : vector<8x8x32xf32> to vector<64x32xf32>
    %c1_150 = arith.constant 1 : index
    %c8_151 = arith.constant 8 : index
    %c0_152 = arith.constant 0 : index
    %c0_153 = arith.constant 0 : index
    %182 = vector.load %arg4[%c1_150, %c8_151, %c0_152, %c0_153] : memref<2x9x32x8xf32, #tpu.memory_space<vmem>>, vector<1x1x32x8xf32>
    %183 = vector.shape_cast %182 : vector<1x1x32x8xf32> to vector<32x8xf32>
    %cst_154 = arith.constant dense<0.000000e+00> : vector<64x8xf32>
    %184 = tpu.matmul %181, %183, %cst_154 {dimension_numbers = #tpu.dot_dimension_numbers<[1], [0], [0], [1], [0, 0, 1, 1], [], []>} : vector<64x32xf32>, vector<32x8xf32>, vector<64x8xf32> -> vector<64x8xf32>
    %185 = arith.addf %179, %184 : vector<64x8xf32>
    %cst_155 = arith.constant 0.000000e+00 : f32
    %186 = vector.broadcast %cst_155 : f32 to vector<64x8xf32>
    %187 = arith.maximumf %185, %186 : vector<64x8xf32>
    %c1_156 = arith.constant 1 : index
    %c0_157 = arith.constant 0 : index
    %c0_158 = arith.constant 0 : index
    %188 = vector.load %arg5[%c1_156, %c0_157, %c0_158] : memref<2x8x32xf32, #tpu.memory_space<vmem>>, vector<1x8x32xf32>
    %189 = vector.shape_cast %188 : vector<1x8x32xf32> to vector<8x32xf32>
    %cst_159 = arith.constant dense<0.000000e+00> : vector<64x32xf32>
    %190 = tpu.matmul %187, %189, %cst_159 {dimension_numbers = #tpu.dot_dimension_numbers<[1], [0], [0], [1], [0, 0, 1, 1], [], []>} : vector<64x8xf32>, vector<8x32xf32>, vector<64x32xf32> -> vector<64x32xf32>
    %191 = arith.addf %127, %190 : vector<64x32xf32>
    %cst_160 = arith.constant 0.000000e+00 : f32
    %192 = vector.broadcast %cst_160 : f32 to vector<64x32xf32>
    %193 = arith.maximumf %191, %192 : vector<64x32xf32>
    %194 = vector.shape_cast %193 : vector<64x32xf32> to vector<8x8x32xf32>
    %c1_161 = arith.constant 1 : index
    %c1_162 = arith.constant 1 : index
    %c0_163 = arith.constant 0 : index
    %195 = vector.load %arg10[%c1_161, %c1_162, %c0_163] : memref<10x10x32xf32, #tpu.memory_space<vmem>>, vector<8x8x32xf32>
    tpu.vector_store %arg10[%c1_161, %c1_162, %c0_163], %194 {strides = array<i32>} : memref<10x10x32xf32, #tpu.memory_space<vmem>>, vector<8x8x32xf32>,
    %c0_164 = arith.constant 0 : index
    %c0_165 = arith.constant 0 : index
    %c0_166 = arith.constant 0 : index
    %196 = vector.load %arg10[%c0_164, %c0_165, %c0_166] : memref<10x10x32xf32, #tpu.memory_space<vmem>>, vector<10x10x32xf32>
    %197 = vector.extract_strided_slice %196 {offsets = [0, 0, 0], sizes = [8, 8, 32], strides = [1, 1, 1]} : vector<10x10x32xf32> to vector<8x8x32xf32>
    %198 = vector.shape_cast %197 : vector<8x8x32xf32> to vector<64x32xf32>
    %c0_167 = arith.constant 0 : index
    %c0_168 = arith.constant 0 : index
    %c0_169 = arith.constant 0 : index
    %c0_170 = arith.constant 0 : index
    %199 = vector.load %arg6[%c0_167, %c0_168, %c0_169, %c0_170] : memref<4x4x32x16xf32, #tpu.memory_space<vmem>>, vector<1x1x32x16xf32>
    %200 = vector.shape_cast %199 : vector<1x1x32x16xf32> to vector<32x16xf32>
    %cst_171 = arith.constant dense<0.000000e+00> : vector<64x16xf32>
    %201 = tpu.matmul %198, %200, %cst_171 {dimension_numbers = #tpu.dot_dimension_numbers<[1], [0], [0], [1], [0, 0, 1, 1], [], []>} : vector<64x32xf32>, vector<32x16xf32>, vector<64x16xf32> -> vector<64x16xf32>
    %202 = vector.extract_strided_slice %196 {offsets = [0, 1, 0], sizes = [8, 8, 32], strides = [1, 1, 1]} : vector<10x10x32xf32> to vector<8x8x32xf32>
    %203 = vector.shape_cast %202 : vector<8x8x32xf32> to vector<64x32xf32>
    %c0_172 = arith.constant 0 : index
    %c1_173 = arith.constant 1 : index
    %c0_174 = arith.constant 0 : index
    %c0_175 = arith.constant 0 : index
    %204 = vector.load %arg6[%c0_172, %c1_173, %c0_174, %c0_175] : memref<4x4x32x16xf32, #tpu.memory_space<vmem>>, vector<1x1x32x16xf32>
    %205 = vector.shape_cast %204 : vector<1x1x32x16xf32> to vector<32x16xf32>
    %cst_176 = arith.constant dense<0.000000e+00> : vector<64x16xf32>
    %206 = tpu.matmul %203, %205, %cst_176 {dimension_numbers = #tpu.dot_dimension_numbers<[1], [0], [0], [1], [0, 0, 1, 1], [], []>} : vector<64x32xf32>, vector<32x16xf32>, vector<64x16xf32> -> vector<64x16xf32>
    %207 = arith.addf %201, %206 : vector<64x16xf32>
    %208 = vector.extract_strided_slice %196 {offsets = [1, 0, 0], sizes = [8, 8, 32], strides = [1, 1, 1]} : vector<10x10x32xf32> to vector<8x8x32xf32>
    %209 = vector.shape_cast %208 : vector<8x8x32xf32> to vector<64x32xf32>
    %c0_177 = arith.constant 0 : index
    %c2_178 = arith.constant 2 : index
    %c0_179 = arith.constant 0 : index
    %c0_180 = arith.constant 0 : index
    %210 = vector.load %arg6[%c0_177, %c2_178, %c0_179, %c0_180] : memref<4x4x32x16xf32, #tpu.memory_space<vmem>>, vector<1x1x32x16xf32>
    %211 = vector.shape_cast %210 : vector<1x1x32x16xf32> to vector<32x16xf32>
    %cst_181 = arith.constant dense<0.000000e+00> : vector<64x16xf32>
    %212 = tpu.matmul %209, %211, %cst_181 {dimension_numbers = #tpu.dot_dimension_numbers<[1], [0], [0], [1], [0, 0, 1, 1], [], []>} : vector<64x32xf32>, vector<32x16xf32>, vector<64x16xf32> -> vector<64x16xf32>
    %213 = arith.addf %207, %212 : vector<64x16xf32>
    %214 = vector.extract_strided_slice %196 {offsets = [1, 1, 0], sizes = [8, 8, 32], strides = [1, 1, 1]} : vector<10x10x32xf32> to vector<8x8x32xf32>
    %215 = vector.shape_cast %214 : vector<8x8x32xf32> to vector<64x32xf32>
    %c0_182 = arith.constant 0 : index
    %c3_183 = arith.constant 3 : index
    %c0_184 = arith.constant 0 : index
    %c0_185 = arith.constant 0 : index
    %216 = vector.load %arg6[%c0_182, %c3_183, %c0_184, %c0_185] : memref<4x4x32x16xf32, #tpu.memory_space<vmem>>, vector<1x1x32x16xf32>
    %217 = vector.shape_cast %216 : vector<1x1x32x16xf32> to vector<32x16xf32>
    %cst_186 = arith.constant dense<0.000000e+00> : vector<64x16xf32>
    %218 = tpu.matmul %215, %217, %cst_186 {dimension_numbers = #tpu.dot_dimension_numbers<[1], [0], [0], [1], [0, 0, 1, 1], [], []>} : vector<64x32xf32>, vector<32x16xf32>, vector<64x16xf32> -> vector<64x16xf32>
    %219 = arith.addf %213, %218 : vector<64x16xf32>
    %c0_187 = arith.constant 0 : index
    %c0_188 = arith.constant 0 : index
    %220 = vector.load %arg7[%c0_187, %c0_188] : memref<1x16xf32, #tpu.memory_space<vmem>>, vector<1x16xf32>
    %221 = vector.broadcast %220 : vector<1x16xf32> to vector<64x16xf32>
    %222 = arith.addf %219, %221 : vector<64x16xf32>
    %cst_189 = arith.constant 0.000000e+00 : f32
    %223 = vector.broadcast %cst_189 : f32 to vector<64x16xf32>
    %224 = arith.maximumf %222, %223 : vector<64x16xf32>
    %c0_190 = arith.constant 0 : index
    %c0_191 = arith.constant 0 : index
    %c0_192 = arith.constant 0 : index
    %c0_193 = arith.constant 0 : index
    %225 = vector.load %arg8[%c0_190, %c0_191, %c0_192, %c0_193] : memref<1x4x64x16xf32, #tpu.memory_space<vmem>>, vector<1x1x64x16xf32>
    %226 = vector.shape_cast %225 : vector<1x1x64x16xf32> to vector<64x16xf32>
    %227 = vector.shape_cast %224 : vector<64x16xf32> to vector<1x1x64x16xf32>
    tpu.vector_store %arg8[%c0_190, %c0_191, %c0_192, %c0_193], %227 {strides = array<i32>} : memref<1x4x64x16xf32, #tpu.memory_space<vmem>>, vector<1x1x64x16xf32>,
    %228 = vector.extract_strided_slice %196 {offsets = [0, 1, 0], sizes = [8, 8, 32], strides = [1, 1, 1]} : vector<10x10x32xf32> to vector<8x8x32xf32>
    %229 = vector.shape_cast %228 : vector<8x8x32xf32> to vector<64x32xf32>
    %c1_194 = arith.constant 1 : index
    %c0_195 = arith.constant 0 : index
    %c0_196 = arith.constant 0 : index
    %c0_197 = arith.constant 0 : index
    %230 = vector.load %arg6[%c1_194, %c0_195, %c0_196, %c0_197] : memref<4x4x32x16xf32, #tpu.memory_space<vmem>>, vector<1x1x32x16xf32>
    %231 = vector.shape_cast %230 : vector<1x1x32x16xf32> to vector<32x16xf32>
    %cst_198 = arith.constant dense<0.000000e+00> : vector<64x16xf32>
    %232 = tpu.matmul %229, %231, %cst_198 {dimension_numbers = #tpu.dot_dimension_numbers<[1], [0], [0], [1], [0, 0, 1, 1], [], []>} : vector<64x32xf32>, vector<32x16xf32>, vector<64x16xf32> -> vector<64x16xf32>
    %233 = vector.extract_strided_slice %196 {offsets = [0, 2, 0], sizes = [8, 8, 32], strides = [1, 1, 1]} : vector<10x10x32xf32> to vector<8x8x32xf32>
    %234 = vector.shape_cast %233 : vector<8x8x32xf32> to vector<64x32xf32>
    %c1_199 = arith.constant 1 : index
    %c1_200 = arith.constant 1 : index
    %c0_201 = arith.constant 0 : index
    %c0_202 = arith.constant 0 : index
    %235 = vector.load %arg6[%c1_199, %c1_200, %c0_201, %c0_202] : memref<4x4x32x16xf32, #tpu.memory_space<vmem>>, vector<1x1x32x16xf32>
    %236 = vector.shape_cast %235 : vector<1x1x32x16xf32> to vector<32x16xf32>
    %cst_203 = arith.constant dense<0.000000e+00> : vector<64x16xf32>
    %237 = tpu.matmul %234, %236, %cst_203 {dimension_numbers = #tpu.dot_dimension_numbers<[1], [0], [0], [1], [0, 0, 1, 1], [], []>} : vector<64x32xf32>, vector<32x16xf32>, vector<64x16xf32> -> vector<64x16xf32>
    %238 = arith.addf %232, %237 : vector<64x16xf32>
    %239 = vector.extract_strided_slice %196 {offsets = [1, 1, 0], sizes = [8, 8, 32], strides = [1, 1, 1]} : vector<10x10x32xf32> to vector<8x8x32xf32>
    %240 = vector.shape_cast %239 : vector<8x8x32xf32> to vector<64x32xf32>
    %c1_204 = arith.constant 1 : index
    %c2_205 = arith.constant 2 : index
    %c0_206 = arith.constant 0 : index
    %c0_207 = arith.constant 0 : index
    %241 = vector.load %arg6[%c1_204, %c2_205, %c0_206, %c0_207] : memref<4x4x32x16xf32, #tpu.memory_space<vmem>>, vector<1x1x32x16xf32>
    %242 = vector.shape_cast %241 : vector<1x1x32x16xf32> to vector<32x16xf32>
    %cst_208 = arith.constant dense<0.000000e+00> : vector<64x16xf32>
    %243 = tpu.matmul %240, %242, %cst_208 {dimension_numbers = #tpu.dot_dimension_numbers<[1], [0], [0], [1], [0, 0, 1, 1], [], []>} : vector<64x32xf32>, vector<32x16xf32>, vector<64x16xf32> -> vector<64x16xf32>
    %244 = arith.addf %238, %243 : vector<64x16xf32>
    %245 = vector.extract_strided_slice %196 {offsets = [1, 2, 0], sizes = [8, 8, 32], strides = [1, 1, 1]} : vector<10x10x32xf32> to vector<8x8x32xf32>
    %246 = vector.shape_cast %245 : vector<8x8x32xf32> to vector<64x32xf32>
    %c1_209 = arith.constant 1 : index
    %c3_210 = arith.constant 3 : index
    %c0_211 = arith.constant 0 : index
    %c0_212 = arith.constant 0 : index
    %247 = vector.load %arg6[%c1_209, %c3_210, %c0_211, %c0_212] : memref<4x4x32x16xf32, #tpu.memory_space<vmem>>, vector<1x1x32x16xf32>
    %248 = vector.shape_cast %247 : vector<1x1x32x16xf32> to vector<32x16xf32>
    %cst_213 = arith.constant dense<0.000000e+00> : vector<64x16xf32>
    %249 = tpu.matmul %246, %248, %cst_213 {dimension_numbers = #tpu.dot_dimension_numbers<[1], [0], [0], [1], [0, 0, 1, 1], [], []>} : vector<64x32xf32>, vector<32x16xf32>, vector<64x16xf32> -> vector<64x16xf32>
    %250 = arith.addf %244, %249 : vector<64x16xf32>
    %c0_214 = arith.constant 0 : index
    %c0_215 = arith.constant 0 : index
    %251 = vector.load %arg7[%c0_214, %c0_215] : memref<1x16xf32, #tpu.memory_space<vmem>>, vector<1x16xf32>
    %252 = vector.broadcast %251 : vector<1x16xf32> to vector<64x16xf32>
    %253 = arith.addf %250, %252 : vector<64x16xf32>
    %cst_216 = arith.constant 0.000000e+00 : f32
    %254 = vector.broadcast %cst_216 : f32 to vector<64x16xf32>
    %255 = arith.maximumf %253, %254 : vector<64x16xf32>
    %c0_217 = arith.constant 0 : index
    %c1_218 = arith.constant 1 : index
    %c0_219 = arith.constant 0 : index
    %c0_220 = arith.constant 0 : index
    %256 = vector.load %arg8[%c0_217, %c1_218, %c0_219, %c0_220] : memref<1x4x64x16xf32, #tpu.memory_space<vmem>>, vector<1x1x64x16xf32>
    %257 = vector.shape_cast %256 : vector<1x1x64x16xf32> to vector<64x16xf32>
    %258 = vector.shape_cast %255 : vector<64x16xf32> to vector<1x1x64x16xf32>
    tpu.vector_store %arg8[%c0_217, %c1_218, %c0_219, %c0_220], %258 {strides = array<i32>} : memref<1x4x64x16xf32, #tpu.memory_space<vmem>>, vector<1x1x64x16xf32>,
    %259 = vector.extract_strided_slice %196 {offsets = [1, 0, 0], sizes = [8, 8, 32], strides = [1, 1, 1]} : vector<10x10x32xf32> to vector<8x8x32xf32>
    %260 = vector.shape_cast %259 : vector<8x8x32xf32> to vector<64x32xf32>
    %c2_221 = arith.constant 2 : index
    %c0_222 = arith.constant 0 : index
    %c0_223 = arith.constant 0 : index
    %c0_224 = arith.constant 0 : index
    %261 = vector.load %arg6[%c2_221, %c0_222, %c0_223, %c0_224] : memref<4x4x32x16xf32, #tpu.memory_space<vmem>>, vector<1x1x32x16xf32>
    %262 = vector.shape_cast %261 : vector<1x1x32x16xf32> to vector<32x16xf32>
    %cst_225 = arith.constant dense<0.000000e+00> : vector<64x16xf32>
    %263 = tpu.matmul %260, %262, %cst_225 {dimension_numbers = #tpu.dot_dimension_numbers<[1], [0], [0], [1], [0, 0, 1, 1], [], []>} : vector<64x32xf32>, vector<32x16xf32>, vector<64x16xf32> -> vector<64x16xf32>
    %264 = vector.extract_strided_slice %196 {offsets = [1, 1, 0], sizes = [8, 8, 32], strides = [1, 1, 1]} : vector<10x10x32xf32> to vector<8x8x32xf32>
    %265 = vector.shape_cast %264 : vector<8x8x32xf32> to vector<64x32xf32>
    %c2_226 = arith.constant 2 : index
    %c1_227 = arith.constant 1 : index
    %c0_228 = arith.constant 0 : index
    %c0_229 = arith.constant 0 : index
    %266 = vector.load %arg6[%c2_226, %c1_227, %c0_228, %c0_229] : memref<4x4x32x16xf32, #tpu.memory_space<vmem>>, vector<1x1x32x16xf32>
    %267 = vector.shape_cast %266 : vector<1x1x32x16xf32> to vector<32x16xf32>
    %cst_230 = arith.constant dense<0.000000e+00> : vector<64x16xf32>
    %268 = tpu.matmul %265, %267, %cst_230 {dimension_numbers = #tpu.dot_dimension_numbers<[1], [0], [0], [1], [0, 0, 1, 1], [], []>} : vector<64x32xf32>, vector<32x16xf32>, vector<64x16xf32> -> vector<64x16xf32>
    %269 = arith.addf %263, %268 : vector<64x16xf32>
    %270 = vector.extract_strided_slice %196 {offsets = [2, 0, 0], sizes = [8, 8, 32], strides = [1, 1, 1]} : vector<10x10x32xf32> to vector<8x8x32xf32>
    %271 = vector.shape_cast %270 : vector<8x8x32xf32> to vector<64x32xf32>
    %c2_231 = arith.constant 2 : index
    %c2_232 = arith.constant 2 : index
    %c0_233 = arith.constant 0 : index
    %c0_234 = arith.constant 0 : index
    %272 = vector.load %arg6[%c2_231, %c2_232, %c0_233, %c0_234] : memref<4x4x32x16xf32, #tpu.memory_space<vmem>>, vector<1x1x32x16xf32>
    %273 = vector.shape_cast %272 : vector<1x1x32x16xf32> to vector<32x16xf32>
    %cst_235 = arith.constant dense<0.000000e+00> : vector<64x16xf32>
    %274 = tpu.matmul %271, %273, %cst_235 {dimension_numbers = #tpu.dot_dimension_numbers<[1], [0], [0], [1], [0, 0, 1, 1], [], []>} : vector<64x32xf32>, vector<32x16xf32>, vector<64x16xf32> -> vector<64x16xf32>
    %275 = arith.addf %269, %274 : vector<64x16xf32>
    %276 = vector.extract_strided_slice %196 {offsets = [2, 1, 0], sizes = [8, 8, 32], strides = [1, 1, 1]} : vector<10x10x32xf32> to vector<8x8x32xf32>
    %277 = vector.shape_cast %276 : vector<8x8x32xf32> to vector<64x32xf32>
    %c2_236 = arith.constant 2 : index
    %c3_237 = arith.constant 3 : index
    %c0_238 = arith.constant 0 : index
    %c0_239 = arith.constant 0 : index
    %278 = vector.load %arg6[%c2_236, %c3_237, %c0_238, %c0_239] : memref<4x4x32x16xf32, #tpu.memory_space<vmem>>, vector<1x1x32x16xf32>
    %279 = vector.shape_cast %278 : vector<1x1x32x16xf32> to vector<32x16xf32>
    %cst_240 = arith.constant dense<0.000000e+00> : vector<64x16xf32>
    %280 = tpu.matmul %277, %279, %cst_240 {dimension_numbers = #tpu.dot_dimension_numbers<[1], [0], [0], [1], [0, 0, 1, 1], [], []>} : vector<64x32xf32>, vector<32x16xf32>, vector<64x16xf32> -> vector<64x16xf32>
    %281 = arith.addf %275, %280 : vector<64x16xf32>
    %c0_241 = arith.constant 0 : index
    %c0_242 = arith.constant 0 : index
    %282 = vector.load %arg7[%c0_241, %c0_242] : memref<1x16xf32, #tpu.memory_space<vmem>>, vector<1x16xf32>
    %283 = vector.broadcast %282 : vector<1x16xf32> to vector<64x16xf32>
    %284 = arith.addf %281, %283 : vector<64x16xf32>
    %cst_243 = arith.constant 0.000000e+00 : f32
    %285 = vector.broadcast %cst_243 : f32 to vector<64x16xf32>
    %286 = arith.maximumf %284, %285 : vector<64x16xf32>
    %c0_244 = arith.constant 0 : index
    %c2_245 = arith.constant 2 : index
    %c0_246 = arith.constant 0 : index
    %c0_247 = arith.constant 0 : index
    %287 = vector.load %arg8[%c0_244, %c2_245, %c0_246, %c0_247] : memref<1x4x64x16xf32, #tpu.memory_space<vmem>>, vector<1x1x64x16xf32>
    %288 = vector.shape_cast %287 : vector<1x1x64x16xf32> to vector<64x16xf32>
    %289 = vector.shape_cast %286 : vector<64x16xf32> to vector<1x1x64x16xf32>
    tpu.vector_store %arg8[%c0_244, %c2_245, %c0_246, %c0_247], %289 {strides = array<i32>} : memref<1x4x64x16xf32, #tpu.memory_space<vmem>>, vector<1x1x64x16xf32>,
    %290 = vector.extract_strided_slice %196 {offsets = [1, 1, 0], sizes = [8, 8, 32], strides = [1, 1, 1]} : vector<10x10x32xf32> to vector<8x8x32xf32>
    %291 = vector.shape_cast %290 : vector<8x8x32xf32> to vector<64x32xf32>
    %c3_248 = arith.constant 3 : index
    %c0_249 = arith.constant 0 : index
    %c0_250 = arith.constant 0 : index
    %c0_251 = arith.constant 0 : index
    %292 = vector.load %arg6[%c3_248, %c0_249, %c0_250, %c0_251] : memref<4x4x32x16xf32, #tpu.memory_space<vmem>>, vector<1x1x32x16xf32>
    %293 = vector.shape_cast %292 : vector<1x1x32x16xf32> to vector<32x16xf32>
    %cst_252 = arith.constant dense<0.000000e+00> : vector<64x16xf32>
    %294 = tpu.matmul %291, %293, %cst_252 {dimension_numbers = #tpu.dot_dimension_numbers<[1], [0], [0], [1], [0, 0, 1, 1], [], []>} : vector<64x32xf32>, vector<32x16xf32>, vector<64x16xf32> -> vector<64x16xf32>
    %295 = vector.extract_strided_slice %196 {offsets = [1, 2, 0], sizes = [8, 8, 32], strides = [1, 1, 1]} : vector<10x10x32xf32> to vector<8x8x32xf32>
    %296 = vector.shape_cast %295 : vector<8x8x32xf32> to vector<64x32xf32>
    %c3_253 = arith.constant 3 : index
    %c1_254 = arith.constant 1 : index
    %c0_255 = arith.constant 0 : index
    %c0_256 = arith.constant 0 : index
    %297 = vector.load %arg6[%c3_253, %c1_254, %c0_255, %c0_256] : memref<4x4x32x16xf32, #tpu.memory_space<vmem>>, vector<1x1x32x16xf32>
    %298 = vector.shape_cast %297 : vector<1x1x32x16xf32> to vector<32x16xf32>
    %cst_257 = arith.constant dense<0.000000e+00> : vector<64x16xf32>
    %299 = tpu.matmul %296, %298, %cst_257 {dimension_numbers = #tpu.dot_dimension_numbers<[1], [0], [0], [1], [0, 0, 1, 1], [], []>} : vector<64x32xf32>, vector<32x16xf32>, vector<64x16xf32> -> vector<64x16xf32>
    %300 = arith.addf %294, %299 : vector<64x16xf32>
    %301 = vector.extract_strided_slice %196 {offsets = [2, 1, 0], sizes = [8, 8, 32], strides = [1, 1, 1]} : vector<10x10x32xf32> to vector<8x8x32xf32>
    %302 = vector.shape_cast %301 : vector<8x8x32xf32> to vector<64x32xf32>
    %c3_258 = arith.constant 3 : index
    %c2_259 = arith.constant 2 : index
    %c0_260 = arith.constant 0 : index
    %c0_261 = arith.constant 0 : index
    %303 = vector.load %arg6[%c3_258, %c2_259, %c0_260, %c0_261] : memref<4x4x32x16xf32, #tpu.memory_space<vmem>>, vector<1x1x32x16xf32>
    %304 = vector.shape_cast %303 : vector<1x1x32x16xf32> to vector<32x16xf32>
    %cst_262 = arith.constant dense<0.000000e+00> : vector<64x16xf32>
    %305 = tpu.matmul %302, %304, %cst_262 {dimension_numbers = #tpu.dot_dimension_numbers<[1], [0], [0], [1], [0, 0, 1, 1], [], []>} : vector<64x32xf32>, vector<32x16xf32>, vector<64x16xf32> -> vector<64x16xf32>
    %306 = arith.addf %300, %305 : vector<64x16xf32>
    %307 = vector.extract_strided_slice %196 {offsets = [2, 2, 0], sizes = [8, 8, 32], strides = [1, 1, 1]} : vector<10x10x32xf32> to vector<8x8x32xf32>
    %308 = vector.shape_cast %307 : vector<8x8x32xf32> to vector<64x32xf32>
    %c3_263 = arith.constant 3 : index
    %c3_264 = arith.constant 3 : index
    %c0_265 = arith.constant 0 : index
    %c0_266 = arith.constant 0 : index
    %309 = vector.load %arg6[%c3_263, %c3_264, %c0_265, %c0_266] : memref<4x4x32x16xf32, #tpu.memory_space<vmem>>, vector<1x1x32x16xf32>
    %310 = vector.shape_cast %309 : vector<1x1x32x16xf32> to vector<32x16xf32>
    %cst_267 = arith.constant dense<0.000000e+00> : vector<64x16xf32>
    %311 = tpu.matmul %308, %310, %cst_267 {dimension_numbers = #tpu.dot_dimension_numbers<[1], [0], [0], [1], [0, 0, 1, 1], [], []>} : vector<64x32xf32>, vector<32x16xf32>, vector<64x16xf32> -> vector<64x16xf32>
    %312 = arith.addf %306, %311 : vector<64x16xf32>
    %c0_268 = arith.constant 0 : index
    %c0_269 = arith.constant 0 : index
    %313 = vector.load %arg7[%c0_268, %c0_269] : memref<1x16xf32, #tpu.memory_space<vmem>>, vector<1x16xf32>
    %314 = vector.broadcast %313 : vector<1x16xf32> to vector<64x16xf32>
    %315 = arith.addf %312, %314 : vector<64x16xf32>
    %cst_270 = arith.constant 0.000000e+00 : f32
    %316 = vector.broadcast %cst_270 : f32 to vector<64x16xf32>
    %317 = arith.maximumf %315, %316 : vector<64x16xf32>
    %c0_271 = arith.constant 0 : index
    %c3_272 = arith.constant 3 : index
    %c0_273 = arith.constant 0 : index
    %c0_274 = arith.constant 0 : index
    %318 = vector.load %arg8[%c0_271, %c3_272, %c0_273, %c0_274] : memref<1x4x64x16xf32, #tpu.memory_space<vmem>>, vector<1x1x64x16xf32>
    %319 = vector.shape_cast %318 : vector<1x1x64x16xf32> to vector<64x16xf32>
    %320 = vector.shape_cast %317 : vector<64x16xf32> to vector<1x1x64x16xf32>
    tpu.vector_store %arg8[%c0_271, %c3_272, %c0_273, %c0_274], %320 {strides = array<i32>} : memref<1x4x64x16xf32, #tpu.memory_space<vmem>>, vector<1x1x64x16xf32>,
    return
  }
  func.func @transform_0(%arg0: i32) -> (i32, i32, i32, i32) {
    %c0_i32 = arith.constant 0 : i32
    %c0_i32_0 = arith.constant 0 : i32
    %c0_i32_1 = arith.constant 0 : i32
    %c0_i32_2 = arith.constant 0 : i32
    return %arg0, %c0_i32, %c0_i32_0, %c0_i32_1 : i32, i32, i32, i32
  }
  func.func @transform_1(%arg0: i32) -> (i32, i32, i32) {
    %c0_i32 = arith.constant 0 : i32
    %c0_i32_0 = arith.constant 0 : i32
    %c0_i32_1 = arith.constant 0 : i32
    %c0_i32_2 = arith.constant 0 : i32
    return %c0_i32, %c0_i32_0, %c0_i32_1 : i32, i32, i32
  }
  func.func @transform_2(%arg0: i32) -> (i32, i32) {
    %c0_i32 = arith.constant 0 : i32
    %c0_i32_0 = arith.constant 0 : i32
    %c0_i32_1 = arith.constant 0 : i32
    return %c0_i32, %c0_i32_0 : i32, i32
  }
  func.func @transform_3(%arg0: i32) -> (i32, i32, i32, i32) {
    %c0_i32 = arith.constant 0 : i32
    %c0_i32_0 = arith.constant 0 : i32
    %c0_i32_1 = arith.constant 0 : i32
    %c0_i32_2 = arith.constant 0 : i32
    %c0_i32_3 = arith.constant 0 : i32
    return %c0_i32, %c0_i32_0, %c0_i32_1, %c0_i32_2 : i32, i32, i32, i32
  }
  func.func @transform_4(%arg0: i32) -> (i32, i32, i32) {
    %c0_i32 = arith.constant 0 : i32
    %c0_i32_0 = arith.constant 0 : i32
    %c0_i32_1 = arith.constant 0 : i32
    %c0_i32_2 = arith.constant 0 : i32
    return %c0_i32, %c0_i32_0, %c0_i32_1 : i32, i32, i32
  }
  func.func @transform_5(%arg0: i32) -> (i32, i32, i32, i32) {
    %c0_i32 = arith.constant 0 : i32
    %c0_i32_0 = arith.constant 0 : i32
    %c0_i32_1 = arith.constant 0 : i32
    %c0_i32_2 = arith.constant 0 : i32
    %c0_i32_3 = arith.constant 0 : i32
    return %c0_i32, %c0_i32_0, %c0_i32_1, %c0_i32_2 : i32, i32, i32, i32
  }
  func.func @transform_6(%arg0: i32) -> (i32, i32) {
    %c0_i32 = arith.constant 0 : i32
    %c0_i32_0 = arith.constant 0 : i32
    %c0_i32_1 = arith.constant 0 : i32
    return %c0_i32, %c0_i32_0 : i32, i32
  }
  func.func @transform_7(%arg0: i32) -> (i32, i32, i32, i32) {
    %c0_i32 = arith.constant 0 : i32
    %c0_i32_0 = arith.constant 0 : i32
    %c0_i32_1 = arith.constant 0 : i32
    %c0_i32_2 = arith.constant 0 : i32
    return %arg0, %c0_i32, %c0_i32_0, %c0_i32_1 : i32, i32, i32, i32
  }
}

</mosaic_0001>

<bundles_post_ra>
// kernel: decoder_forward.3
= control target key start
LH: loop header
LB: loop body
LE: loop exit
PB: predicated region body
PF: predicated region fallthrough
CT: control target
= control target key end

     0   :  { %s7146_s12 = smov 0   ;;  %s10126_s0 = inlined_call_operand.vmem [shape: f32[2,16,16,16], index: 0, kind: input, shape index: {}]   ;;  %s10127_s1 = inlined_call_operand.vmem [shape: f32[4,4,16,3], index: 1, kind: input, shape index: {}]   ;;  %s10128_s2 = inlined_call_operand.vmem [shape: f32[1,3], index: 2, kind: input, shape index: {}]   ;;  %s10129_s3 = inlined_call_operand.vmem [shape: f32[2,4,256,3], index: 3, kind: output, shape index: {}]  }
   0x1 LB: > { %s5044_s13 = sadd.s32 4294967295, %s7123_s12   ;;  %p5048_p0 = scmp.ge.s32.totalorder %s7123_s12, 1  ;;  %s7123_s12 = sphi %s7146_s12, %s13_s12  }
   0x2   : > { %p137_p1 = scmp.lt.s32.totalorder %s7123_s12, 3 }
   0x4   : > { %p138_p2 = pnand %p5048_p0, %p137_p1 }
   0x6   : > { %141 = sbr.rel (%p138_p2) target bundleno = 758 (0x2f6), region = 32 }
   0xb   : > { %v5054_v0 = vld [vmem:[%s10127_s1 + $0x18] sm:$0xff]  ;;  %v347_v1 = vld [vmem:[%s10127_s1 + $0x8] sm:$0xff]  ;;  %v7163_v2 = vld [vmem:[%s10127_s1 + $0x10] sm:$0xff]  ;;  %vm171_vm0 = vcmask 130048   ;;  %v7125_v4 = vmov 0.0   ;;  %vm174_vm1 = vcmask 123904  }
   0xc   : > { %6243 = vmatprep.subr.mxu0 %v5054_v0  ;;  %6295 = vmatprep.subr.mxu1 %v347_v1  ;;  %v7168_v3 = vld [vmem:[%s10127_s1] sm:$0xff]  ;;  %172 = vst.msk [vmem:[#allocation2] sm:$0xff] %vm171_vm0, %v7125_v4  ;;  %173 = vst.msk [vmem:[#allocation2 + $0x8] sm:$0xff] %vm171_vm0, %v7125_v4  ;;  %p7208_p3 = scmp.lt.s32.totalorder %s5044_s13, 1  ;;  %v7233_v5 = vld [vmem:[%s10127_s1 + $0x28] sm:$0xff]  ;;  %vm396_vm2 = vcmask 1046528  }
   0xd   : > { %176 = vst.msk [vmem:[#allocation2 + $0x18] sm:$0xff] %vm171_vm0, %v7125_v4  ;;  %177 = vst.msk [vmem:[#allocation2 + $0x20] sm:$0xff] %vm171_vm0, %v7125_v4  ;;  %6244 = vmatpush3.msra.mxu0 %v5054_v0  ;;  %6296 = vmatpush3.msra.mxu1 %v347_v1  ;;  %v5154_v6 = vld [vmem:[%s10127_s1 + $0x38] sm:$0xff]  ;;  %v5153_v10 = vld [vmem:[%s10127_s1 + $0x30] sm:$0xff]  ;;  %vm1669_vm3 = vcmask 1045504   ;;  %vm1633_vm4 = vcmask 23552  }
   0xe   : > { %179 = vst.msk [vmem:[#allocation2 + $0x30] sm:$0xff] %vm171_vm0, %v7125_v4  ;;  %180 = vst.msk [vmem:[#allocation2 + $0x38] sm:$0xff] %vm171_vm0, %v7125_v4  ;;  %6245 = vmatprep.subr.mxu0 %v7163_v2  ;;  %6297 = vmatprep.subr.mxu1 %v7168_v3  ;;  %s10720_s13 = smov (!%p7208_p3, %s5044_s13), 1  ;;  %v7279_v19 = vld [vmem:[%s10127_s1 + $0x48] sm:$0xff]  ;;  %v5119_v25 = vld [vmem:[%s10127_s1 + $0x20] sm:$0xff] }
   0xf   : > { %182 = vst.msk [vmem:[#allocation2 + $0x48] sm:$0xff] %vm171_vm0, %v7125_v4  ;;  %183 = vst.msk [vmem:[#allocation2 + $0x50] sm:$0xff] %vm171_vm0, %v7125_v4  ;;  %6246 = vmatpush3.msra.mxu0 %v7163_v2  ;;  %6298 = vmatpush3.msra.mxu1 %v7168_v3  ;;  %s5697_s27 = sshll.u32 %s10720_s13, 8  ;;  %v7314_v34 = vld [vmem:[%s10127_s1 + $0x58] sm:$0xff]  ;;  %s5698_s17 = sshll.u32 %s10720_s13, 10 }
  0x10   : > { %185 = vst.msk [vmem:[#allocation2 + $0x60] sm:$0xff] %vm171_vm0, %v7125_v4  ;;  %186 = vst.msk [vmem:[#allocation2 + $0x68] sm:$0xff] %vm171_vm0, %v7125_v4  ;;  %6347 = vmatprep.subr.mxu0 %v7233_v5  ;;  %6399 = vmatprep.subr.mxu1 %v5154_v6  ;;  %s7253_s30 = scalar_lea.vmem %s10126_s0, %s5697_s27  ;;  %s8495_s25 = scalar_lea.vmem %s10129_s3, %s5698_s17 }
  0x11   : > { %188 = vst.msk [vmem:[#allocation2 + $0x78] sm:$0xff] %vm171_vm0, %v7125_v4  ;;  %189 = vst.msk [vmem:[#allocation2 + $0x80] sm:$0xff] %vm171_vm0, %v7125_v4  ;;  %v227_v7 = vld [vmem:[%s7253_s30] sm:$0xff]  ;;  %v228_v8 = vld [vmem:[%s7253_s30 + $0x8] sm:$0xff] }
  0x12   : > { %191 = vst.msk [vmem:[#allocation2 + $0x90] sm:$0xff] %vm171_vm0, %v7125_v4  ;;  %192 = vst.msk [vmem:[#allocation2 + $0x98] sm:$0xff] %vm171_vm0, %v7125_v4  ;;  %v229_v9 = vld [vmem:[%s7253_s30 + $0x10] sm:$0xff]  ;;  %v230_v13 = vld [vmem:[%s7253_s30 + $0x18] sm:$0xff] }
  0x13   : > { %194 = vst.msk [vmem:[#allocation2 + $0xa8] sm:$0xff] %vm171_vm0, %v7125_v4  ;;  %195 = vst.msk [vmem:[#allocation2 + $0xb0] sm:$0xff] %vm171_vm0, %v7125_v4  ;;  %v7261_v11 = vld [vmem:[#allocation2] sm:$0xff]  ;;  %v7263_v12 = vld [vmem:[#allocation2 + $0x8] sm:$0xff] }
  0x14   : > { %197 = vst.msk [vmem:[#allocation2 + $0xc0] sm:$0xff] %vm171_vm0, %v7125_v4  ;;  %198 = vst.msk [vmem:[#allocation2 + $0xc8] sm:$0xff] %vm171_vm0, %v7125_v4  ;;  %v397_v14 = vrot.slane %v7261_v11, 1  ;;  %v398_v15 = vrot.slane %v7263_v12, 1  ;;  %6299 = vmatprep.mubr.msk.f32.mxu1 %vm171_vm0, %v7261_v11  ;;  %v231_v17 = vld [vmem:[%s7253_s30 + $0x20] sm:$0xff]  ;;  %v232_v18 = vld [vmem:[%s7253_s30 + $0x28] sm:$0xff] }
  0x15   : > { %200 = vst.msk [vmem:[#allocation2 + $0xd8] sm:$0xff] %vm171_vm0, %v7125_v4  ;;  %201 = vst.msk [vmem:[#allocation2 + $0xe0] sm:$0xff] %vm171_vm0, %v7125_v4  ;;  %6300 = vmatmul.mubr.msk.f32.vlgmr.msra.gmra.mxu1 %vm171_vm0, %v7263_v12  ;;  %v233_v22 = vld [vmem:[%s7253_s30 + $0x30] sm:$0xff]  ;;  %v234_v23 = vld [vmem:[%s7253_s30 + $0x38] sm:$0xff]  ;;  %v1670_v35 = vrot.slane %v7261_v11, 2  ;;  %v1671_v36 = vrot.slane %v7263_v12, 2 }
  0x16   : > { %203 = vst.msk [vmem:[#allocation2 + $0xf0] sm:$0xff] %vm171_vm0, %v7125_v4  ;;  %204 = vst.msk [vmem:[#allocation2 + $0xf8] sm:$0xff] %vm171_vm0, %v7125_v4  ;;  %v235_v24 = vld [vmem:[%s7253_s30 + $0x40] sm:$0xff]  ;;  %v7292_v26 = vsel %vm396_vm2, %v397_v14, %v398_v15  ;;  %6400 = vmatpush3.msra.mxu1 %v5154_v6  ;;  %v236_v27 = vld [vmem:[%s7253_s30 + $0x48] sm:$0xff] }
  0x17   : > { %206 = vst.msk [vmem:[#allocation2 + $0x108] sm:$0xff] %vm171_vm0, %v7125_v4  ;;  %207 = vst.msk [vmem:[#allocation2 + $0x110] sm:$0xff] %vm171_vm0, %v7125_v4  ;;  %v237_v28 = vld [vmem:[%s7253_s30 + $0x50] sm:$0xff]  ;;  %v238_v29 = vld [vmem:[%s7253_s30 + $0x58] sm:$0xff]  ;;  %6247 = vmatprep.mubr.msk.f32.mxu0 %vm171_vm0, %v7292_v26  ;;  %6401 = vmatprep.subr.mxu1 %v5153_v10  ;;  %v7335_v43 = vsel %vm1669_vm3, %v1670_v35, %v1671_v36 }
  0x18   : > { %209 = vst.msk [vmem:[#allocation2 + $0x120] sm:$0xff] %vm171_vm0, %v7125_v4  ;;  %210 = vst.msk [vmem:[#allocation2 + $0x128] sm:$0xff] %vm171_vm0, %v7125_v4  ;;  %v239_v31 = vld [vmem:[%s7253_s30 + $0x60] sm:$0xff]  ;;  %v240_v32 = vld [vmem:[%s7253_s30 + $0x68] sm:$0xff]  ;;  %6402 = vmatpush3.msra.mxu1 %v5153_v10 }
  0x19   : > { %212 = vst.msk [vmem:[#allocation2 + $0x138] sm:$0xff] %vm171_vm0, %v7125_v4  ;;  %213 = vst.msk [vmem:[#allocation2 + $0x140] sm:$0xff] %vm171_vm0, %v7125_v4  ;;  %v241_v33 = vld [vmem:[%s7253_s30 + $0x70] sm:$0xff]  ;;  %v242_v37 = vld [vmem:[%s7253_s30 + $0x78] sm:$0xff]  ;;  %6503 = vmatprep.subr.mxu1 %v7279_v19 }
  0x1a   : > { %215 = vst.msk [vmem:[#allocation2 + $0x150] sm:$0xff] %vm171_vm0, %v7125_v4  ;;  %216 = vst.msk [vmem:[#allocation2 + $0x158] sm:$0xff] %vm171_vm0, %v7125_v4  ;;  %v243_v38 = vld [vmem:[%s7253_s30 + $0x80] sm:$0xff]  ;;  %v244_v39 = vld [vmem:[%s7253_s30 + $0x88] sm:$0xff] }
  0x1b   : > { %218 = vst.msk [vmem:[#allocation2 + $0x168] sm:$0xff] %vm171_vm0, %v7125_v4  ;;  %219 = vst.msk [vmem:[#allocation2 + $0x170] sm:$0xff] %vm171_vm0, %v7125_v4  ;;  %v245_v40 = vld [vmem:[%s7253_s30 + $0x90] sm:$0xff]  ;;  %v246_v41 = vld [vmem:[%s7253_s30 + $0x98] sm:$0xff] }
  0x1c   : > { %221 = vst.msk [vmem:[#allocation2 + $0x180] sm:$0xff] %vm171_vm0, %v7125_v4  ;;  %222 = vst.msk [vmem:[#allocation2 + $0x188] sm:$0xff] %vm171_vm0, %v7125_v4  ;;  %v247_v42 = vld [vmem:[%s7253_s30 + $0xa0] sm:$0xff]  ;;  %v248_v53 = vld [vmem:[%s7253_s30 + $0xa8] sm:$0xff] }
  0x1d   : > { %224 = vst.msk [vmem:[#allocation2 + $0x198] sm:$0xff] %vm171_vm0, %v7125_v4  ;;  %225 = vst.msk [vmem:[#allocation2 + $0x1a0] sm:$0xff] %vm171_vm0, %v7125_v4 }
  0x1e   : > { %175 = vst.msk [vmem:[#allocation2 + $0x10] sm:$0x3] %vm174_vm1, %v7125_v4  ;;  %178 = vst.msk [vmem:[#allocation2 + $0x28] sm:$0x3] %vm174_vm1, %v7125_v4 }
  0x1f   : > { %181 = vst.msk [vmem:[#allocation2 + $0x40] sm:$0x3] %vm174_vm1, %v7125_v4  ;;  %184 = vst.msk [vmem:[#allocation2 + $0x58] sm:$0x3] %vm174_vm1, %v7125_v4 }
  0x20   : > { %187 = vst.msk [vmem:[#allocation2 + $0x70] sm:$0x3] %vm174_vm1, %v7125_v4  ;;  %190 = vst.msk [vmem:[#allocation2 + $0x88] sm:$0x3] %vm174_vm1, %v7125_v4 }
  0x21   : > { %193 = vst.msk [vmem:[#allocation2 + $0xa0] sm:$0x3] %vm174_vm1, %v7125_v4  ;;  %196 = vst.msk [vmem:[#allocation2 + $0xb8] sm:$0x3] %vm174_vm1, %v7125_v4 }
  0x22   : > { %199 = vst.msk [vmem:[#allocation2 + $0xd0] sm:$0x3] %vm174_vm1, %v7125_v4  ;;  %202 = vst.msk [vmem:[#allocation2 + $0xe8] sm:$0x3] %vm174_vm1, %v7125_v4 }
  0x23   : > { %205 = vst.msk [vmem:[#allocation2 + $0x100] sm:$0x3] %vm174_vm1, %v7125_v4  ;;  %208 = vst.msk [vmem:[#allocation2 + $0x118] sm:$0x3] %vm174_vm1, %v7125_v4 }
  0x24   : > { %211 = vst.msk [vmem:[#allocation2 + $0x130] sm:$0x3] %vm174_vm1, %v7125_v4  ;;  %214 = vst.msk [vmem:[#allocation2 + $0x148] sm:$0x3] %vm174_vm1, %v7125_v4 }
  0x25   : > { %217 = vst.msk [vmem:[#allocation2 + $0x160] sm:$0x3] %vm174_vm1, %v7125_v4  ;;  %220 = vst.msk [vmem:[#allocation2 + $0x178] sm:$0x3] %vm174_vm1, %v7125_v4  ;;  %v294_v16 = vld [vmem:[#allocation2 + $0x10] sm:$0x3] }
  0x26   : > { %223 = vst.msk [vmem:[#allocation2 + $0x190] sm:$0x3] %vm174_vm1, %v7125_v4  ;;  %226 = vst.msk [vmem:[#allocation2 + $0x1a8] sm:$0x3] %vm174_vm1, %v7125_v4  ;;  %v400_v20 = vrot.slane %v294_v16, 1  ;;  %v1673_v21 = vrot.slane %v294_v16, 2 }
  0x27   : > { %260 = vst.msk [vmem:[#allocation2 + $0x19] sm:$0xff] %vm171_vm0, %v227_v7  ;;  %261 = vst.msk [vmem:[#allocation2 + $0x21] sm:$0xff] %vm171_vm0, %v228_v8 }
  0x28   : > { %262 = vst.msk [vmem:[#allocation2 + $0x31] sm:$0xff] %vm171_vm0, %v229_v9  ;;  %263 = vst.msk [vmem:[#allocation2 + $0x39] sm:$0xff] %vm171_vm0, %v230_v13  ;;  %v7303_v30 = vsel %vm396_vm2, %v398_v15, %v400_v20  ;;  %v7338_v44 = vsel %vm1669_vm3, %v1671_v36, %v1673_v21  ;;  %v249_v21 = vld [vmem:[%s7253_s30 + $0xb0] sm:$0xff] }
  0x29   : > { %264 = vst.msk [vmem:[#allocation2 + $0x49] sm:$0xff] %vm171_vm0, %v231_v17  ;;  %265 = vst.msk [vmem:[#allocation2 + $0x51] sm:$0xff] %vm171_vm0, %v232_v18  ;;  %6248 = vmatmul.mubr.msk.f32.vlgmr.msra.gmra.mxu0 %vm171_vm0, %v7303_v30 }
  0x2a   : > { %10307 = vst [vmem:[#allocation3_spill] sm:$0xff] %v7292_v26  ;;  %266 = vst.msk [vmem:[#allocation2 + $0x61] sm:$0xff] %vm171_vm0, %v233_v22  ;;  %6348 = vmatpush3.msra.mxu0 %v7233_v5  ;;  %v250_v22 = vld [vmem:[%s7253_s30 + $0xb8] sm:$0xff] }
  0x2b   : > { %267 = vst.msk [vmem:[#allocation2 + $0x69] sm:$0xff] %vm171_vm0, %v234_v23  ;;  %268 = vst.msk [vmem:[#allocation2 + $0x79] sm:$0xff] %vm171_vm0, %v235_v24  ;;  %6349 = vmatprep.subr.mxu0 %v5119_v25  ;;  %v251_v23 = vld [vmem:[%s7253_s30 + $0xc0] sm:$0xff]  ;;  %v252_v24 = vld [vmem:[%s7253_s30 + $0xc8] sm:$0xff] }
  0x2c   : > { %10308 = vst [vmem:[#allocation4_spill] sm:$0xff] %v7303_v30  ;;  %269 = vst.msk [vmem:[#allocation2 + $0x81] sm:$0xff] %vm171_vm0, %v236_v27  ;;  %6350 = vmatpush3.msra.mxu0 %v5119_v25  ;;  %v253_v25 = vld [vmem:[%s7253_s30 + $0xd0] sm:$0xff] }
  0x2d   : > { %270 = vst.msk [vmem:[#allocation2 + $0x91] sm:$0xff] %vm171_vm0, %v237_v28  ;;  %271 = vst.msk [vmem:[#allocation2 + $0x99] sm:$0xff] %vm171_vm0, %v238_v29  ;;  %6451 = vmatprep.subr.mxu0 %v7314_v34  ;;  %v254_v29 = vld [vmem:[%s7253_s30 + $0xd8] sm:$0xff] }
  0x2e   : > { %272 = vst.msk [vmem:[#allocation2 + $0xa9] sm:$0xff] %vm171_vm0, %v239_v31  ;;  %273 = vst.msk [vmem:[#allocation2 + $0xb1] sm:$0xff] %vm171_vm0, %v240_v32  ;;  %v7340_v45 = vld [vmem:[#allocation2 + $0x18] sm:$0xff]  ;;  %v7342_v46 = vld [vmem:[#allocation2 + $0x20] sm:$0xff] }
  0x2f   : > { %274 = vst.msk [vmem:[#allocation2 + $0xc1] sm:$0xff] %vm171_vm0, %v241_v33  ;;  %275 = vst.msk [vmem:[#allocation2 + $0xc9] sm:$0xff] %vm171_vm0, %v242_v37  ;;  %v7344_v47 = vld [vmem:[#allocation2 + $0x28] sm:$0x3]  ;;  %v402_v48 = vrot.slane %v7340_v45, 1  ;;  %v403_v49 = vrot.slane %v7342_v46, 1  ;;  %6302 = vmatprep.mubr.msk.f32.mxu1 %vm171_vm0, %v7340_v45 }
  0x30   : > { %276 = vst.msk [vmem:[#allocation2 + $0xd9] sm:$0xff] %vm171_vm0, %v243_v38  ;;  %277 = vst.msk [vmem:[#allocation2 + $0xe1] sm:$0xff] %vm171_vm0, %v244_v39  ;;  %v405_v50 = vrot.slane %v7344_v47, 1  ;;  %v7354_v51 = vld [vmem:[#allocation2 + $0x30] sm:$0xff]  ;;  %v7356_v52 = vld [vmem:[#allocation2 + $0x38] sm:$0xff]  ;;  %6303 = vmatmul.mubr.msk.f32.gmra.mxu1 %vm171_vm0, %v7342_v46 }
  0x31   : > { %10309 = vst [vmem:[#allocation5_spill] sm:$0xff] %v7335_v43  ;;  %10310 = vst [vmem:[#allocation6_spill] sm:$0xff] %v7338_v44  ;;  %v407_v54 = vrot.slane %v7354_v51, 1  ;;  %v408_v55 = vrot.slane %v7356_v52, 1  ;;  %v7363_v56 = vld [vmem:[#allocation2 + $0x40] sm:$0x3]  ;;  %v7372_v59 = vsel %vm396_vm2, %v402_v48, %v403_v49  ;;  %6305 = vmatprep.mubr.msk.f32.mxu1 %vm171_vm0, %v7354_v51 }
  0x32   : > { %10311 = vst [vmem:[#allocation7_spill] sm:$0xff] %v7344_v47  ;;  %278 = vst.msk [vmem:[#allocation2 + $0xf1] sm:$0xff] %vm171_vm0, %v245_v40  ;;  %v7365_v57 = vld [vmem:[#allocation2 + $0x48] sm:$0xff]  ;;  %v7367_v58 = vld [vmem:[#allocation2 + $0x50] sm:$0xff]  ;;  %v7375_v60 = vsel %vm396_vm2, %v403_v49, %v405_v50  ;;  %v410_v61 = vrot.slane %v7363_v56, 1  ;;  %6250 = vmatprep.mubr.msk.f32.mxu0 %vm171_vm0, %v7372_v59 }
  0x33   : > { %279 = vst.msk [vmem:[#allocation2 + $0xf9] sm:$0xff] %vm171_vm0, %v246_v41  ;;  %280 = vst.msk [vmem:[#allocation2 + $0x109] sm:$0xff] %vm171_vm0, %v247_v42  ;;  %v412_v62 = vrot.slane %v7365_v57, 1  ;;  %v7381_v63 = vld [vmem:[#allocation2 + $0x58] sm:$0x3]  ;;  %v7386_v0 = vsel %vm396_vm2, %v407_v54, %v408_v55  ;;  %v413_v1 = vrot.slane %v7367_v58, 1  ;;  %6251 = vmatmul.mubr.msk.f32.gmra.mxu0 %vm171_vm0, %v7375_v60 }
  0x34   : > { %10312 = vst [vmem:[#allocation8_spill] sm:$0xff] %v7363_v56  ;;  %281 = vst.msk [vmem:[#allocation2 + $0x111] sm:$0xff] %vm171_vm0, %v248_v53  ;;  %v7389_v2 = vld [vmem:[#allocation2 + $0x60] sm:$0xff]  ;;  %v7391_v3 = vld [vmem:[#allocation2 + $0x68] sm:$0xff]  ;;  %6253 = vmatprep.mubr.msk.f32.mxu0 %vm171_vm0, %v7386_v0  ;;  %v7398_v4 = vsel %vm396_vm2, %v408_v55, %v410_v61  ;;  %6306 = vmatmul.mubr.msk.f32.gmra.mxu1 %vm171_vm0, %v7356_v52  ;;  %v415_v5 = vrot.slane %v7381_v63, 1 }
  0x35   : > { %10313 = vst [vmem:[#allocation9_spill] sm:$0xff] %v7372_v59  ;;  %10314 = vst [vmem:[#allocation10_spill] sm:$0xff] %v7375_v60  ;;  %v7404_v6 = vsel %vm396_vm2, %v412_v62, %v413_v1  ;;  %6308 = vmatprep.mubr.msk.f32.mxu1 %vm171_vm0, %v7365_v57  ;;  %v417_v7 = vrot.slane %v7389_v2, 1  ;;  %v418_v8 = vrot.slane %v7391_v3, 1  ;;  %v7410_v9 = vld [vmem:[#allocation2 + $0x70] sm:$0x3] }
  0x36   : > { %10315 = vst [vmem:[#allocation11_spill] sm:$0xff] %v7381_v63  ;;  %10316 = vst [vmem:[#allocation12_spill] sm:$0xff] %v7386_v0  ;;  %v7412_v10 = vld [vmem:[#allocation2 + $0x78] sm:$0xff]  ;;  %v7414_v11 = vld [vmem:[#allocation2 + $0x80] sm:$0xff]  ;;  %v7421_v12 = vsel %vm396_vm2, %v413_v1, %v415_v5  ;;  %v420_v13 = vrot.slane %v7410_v9, 1 }
  0x37   : > { %10317 = vst [vmem:[#allocation13_spill] sm:$0xff] %v7398_v4  ;;  %10318 = vst [vmem:[#allocation14_spill] sm:$0xff] %v7404_v6  ;;  %6254 = vmatmul.mubr.msk.f32.gmra.mxu0 %vm171_vm0, %v7398_v4  ;;  %v7427_v14 = vsel %vm396_vm2, %v417_v7, %v418_v8  ;;  %v422_v15 = vrot.slane %v7412_v10, 1  ;;  %v423_v16 = vrot.slane %v7414_v11, 1  ;;  %v7433_v17 = vld [vmem:[#allocation2 + $0x88] sm:$0x3] }
  0x38   : > { %10319 = vst [vmem:[#allocation15_spill] sm:$0xff] %v7410_v9  ;;  %6256 = vmatprep.mubr.msk.f32.mxu0 %vm171_vm0, %v7404_v6  ;;  %6309 = vmatmul.mubr.msk.f32.gmra.mxu1 %vm171_vm0, %v7367_v58  ;;  %10320 = vst [vmem:[#allocation16_spill] sm:$0xff] %v7427_v14  ;;  %v7435_v18 = vld [vmem:[#allocation2 + $0x90] sm:$0xff]  ;;  %v7437_v20 = vld [vmem:[#allocation2 + $0x98] sm:$0xff]  ;;  %v7451_v27 = vsel %vm396_vm2, %v418_v8, %v420_v13  ;;  %v425_v28 = vrot.slane %v7433_v17, 1 }
  0x39   : > { %6311 = vmatprep.mubr.msk.f32.mxu1 %vm171_vm0, %v7389_v2  ;;  %10321 = vst [vmem:[#allocation17_spill] sm:$0xff] %v7433_v17  ;;  %282 = vst.msk [vmem:[#allocation2 + $0x121] sm:$0xff] %vm171_vm0, %v249_v21  ;;  %v255_v31 = vld [vmem:[%s7253_s30 + $0xe0] sm:$0xff]  ;;  %v256_v32 = vld [vmem:[%s7253_s30 + $0xe8] sm:$0xff]  ;;  %v7463_v33 = vsel %vm396_vm2, %v422_v15, %v423_v16  ;;  %v427_v35 = vrot.slane %v7435_v18, 1  ;;  %v428_v36 = vrot.slane %v7437_v20, 1 }
  0x3a   : > { %283 = vst.msk [vmem:[#allocation2 + $0x129] sm:$0xff] %vm171_vm0, %v250_v22  ;;  %284 = vst.msk [vmem:[#allocation2 + $0x139] sm:$0xff] %vm171_vm0, %v251_v23  ;;  %v7469_v37 = vld [vmem:[#allocation2 + $0xa0] sm:$0x3]  ;;  %v257_v38 = vld [vmem:[%s7253_s30 + $0xf0] sm:$0xff]  ;;  %v7487_v42 = vsel %vm396_vm2, %v423_v16, %v425_v28 }
  0x3b   : > { %6257 = vmatmul.mubr.msk.f32.gmra.mxu0 %vm171_vm0, %v7421_v12  ;;  %285 = vst.msk [vmem:[#allocation2 + $0x141] sm:$0xff] %vm171_vm0, %v252_v24  ;;  %286 = vst.msk [vmem:[#allocation2 + $0x151] sm:$0xff] %vm171_vm0, %v253_v25  ;;  %v258_v39 = vld [vmem:[%s7253_s30 + $0xf8] sm:$0xff]  ;;  %v7476_v40 = vld [vmem:[#allocation2 + $0xa8] sm:$0xff]  ;;  %v430_v48 = vrot.slane %v7469_v37, 1  ;;  %v7493_v49 = vsel %vm396_vm2, %v427_v35, %v428_v36 }
  0x3c   : > { %6259 = vmatprep.mubr.msk.f32.mxu0 %vm171_vm0, %v7427_v14  ;;  %6312 = vmatmul.mubr.msk.f32.gmra.mxu1 %vm171_vm0, %v7391_v3  ;;  %10322 = vst [vmem:[#allocation18_spill] sm:$0xff] %v7463_v33  ;;  %10323 = vst [vmem:[#allocation19_spill] sm:$0xff] %v7469_v37  ;;  %v7478_v41 = vld [vmem:[#allocation2 + $0xb0] sm:$0xff]  ;;  %v432_v50 = vrot.slane %v7476_v40, 1  ;;  %v7499_v54 = vld [vmem:[#allocation2 + $0xb8] sm:$0x3] }
  0x3d   : > { %6314 = vmatprep.mubr.msk.f32.mxu1 %vm171_vm0, %v7412_v10  ;;  %287 = vst.msk [vmem:[#allocation2 + $0x159] sm:$0xff] %vm171_vm0, %v254_v29  ;;  %288 = vst.msk [vmem:[#allocation2 + $0x169] sm:$0xff] %vm171_vm0, %v255_v31  ;;  %v433_v53 = vrot.slane %v7478_v41, 1  ;;  %v7501_v55 = vld [vmem:[#allocation2 + $0xc0] sm:$0xff]  ;;  %v7503_v61 = vld [vmem:[#allocation2 + $0xc8] sm:$0xff]  ;;  %v7510_v62 = vsel %vm396_vm2, %v428_v36, %v430_v48  ;;  %v435_v1 = vrot.slane %v7499_v54, 1 }
  0x3e   : > { %289 = vst.msk [vmem:[#allocation2 + $0x171] sm:$0xff] %vm171_vm0, %v256_v32  ;;  %290 = vst.msk [vmem:[#allocation2 + $0x181] sm:$0xff] %vm171_vm0, %v257_v38  ;;  %v437_v7 = vrot.slane %v7501_v55, 1  ;;  %v438_v8 = vrot.slane %v7503_v61, 1  ;;  %v7522_v13 = vld [vmem:[#allocation2 + $0xd0] sm:$0x3] }
  0x3f   : > { %291 = vst.msk [vmem:[#allocation2 + $0x189] sm:$0xff] %vm171_vm0, %v258_v39  ;;  %6260 = vmatmul.mubr.msk.f32.gmra.mxu0 %vm171_vm0, %v7451_v27  ;;  %10324 = vst [vmem:[#allocation20_spill] sm:$0xff] %v7493_v49  ;;  %v7516_v5 = vsel %vm396_vm2, %v432_v50, %v433_v53  ;;  %v7524_v15 = vld [vmem:[#allocation2 + $0xd8] sm:$0xff]  ;;  %v7526_v16 = vld [vmem:[#allocation2 + $0xe0] sm:$0xff]  ;;  %v7533_v21 = vsel %vm396_vm2, %v433_v53, %v435_v1  ;;  %v440_v22 = vrot.slane %v7522_v13, 1 }
  0x40   : > { %6262 = vmatprep.mubr.msk.f32.mxu0 %vm171_vm0, %v7463_v33  ;;  %6315 = vmatmul.mubr.msk.f32.gmra.mxu1 %vm171_vm0, %v7414_v11  ;;  %10325 = vst [vmem:[#allocation21_spill] sm:$0xff] %v7499_v54  ;;  %10326 = vst [vmem:[#allocation22_spill] sm:$0xff] %v7516_v5  ;;  %v7539_v23 = vsel %vm396_vm2, %v437_v7, %v438_v8  ;;  %v442_v24 = vrot.slane %v7524_v15, 1  ;;  %v443_v25 = vrot.slane %v7526_v16, 1  ;;  %v7545_v28 = vld [vmem:[#allocation2 + $0xe8] sm:$0x3] }
  0x41   : > { %6317 = vmatprep.mubr.msk.f32.mxu1 %vm171_vm0, %v7435_v18  ;;  %10327 = vst [vmem:[#allocation23_spill] sm:$0xff] %v7522_v13  ;;  %10328 = vst [vmem:[#allocation24_spill] sm:$0xff] %v7533_v21  ;;  %v7547_v29 = vld [vmem:[#allocation2 + $0xf0] sm:$0xff]  ;;  %v7549_v31 = vld [vmem:[#allocation2 + $0xf8] sm:$0xff]  ;;  %v7556_v32 = vsel %vm396_vm2, %v438_v8, %v440_v22  ;;  %v445_v35 = vrot.slane %v7545_v28, 1 }
  0x42   : > { %10329 = vst [vmem:[#allocation25_spill] sm:$0xff] %v7539_v23  ;;  %10330 = vst [vmem:[#allocation26_spill] sm:$0xff] %v7545_v28  ;;  %v7562_v36 = vsel %vm396_vm2, %v442_v24, %v443_v25  ;;  %v447_v38 = vrot.slane %v7547_v29, 1  ;;  %v448_v39 = vrot.slane %v7549_v31, 1  ;;  %v7568_v48 = vld [vmem:[#allocation2 + $0x100] sm:$0x3] }
  0x43   : > { %6263 = vmatmul.mubr.msk.f32.gmra.mxu0 %vm171_vm0, %v7487_v42  ;;  %10331 = vst [vmem:[#allocation27_spill] sm:$0xff] %v7556_v32  ;;  %10332 = vst [vmem:[#allocation28_spill] sm:$0xff] %v7562_v36  ;;  %v7570_v50 = vld [vmem:[#allocation2 + $0x108] sm:$0xff]  ;;  %v7572_v53 = vld [vmem:[#allocation2 + $0x110] sm:$0xff]  ;;  %v7579_v1 = vsel %vm396_vm2, %v443_v25, %v445_v35  ;;  %v450_v7 = vrot.slane %v7568_v48, 1 }
  0x44   : > { %6265 = vmatprep.mubr.msk.f32.mxu0 %vm171_vm0, %v7493_v49  ;;  %6318 = vmatmul.mubr.msk.f32.gmra.mxu1 %vm171_vm0, %v7437_v20  ;;  %10333 = vst [vmem:[#allocation29_spill] sm:$0xff] %v7568_v48  ;;  %10334 = vst [vmem:[#allocation30_spill] sm:$0xff] %v7579_v1  ;;  %v7585_v8 = vsel %vm396_vm2, %v447_v38, %v448_v39  ;;  %v452_v22 = vrot.slane %v7570_v50, 1  ;;  %v453_v24 = vrot.slane %v7572_v53, 1  ;;  %v7591_v28 = vld [vmem:[#allocation2 + $0x118] sm:$0x3] }
  0x45   : > { %6320 = vmatprep.mubr.msk.f32.mxu1 %vm171_vm0, %v7476_v40  ;;  %10335 = vst [vmem:[#allocation31_spill] sm:$0xff] %v7585_v8  ;;  %10336 = vst [vmem:[#allocation32_spill] sm:$0xff] %v7591_v28  ;;  %v7593_v13 = vld [vmem:[#allocation2 + $0x120] sm:$0xff]  ;;  %v7595_v25 = vld [vmem:[#allocation2 + $0x128] sm:$0xff]  ;;  %v7602_v35 = vsel %vm396_vm2, %v448_v39, %v450_v7  ;;  %v455_v38 = vrot.slane %v7591_v28, 1 }
  0x46   : > { %10337 = vst [vmem:[#allocation33_spill] sm:$0xff] %v7593_v13  ;;  %10338 = vst [vmem:[#allocation34_spill] sm:$0xff] %v7595_v25  ;;  %v7608_v48 = vsel %vm396_vm2, %v452_v22, %v453_v24  ;;  %v457_v54 = vrot.slane %v7593_v13, 1  ;;  %v458_v37 = vrot.slane %v7595_v25, 1  ;;  %v7614_v17 = vld [vmem:[#allocation2 + $0x130] sm:$0x3] }
  0x47   : > { %6266 = vmatmul.mubr.msk.f32.gmra.mxu0 %vm171_vm0, %v7510_v62  ;;  %10339 = vst [vmem:[#allocation35_spill] sm:$0xff] %v7602_v35  ;;  %10340 = vst [vmem:[#allocation36_spill] sm:$0xff] %v7608_v48  ;;  %v7616_v9 = vld [vmem:[#allocation2 + $0x138] sm:$0xff]  ;;  %v7618_v39 = vld [vmem:[#allocation2 + $0x140] sm:$0xff]  ;;  %v7625_v7 = vsel %vm396_vm2, %v453_v24, %v455_v38  ;;  %v460_v22 = vrot.slane %v7614_v17, 1 }
  0x48   : > { %6268 = vmatprep.mubr.msk.f32.mxu0 %vm171_vm0, %v7516_v5  ;;  %6321 = vmatmul.mubr.msk.f32.gmra.mxu1 %vm171_vm0, %v7478_v41  ;;  %10341 = vst [vmem:[#allocation37_spill] sm:$0xff] %v7614_v17  ;;  %10342 = vst [vmem:[#allocation38_spill] sm:$0xff] %v7616_v9  ;;  %v7631_v28 = vsel %vm396_vm2, %v457_v54, %v458_v37  ;;  %v462_v63 = vrot.slane %v7616_v9, 1  ;;  %v463_v56 = vrot.slane %v7618_v39, 1  ;;  %v7637_v44 = vld [vmem:[#allocation2 + $0x148] sm:$0x3] }
  0x49   : > { %6323 = vmatprep.mubr.msk.f32.mxu1 %vm171_vm0, %v7501_v55  ;;  %10343 = vst [vmem:[#allocation39_spill] sm:$0xff] %v7625_v7  ;;  %10344 = vst [vmem:[#allocation40_spill] sm:$0xff] %v7631_v28  ;;  %v7639_v30 = vld [vmem:[#allocation2 + $0x150] sm:$0xff]  ;;  %v7641_v24 = vld [vmem:[#allocation2 + $0x158] sm:$0xff]  ;;  %v7648_v54 = vsel %vm396_vm2, %v458_v37, %v460_v22  ;;  %v465_v38 = vrot.slane %v7637_v44, 1 }
  0x4a   : > { %10345 = vst [vmem:[#allocation41_spill] sm:$0xff] %v7637_v44  ;;  %10346 = vst [vmem:[#allocation42_spill] sm:$0xff] %v7648_v54  ;;  %v7654_v17 = vsel %vm396_vm2, %v462_v63, %v463_v56  ;;  %v467_v47 = vrot.slane %v7639_v30, 1  ;;  %v468_v43 = vrot.slane %v7641_v24, 1  ;;  %v7660_v26 = vld [vmem:[#allocation2 + $0x160] sm:$0x3] }
  0x4b   : > { %6269 = vmatmul.mubr.msk.f32.gmra.mxu0 %vm171_vm0, %v7533_v21  ;;  %10347 = vst [vmem:[#allocation43_spill] sm:$0xff] %v7654_v17  ;;  %10348 = vst [vmem:[#allocation44_spill] sm:$0xff] %v7660_v26  ;;  %v7664_v37 = vld [vmem:[#allocation2 + $0x170] sm:$0xff]  ;;  %v7671_v63 = vsel %vm396_vm2, %v463_v56, %v465_v38  ;;  %v470_v22 = vrot.slane %v7660_v26, 1  ;;  %v7833_v26 = vld [vmem:[#allocation2 + $0x188] sm:$0xff] }
  0x4c   : > { %6271 = vmatprep.mubr.msk.f32.mxu0 %vm171_vm0, %v7539_v23  ;;  %6324 = vmatmul.mubr.msk.f32.gmra.mxu1 %vm171_vm0, %v7503_v61  ;;  %10349 = vst [vmem:[#allocation45_spill] sm:$0xff] %v7671_v63  ;;  %v7677_v44 = vsel %vm396_vm2, %v467_v47, %v468_v43 }
  0x4d   : > { %6326 = vmatprep.mubr.msk.f32.mxu1 %vm171_vm0, %v7524_v15  ;;  %10350 = vst [vmem:[#allocation46_spill] sm:$0xff] %v7677_v44  ;;  %v7690_v56 = vsel %vm396_vm2, %v468_v43, %v470_v22  ;;  %v7741_v22 = vld [vmem:[%s10127_s1 + $0x78] sm:$0xff] }
  0x4e   : > { %10352 = vst [vmem:[#allocation48_spill] sm:$0xff] %v7690_v56 }
  0x4f   : > { %6272 = vmatmul.mubr.msk.f32.gmra.mxu0 %vm171_vm0, %v7556_v32 }
  0x50   : > { %6274 = vmatprep.mubr.msk.f32.mxu0 %vm171_vm0, %v7562_v36  ;;  %6327 = vmatmul.mubr.msk.f32.gmra.mxu1 %vm171_vm0, %v7526_v16 }
  0x51   : > { %6329 = vmatprep.mubr.msk.f32.mxu1 %vm171_vm0, %v7547_v29 }
  0x53   : > { %6275 = vmatmul.mubr.msk.f32.gmra.mxu0 %vm171_vm0, %v7579_v1 }
  0x54   : > { %6277 = vmatprep.mubr.msk.f32.mxu0 %vm171_vm0, %v7585_v8  ;;  %6330 = vmatmul.mubr.msk.f32.gmra.mxu1 %vm171_vm0, %v7549_v31 }
  0x55   : > { %6332 = vmatprep.mubr.msk.f32.mxu1 %vm171_vm0, %v7570_v50 }
  0x57   : > { %6278 = vmatmul.mubr.msk.f32.gmra.mxu0 %vm171_vm0, %v7602_v35 }
  0x58   : > { %6280 = vmatprep.mubr.msk.f32.mxu0 %vm171_vm0, %v7608_v48  ;;  %6333 = vmatmul.mubr.msk.f32.gmra.mxu1 %vm171_vm0, %v7572_v53 }
  0x59   : > { %6335 = vmatprep.mubr.msk.f32.mxu1 %vm171_vm0, %v7593_v13  ;;  %v7662_v13 = vld [vmem:[#allocation2 + $0x168] sm:$0xff] }
  0x5b   : > { %6281 = vmatmul.mubr.msk.f32.gmra.mxu0 %vm171_vm0, %v7625_v7 }
  0x5c   : > { %6283 = vmatprep.mubr.msk.f32.mxu0 %vm171_vm0, %v7631_v28  ;;  %6336 = vmatmul.mubr.msk.f32.gmra.mxu1 %vm171_vm0, %v7595_v25  ;;  %v473_v25 = vrot.slane %v7664_v37, 1 }
  0x5d   : > { %6338 = vmatprep.mubr.msk.f32.mxu1 %vm171_vm0, %v7616_v9  ;;  %v472_v9 = vrot.slane %v7662_v13, 1 }
  0x5f   : > { %6284 = vmatmul.mubr.msk.f32.gmra.mxu0 %vm171_vm0, %v7648_v54  ;;  %v7683_v54 = vld [vmem:[#allocation2 + $0x178] sm:$0x3]  ;;  %v7696_v38 = vsel %vm396_vm2, %v472_v9, %v473_v25  ;;  %v5188_v9 = vld [vmem:[%s10127_s1 + $0x40] sm:$0xff] }
  0x60   : > { %6286 = vmatprep.mubr.msk.f32.mxu0 %vm171_vm0, %v7654_v17  ;;  %6339 = vmatmul.mubr.msk.f32.gmra.mxu1 %vm171_vm0, %v7618_v39  ;;  %10351 = vst [vmem:[#allocation47_spill] sm:$0xff] %v7683_v54  ;;  %v475_v47 = vrot.slane %v7683_v54, 1  ;;  %10353 = vst [vmem:[#allocation49_spill] sm:$0xff] %v7696_v38  ;;  %v7831_v54 = vld [vmem:[#allocation2 + $0x180] sm:$0xff] }
  0x61   : > { %6341 = vmatprep.mubr.msk.f32.mxu1 %vm171_vm0, %v7639_v30 }
  0x62   : > { %v7705_v43 = vsel %vm396_vm2, %v473_v25, %v475_v47  ;;  %v5190_v25 = vld [vmem:[%s10127_s1 + $0x50] sm:$0xff]  ;;  %v10356_v47 = vld [vmem:[#allocation42_spill] sm:$0xff] }
  0x63   : > { %6287 = vmatmul.mubr.msk.f32.gmra.mxu0 %vm171_vm0, %v7671_v63  ;;  %10354 = vst [vmem:[#allocation50_spill] sm:$0xff] %v7705_v43 }
  0x64   : > { %6289 = vmatprep.mubr.msk.f32.mxu0 %vm171_vm0, %v7677_v44  ;;  %6342 = vmatmul.mubr.msk.f32.gmra.mxu1 %vm171_vm0, %v7641_v24 }
  0x65   : > { %6344 = vmatprep.mubr.msk.f32.mxu1 %vm171_vm0, %v7662_v13 }
  0x67   : > { %6290 = vmatmul.mubr.msk.f32.gmra.mxu0 %vm171_vm0, %v7690_v56 }
  0x68   : > { %6292 = vmatprep.mubr.msk.f32.mxu0 %vm171_vm0, %v7696_v38  ;;  %6345 = vmatmul.mubr.msk.f32.gmra.mxu1 %vm171_vm0, %v7664_v37 }
  0x69   : > { %6403 = vmatprep.mubr.msk.f32.mxu1 %vm171_vm0, %v7372_v59 }
  0x6b   : > { %6293 = vmatmul.mubr.msk.f32.gmra.mxu0 %vm171_vm0, %v7705_v43 }
  0x6c   : > { %6351 = vmatprep.mubr.msk.f32.mxu0 %vm171_vm0, %v7340_v45  ;;  %6404 = vmatmul.mubr.msk.f32.vlgmr.msra.gmra.mxu1 %vm171_vm0, %v7375_v60 }
  0x6d   : > { %6504 = vmatpush3.msra.mxu1 %v7279_v19  ;;  %6406 = vmatprep.mubr.msk.f32.mxu1 %vm171_vm0, %v7386_v0  ;;  %v7734_v19 = vld [vmem:[%s10127_s1 + $0x68] sm:$0xff] }
  0x6e   : > { %6505 = vmatprep.subr.mxu1 %v5188_v9 }
  0x6f   : > { %6352 = vmatmul.mubr.msk.f32.vlgmr.msra.gmra.mxu0 %vm171_vm0, %v7342_v46  ;;  %6506 = vmatpush3.msra.mxu1 %v5188_v9  ;;  %v10357_v9 = vld [vmem:[#allocation34_spill] sm:$0xff] }
  0x70   : > { %6452 = vmatpush3.msra.mxu0 %v7314_v34  ;;  %6354 = vmatprep.mubr.msk.f32.mxu0 %vm171_vm0, %v7354_v51  ;;  %v10355_v34 = vld [vmem:[#allocation33_spill] sm:$0xff]  ;;  %10360 = vst [vmem:[#allocation34_spill] sm:$0xff] %v7833_v26 }
  0x71   : > { %6407 = vmatmul.mubr.msk.f32.gmra.mxu1 %vm171_vm0, %v7398_v4  ;;  %6453 = vmatprep.subr.mxu0 %v5190_v25  ;;  %10359 = vst [vmem:[#allocation33_spill] sm:$0xff] %v7831_v54 }
  0x72   : > { %6409 = vmatprep.mubr.msk.f32.mxu1 %vm171_vm0, %v7404_v6  ;;  %6454 = vmatpush3.msra.mxu0 %v5190_v25  ;;  %v10358_v25 = vld [vmem:[#allocation38_spill] sm:$0xff] }
  0x73   : > { %6355 = vmatmul.mubr.msk.f32.gmra.mxu0 %vm171_vm0, %v7356_v52  ;;  %6555 = vmatprep.subr.mxu0 %v7734_v19 }
  0x74   : > { %6357 = vmatprep.mubr.msk.f32.mxu0 %vm171_vm0, %v7365_v57  ;;  %6607 = vmatprep.subr.mxu1 %v7741_v22 }
  0x75   : > { %6410 = vmatmul.mubr.msk.f32.gmra.mxu1 %vm171_vm0, %v7421_v12 }
  0x76   : > { %6412 = vmatprep.mubr.msk.f32.mxu1 %vm171_vm0, %v7427_v14 }
  0x77   : > { %6358 = vmatmul.mubr.msk.f32.gmra.mxu0 %vm171_vm0, %v7367_v58 }
  0x78   : > { %6360 = vmatprep.mubr.msk.f32.mxu0 %vm171_vm0, %v7389_v2 }
  0x79   : > { %6413 = vmatmul.mubr.msk.f32.gmra.mxu1 %vm171_vm0, %v7451_v27 }
  0x7a   : > { %6415 = vmatprep.mubr.msk.f32.mxu1 %vm171_vm0, %v7463_v33 }
  0x7b   : > { %6361 = vmatmul.mubr.msk.f32.gmra.mxu0 %vm171_vm0, %v7391_v3 }
  0x7c   : > { %6363 = vmatprep.mubr.msk.f32.mxu0 %vm171_vm0, %v7412_v10 }
  0x7d   : > { %6416 = vmatmul.mubr.msk.f32.gmra.mxu1 %vm171_vm0, %v7487_v42 }
  0x7e   : > { %6418 = vmatprep.mubr.msk.f32.mxu1 %vm171_vm0, %v7493_v49 }
  0x7f   : > { %6364 = vmatmul.mubr.msk.f32.gmra.mxu0 %vm171_vm0, %v7414_v11 }
  0x80   : > { %6366 = vmatprep.mubr.msk.f32.mxu0 %vm171_vm0, %v7435_v18 }
  0x81   : > { %6419 = vmatmul.mubr.msk.f32.gmra.mxu1 %vm171_vm0, %v7510_v62 }
  0x82   : > { %6421 = vmatprep.mubr.msk.f32.mxu1 %vm171_vm0, %v7516_v5 }
  0x83   : > { %6367 = vmatmul.mubr.msk.f32.gmra.mxu0 %vm171_vm0, %v7437_v20 }
  0x84   : > { %6369 = vmatprep.mubr.msk.f32.mxu0 %vm171_vm0, %v7476_v40 }
  0x85   : > { %6422 = vmatmul.mubr.msk.f32.gmra.mxu1 %vm171_vm0, %v7533_v21 }
  0x86   : > { %6424 = vmatprep.mubr.msk.f32.mxu1 %vm171_vm0, %v7539_v23 }
  0x87   : > { %6370 = vmatmul.mubr.msk.f32.gmra.mxu0 %vm171_vm0, %v7478_v41 }
  0x88   : > { %6372 = vmatprep.mubr.msk.f32.mxu0 %vm171_vm0, %v7501_v55 }
  0x89   : > { %6425 = vmatmul.mubr.msk.f32.gmra.mxu1 %vm171_vm0, %v7556_v32 }
  0x8a   : > { %6427 = vmatprep.mubr.msk.f32.mxu1 %vm171_vm0, %v7562_v36 }
  0x8b   : > { %6373 = vmatmul.mubr.msk.f32.gmra.mxu0 %vm171_vm0, %v7503_v61 }
  0x8c   : > { %6375 = vmatprep.mubr.msk.f32.mxu0 %vm171_vm0, %v7524_v15 }
  0x8d   : > { %6428 = vmatmul.mubr.msk.f32.gmra.mxu1 %vm171_vm0, %v7579_v1 }
  0x8e   : > { %6430 = vmatprep.mubr.msk.f32.mxu1 %vm171_vm0, %v7585_v8 }
  0x8f   : > { %6376 = vmatmul.mubr.msk.f32.gmra.mxu0 %vm171_vm0, %v7526_v16 }
  0x90   : > { %6378 = vmatprep.mubr.msk.f32.mxu0 %vm171_vm0, %v7547_v29 }
  0x91   : > { %6431 = vmatmul.mubr.msk.f32.gmra.mxu1 %vm171_vm0, %v7602_v35 }
  0x92   : > { %6433 = vmatprep.mubr.msk.f32.mxu1 %vm171_vm0, %v7608_v48 }
  0x93   : > { %6379 = vmatmul.mubr.msk.f32.gmra.mxu0 %vm171_vm0, %v7549_v31 }
  0x94   : > { %6381 = vmatprep.mubr.msk.f32.mxu0 %vm171_vm0, %v7570_v50 }
  0x95   : > { %6434 = vmatmul.mubr.msk.f32.gmra.mxu1 %vm171_vm0, %v7625_v7 }
  0x96   : > { %6436 = vmatprep.mubr.msk.f32.mxu1 %vm171_vm0, %v7631_v28  ;;  %v7843_v28 = vld [vmem:[#allocation2 + $0x190] sm:$0x3] }
  0x97   : > { %6382 = vmatmul.mubr.msk.f32.gmra.mxu0 %vm171_vm0, %v7572_v53  ;;  %10361 = vst [vmem:[#allocation38_spill] sm:$0xff] %v7843_v28 }
  0x98   : > { %6384 = vmatprep.mubr.msk.f32.mxu0 %vm171_vm0, %v10355_v34 }
  0x99   : > { %6437 = vmatmul.mubr.msk.f32.gmra.mxu1 %vm171_vm0, %v10356_v47  ;;  %v1326_v47 = vrot.slane %v7833_v26, 1 }
  0x9a   : > { %6439 = vmatprep.mubr.msk.f32.mxu1 %vm171_vm0, %v7654_v17  ;;  %v1325_v17 = vrot.slane %v7831_v54, 1 }
  0x9b   : > { %6385 = vmatmul.mubr.msk.f32.gmra.mxu0 %vm171_vm0, %v10357_v9 }
  0x9c   : > { %6387 = vmatprep.mubr.msk.f32.mxu0 %vm171_vm0, %v10358_v25 }
  0x9d   : > { %6440 = vmatmul.mubr.msk.f32.gmra.mxu1 %vm171_vm0, %v7671_v63  ;;  %v7855_v63 = vsel %vm396_vm2, %v1325_v17, %v1326_v47  ;;  %v1675_v17 = vrot.slane %v7340_v45, 2 }
  0x9e   : > { %6442 = vmatprep.mubr.msk.f32.mxu1 %vm171_vm0, %v7677_v44  ;;  %v1328_v44 = vrot.slane %v7843_v28, 1  ;;  %10362 = vst [vmem:[#allocation51_spill] sm:$0xff] %v7855_v63  ;;  %v1676_v28 = vrot.slane %v7342_v46, 2  ;;  %v1680_v46 = vrot.slane %v7354_v51, 2 }
  0x9f   : > { %6388 = vmatmul.mubr.msk.f32.gmra.mxu0 %vm171_vm0, %v7618_v39 }
  0xa0   : > { %6390 = vmatprep.mubr.msk.f32.mxu0 %vm171_vm0, %v7639_v30  ;;  %v7887_v45 = vsel %vm1669_vm3, %v1675_v17, %v1676_v28  ;;  %v1685_v17 = vrot.slane %v7365_v57, 2 }
  0xa1   : > { %6443 = vmatmul.mubr.msk.f32.gmra.mxu1 %vm171_vm0, %v7690_v56  ;;  %v7864_v56 = vsel %vm396_vm2, %v1326_v47, %v1328_v44  ;;  %v10365_v44 = vld [vmem:[#allocation5_spill] sm:$0xff]  ;;  %v10366_v47 = vld [vmem:[#allocation7_spill] sm:$0xff] }
  0xa2   : > { %6445 = vmatprep.mubr.msk.f32.mxu1 %vm171_vm0, %v7696_v38  ;;  %10363 = vst [vmem:[#allocation52_spill] sm:$0xff] %v7864_v56 }
  0xa3   : > { %6391 = vmatmul.mubr.msk.f32.gmra.mxu0 %vm171_vm0, %v7641_v24 }
  0xa4   : > { %6393 = vmatprep.mubr.msk.f32.mxu0 %vm171_vm0, %v7662_v13 }
  0xa5   : > { %6446 = vmatmul.mubr.msk.f32.gmra.mxu1 %vm171_vm0, %v7705_v43  ;;  %v10364_v43 = vld [vmem:[#allocation3_spill] sm:$0xff] }
  0xa6   : > { %6448 = vmatprep.mubr.msk.f32.mxu1 %vm171_vm0, %v7855_v63  ;;  %v1678_v63 = vrot.slane %v10366_v47, 2  ;;  %10368 = vst [vmem:[#allocation3_spill] sm:$0xff] %v7887_v45  ;;  %v10369_v47 = vld [vmem:[#allocation6_spill] sm:$0xff] }
  0xa7   : > { %6394 = vmatmul.mubr.msk.f32.gmra.mxu0 %vm171_vm0, %v7664_v37 }
  0xa8   : > { %6396 = vmatprep.mubr.msk.f32.mxu0 %vm171_vm0, %v7831_v54  ;;  %v5290_v54 = vld [vmem:[%s10127_s1 + $0x70] sm:$0xff]  ;;  %v7903_v51 = vsel %vm1669_vm3, %v1676_v28, %v1678_v63  ;;  %v7923_v28 = vld [vmem:[%s10127_s1 + $0x88] sm:$0xff] }
  0xa9   : > { %6449 = vmatmul.mubr.msk.f32.gmra.mxu1 %vm171_vm0, %v7864_v56  ;;  %v10367_v56 = vld [vmem:[#allocation4_spill] sm:$0xff]  ;;  %10370 = vst [vmem:[#allocation5_spill] sm:$0xff] %v7903_v51 }
  0xaa   : > { %6507 = vmatprep.mubr.msk.f32.mxu1 %vm171_vm0, %v10364_v43  ;;  %v1681_v43 = vrot.slane %v7356_v52, 2  ;;  %v10371_v52 = vld [vmem:[#allocation8_spill] sm:$0xff] }
  0xab   : > { %6397 = vmatmul.mubr.msk.f32.gmra.mxu0 %vm171_vm0, %v7833_v26  ;;  %v1741_v26 = vrot.slane %v7641_v24, 2  ;;  %v1745_v24 = vrot.slane %v7662_v13, 2 }
  0xac   : > { %6455 = vmatprep.mubr.msk.f32.mxu0 %vm171_vm0, %v10365_v44  ;;  %v5256_v44 = vld [vmem:[%s10127_s1 + $0x60] sm:$0xff] }
  0xad   : > { %6508 = vmatmul.mubr.msk.f32.vlgmr.msra.gmra.mxu1 %vm171_vm0, %v10367_v56  ;;  %v1683_v56 = vrot.slane %v10371_v52, 2  ;;  %v10377_v52 = vld [vmem:[#allocation15_spill] sm:$0xff] }
  0xae   : > { %6608 = vmatpush3.msra.mxu1 %v7741_v22  ;;  %6510 = vmatprep.mubr.msk.f32.mxu1 %vm171_vm0, %v7372_v59  ;;  %v7909_v22 = vsel %vm1669_vm3, %v1680_v46, %v1681_v43 }
  0xaf   : > { %6456 = vmatmul.mubr.msk.f32.vlgmr.msra.gmra.mxu0 %vm171_vm0, %v10369_v47  ;;  %6609 = vmatprep.subr.mxu1 %v5290_v54  ;;  %10372 = vst [vmem:[#allocation7_spill] sm:$0xff] %v7909_v22  ;;  %v1686_v47 = vrot.slane %v7367_v58, 2  ;;  %v7930_v57 = vsel %vm1669_vm3, %v1681_v43, %v1683_v56  ;;  %v10374_v58 = vld [vmem:[#allocation11_spill] sm:$0xff]  ;;  %v1693_v56 = vrot.slane %v10377_v52, 2 }
  0xb0   : > { %6556 = vmatpush3.msra.mxu0 %v7734_v19  ;;  %6458 = vmatprep.mubr.msk.f32.mxu0 %vm171_vm0, %v7887_v45  ;;  %v7916_v19 = vld [vmem:[%s10127_s1 + $0x98] sm:$0xff]  ;;  %10373 = vst [vmem:[#allocation4_spill] sm:$0xff] %v7930_v57  ;;  %v1688_v63 = vrot.slane %v10374_v58, 2  ;;  %v10380_v58 = vld [vmem:[#allocation17_spill] sm:$0xff]  ;;  %v10383_v52 = vld [vmem:[#allocation19_spill] sm:$0xff] }
  0xb1   : > { %6511 = vmatmul.mubr.msk.f32.gmra.mxu1 %vm171_vm0, %v7375_v60  ;;  %6557 = vmatprep.subr.mxu0 %v5256_v44  ;;  %v7937_v46 = vsel %vm1669_vm3, %v1685_v17, %v1686_v47  ;;  %v1696_v17 = vrot.slane %v7414_v11, 2  ;;  %v1700_v11 = vrot.slane %v7435_v18, 2 }
  0xb2   : > { %6513 = vmatprep.mubr.msk.f32.mxu1 %vm171_vm0, %v7386_v0  ;;  %6558 = vmatpush3.msra.mxu0 %v5256_v44  ;;  %10375 = vst [vmem:[#allocation6_spill] sm:$0xff] %v7937_v46  ;;  %v1690_v44 = vrot.slane %v7389_v2, 2  ;;  %v7949_v43 = vsel %vm1669_vm3, %v1686_v47, %v1688_v63  ;;  %v1698_v63 = vrot.slane %v10380_v58, 2  ;;  %v10386_v58 = vld [vmem:[#allocation21_spill] sm:$0xff] }
  0xb3   : > { %6459 = vmatmul.mubr.msk.f32.gmra.mxu0 %vm171_vm0, %v7903_v51  ;;  %6610 = vmatpush3.msra.mxu1 %v5290_v54  ;;  %v1691_v54 = vrot.slane %v7391_v3, 2  ;;  %10376 = vst [vmem:[#allocation8_spill] sm:$0xff] %v7949_v43  ;;  %v1695_v3 = vrot.slane %v7412_v10, 2 }
  0xb4   : > { %6461 = vmatprep.mubr.msk.f32.mxu0 %vm171_vm0, %v7909_v22  ;;  %6659 = vmatprep.subr.mxu0 %v7916_v19 }
  0xb5   : > { %6514 = vmatmul.mubr.msk.f32.gmra.mxu1 %vm171_vm0, %v7398_v4  ;;  %6711 = vmatprep.subr.mxu1 %v7923_v28  ;;  %v7955_v2 = vsel %vm1669_vm3, %v1690_v44, %v1691_v54  ;;  %v7966_v47 = vsel %vm1669_vm3, %v1691_v54, %v1693_v56  ;;  %v7972_v10 = vsel %vm1669_vm3, %v1695_v3, %v1696_v17  ;;  %v1701_v44 = vrot.slane %v7437_v20, 2 }
  0xb6   : > { %6516 = vmatprep.mubr.msk.f32.mxu1 %vm171_vm0, %v7404_v6  ;;  %10378 = vst [vmem:[#allocation11_spill] sm:$0xff] %v7955_v2  ;;  %10379 = vst [vmem:[#allocation15_spill] sm:$0xff] %v7966_v47  ;;  %v7983_v54 = vsel %vm1669_vm3, %v1696_v17, %v1698_v63  ;;  %v1703_v56 = vrot.slane %v10383_v52, 2  ;;  %v1705_v20 = vrot.slane %v7476_v40, 2  ;;  %v1706_v3 = vrot.slane %v7478_v41, 2  ;;  %v10389_v52 = vld [vmem:[#allocation23_spill] sm:$0xff] }
  0xb7   : > { %6462 = vmatmul.mubr.msk.f32.gmra.mxu0 %vm171_vm0, %v7930_v57  ;;  %10381 = vst [vmem:[#allocation17_spill] sm:$0xff] %v7972_v10  ;;  %10382 = vst [vmem:[#allocation53_spill] sm:$0xff] %v7983_v54  ;;  %v7989_v18 = vsel %vm1669_vm3, %v1700_v11, %v1701_v44  ;;  %v1708_v63 = vrot.slane %v10386_v58, 2  ;;  %v1710_v41 = vrot.slane %v7501_v55, 2  ;;  %v1711_v11 = vrot.slane %v7503_v61, 2  ;;  %v10392_v58 = vld [vmem:[#allocation26_spill] sm:$0xff] }
  0xb8   : > { %6464 = vmatprep.mubr.msk.f32.mxu0 %vm171_vm0, %v7937_v46  ;;  %10384 = vst [vmem:[#allocation19_spill] sm:$0xff] %v7989_v18  ;;  %v8000_v17 = vsel %vm1669_vm3, %v1701_v44, %v1703_v56  ;;  %v8006_v40 = vsel %vm1669_vm3, %v1705_v20, %v1706_v3  ;;  %v1713_v56 = vrot.slane %v10389_v52, 2  ;;  %v1715_v61 = vrot.slane %v7524_v15, 2  ;;  %v10395_v52 = vld [vmem:[#allocation29_spill] sm:$0xff] }
  0xb9   : > { %6517 = vmatmul.mubr.msk.f32.gmra.mxu1 %vm171_vm0, %v7421_v12  ;;  %10385 = vst [vmem:[#allocation54_spill] sm:$0xff] %v8000_v17  ;;  %10387 = vst [vmem:[#allocation21_spill] sm:$0xff] %v8006_v40  ;;  %v8017_v44 = vsel %vm1669_vm3, %v1706_v3, %v1708_v63  ;;  %v8023_v55 = vsel %vm1669_vm3, %v1710_v41, %v1711_v11  ;;  %v1716_v20 = vrot.slane %v7526_v16, 2  ;;  %v1718_v63 = vrot.slane %v10392_v58, 2  ;;  %v10398_v58 = vld [vmem:[#allocation32_spill] sm:$0xff] }
  0xba   : > { %6519 = vmatprep.mubr.msk.f32.mxu1 %vm171_vm0, %v7427_v14  ;;  %10388 = vst [vmem:[#allocation55_spill] sm:$0xff] %v8017_v44  ;;  %10390 = vst [vmem:[#allocation23_spill] sm:$0xff] %v8023_v55  ;;  %v8034_v3 = vsel %vm1669_vm3, %v1711_v11, %v1713_v56  ;;  %v1720_v16 = vrot.slane %v7547_v29, 2  ;;  %v1721_v41 = vrot.slane %v7549_v31, 2  ;;  %v1723_v56 = vrot.slane %v10395_v52, 2  ;;  %v10401_v52 = vld [vmem:[#allocation37_spill] sm:$0xff] }
  0xbb   : > { %6465 = vmatmul.mubr.msk.f32.gmra.mxu0 %vm171_vm0, %v7949_v43  ;;  %10391 = vst [vmem:[#allocation56_spill] sm:$0xff] %v8034_v3  ;;  %v8040_v15 = vsel %vm1669_vm3, %v1715_v61, %v1716_v20  ;;  %v8051_v11 = vsel %vm1669_vm3, %v1716_v20, %v1718_v63  ;;  %v1725_v31 = vrot.slane %v7570_v50, 2  ;;  %v1726_v61 = vrot.slane %v7572_v53, 2 }
  0xbc   : > { %6467 = vmatprep.mubr.msk.f32.mxu0 %vm171_vm0, %v7955_v2  ;;  %10393 = vst [vmem:[#allocation26_spill] sm:$0xff] %v8040_v15  ;;  %10394 = vst [vmem:[#allocation57_spill] sm:$0xff] %v8051_v11  ;;  %v8057_v29 = vsel %vm1669_vm3, %v1720_v16, %v1721_v41  ;;  %v8068_v20 = vsel %vm1669_vm3, %v1721_v41, %v1723_v56  ;;  %v1728_v63 = vrot.slane %v10398_v58, 2  ;;  %v1730_v53 = vrot.slane %v10355_v34, 2  ;;  %v10403_v58 = vld [vmem:[#allocation40_spill] sm:$0xff] }
  0xbd   : > { %6520 = vmatmul.mubr.msk.f32.gmra.mxu1 %vm171_vm0, %v7451_v27  ;;  %10396 = vst [vmem:[#allocation29_spill] sm:$0xff] %v8057_v29  ;;  %10397 = vst [vmem:[#allocation58_spill] sm:$0xff] %v8068_v20  ;;  %v8074_v50 = vsel %vm1669_vm3, %v1725_v31, %v1726_v61  ;;  %v1731_v16 = vrot.slane %v10357_v9, 2  ;;  %v1733_v56 = vrot.slane %v10401_v52, 2  ;;  %v1735_v9 = vrot.slane %v10358_v25, 2 }
  0xbe   : > { %6522 = vmatprep.mubr.msk.f32.mxu1 %vm171_vm0, %v7463_v33  ;;  %10399 = vst [vmem:[#allocation32_spill] sm:$0xff] %v8074_v50  ;;  %v8085_v41 = vsel %vm1669_vm3, %v1726_v61, %v1728_v63  ;;  %v1736_v31 = vrot.slane %v7618_v39, 2  ;;  %v10405_v63 = vld [vmem:[#allocation41_spill] sm:$0xff]  ;;  %v1740_v39 = vrot.slane %v7639_v30, 2 }
  0xbf   : > { %6468 = vmatmul.mubr.msk.f32.gmra.mxu0 %vm171_vm0, %v7966_v47  ;;  %10400 = vst [vmem:[#allocation59_spill] sm:$0xff] %v8085_v41  ;;  %v8091_v34 = vsel %vm1669_vm3, %v1730_v53, %v1731_v16  ;;  %v8102_v61 = vsel %vm1669_vm3, %v1731_v16, %v1733_v56  ;;  %v1738_v52 = vrot.slane %v10405_v63, 2  ;;  %v10406_v53 = vld [vmem:[#allocation42_spill] sm:$0xff]  ;;  %v10410_v56 = vld [vmem:[#allocation44_spill] sm:$0xff] }
  0xc0   : > { %6470 = vmatprep.mubr.msk.f32.mxu0 %vm171_vm0, %v7972_v10  ;;  %10402 = vst [vmem:[#allocation37_spill] sm:$0xff] %v8091_v34  ;;  %10404 = vst [vmem:[#allocation60_spill] sm:$0xff] %v8102_v61  ;;  %v8108_v25 = vsel %vm1669_vm3, %v1735_v9, %v1736_v31  ;;  %v1743_v63 = vrot.slane %v10410_v56, 2  ;;  %v10411_v9 = vld [vmem:[#allocation45_spill] sm:$0xff]  ;;  %v8125_v30 = vsel %vm1669_vm3, %v1740_v39, %v1741_v26  ;;  %v10416_v39 = vld [vmem:[#allocation48_spill] sm:$0xff] }
  0xc1   : > { %6523 = vmatmul.mubr.msk.f32.gmra.mxu1 %vm171_vm0, %v7487_v42  ;;  %10407 = vst [vmem:[#allocation41_spill] sm:$0xff] %v8108_v25  ;;  %v8119_v16 = vsel %vm1669_vm3, %v1736_v31, %v1738_v52  ;;  %10412 = vst [vmem:[#allocation44_spill] sm:$0xff] %v8125_v30  ;;  %v10415_v52 = vld [vmem:[#allocation47_spill] sm:$0xff] }
  0xc2   : > { %6525 = vmatprep.mubr.msk.f32.mxu1 %vm171_vm0, %v7493_v49  ;;  %10409 = vst [vmem:[#allocation61_spill] sm:$0xff] %v8119_v16  ;;  %v8136_v31 = vsel %vm1669_vm3, %v1741_v26, %v1743_v63  ;;  %v1748_v56 = vrot.slane %v10415_v52, 2 }
  0xc3   : > { %6471 = vmatmul.mubr.msk.f32.gmra.mxu0 %vm171_vm0, %v7983_v54  ;;  %10414 = vst [vmem:[#allocation62_spill] sm:$0xff] %v8136_v31 }
  0xc4   : > { %6473 = vmatprep.mubr.msk.f32.mxu0 %vm171_vm0, %v7989_v18 }
  0xc5   : > { %6526 = vmatmul.mubr.msk.f32.gmra.mxu1 %vm171_vm0, %v7510_v62 }
  0xc6   : > { %6528 = vmatprep.mubr.msk.f32.mxu1 %vm171_vm0, %v7516_v5 }
  0xc7   : > { %6474 = vmatmul.mubr.msk.f32.gmra.mxu0 %vm171_vm0, %v8000_v17 }
  0xc8   : > { %6476 = vmatprep.mubr.msk.f32.mxu0 %vm171_vm0, %v8006_v40 }
  0xc9   : > { %6529 = vmatmul.mubr.msk.f32.gmra.mxu1 %vm171_vm0, %v7533_v21 }
  0xca   : > { %6531 = vmatprep.mubr.msk.f32.mxu1 %vm171_vm0, %v7539_v23 }
  0xcb   : > { %6477 = vmatmul.mubr.msk.f32.gmra.mxu0 %vm171_vm0, %v8017_v44 }
  0xcc   : > { %6479 = vmatprep.mubr.msk.f32.mxu0 %vm171_vm0, %v8023_v55 }
  0xcd   : > { %6532 = vmatmul.mubr.msk.f32.gmra.mxu1 %vm171_vm0, %v7556_v32 }
  0xce   : > { %6534 = vmatprep.mubr.msk.f32.mxu1 %vm171_vm0, %v7562_v36 }
  0xcf   : > { %6480 = vmatmul.mubr.msk.f32.gmra.mxu0 %vm171_vm0, %v8034_v3 }
  0xd0   : > { %6482 = vmatprep.mubr.msk.f32.mxu0 %vm171_vm0, %v8040_v15 }
  0xd1   : > { %6535 = vmatmul.mubr.msk.f32.gmra.mxu1 %vm171_vm0, %v7579_v1 }
  0xd2   : > { %6537 = vmatprep.mubr.msk.f32.mxu1 %vm171_vm0, %v7585_v8 }
  0xd3   : > { %6483 = vmatmul.mubr.msk.f32.gmra.mxu0 %vm171_vm0, %v8051_v11 }
  0xd4   : > { %6485 = vmatprep.mubr.msk.f32.mxu0 %vm171_vm0, %v8057_v29 }
  0xd5   : > { %6538 = vmatmul.mubr.msk.f32.gmra.mxu1 %vm171_vm0, %v7602_v35  ;;  %v8155_v63 = vpop.f32.mrf.mxu1 }
  0xd6   : > { %6540 = vmatprep.mubr.msk.f32.mxu1 %vm171_vm0, %v7608_v48 }
  0xd7   : > { %6486 = vmatmul.mubr.msk.f32.gmra.mxu0 %vm171_vm0, %v8068_v20  ;;  %v8170_v52 = vpop.f32.mrf.mxu1 }
  0xd8   : > { %6488 = vmatprep.mubr.msk.f32.mxu0 %vm171_vm0, %v8074_v50 }
  0xd9   : > { %6541 = vmatmul.mubr.msk.f32.gmra.mxu1 %vm171_vm0, %v7625_v7 }
  0xda   : > { %6543 = vmatprep.mubr.msk.f32.mxu1 %vm171_vm0, %v10403_v58  ;;  %v10408_v58 = vld [vmem:[#allocation43_spill] sm:$0xff] }
  0xdb   : > { %6489 = vmatmul.mubr.msk.f32.gmra.mxu0 %vm171_vm0, %v8085_v41 }
  0xdc   : > { %6491 = vmatprep.mubr.msk.f32.mxu0 %vm171_vm0, %v8091_v34 }
  0xdd   : > { %6544 = vmatmul.mubr.msk.f32.gmra.mxu1 %vm171_vm0, %v10406_v53  ;;  %v10413_v53 = vld [vmem:[#allocation46_spill] sm:$0xff] }
  0xde   : > { %6546 = vmatprep.mubr.msk.f32.mxu1 %vm171_vm0, %v10408_v58  ;;  %v1746_v58 = vrot.slane %v7664_v37, 2  ;;  %v10419_v37 = vld [vmem:[#allocation50_spill] sm:$0xff] }
  0xdf   : > { %6492 = vmatmul.mubr.msk.f32.gmra.mxu0 %vm171_vm0, %v8102_v61 }
  0xe0   : > { %6494 = vmatprep.mubr.msk.f32.mxu0 %vm171_vm0, %v8108_v25  ;;  %v8142_v13 = vsel %vm1669_vm3, %v1745_v24, %v1746_v58  ;;  %v8151_v26 = vsel %vm1669_vm3, %v1746_v58, %v1748_v56  ;;  %v5357_v24 = vld [vmem:[%s10127_s1 + $0x80] sm:$0xff]  ;;  %v5359_v56 = vld [vmem:[%s10127_s1 + $0x90] sm:$0xff] }
  0xe1   : > { %6547 = vmatmul.mubr.msk.f32.gmra.mxu1 %vm171_vm0, %v10411_v9  ;;  %10417 = vst [vmem:[#allocation47_spill] sm:$0xff] %v8142_v13  ;;  %10418 = vst [vmem:[#allocation63_spill] sm:$0xff] %v8151_v26 }
  0xe2   : > { %6549 = vmatprep.mubr.msk.f32.mxu1 %vm171_vm0, %v10413_v53 }
  0xe3   : > { %6495 = vmatmul.mubr.msk.f32.gmra.mxu0 %vm171_vm0, %v8119_v16 }
  0xe4   : > { %6497 = vmatprep.mubr.msk.f32.mxu0 %vm171_vm0, %v8125_v30 }
  0xe5   : > { %6550 = vmatmul.mubr.msk.f32.gmra.mxu1 %vm171_vm0, %v10416_v39 }
  0xe6   : > { %6552 = vmatprep.mubr.msk.f32.mxu1 %vm171_vm0, %v7696_v38 }
  0xe7   : > { %6498 = vmatmul.mubr.msk.f32.gmra.mxu0 %vm171_vm0, %v8136_v31 }
  0xe8   : > { %6500 = vmatprep.mubr.msk.f32.mxu0 %vm171_vm0, %v8142_v13 }
  0xe9   : > { %6553 = vmatmul.mubr.msk.f32.gmra.mxu1 %vm171_vm0, %v10419_v37  ;;  %v8166_v58 = vpop.f32.mrf.mxu0 }
  0xea   : > { %6611 = vmatprep.mubr.msk.f32.mxu1 %vm171_vm0, %v7887_v45 }
  0xeb   : > { %6501 = vmatmul.mubr.msk.f32.gmra.mxu0 %vm171_vm0, %v8151_v26  ;;  %v8185_v45 = vpop.f32.mrf.mxu0 }
  0xec   : > { %6559 = vmatprep.mubr.msk.f32.mxu0 %vm171_vm0, %v7372_v59 }
  0xed   : > { %6612 = vmatmul.mubr.msk.f32.vlgmr.msra.gmra.mxu1 %vm171_vm0, %v7903_v51 }
  0xee   : > { %6712 = vmatpush3.msra.mxu1 %v7923_v28  ;;  %6614 = vmatprep.mubr.msk.f32.mxu1 %vm171_vm0, %v7909_v22  ;;  %v8192_v28 = vld [vmem:[%s10127_s1 + $0xa8] sm:$0xff] }
  0xef   : > { %6560 = vmatmul.mubr.msk.f32.vlgmr.msra.gmra.mxu0 %vm171_vm0, %v7375_v60  ;;  %6713 = vmatprep.subr.mxu1 %v5357_v24 }
  0xf0   : > { %6660 = vmatpush3.msra.mxu0 %v7916_v19  ;;  %6562 = vmatprep.mubr.msk.f32.mxu0 %vm171_vm0, %v7386_v0  ;;  %v8183_v51 = vpop.f32.mrf.mxu1  ;;  %v8201_v19 = vld [vmem:[%s10127_s1 + $0xb8] sm:$0xff] }
  0xf1   : > { %10420 = vst [vmem:[#allocation64_spill] sm:$0xff] %v8183_v51  ;;  %6615 = vmatmul.mubr.msk.f32.gmra.mxu1 %vm171_vm0, %v7930_v57  ;;  %6661 = vmatprep.subr.mxu0 %v5359_v56 }
  0xf2   : > { %v8194_v22 = vpop.f32.mrf.mxu1  ;;  %6617 = vmatprep.mubr.msk.f32.mxu1 %vm171_vm0, %v7937_v46  ;;  %6662 = vmatpush3.msra.mxu0 %v5359_v56 }
  0xf3   : > { %v8203_v51 = vpop.f32.mrf.mxu0  ;;  %6563 = vmatmul.mubr.msk.f32.gmra.mxu0 %vm171_vm0, %v7398_v4  ;;  %6714 = vmatpush3.msra.mxu1 %v5357_v24 }
  0xf4   : > { %6565 = vmatprep.mubr.msk.f32.mxu0 %vm171_vm0, %v7404_v6  ;;  %v8209_v57 = vpop.f32.mrf.mxu1  ;;  %6763 = vmatprep.subr.mxu0 %v8192_v28 }
  0xf5   : > { %10421 = vst [vmem:[#allocation65_spill] sm:$0xff] %v8209_v57  ;;  %v8212_v46 = vpop.f32.mrf.mxu0  ;;  %6618 = vmatmul.mubr.msk.f32.gmra.mxu1 %vm171_vm0, %v7949_v43  ;;  %6815 = vmatprep.subr.mxu1 %v8201_v19 }
  0xf6   : > { %v8217_v56 = vpop.f32.mrf.mxu1  ;;  %6620 = vmatprep.mubr.msk.f32.mxu1 %vm171_vm0, %v7955_v2 }
  0xf7   : > { %v8221_v24 = vpop.f32.mrf.mxu0  ;;  %6566 = vmatmul.mubr.msk.f32.gmra.mxu0 %vm171_vm0, %v7421_v12 }
  0xf8   : > { %6568 = vmatprep.mubr.msk.f32.mxu0 %vm171_vm0, %v7427_v14  ;;  %v8227_v57 = vpop.f32.mrf.mxu1 }
  0xf9   : > { %10422 = vst [vmem:[#allocation66_spill] sm:$0xff] %v8227_v57  ;;  %v8229_v6 = vpop.f32.mrf.mxu0  ;;  %6621 = vmatmul.mubr.msk.f32.gmra.mxu1 %vm171_vm0, %v7966_v47 }
  0xfa   : > { %v8233_v43 = vpop.f32.mrf.mxu1  ;;  %6623 = vmatprep.mubr.msk.f32.mxu1 %vm171_vm0, %v7972_v10 }
  0xfb   : > { %v8237_v2 = vpop.f32.mrf.mxu0  ;;  %6569 = vmatmul.mubr.msk.f32.gmra.mxu0 %vm171_vm0, %v7451_v27 }
  0xfc   : > { %6571 = vmatprep.mubr.msk.f32.mxu0 %vm171_vm0, %v7463_v33  ;;  %v8243_v14 = vpop.f32.mrf.mxu1 }
  0xfd   : > { %10423 = vst [vmem:[#allocation67_spill] sm:$0xff] %v8243_v14  ;;  %v8245_v57 = vpop.f32.mrf.mxu0  ;;  %6624 = vmatmul.mubr.msk.f32.gmra.mxu1 %vm171_vm0, %v7983_v54 }
  0xfe   : > { %v8249_v47 = vpop.f32.mrf.mxu1  ;;  %6626 = vmatprep.mubr.msk.f32.mxu1 %vm171_vm0, %v7989_v18 }
  0xff   : > { %v8253_v10 = vpop.f32.mrf.mxu0  ;;  %6572 = vmatmul.mubr.msk.f32.gmra.mxu0 %vm171_vm0, %v7487_v42 }
 0x100   : > { %6574 = vmatprep.mubr.msk.f32.mxu0 %vm171_vm0, %v7493_v49  ;;  %v8259_v33 = vpop.f32.mrf.mxu1 }
 0x101   : > { %10424 = vst [vmem:[#allocation68_spill] sm:$0xff] %v8259_v33  ;;  %v8261_v14 = vpop.f32.mrf.mxu0  ;;  %6627 = vmatmul.mubr.msk.f32.gmra.mxu1 %vm171_vm0, %v8000_v17 }
 0x102   : > { %v8265_v54 = vpop.f32.mrf.mxu1  ;;  %6629 = vmatprep.mubr.msk.f32.mxu1 %vm171_vm0, %v8006_v40 }
 0x103   : > { %v8269_v18 = vpop.f32.mrf.mxu0  ;;  %6575 = vmatmul.mubr.msk.f32.gmra.mxu0 %vm171_vm0, %v7510_v62 }
 0x104   : > { %6577 = vmatprep.mubr.msk.f32.mxu0 %vm171_vm0, %v7516_v5  ;;  %v8275_v49 = vpop.f32.mrf.mxu1 }
 0x105   : > { %10425 = vst [vmem:[#allocation69_spill] sm:$0xff] %v8275_v49  ;;  %v8277_v33 = vpop.f32.mrf.mxu0  ;;  %6630 = vmatmul.mubr.msk.f32.gmra.mxu1 %vm171_vm0, %v8017_v44 }
 0x106   : > { %v8281_v17 = vpop.f32.mrf.mxu1  ;;  %6632 = vmatprep.mubr.msk.f32.mxu1 %vm171_vm0, %v8023_v55 }
 0x107   : > { %v8285_v40 = vpop.f32.mrf.mxu0  ;;  %6578 = vmatmul.mubr.msk.f32.gmra.mxu0 %vm171_vm0, %v7533_v21 }
 0x108   : > { %6580 = vmatprep.mubr.msk.f32.mxu0 %vm171_vm0, %v7539_v23  ;;  %v8291_v5 = vpop.f32.mrf.mxu1 }
 0x109   : > { %10426 = vst [vmem:[#allocation70_spill] sm:$0xff] %v8291_v5  ;;  %v8293_v49 = vpop.f32.mrf.mxu0  ;;  %6633 = vmatmul.mubr.msk.f32.gmra.mxu1 %vm171_vm0, %v8034_v3 }
 0x10a   : > { %v8297_v44 = vpop.f32.mrf.mxu1  ;;  %6635 = vmatprep.mubr.msk.f32.mxu1 %vm171_vm0, %v8040_v15 }
 0x10b   : > { %v8301_v55 = vpop.f32.mrf.mxu0  ;;  %6581 = vmatmul.mubr.msk.f32.gmra.mxu0 %vm171_vm0, %v7556_v32 }
 0x10c   : > { %6583 = vmatprep.mubr.msk.f32.mxu0 %vm171_vm0, %v7562_v36  ;;  %v8307_v23 = vpop.f32.mrf.mxu1 }
 0x10d   : > { %10427 = vst [vmem:[#allocation71_spill] sm:$0xff] %v8307_v23  ;;  %v8309_v5 = vpop.f32.mrf.mxu0  ;;  %6636 = vmatmul.mubr.msk.f32.gmra.mxu1 %vm171_vm0, %v8051_v11 }
 0x10e   : > { %v8313_v3 = vpop.f32.mrf.mxu1  ;;  %6638 = vmatprep.mubr.msk.f32.mxu1 %vm171_vm0, %v8057_v29 }
 0x10f   : > { %v8317_v15 = vpop.f32.mrf.mxu0  ;;  %6584 = vmatmul.mubr.msk.f32.gmra.mxu0 %vm171_vm0, %v7579_v1 }
 0x110   : > { %6586 = vmatprep.mubr.msk.f32.mxu0 %vm171_vm0, %v7585_v8  ;;  %v8323_v36 = vpop.f32.mrf.mxu1 }
 0x111   : > { %10428 = vst [vmem:[#allocation72_spill] sm:$0xff] %v8323_v36  ;;  %v8325_v23 = vpop.f32.mrf.mxu0  ;;  %6639 = vmatmul.mubr.msk.f32.gmra.mxu1 %vm171_vm0, %v8068_v20 }
 0x112   : > { %v8329_v11 = vpop.f32.mrf.mxu1  ;;  %6641 = vmatprep.mubr.msk.f32.mxu1 %vm171_vm0, %v8074_v50 }
 0x113   : > { %10429 = vst [vmem:[#allocation73_spill] sm:$0xff] %v8329_v11  ;;  %v8333_v29 = vpop.f32.mrf.mxu0  ;;  %6587 = vmatmul.mubr.msk.f32.gmra.mxu0 %vm171_vm0, %v7602_v35  ;;  %v10432_v11 = vld [vmem:[#allocation40_spill] sm:$0xff] }
 0x114   : > { %6589 = vmatprep.mubr.msk.f32.mxu0 %vm171_vm0, %v7608_v48  ;;  %v8339_v8 = vpop.f32.mrf.mxu1 }
 0x115   : > { %10430 = vst [vmem:[#allocation74_spill] sm:$0xff] %v8339_v8  ;;  %v8341_v36 = vpop.f32.mrf.mxu0  ;;  %6642 = vmatmul.mubr.msk.f32.gmra.mxu1 %vm171_vm0, %v8085_v41 }
 0x116   : > { %v8345_v20 = vpop.f32.mrf.mxu1  ;;  %6644 = vmatprep.mubr.msk.f32.mxu1 %vm171_vm0, %v8091_v34 }
 0x117   : > { %10431 = vst [vmem:[#allocation75_spill] sm:$0xff] %v8345_v20  ;;  %v8349_v50 = vpop.f32.mrf.mxu0  ;;  %6590 = vmatmul.mubr.msk.f32.gmra.mxu0 %vm171_vm0, %v7625_v7  ;;  %v10436_v20 = vld [vmem:[#allocation42_spill] sm:$0xff]  ;;  %v10437_v7 = vld [vmem:[#allocation43_spill] sm:$0xff] }
 0x118   : > { %6592 = vmatprep.mubr.msk.f32.mxu0 %vm171_vm0, %v10432_v11  ;;  %v8355_v48 = vpop.f32.mrf.mxu1 }
 0x119   : > { %10433 = vst [vmem:[#allocation76_spill] sm:$0xff] %v8355_v48  ;;  %v8357_v8 = vpop.f32.mrf.mxu0  ;;  %6645 = vmatmul.mubr.msk.f32.gmra.mxu1 %vm171_vm0, %v8102_v61 }
 0x11a   : > { %v8361_v41 = vpop.f32.mrf.mxu1  ;;  %6647 = vmatprep.mubr.msk.f32.mxu1 %vm171_vm0, %v8108_v25 }
 0x11b   : > { %10434 = vst [vmem:[#allocation77_spill] sm:$0xff] %v8361_v41  ;;  %v8365_v34 = vpop.f32.mrf.mxu0  ;;  %6593 = vmatmul.mubr.msk.f32.gmra.mxu0 %vm171_vm0, %v10436_v20  ;;  %v10440_v41 = vld [vmem:[#allocation33_spill] sm:$0xff] }
 0x11c   : > { %10435 = vst [vmem:[#allocation78_spill] sm:$0xff] %v8365_v34  ;;  %6595 = vmatprep.mubr.msk.f32.mxu0 %vm171_vm0, %v10437_v7  ;;  %v8371_v11 = vpop.f32.mrf.mxu1  ;;  %v2527_v20 = vrot.slane %v10440_v41, 2  ;;  %v10441_v7 = vld [vmem:[#allocation34_spill] sm:$0xff] }
 0x11d   : > { %10438 = vst [vmem:[#allocation79_spill] sm:$0xff] %v8371_v11  ;;  %v8373_v48 = vpop.f32.mrf.mxu0  ;;  %6648 = vmatmul.mubr.msk.f32.gmra.mxu1 %vm171_vm0, %v8119_v16  ;;  %v2528_v34 = vrot.slane %v10441_v7, 2 }
 0x11e   : > { %v8377_v61 = vpop.f32.mrf.mxu1  ;;  %6650 = vmatprep.mubr.msk.f32.mxu1 %vm171_vm0, %v8125_v30 }
 0x11f   : > { %10439 = vst [vmem:[#allocation80_spill] sm:$0xff] %v8377_v61  ;;  %v8381_v25 = vpop.f32.mrf.mxu0  ;;  %6596 = vmatmul.mubr.msk.f32.gmra.mxu0 %vm171_vm0, %v10411_v9  ;;  %v10444_v61 = vld [vmem:[#allocation38_spill] sm:$0xff]  ;;  %v8405_v7 = vsel %vm1669_vm3, %v2527_v20, %v2528_v34 }
 0x120   : > { %6598 = vmatprep.mubr.msk.f32.mxu0 %vm171_vm0, %v10413_v53  ;;  %v8389_v11 = vpop.f32.mrf.mxu1  ;;  %v2530_v9 = vrot.slane %v10444_v61, 2  ;;  %10445 = vst [vmem:[#allocation38_spill] sm:$0xff] %v8405_v7 }
 0x121   : > { %10442 = vst [vmem:[#allocation33_spill] sm:$0xff] %v8389_v11  ;;  %v8391_v16 = vpop.f32.mrf.mxu0  ;;  %6651 = vmatmul.mubr.msk.f32.gmra.mxu1 %vm171_vm0, %v8136_v31 }
 0x122   : > { %v8395_v30 = vpop.f32.mrf.mxu1  ;;  %6653 = vmatprep.mubr.msk.f32.mxu1 %vm171_vm0, %v8142_v13  ;;  %v8420_v61 = vsel %vm1669_vm3, %v2528_v34, %v2530_v9  ;;  %v10453_v9 = vld [vmem:[#allocation52_spill] sm:$0xff] }
 0x123   : > { %10443 = vst [vmem:[#allocation34_spill] sm:$0xff] %v8395_v30  ;;  %v8400_v41 = vpop.f32.mrf.mxu0  ;;  %6599 = vmatmul.mubr.msk.f32.gmra.mxu0 %vm171_vm0, %v10416_v39  ;;  %10448 = vst [vmem:[#allocation83_spill] sm:$0xff] %v8420_v61 }
 0x124   : > { %6601 = vmatprep.mubr.msk.f32.mxu0 %vm171_vm0, %v7696_v38  ;;  %v8409_v11 = vpop.f32.mrf.mxu1  ;;  %v10449_v38 = vld [vmem:[#allocation51_spill] sm:$0xff] }
 0x125   : > { %10446 = vst [vmem:[#allocation81_spill] sm:$0xff] %v8409_v11  ;;  %v8411_v31 = vpop.f32.mrf.mxu0  ;;  %6654 = vmatmul.mubr.msk.f32.gmra.mxu1 %vm171_vm0, %v8151_v26 }
 0x126   : > { %v8415_v13 = vpop.f32.mrf.mxu1  ;;  %6656 = vmatprep.mubr.msk.f32.mxu1 %vm171_vm0, %v8405_v7  ;;  %v7084_v7 = vld [vmem:[#allocation2 + $0x18] sm:$0xff] }
 0x127   : > { %10447 = vst [vmem:[#allocation82_spill] sm:$0xff] %v8415_v13  ;;  %v8422_v20 = vpop.f32.mrf.mxu0  ;;  %6602 = vmatmul.mubr.msk.f32.gmra.mxu0 %vm171_vm0, %v10419_v37 }
 0x128   : > { %6604 = vmatprep.mubr.msk.f32.mxu0 %vm171_vm0, %v10449_v38  ;;  %v8428_v11 = vpop.f32.mrf.mxu1  ;;  %v5459_v38 = vld [vmem:[%s10127_s1 + $0xb0] sm:$0xff] }
 0x129   : > { %10450 = vst [vmem:[#allocation84_spill] sm:$0xff] %v8428_v11  ;;  %v8430_v30 = vpop.f32.mrf.mxu0  ;;  %6657 = vmatmul.mubr.msk.f32.gmra.mxu1 %vm171_vm0, %v8420_v61 }
 0x12a   : > { %v8434_v26 = vpop.f32.mrf.mxu1  ;;  %6715 = vmatprep.mubr.msk.f32.mxu1 %vm171_vm0, %v7084_v7  ;;  %v905_v7 = vadd.f32 %v8155_v63, %v8166_v58  ;;  %v8470_v58 = vld [vmem:[%s10128_s2] ss:$0 sm:$0xff] }
 0x12b   : > { %10451 = vst [vmem:[#allocation85_spill] sm:$0xff] %v8434_v26  ;;  %v8437_v34 = vpop.f32.mrf.mxu0  ;;  %6605 = vmatmul.mubr.msk.f32.gmra.mxu0 %vm171_vm0, %v10453_v9  ;;  %v7085_v26 = vld [vmem:[#allocation2 + $0x20] sm:$0xff]  ;;  %v8452_v9 = vld [vmem:[#allocation2 + $0x30] sm:$0xff] }
 0x12c   : > { %10452 = vst [vmem:[#allocation86_spill] sm:$0xff] %v8437_v34  ;;  %6663 = vmatprep.mubr.msk.f32.mxu0 %vm171_vm0, %v7372_v59  ;;  %v6405_v11 = vpop.f32.mrf.mxu1  ;;  %10455 = vst [vmem:[#allocation88_spill] sm:$0xff] %v8452_v9  ;;  %v5425_v59 = vld [vmem:[%s10127_s1 + $0xa0] sm:$0xff] }
 0x12d   : > { %v8446_v61 = vpop.f32.mrf.mxu0  ;;  %6716 = vmatmul.mubr.msk.f32.vlgmr.msra.gmra.mxu1 %vm171_vm0, %v7085_v26  ;;  %v900_v26 = vadd.f32 %v8170_v52, %v8185_v45  ;;  %v8479_v45 = vld [vmem:[%s10127_s1 + $0xd8] sm:$0xff] }
 0x12e   : > { %10454 = vst [vmem:[#allocation87_spill] sm:$0xff] %v8446_v61  ;;  %v1403_v34 = vpop.f32.mrf.mxu1  ;;  %6816 = vmatpush3.msra.mxu1 %v8201_v19  ;;  %6718 = vmatprep.mubr.msk.f32.mxu1 %vm171_vm0, %v8452_v9  ;;  %v8472_v61 = vld [vmem:[#allocation2 + $0x38] sm:$0xff]  ;;  %10457 = vst [vmem:[#allocation90_spill] sm:$0xff] %v8479_v45 }
 0x12f   : > { %v6353_v13 = vpop.f32.mrf.mxu0  ;;  %6664 = vmatmul.mubr.msk.f32.vlgmr.msra.gmra.mxu0 %vm171_vm0, %v7375_v60  ;;  %6817 = vmatprep.subr.mxu1 %v5459_v38  ;;  %10456 = vst [vmem:[#allocation89_spill] sm:$0xff] %v8472_v61  ;;  %v8483_v60 = vld [vmem:[#allocation2 + $0x48] sm:$0xff] }
 0x130   : > { %v1293_v63 = vadd.f32 %v6353_v13, %v905_v7  ;;  %6764 = vmatpush3.msra.mxu0 %v8192_v28  ;;  %6666 = vmatprep.mubr.msk.f32.mxu0 %vm171_vm0, %v7386_v0  ;;  %v10458_v13 = vld [vmem:[#allocation64_spill] sm:$0xff] }
 0x131   : > { %v1133_v19 = vpop.f32.mrf.mxu0  ;;  %v6408_v9 = vpop.f32.mrf.mxu1  ;;  %6719 = vmatmul.mubr.msk.f32.gmra.mxu1 %vm171_vm0, %v8472_v61  ;;  %6765 = vmatprep.subr.mxu0 %v5425_v59  ;;  %v915_v52 = vadd.f32 %v10458_v13, %v8203_v51  ;;  %10459 = vst [vmem:[#allocation64_spill] sm:$0xff] %v8483_v60  ;;  %v8490_v61 = vld [vmem:[%s10127_s1 + $0xc8] sm:$0xff]  ;;  %v910_v51 = vadd.f32 %v8194_v22, %v8212_v46  ;;  %v8505_v46 = vld [vmem:[#allocation2 + $0x50] sm:$0xff] }
 0x132   : > { %v1563_v28 = vadd.f32 %v6405_v11, %v1293_v63  ;;  %v1292_v7 = vadd.f32 %v1133_v19, %v900_v26  ;;  %6721 = vmatprep.mubr.msk.f32.mxu1 %vm171_vm0, %v8483_v60  ;;  %6766 = vmatpush3.msra.mxu0 %v5425_v59  ;;  %v10460_v13 = vld [vmem:[#allocation14_spill] sm:$0xff] }
 0x133   : > { %v6356_v11 = vpop.f32.mrf.mxu0  ;;  %6667 = vmatmul.mubr.msk.f32.gmra.mxu0 %vm171_vm0, %v7398_v4  ;;  %v1413_v59 = vpop.f32.mrf.mxu1  ;;  %6818 = vmatpush3.msra.mxu1 %v5459_v38  ;;  %10461 = vst [vmem:[#allocation14_spill] sm:$0xff] %v8505_v46  ;;  %v10462_v38 = vld [vmem:[#allocation65_spill] sm:$0xff] }
 0x134   : > { %v1602_v26 = vadd.f32 %v8470_v58, %v1563_v28  ;;  %v1562_v63 = vadd.f32 %v1403_v34, %v1292_v7  ;;  %v1295_v19 = vadd.f32 %v6356_v11, %v915_v52  ;;  %6669 = vmatprep.mubr.msk.f32.mxu0 %vm171_vm0, %v10460_v13  ;;  %6867 = vmatprep.subr.mxu0 %v8479_v45  ;;  %v8515_v11 = vld [vmem:[#allocation2 + $0x60] sm:$0xff] }
 0x135   : > { %v1143_v60 = vpop.f32.mrf.mxu0  ;;  %v6411_v22 = vpop.f32.mrf.mxu1  ;;  %6722 = vmatmul.mubr.msk.f32.gmra.mxu1 %vm171_vm0, %v8505_v46  ;;  %6919 = vmatprep.subr.mxu1 %v8490_v61  ;;  %v925_v28 = vadd.f32 %v10462_v38, %v8221_v24  ;;  %10463 = vst [vmem:[#allocation65_spill] sm:$0xff] %v8515_v11  ;;  %v920_v24 = vadd.f32 %v8217_v56, %v8229_v6  ;;  %v8528_v38 = vld [vmem:[#allocation2 + $0x68] sm:$0xff] }
 0x136   : > { %1635 = vst.msk [vmem:[%s8495_s25 + $0x8] sm:$0xff] %vm1633_vm4, %v1602_v26  ;;  %v1601_v34 = vadd.f32 %v8470_v58, %v1562_v63  ;;  %v1565_v52 = vadd.f32 %v6408_v9, %v1295_v19  ;;  %v1294_v7 = vadd.f32 %v1143_v60, %v910_v51  ;;  %6724 = vmatprep.mubr.msk.f32.mxu1 %vm171_vm0, %v8515_v11  ;;  %v10464_v51 = vld [vmem:[#allocation16_spill] sm:$0xff]  ;;  %v10465_v11 = vld [vmem:[#allocation66_spill] sm:$0xff] }
 0x137   : > { %v6359_v45 = vpop.f32.mrf.mxu0  ;;  %6670 = vmatmul.mubr.msk.f32.gmra.mxu0 %vm171_vm0, %v7421_v12  ;;  %v1423_v46 = vpop.f32.mrf.mxu1  ;;  %v935_v6 = vadd.f32 %v10465_v11, %v8237_v2  ;;  %v930_v2 = vadd.f32 %v8233_v43, %v8245_v57 }
 0x138   : > { %1634 = vst.msk [vmem:[%s8495_s25] sm:$0xff] %vm1633_vm4, %v1601_v34  ;;  %v1604_v26 = vadd.f32 %v8470_v58, %v1565_v52  ;;  %v1564_v9 = vadd.f32 %v1413_v59, %v1294_v7  ;;  %v1297_v60 = vadd.f32 %v6359_v45, %v925_v28  ;;  %6672 = vmatprep.mubr.msk.f32.mxu0 %vm171_vm0, %v10464_v51  ;;  %v8537_v28 = vld [vmem:[#allocation2 + $0x78] sm:$0xff] }
 0x139   : > { %v1153_v63 = vpop.f32.mrf.mxu0  ;;  %v6414_v19 = vpop.f32.mrf.mxu1  ;;  %6725 = vmatmul.mubr.msk.f32.gmra.mxu1 %vm171_vm0, %v8528_v38 }
 0x13a   : > { %1637 = vst.msk [vmem:[%s8495_s25 + $0x18] sm:$0xff] %vm1633_vm4, %v1604_v26  ;;  %v1603_v56 = vadd.f32 %v8470_v58, %v1564_v9  ;;  %v1567_v59 = vadd.f32 %v6411_v22, %v1297_v60  ;;  %v1296_v45 = vadd.f32 %v1153_v63, %v920_v24  ;;  %6727 = vmatprep.mubr.msk.f32.mxu1 %vm171_vm0, %v8537_v28  ;;  %v10466_v24 = vld [vmem:[#allocation18_spill] sm:$0xff]  ;;  %v8550_v60 = vld [vmem:[#allocation2 + $0x80] sm:$0xff]  ;;  %v10467_v63 = vld [vmem:[#allocation67_spill] sm:$0xff] }
 0x13b   : > { %v6362_v34 = vpop.f32.mrf.mxu0  ;;  %6673 = vmatmul.mubr.msk.f32.gmra.mxu0 %vm171_vm0, %v7451_v27  ;;  %v1433_v52 = vpop.f32.mrf.mxu1  ;;  %v945_v57 = vadd.f32 %v10467_v63, %v8253_v10  ;;  %v940_v10 = vadd.f32 %v8249_v47, %v8261_v14  ;;  %v10469_v63 = vld [vmem:[#allocation68_spill] sm:$0xff] }
 0x13c   : > { %1636 = vst.msk [vmem:[%s8495_s25 + $0x10] sm:$0xff] %vm1633_vm4, %v1603_v56  ;;  %v1606_v7 = vadd.f32 %v8470_v58, %v1567_v59  ;;  %v1566_v22 = vadd.f32 %v1423_v46, %v1296_v45  ;;  %v1299_v11 = vadd.f32 %v6362_v34, %v935_v6  ;;  %6675 = vmatprep.mubr.msk.f32.mxu0 %vm171_vm0, %v10466_v24  ;;  %v8559_v56 = vld [vmem:[#allocation2 + $0x90] sm:$0xff] }
 0x13d   : > { %v1163_v26 = vpop.f32.mrf.mxu0  ;;  %v6417_v9 = vpop.f32.mrf.mxu1  ;;  %6728 = vmatmul.mubr.msk.f32.gmra.mxu1 %vm171_vm0, %v8550_v60  ;;  %v955_v14 = vadd.f32 %v10469_v63, %v8269_v18  ;;  %v950_v18 = vadd.f32 %v8265_v54, %v8277_v33  ;;  %v10471_v63 = vld [vmem:[#allocation69_spill] sm:$0xff] }
 0x13e   : > { %1639 = vst.msk [vmem:[%s8495_s25 + $0x28] sm:$0xff] %vm1633_vm4, %v1606_v7  ;;  %v1605_v43 = vadd.f32 %v8470_v58, %v1566_v22  ;;  %v1569_v46 = vadd.f32 %v6414_v19, %v1299_v11  ;;  %v1298_v6 = vadd.f32 %v1163_v26, %v930_v2  ;;  %6730 = vmatprep.mubr.msk.f32.mxu1 %vm171_vm0, %v8559_v56  ;;  %v10468_v7 = vld [vmem:[#allocation20_spill] sm:$0xff] }
 0x13f   : > { %v6365_v59 = vpop.f32.mrf.mxu0  ;;  %6676 = vmatmul.mubr.msk.f32.gmra.mxu0 %vm171_vm0, %v7487_v42  ;;  %v1443_v45 = vpop.f32.mrf.mxu1  ;;  %v8572_v26 = vld [vmem:[#allocation2 + $0x98] sm:$0xff]  ;;  %v965_v33 = vadd.f32 %v10471_v63, %v8285_v40  ;;  %v960_v40 = vadd.f32 %v8281_v17, %v8293_v49  ;;  %v10473_v63 = vld [vmem:[#allocation70_spill] sm:$0xff] }
 0x140   : > { %1638 = vst.msk [vmem:[%s8495_s25 + $0x20] sm:$0xff] %vm1633_vm4, %v1605_v43  ;;  %v1608_v34 = vadd.f32 %v8470_v58, %v1569_v46  ;;  %v1568_v19 = vadd.f32 %v1433_v52, %v1298_v6  ;;  %v1301_v2 = vadd.f32 %v6365_v59, %v945_v57  ;;  %6678 = vmatprep.mubr.msk.f32.mxu0 %vm171_vm0, %v10468_v7  ;;  %v8581_v43 = vld [vmem:[#allocation2 + $0xa8] sm:$0xff] }
 0x141   : > { %v1173_v22 = vpop.f32.mrf.mxu0  ;;  %v6420_v11 = vpop.f32.mrf.mxu1  ;;  %6731 = vmatmul.mubr.msk.f32.gmra.mxu1 %vm171_vm0, %v8572_v26  ;;  %v975_v49 = vadd.f32 %v10473_v63, %v8301_v55  ;;  %v970_v55 = vadd.f32 %v8297_v44, %v8309_v5  ;;  %v10475_v63 = vld [vmem:[#allocation71_spill] sm:$0xff] }
 0x142   : > { %1641 = vst.msk [vmem:[%s8495_s25 + $0x38] sm:$0xff] %vm1633_vm4, %v1608_v34  ;;  %v1607_v47 = vadd.f32 %v8470_v58, %v1568_v19  ;;  %v1571_v52 = vadd.f32 %v6417_v9, %v1301_v2  ;;  %v1300_v57 = vadd.f32 %v1173_v22, %v940_v10  ;;  %6733 = vmatprep.mubr.msk.f32.mxu1 %vm171_vm0, %v8581_v43  ;;  %v10470_v34 = vld [vmem:[#allocation22_spill] sm:$0xff]  ;;  %v8594_v22 = vld [vmem:[#allocation2 + $0xb0] sm:$0xff] }
 0x143   : > { %v6368_v46 = vpop.f32.mrf.mxu0  ;;  %6679 = vmatmul.mubr.msk.f32.gmra.mxu0 %vm171_vm0, %v7510_v62  ;;  %v1453_v6 = vpop.f32.mrf.mxu1  ;;  %v985_v5 = vadd.f32 %v10475_v63, %v8317_v15  ;;  %v980_v15 = vadd.f32 %v8313_v3, %v8325_v23  ;;  %v10477_v63 = vld [vmem:[#allocation72_spill] sm:$0xff] }
 0x144   : > { %1640 = vst.msk [vmem:[%s8495_s25 + $0x30] sm:$0xff] %vm1633_vm4, %v1607_v47  ;;  %v1610_v59 = vadd.f32 %v8470_v58, %v1571_v52  ;;  %v1570_v9 = vadd.f32 %v1443_v45, %v1300_v57  ;;  %v1303_v10 = vadd.f32 %v6368_v46, %v955_v14  ;;  %6681 = vmatprep.mubr.msk.f32.mxu0 %vm171_vm0, %v10470_v34  ;;  %v8603_v47 = vld [vmem:[#allocation2 + $0xc0] sm:$0xff] }
 0x145   : > { %v1183_v19 = vpop.f32.mrf.mxu0  ;;  %v6423_v2 = vpop.f32.mrf.mxu1  ;;  %6734 = vmatmul.mubr.msk.f32.gmra.mxu1 %vm171_vm0, %v8594_v22  ;;  %v995_v23 = vadd.f32 %v10477_v63, %v8333_v29  ;;  %v8682_v63 = vld [vmem:[#allocation2 + $0x110] sm:$0xff] }
 0x146   : > { %1643 = vst.msk [vmem:[%s8495_s25 + $0x48] sm:$0xff] %vm1633_vm4, %v1610_v59  ;;  %v1609_v54 = vadd.f32 %v8470_v58, %v1570_v9  ;;  %v1573_v45 = vadd.f32 %v6420_v11, %v1303_v10  ;;  %v1302_v14 = vadd.f32 %v1183_v19, %v950_v18  ;;  %6736 = vmatprep.mubr.msk.f32.mxu1 %vm171_vm0, %v8603_v47  ;;  %v10472_v59 = vld [vmem:[#allocation25_spill] sm:$0xff]  ;;  %v8616_v19 = vld [vmem:[#allocation2 + $0xc8] sm:$0xff]  ;;  %10481 = vst [vmem:[#allocation66_spill] sm:$0xff] %v8682_v63 }
 0x147   : > { %v6371_v52 = vpop.f32.mrf.mxu0  ;;  %6682 = vmatmul.mubr.msk.f32.gmra.mxu0 %vm171_vm0, %v7533_v21  ;;  %v1463_v57 = vpop.f32.mrf.mxu1 }
 0x148   : > { %1642 = vst.msk [vmem:[%s8495_s25 + $0x40] sm:$0xff] %vm1633_vm4, %v1609_v54  ;;  %v1612_v46 = vadd.f32 %v8470_v58, %v1573_v45  ;;  %v1572_v11 = vadd.f32 %v1453_v6, %v1302_v14  ;;  %v1305_v18 = vadd.f32 %v6371_v52, %v965_v33  ;;  %6684 = vmatprep.mubr.msk.f32.mxu0 %vm171_vm0, %v10472_v59  ;;  %v8625_v54 = vld [vmem:[#allocation2 + $0xd8] sm:$0xff] }
 0x149   : > { %v1193_v9 = vpop.f32.mrf.mxu0  ;;  %v6426_v10 = vpop.f32.mrf.mxu1  ;;  %6737 = vmatmul.mubr.msk.f32.gmra.mxu1 %vm171_vm0, %v8616_v19 }
 0x14a   : > { %1645 = vst.msk [vmem:[%s8495_s25 + $0x58] sm:$0xff] %vm1633_vm4, %v1612_v46  ;;  %v1611_v17 = vadd.f32 %v8470_v58, %v1572_v11  ;;  %v1575_v6 = vadd.f32 %v6423_v2, %v1305_v18  ;;  %v1304_v33 = vadd.f32 %v1193_v9, %v960_v40  ;;  %6739 = vmatprep.mubr.msk.f32.mxu1 %vm171_vm0, %v8625_v54  ;;  %v10474_v46 = vld [vmem:[#allocation28_spill] sm:$0xff]  ;;  %v8638_v9 = vld [vmem:[#allocation2 + $0xe0] sm:$0xff] }
 0x14b   : > { %v6374_v45 = vpop.f32.mrf.mxu0  ;;  %6685 = vmatmul.mubr.msk.f32.gmra.mxu0 %vm171_vm0, %v7556_v32  ;;  %v1473_v14 = vpop.f32.mrf.mxu1 }
 0x14c   : > { %1644 = vst.msk [vmem:[%s8495_s25 + $0x50] sm:$0xff] %vm1633_vm4, %v1611_v17  ;;  %v1614_v52 = vadd.f32 %v8470_v58, %v1575_v6  ;;  %v1574_v2 = vadd.f32 %v1463_v57, %v1304_v33  ;;  %v1307_v40 = vadd.f32 %v6374_v45, %v975_v49  ;;  %6687 = vmatprep.mubr.msk.f32.mxu0 %vm171_vm0, %v10474_v46  ;;  %v8647_v17 = vld [vmem:[#allocation2 + $0xf0] sm:$0xff] }
 0x14d   : > { %v1203_v11 = vpop.f32.mrf.mxu0  ;;  %v6429_v18 = vpop.f32.mrf.mxu1  ;;  %6740 = vmatmul.mubr.msk.f32.gmra.mxu1 %vm171_vm0, %v8638_v9 }
 0x14e   : > { %1647 = vst.msk [vmem:[%s8495_s25 + $0x68] sm:$0xff] %vm1633_vm4, %v1614_v52  ;;  %v1613_v44 = vadd.f32 %v8470_v58, %v1574_v2  ;;  %v1577_v57 = vadd.f32 %v6426_v10, %v1307_v40  ;;  %v1306_v49 = vadd.f32 %v1203_v11, %v970_v55  ;;  %6742 = vmatprep.mubr.msk.f32.mxu1 %vm171_vm0, %v8647_v17  ;;  %v10476_v52 = vld [vmem:[#allocation31_spill] sm:$0xff]  ;;  %v8660_v11 = vld [vmem:[#allocation2 + $0xf8] sm:$0xff] }
 0x14f   : > { %v6377_v6 = vpop.f32.mrf.mxu0  ;;  %6688 = vmatmul.mubr.msk.f32.gmra.mxu0 %vm171_vm0, %v7579_v1  ;;  %v1483_v33 = vpop.f32.mrf.mxu1 }
 0x150   : > { %1646 = vst.msk [vmem:[%s8495_s25 + $0x60] sm:$0xff] %vm1633_vm4, %v1613_v44  ;;  %v1616_v45 = vadd.f32 %v8470_v58, %v1577_v57  ;;  %v1576_v10 = vadd.f32 %v1473_v14, %v1306_v49  ;;  %v1309_v55 = vadd.f32 %v6377_v6, %v985_v5  ;;  %6690 = vmatprep.mubr.msk.f32.mxu0 %vm171_vm0, %v10476_v52  ;;  %v8669_v44 = vld [vmem:[#allocation2 + $0x108] sm:$0xff]  ;;  %v10479_v6 = vld [vmem:[#allocation73_spill] sm:$0xff] }
 0x151   : > { %v1213_v2 = vpop.f32.mrf.mxu0  ;;  %v6432_v40 = vpop.f32.mrf.mxu1  ;;  %6743 = vmatmul.mubr.msk.f32.gmra.mxu1 %vm171_vm0, %v8660_v11  ;;  %10478 = vst [vmem:[#allocation16_spill] sm:$0xff] %v8669_v44  ;;  %v990_v29 = vadd.f32 %v10479_v6, %v8341_v36 }
 0x152   : > { %1649 = vst.msk [vmem:[%s8495_s25 + $0x78] sm:$0xff] %vm1633_vm4, %v1616_v45  ;;  %v1615_v3 = vadd.f32 %v8470_v58, %v1576_v10  ;;  %v1579_v14 = vadd.f32 %v6429_v18, %v1309_v55  ;;  %v1308_v5 = vadd.f32 %v1213_v2, %v980_v15  ;;  %6745 = vmatprep.mubr.msk.f32.mxu1 %vm171_vm0, %v8669_v44  ;;  %v10480_v10 = vld [vmem:[#allocation36_spill] sm:$0xff]  ;;  %v10482_v44 = vld [vmem:[#allocation74_spill] sm:$0xff] }
 0x153   : > { %v6380_v57 = vpop.f32.mrf.mxu0  ;;  %6691 = vmatmul.mubr.msk.f32.gmra.mxu0 %vm171_vm0, %v7602_v35  ;;  %v1493_v49 = vpop.f32.mrf.mxu1  ;;  %v1005_v36 = vadd.f32 %v10482_v44, %v8349_v50 }
 0x154   : > { %1648 = vst.msk [vmem:[%s8495_s25 + $0x70] sm:$0xff] %vm1633_vm4, %v1615_v3  ;;  %v1618_v45 = vadd.f32 %v8470_v58, %v1579_v14  ;;  %v1578_v18 = vadd.f32 %v1483_v33, %v1308_v5  ;;  %v1311_v15 = vadd.f32 %v6380_v57, %v995_v23  ;;  %6693 = vmatprep.mubr.msk.f32.mxu0 %vm171_vm0, %v10480_v10  ;;  %v8691_v14 = vld [vmem:[#allocation2 + $0x120] sm:$0xff]  ;;  %v10484_v57 = vld [vmem:[#allocation39_spill] sm:$0xff] }
 0x155   : > { %v1223_v55 = vpop.f32.mrf.mxu0  ;;  %v6435_v2 = vpop.f32.mrf.mxu1  ;;  %6746 = vmatmul.mubr.msk.f32.gmra.mxu1 %vm171_vm0, %v8682_v63  ;;  %10483 = vst [vmem:[#allocation18_spill] sm:$0xff] %v8691_v14  ;;  %v10485_v63 = vld [vmem:[#allocation75_spill] sm:$0xff] }
 0x156   : > { %1651 = vst.msk [vmem:[%s8495_s25 + $0x88] sm:$0xff] %vm1633_vm4, %v1618_v45  ;;  %v1617_v3 = vadd.f32 %v8470_v58, %v1578_v18  ;;  %v1581_v33 = vadd.f32 %v6432_v40, %v1311_v15  ;;  %v1310_v23 = vadd.f32 %v1223_v55, %v990_v29  ;;  %6748 = vmatprep.mubr.msk.f32.mxu1 %vm171_vm0, %v8691_v14  ;;  %v10486_v45 = vld [vmem:[#allocation40_spill] sm:$0xff]  ;;  %v8704_v55 = vld [vmem:[#allocation2 + $0x128] sm:$0xff] }
 0x157   : > { %v6383_v5 = vpop.f32.mrf.mxu0  ;;  %6694 = vmatmul.mubr.msk.f32.gmra.mxu0 %vm171_vm0, %v10484_v57  ;;  %v1503_v6 = vpop.f32.mrf.mxu1  ;;  %v1000_v50 = vadd.f32 %v10485_v63, %v8357_v8  ;;  %10487 = vst [vmem:[#allocation67_spill] sm:$0xff] %v8704_v55  ;;  %v10488_v14 = vld [vmem:[#allocation78_spill] sm:$0xff]  ;;  %v10489_v57 = vld [vmem:[#allocation76_spill] sm:$0xff] }
 0x158   : > { %1650 = vst.msk [vmem:[%s8495_s25 + $0x80] sm:$0xff] %vm1633_vm4, %v1617_v3  ;;  %v1620_v44 = vadd.f32 %v8470_v58, %v1581_v33  ;;  %v1580_v40 = vadd.f32 %v1493_v49, %v1310_v23  ;;  %v1313_v29 = vadd.f32 %v6383_v5, %v1005_v36  ;;  %6696 = vmatprep.mubr.msk.f32.mxu0 %vm171_vm0, %v10486_v45  ;;  %v8713_v3 = vld [vmem:[#allocation2 + $0x138] sm:$0xff]  ;;  %v10491_v23 = vld [vmem:[#allocation42_spill] sm:$0xff] }
 0x159   : > { %v1233_v18 = vpop.f32.mrf.mxu0  ;;  %v6438_v15 = vpop.f32.mrf.mxu1  ;;  %6749 = vmatmul.mubr.msk.f32.gmra.mxu1 %vm171_vm0, %v8704_v55  ;;  %v1015_v8 = vadd.f32 %v10489_v57, %v10488_v14  ;;  %10490 = vst [vmem:[#allocation20_spill] sm:$0xff] %v8713_v3  ;;  %v10492_v55 = vld [vmem:[#allocation77_spill] sm:$0xff] }
 0x15a   : > { %1653 = vst.msk [vmem:[%s8495_s25 + $0x98] sm:$0xff] %vm1633_vm4, %v1620_v44  ;;  %v1619_v63 = vadd.f32 %v8470_v58, %v1580_v40  ;;  %v1583_v49 = vadd.f32 %v6435_v2, %v1313_v29  ;;  %v1312_v36 = vadd.f32 %v1233_v18, %v1000_v50  ;;  %6751 = vmatprep.mubr.msk.f32.mxu1 %vm171_vm0, %v8713_v3  ;;  %v10493_v44 = vld [vmem:[#allocation43_spill] sm:$0xff]  ;;  %v8726_v18 = vld [vmem:[#allocation2 + $0x140] sm:$0xff] }
 0x15b   : > { %v6386_v33 = vpop.f32.mrf.mxu0  ;;  %6697 = vmatmul.mubr.msk.f32.gmra.mxu0 %vm171_vm0, %v10491_v23  ;;  %v1513_v5 = vpop.f32.mrf.mxu1  ;;  %v1010_v14 = vadd.f32 %v10492_v55, %v8373_v48  ;;  %10494 = vst [vmem:[#allocation68_spill] sm:$0xff] %v8726_v18  ;;  %v10495_v3 = vld [vmem:[#allocation79_spill] sm:$0xff] }
 0x15c   : > { %1652 = vst.msk [vmem:[%s8495_s25 + $0x90] sm:$0xff] %vm1633_vm4, %v1619_v63  ;;  %v1622_v57 = vadd.f32 %v8470_v58, %v1583_v49  ;;  %v1582_v2 = vadd.f32 %v1503_v6, %v1312_v36  ;;  %v1315_v50 = vadd.f32 %v6386_v33, %v1015_v8  ;;  %6699 = vmatprep.mubr.msk.f32.mxu0 %vm171_vm0, %v10493_v44  ;;  %v8735_v63 = vld [vmem:[#allocation2 + $0x150] sm:$0xff]  ;;  %v10496_v36 = vld [vmem:[#allocation45_spill] sm:$0xff] }
 0x15d   : > { %v1243_v40 = vpop.f32.mrf.mxu0  ;;  %v6441_v29 = vpop.f32.mrf.mxu1  ;;  %6752 = vmatmul.mubr.msk.f32.gmra.mxu1 %vm171_vm0, %v8726_v18  ;;  %v1025_v48 = vadd.f32 %v10495_v3, %v8381_v25  ;;  %v10497_v18 = vld [vmem:[#allocation80_spill] sm:$0xff] }
 0x15e   : > { %1655 = vst.msk [vmem:[%s8495_s25 + $0xa8] sm:$0xff] %vm1633_vm4, %v1622_v57  ;;  %v1621_v55 = vadd.f32 %v8470_v58, %v1582_v2  ;;  %v1585_v6 = vadd.f32 %v6438_v15, %v1315_v50  ;;  %v1314_v8 = vadd.f32 %v1243_v40, %v1010_v14  ;;  %6754 = vmatprep.mubr.msk.f32.mxu1 %vm171_vm0, %v8735_v63  ;;  %v8748_v50 = vld [vmem:[#allocation2 + $0x158] sm:$0xff]  ;;  %v10498_v40 = vld [vmem:[#allocation33_spill] sm:$0xff] }
 0x15f   : > { %v6389_v49 = vpop.f32.mrf.mxu0  ;;  %6700 = vmatmul.mubr.msk.f32.gmra.mxu0 %vm171_vm0, %v10496_v36  ;;  %v1523_v33 = vpop.f32.mrf.mxu1  ;;  %v1020_v25 = vadd.f32 %v10497_v18, %v8391_v16  ;;  %v1035_v16 = vadd.f32 %v10498_v40, %v8400_v41  ;;  %v8770_v40 = vld [vmem:[#allocation2 + $0x170] sm:$0xff] }
 0x160   : > { %1654 = vst.msk [vmem:[%s8495_s25 + $0xa0] sm:$0xff] %vm1633_vm4, %v1621_v55  ;;  %v1624_v3 = vadd.f32 %v8470_v58, %v1585_v6  ;;  %v1584_v15 = vadd.f32 %v1513_v5, %v1314_v8  ;;  %v1317_v14 = vadd.f32 %v6389_v49, %v1025_v48  ;;  %6702 = vmatprep.mubr.msk.f32.mxu0 %vm171_vm0, %v10413_v53  ;;  %v8757_v55 = vld [vmem:[#allocation2 + $0x168] sm:$0xff]  ;;  %10502 = vst [vmem:[#allocation70_spill] sm:$0xff] %v8770_v40 }
 0x161   : > { %v1253_v57 = vpop.f32.mrf.mxu0  ;;  %v6444_v2 = vpop.f32.mrf.mxu1  ;;  %6755 = vmatmul.mubr.msk.f32.gmra.mxu1 %vm171_vm0, %v8748_v50  ;;  %10499 = vst [vmem:[#allocation69_spill] sm:$0xff] %v8757_v55  ;;  %v10500_v49 = vld [vmem:[#allocation34_spill] sm:$0xff] }
 0x162   : > { %1657 = vst.msk [vmem:[%s8495_s25 + $0xb8] sm:$0xff] %vm1633_vm4, %v1624_v3  ;;  %v1623_v18 = vadd.f32 %v8470_v58, %v1584_v15  ;;  %v1587_v5 = vadd.f32 %v6441_v29, %v1317_v14  ;;  %v1316_v48 = vadd.f32 %v1253_v57, %v1020_v25  ;;  %6757 = vmatprep.mubr.msk.f32.mxu1 %vm171_vm0, %v8757_v55  ;;  %v10501_v15 = vld [vmem:[#allocation49_spill] sm:$0xff] }
 0x163   : > { %v6392_v6 = vpop.f32.mrf.mxu0  ;;  %6703 = vmatmul.mubr.msk.f32.gmra.mxu0 %vm171_vm0, %v10416_v39  ;;  %v1533_v8 = vpop.f32.mrf.mxu1  ;;  %v1030_v41 = vadd.f32 %v10500_v49, %v8411_v31  ;;  %v10503_v55 = vld [vmem:[#allocation81_spill] sm:$0xff]  ;;  %v10505_v49 = vld [vmem:[#allocation82_spill] sm:$0xff] }
 0x164   : > { %1656 = vst.msk [vmem:[%s8495_s25 + $0xb0] sm:$0xff] %vm1633_vm4, %v1623_v18  ;;  %v1626_v3 = vadd.f32 %v8470_v58, %v1587_v5  ;;  %v1586_v29 = vadd.f32 %v1523_v33, %v1316_v48  ;;  %v1319_v25 = vadd.f32 %v6392_v6, %v1035_v16  ;;  %6705 = vmatprep.mubr.msk.f32.mxu0 %vm171_vm0, %v10501_v15  ;;  %v8779_v5 = vld [vmem:[#allocation2 + $0x180] sm:$0xff] }
 0x165   : > { %v1263_v14 = vpop.f32.mrf.mxu0  ;;  %v6447_v57 = vpop.f32.mrf.mxu1  ;;  %6758 = vmatmul.mubr.msk.f32.gmra.mxu1 %vm171_vm0, %v8770_v40  ;;  %v1045_v31 = vadd.f32 %v10503_v55, %v8422_v20  ;;  %10504 = vst [vmem:[#allocation71_spill] sm:$0xff] %v8779_v5  ;;  %v1040_v20 = vadd.f32 %v10505_v49, %v8430_v30  ;;  %v10509_v40 = vld [vmem:[#allocation84_spill] sm:$0xff]  ;;  %v10511_v49 = vld [vmem:[#allocation87_spill] sm:$0xff] }
 0x166   : > { %1659 = vst.msk [vmem:[%s8495_s25 + $0xc8] sm:$0xff] %vm1633_vm4, %v1626_v3  ;;  %v1625_v18 = vadd.f32 %v8470_v58, %v1586_v29  ;;  %v1589_v33 = vadd.f32 %v6444_v2, %v1319_v25  ;;  %v1318_v16 = vadd.f32 %v1263_v14, %v1030_v41  ;;  %6760 = vmatprep.mubr.msk.f32.mxu1 %vm171_vm0, %v8779_v5  ;;  %v10506_v3 = vld [vmem:[#allocation51_spill] sm:$0xff]  ;;  %v8792_v14 = vld [vmem:[#allocation2 + $0x188] sm:$0xff] }
 0x167   : > { %v6395_v48 = vpop.f32.mrf.mxu0  ;;  %6706 = vmatmul.mubr.msk.f32.gmra.mxu0 %vm171_vm0, %v10419_v37  ;;  %v1543_v6 = vpop.f32.mrf.mxu1  ;;  %10507 = vst [vmem:[#allocation72_spill] sm:$0xff] %v8792_v14  ;;  %v10508_v5 = vld [vmem:[#allocation86_spill] sm:$0xff] }
 0x168   : > { %1658 = vst.msk [vmem:[%s8495_s25 + $0xc0] sm:$0xff] %vm1633_vm4, %v1625_v18  ;;  %v1628_v55 = vadd.f32 %v8470_v58, %v1589_v33  ;;  %v1588_v2 = vadd.f32 %v1533_v8, %v1318_v16  ;;  %v1321_v41 = vadd.f32 %v6395_v48, %v1045_v31  ;;  %6708 = vmatprep.mubr.msk.f32.mxu0 %vm171_vm0, %v10506_v3  ;;  %v10510_v16 = vld [vmem:[#allocation52_spill] sm:$0xff] }
 0x169   : > { %v1273_v29 = vpop.f32.mrf.mxu0  ;;  %v6450_v25 = vpop.f32.mrf.mxu1  ;;  %6761 = vmatmul.mubr.msk.f32.gmra.mxu1 %vm171_vm0, %v8792_v14  ;;  %v1055_v30 = vadd.f32 %v10509_v40, %v10508_v5  ;;  %v10512_v14 = vld [vmem:[#allocation85_spill] sm:$0xff] }
 0x16a   : > { %1661 = vst.msk [vmem:[%s8495_s25 + $0xd8] sm:$0xff] %vm1633_vm4, %v1628_v55  ;;  %v1627_v18 = vadd.f32 %v8470_v58, %v1588_v2  ;;  %v1591_v8 = vadd.f32 %v6447_v57, %v1321_v41  ;;  %v1320_v31 = vadd.f32 %v1273_v29, %v1040_v20  ;;  %6819 = vmatprep.mubr.msk.f32.mxu1 %vm171_vm0, %v7386_v0  ;;  %v10513_v57 = vld [vmem:[#allocation88_spill] sm:$0xff]  ;;  %v5526_v20 = vld [vmem:[%s10127_s1 + $0xc0] sm:$0xff] }
 0x16b   : > { %v6398_v33 = vpop.f32.mrf.mxu0  ;;  %6709 = vmatmul.mubr.msk.f32.gmra.mxu0 %vm171_vm0, %v10510_v16  ;;  %v1553_v48 = vpop.f32.mrf.mxu1  ;;  %v1050_v3 = vadd.f32 %v10512_v14, %v10511_v49 }
 0x16c   : > { %1660 = vst.msk [vmem:[%s8495_s25 + $0xd0] sm:$0xff] %vm1633_vm4, %v1627_v18  ;;  %v1630_v40 = vadd.f32 %v8470_v58, %v1591_v8  ;;  %v1590_v5 = vadd.f32 %v1543_v6, %v1320_v31  ;;  %v1323_v55 = vadd.f32 %v6398_v33, %v1055_v30  ;;  %6767 = vmatprep.mubr.msk.f32.mxu0 %vm171_vm0, %v10513_v57  ;;  %v5528_v30 = vld [vmem:[%s10127_s1 + $0xd0] sm:$0xff]  ;;  %v10514_v8 = vld [vmem:[#allocation89_spill] sm:$0xff]  ;;  %v10516_v33 = vld [vmem:[#allocation64_spill] sm:$0xff] }
 0x16d   : > { %v1283_v2 = vpop.f32.mrf.mxu0  ;;  %v8815_v41 = vpop.f32.mrf.mxu1  ;;  %6820 = vmatmul.mubr.msk.f32.vlgmr.msra.gmra.mxu1 %vm171_vm0, %v7398_v4 }
 0x16e   : > { %1663 = vst.msk [vmem:[%s8495_s25 + $0xe8] sm:$0xff] %vm1633_vm4, %v1630_v40  ;;  %v1629_v29 = vadd.f32 %v8470_v58, %v1590_v5  ;;  %v1593_v6 = vadd.f32 %v6450_v25, %v1323_v55  ;;  %v1322_v14 = vadd.f32 %v1283_v2, %v1050_v3  ;;  %6920 = vmatpush3.msra.mxu1 %v8490_v61  ;;  %v10515_v25 = vld [vmem:[#allocation90_spill] sm:$0xff]  ;;  %v8859_v55 = vld [vmem:[%s10127_s1 + $0xf8] sm:$0xff] }
 0x16f   : > { %6822 = vmatprep.mubr.msk.f32.mxu1 %vm171_vm0, %v10460_v13  ;;  %v8828_v18 = vpop.f32.mrf.mxu0  ;;  %6768 = vmatmul.mubr.msk.f32.vlgmr.msra.gmra.mxu0 %vm171_vm0, %v10514_v8  ;;  %v8832_v31 = vpop.f32.mrf.mxu1  ;;  %v8849_v5 = vld [vmem:[%s10127_s1 + $0xe8] sm:$0xff] }
 0x170   : > { %6921 = vmatprep.subr.mxu1 %v5526_v20  ;;  %1662 = vst.msk [vmem:[%s8495_s25 + $0xe0] sm:$0xff] %vm1633_vm4, %v1629_v29  ;;  %v1632_v61 = vadd.f32 %v8470_v58, %v1593_v6  ;;  %v1592_v3 = vadd.f32 %v1553_v48, %v1322_v14  ;;  %6868 = vmatpush3.msra.mxu0 %v10515_v25  ;;  %v10517_v2 = vld [vmem:[#allocation14_spill] sm:$0xff]  ;;  %v10518_v6 = vld [vmem:[#allocation65_spill] sm:$0xff] }
 0x171   : > { %6770 = vmatprep.mubr.msk.f32.mxu0 %vm171_vm0, %v10516_v33  ;;  %v8840_v49 = vpop.f32.mrf.mxu0  ;;  %v8842_v40 = vpop.f32.mrf.mxu1  ;;  %6823 = vmatmul.mubr.msk.f32.gmra.mxu1 %vm171_vm0, %v7421_v12 }
 0x172   : > { %6869 = vmatprep.subr.mxu0 %v5528_v30  ;;  %1665 = vst.msk [vmem:[%s8495_s25 + $0xf8] sm:$0xff] %vm1633_vm4, %v1632_v61  ;;  %v1631_v48 = vadd.f32 %v8470_v58, %v1592_v3  ;;  %6825 = vmatprep.mubr.msk.f32.mxu1 %vm171_vm0, %v10464_v51 }
 0x173   : > { %6870 = vmatpush3.msra.mxu0 %v5528_v30  ;;  %v8861_v57 = vpop.f32.mrf.mxu0  ;;  %v8865_v29 = vpop.f32.mrf.mxu1  ;;  %6922 = vmatpush3.msra.mxu1 %v5526_v20 }
 0x174   : > { %6771 = vmatmul.mubr.msk.f32.gmra.mxu0 %vm171_vm0, %v10517_v2  ;;  %1664 = vst.msk [vmem:[%s8495_s25 + $0xf0] sm:$0xff] %vm1633_vm4, %v1631_v48  ;;  %6971 = vmatprep.subr.mxu0 %v8849_v5 }
 0x175   : > { %6773 = vmatprep.mubr.msk.f32.mxu0 %vm171_vm0, %v10518_v6  ;;  %v8872_v14 = vpop.f32.mrf.mxu0  ;;  %v8874_v30 = vpop.f32.mrf.mxu1  ;;  %6826 = vmatmul.mubr.msk.f32.gmra.mxu1 %vm171_vm0, %v7451_v27 }
 0x176   : > { %7023 = vmatprep.subr.mxu1 %v8859_v55  ;;  %6828 = vmatprep.mubr.msk.f32.mxu1 %vm171_vm0, %v10466_v24 }
 0x177   : > { %v8881_v20 = vpop.f32.mrf.mxu0  ;;  %v8885_v8 = vpop.f32.mrf.mxu1 }
 0x178   : > { %6774 = vmatmul.mubr.msk.f32.gmra.mxu0 %vm171_vm0, %v8528_v38 }
 0x179   : > { %6776 = vmatprep.mubr.msk.f32.mxu0 %vm171_vm0, %v8537_v28  ;;  %v8889_v61 = vpop.f32.mrf.mxu0  ;;  %v8891_v3 = vpop.f32.mrf.mxu1  ;;  %6829 = vmatmul.mubr.msk.f32.gmra.mxu1 %vm171_vm0, %v7487_v42 }
 0x17a   : > { %6831 = vmatprep.mubr.msk.f32.mxu1 %vm171_vm0, %v10468_v7 }
 0x17b   : > { %v8897_v25 = vpop.f32.mrf.mxu0  ;;  %v8901_v38 = vpop.f32.mrf.mxu1 }
 0x17c   : > { %6777 = vmatmul.mubr.msk.f32.gmra.mxu0 %vm171_vm0, %v8550_v60 }
 0x17d   : > { %6779 = vmatprep.mubr.msk.f32.mxu0 %vm171_vm0, %v8559_v56  ;;  %v8905_v28 = vpop.f32.mrf.mxu0  ;;  %v8907_v33 = vpop.f32.mrf.mxu1  ;;  %6832 = vmatmul.mubr.msk.f32.gmra.mxu1 %vm171_vm0, %v7510_v62 }
 0x17e   : > { %6834 = vmatprep.mubr.msk.f32.mxu1 %vm171_vm0, %v10470_v34 }
 0x17f   : > { %v8913_v48 = vpop.f32.mrf.mxu0  ;;  %v8917_v60 = vpop.f32.mrf.mxu1 }
 0x180   : > { %6780 = vmatmul.mubr.msk.f32.gmra.mxu0 %vm171_vm0, %v8572_v26 }
 0x181   : > { %6782 = vmatprep.mubr.msk.f32.mxu0 %vm171_vm0, %v8581_v43  ;;  %v8921_v56 = vpop.f32.mrf.mxu0  ;;  %v8923_v2 = vpop.f32.mrf.mxu1  ;;  %6835 = vmatmul.mubr.msk.f32.gmra.mxu1 %vm171_vm0, %v7533_v21 }
 0x182   : > { %6837 = vmatprep.mubr.msk.f32.mxu1 %vm171_vm0, %v10472_v59 }
 0x183   : > { %v8929_v6 = vpop.f32.mrf.mxu0  ;;  %v8933_v26 = vpop.f32.mrf.mxu1 }
 0x184   : > { %6783 = vmatmul.mubr.msk.f32.gmra.mxu0 %vm171_vm0, %v8594_v22 }
 0x185   : > { %6785 = vmatprep.mubr.msk.f32.mxu0 %vm171_vm0, %v8603_v47  ;;  %v8937_v43 = vpop.f32.mrf.mxu0  ;;  %v8939_v34 = vpop.f32.mrf.mxu1  ;;  %6838 = vmatmul.mubr.msk.f32.gmra.mxu1 %vm171_vm0, %v7556_v32 }
 0x186   : > { %6840 = vmatprep.mubr.msk.f32.mxu1 %vm171_vm0, %v10474_v46 }
 0x187   : > { %v8945_v59 = vpop.f32.mrf.mxu0  ;;  %v8949_v22 = vpop.f32.mrf.mxu1 }
 0x188   : > { %6786 = vmatmul.mubr.msk.f32.gmra.mxu0 %vm171_vm0, %v8616_v19 }
 0x189   : > { %6788 = vmatprep.mubr.msk.f32.mxu0 %vm171_vm0, %v8625_v54  ;;  %v8953_v47 = vpop.f32.mrf.mxu0  ;;  %v8955_v21 = vpop.f32.mrf.mxu1  ;;  %6841 = vmatmul.mubr.msk.f32.gmra.mxu1 %vm171_vm0, %v7579_v1  ;;  %v10522_v1 = vld [vmem:[#allocation16_spill] sm:$0xff] }
 0x18a   : > { %6843 = vmatprep.mubr.msk.f32.mxu1 %vm171_vm0, %v10476_v52 }
 0x18b   : > { %v8961_v46 = vpop.f32.mrf.mxu0  ;;  %v8965_v19 = vpop.f32.mrf.mxu1 }
 0x18c   : > { %6789 = vmatmul.mubr.msk.f32.gmra.mxu0 %vm171_vm0, %v8638_v9  ;;  %10519 = vst [vmem:[#allocation73_spill] sm:$0xff] %v8965_v19 }
 0x18d   : > { %6791 = vmatprep.mubr.msk.f32.mxu0 %vm171_vm0, %v8647_v17  ;;  %v8969_v54 = vpop.f32.mrf.mxu0  ;;  %v8971_v32 = vpop.f32.mrf.mxu1  ;;  %6844 = vmatmul.mubr.msk.f32.gmra.mxu1 %vm171_vm0, %v7602_v35  ;;  %v10525_v35 = vld [vmem:[#allocation66_spill] sm:$0xff] }
 0x18e   : > { %10520 = vst [vmem:[#allocation74_spill] sm:$0xff] %v8971_v32  ;;  %6846 = vmatprep.mubr.msk.f32.mxu1 %vm171_vm0, %v10480_v10  ;;  %v10524_v32 = vld [vmem:[#allocation39_spill] sm:$0xff] }
 0x18f   : > { %v8977_v52 = vpop.f32.mrf.mxu0  ;;  %v8981_v9 = vpop.f32.mrf.mxu1 }
 0x190   : > { %6792 = vmatmul.mubr.msk.f32.gmra.mxu0 %vm171_vm0, %v8660_v11  ;;  %10521 = vst [vmem:[#allocation75_spill] sm:$0xff] %v8981_v9  ;;  %v10527_v9 = vld [vmem:[#allocation18_spill] sm:$0xff] }
 0x191   : > { %6794 = vmatprep.mubr.msk.f32.mxu0 %vm171_vm0, %v10522_v1  ;;  %v8985_v17 = vpop.f32.mrf.mxu0  ;;  %v8987_v19 = vpop.f32.mrf.mxu1  ;;  %6847 = vmatmul.mubr.msk.f32.gmra.mxu1 %vm171_vm0, %v10524_v32  ;;  %v10529_v32 = vld [vmem:[#allocation67_spill] sm:$0xff] }
 0x192   : > { %10523 = vst [vmem:[#allocation78_spill] sm:$0xff] %v8985_v17  ;;  %6849 = vmatprep.mubr.msk.f32.mxu1 %vm171_vm0, %v10486_v45 }
 0x193   : > { %v8993_v10 = vpop.f32.mrf.mxu0  ;;  %v8997_v11 = vpop.f32.mrf.mxu1 }
 0x194   : > { %6795 = vmatmul.mubr.msk.f32.gmra.mxu0 %vm171_vm0, %v10525_v35  ;;  %10526 = vst [vmem:[#allocation76_spill] sm:$0xff] %v8997_v11  ;;  %v10531_v11 = vld [vmem:[#allocation20_spill] sm:$0xff] }
 0x195   : > { %6797 = vmatprep.mubr.msk.f32.mxu0 %vm171_vm0, %v10527_v9  ;;  %v9001_v1 = vpop.f32.mrf.mxu0  ;;  %v9003_v17 = vpop.f32.mrf.mxu1  ;;  %6850 = vmatmul.mubr.msk.f32.gmra.mxu1 %vm171_vm0, %v10491_v23  ;;  %v10535_v23 = vld [vmem:[#allocation68_spill] sm:$0xff] }
 0x196   : > { %10528 = vst [vmem:[#allocation77_spill] sm:$0xff] %v9001_v1  ;;  %6852 = vmatprep.mubr.msk.f32.mxu1 %vm171_vm0, %v10493_v44 }
 0x197   : > { %v9009_v45 = vpop.f32.mrf.mxu0  ;;  %v9013_v35 = vpop.f32.mrf.mxu1 }
 0x198   : > { %6798 = vmatmul.mubr.msk.f32.gmra.mxu0 %vm171_vm0, %v10529_v32  ;;  %10530 = vst [vmem:[#allocation79_spill] sm:$0xff] %v9013_v35  ;;  %v9035_v35 = vld [vmem:[#allocation2 + $0x1a0] sm:$0xff] }
 0x199   : > { %6800 = vmatprep.mubr.msk.f32.mxu0 %vm171_vm0, %v10531_v11  ;;  %v9017_v9 = vpop.f32.mrf.mxu0  ;;  %v9019_v1 = vpop.f32.mrf.mxu1  ;;  %6853 = vmatmul.mubr.msk.f32.gmra.mxu1 %vm171_vm0, %v10496_v36  ;;  %v9033_v11 = vld [vmem:[#allocation2 + $0x198] sm:$0xff]  ;;  %10538 = vst [vmem:[#allocation86_spill] sm:$0xff] %v9035_v35 }
 0x19a   : > { %10532 = vst [vmem:[#allocation80_spill] sm:$0xff] %v9017_v9  ;;  %10533 = vst [vmem:[#allocation33_spill] sm:$0xff] %v9019_v1  ;;  %6855 = vmatprep.mubr.msk.f32.mxu1 %vm171_vm0, %v10413_v53  ;;  %v3591_v53 = vrot.slane %v9033_v11, 1 }
 0x19b   : > { %v9025_v44 = vpop.f32.mrf.mxu0  ;;  %v9029_v32 = vpop.f32.mrf.mxu1  ;;  %10537 = vst [vmem:[#allocation82_spill] sm:$0xff] %v9033_v11 }
 0x19c   : > { %10534 = vst [vmem:[#allocation34_spill] sm:$0xff] %v9025_v44  ;;  %6801 = vmatmul.mubr.msk.f32.gmra.mxu0 %vm171_vm0, %v10535_v23  ;;  %10536 = vst [vmem:[#allocation81_spill] sm:$0xff] %v9029_v32  ;;  %v3592_v32 = vrot.slane %v9035_v35, 1 }
 0x19d   : > { %6803 = vmatprep.mubr.msk.f32.mxu0 %vm171_vm0, %v8735_v63  ;;  %v9037_v1 = vpop.f32.mrf.mxu0  ;;  %v9039_v36 = vpop.f32.mrf.mxu1  ;;  %6856 = vmatmul.mubr.msk.f32.gmra.mxu1 %vm171_vm0, %v10416_v39 }
 0x19e   : > { %10539 = vst [vmem:[#allocation84_spill] sm:$0xff] %v9037_v1  ;;  %10540 = vst [vmem:[#allocation87_spill] sm:$0xff] %v9039_v36  ;;  %6858 = vmatprep.mubr.msk.f32.mxu1 %vm171_vm0, %v10501_v15  ;;  %v9053_v1 = vld [vmem:[#allocation2 + $0x1a8] sm:$0x3]  ;;  %v10544_v36 = vld [vmem:[#allocation69_spill] sm:$0xff] }
 0x19f   : > { %v9045_v23 = vpop.f32.mrf.mxu0  ;;  %v9049_v63 = vpop.f32.mrf.mxu1  ;;  %10543 = vst [vmem:[#allocation89_spill] sm:$0xff] %v9053_v1  ;;  %v10547_v15 = vld [vmem:[#allocation51_spill] sm:$0xff] }
 0x1a0   : > { %10541 = vst [vmem:[#allocation85_spill] sm:$0xff] %v9045_v23  ;;  %6804 = vmatmul.mubr.msk.f32.gmra.mxu0 %vm171_vm0, %v8748_v50  ;;  %10542 = vst [vmem:[#allocation88_spill] sm:$0xff] %v9049_v63  ;;  %v3594_v50 = vrot.slane %v9053_v1, 1  ;;  %v10548_v23 = vld [vmem:[#allocation70_spill] sm:$0xff] }
 0x1a1   : > { %6806 = vmatprep.mubr.msk.f32.mxu0 %vm171_vm0, %v10544_v36  ;;  %v9057_v39 = vpop.f32.mrf.mxu0  ;;  %v9059_v44 = vpop.f32.mrf.mxu1  ;;  %6859 = vmatmul.mubr.msk.f32.gmra.mxu1 %vm171_vm0, %v10419_v37  ;;  %v9073_v36 = vsel %vm396_vm2, %v3591_v53, %v3592_v32  ;;  %v10553_v53 = vld [vmem:[#allocation72_spill] sm:$0xff] }
 0x1a2   : > { %10545 = vst [vmem:[#allocation90_spill] sm:$0xff] %v9057_v39  ;;  %10546 = vst [vmem:[#allocation64_spill] sm:$0xff] %v9059_v44  ;;  %6861 = vmatprep.mubr.msk.f32.mxu1 %vm171_vm0, %v10547_v15  ;;  %v10550_v39 = vld [vmem:[#allocation71_spill] sm:$0xff] }
 0x1a3   : > { %v9066_v63 = vpop.f32.mrf.mxu0  ;;  %v9070_v9 = vpop.f32.mrf.mxu1  ;;  %10549 = vst [vmem:[#allocation14_spill] sm:$0xff] %v9073_v36 }
 0x1a4   : > { %6807 = vmatmul.mubr.msk.f32.gmra.mxu0 %vm171_vm0, %v10548_v23  ;;  %v9086_v23 = vsel %vm396_vm2, %v3592_v32, %v3594_v50 }
 0x1a5   : > { %6809 = vmatprep.mubr.msk.f32.mxu0 %vm171_vm0, %v10550_v39  ;;  %v9077_v44 = vpop.f32.mrf.mxu0  ;;  %v9079_v37 = vpop.f32.mrf.mxu1  ;;  %6862 = vmatmul.mubr.msk.f32.gmra.mxu1 %vm171_vm0, %v10510_v16  ;;  %10552 = vst [vmem:[#allocation16_spill] sm:$0xff] %v9086_v23  ;;  %v10561_v16 = vld [vmem:[#allocation10_spill] sm:$0xff] }
 0x1a6   : > { %10551 = vst [vmem:[#allocation65_spill] sm:$0xff] %v9079_v37  ;;  %6864 = vmatprep.mubr.msk.f32.mxu1 %vm171_vm0, %v9073_v36  ;;  %v10556_v36 = vld [vmem:[#allocation9_spill] sm:$0xff] }
 0x1a7   : > { %v9088_v1 = vpop.f32.mrf.mxu0  ;;  %v9092_v15 = vpop.f32.mrf.mxu1 }
 0x1a8   : > { %6810 = vmatmul.mubr.msk.f32.gmra.mxu0 %vm171_vm0, %v10553_v53  ;;  %10554 = vst [vmem:[#allocation66_spill] sm:$0xff] %v9092_v15  ;;  %v10559_v53 = vld [vmem:[#allocation3_spill] sm:$0xff] }
 0x1a9   : > { %6812 = vmatprep.mubr.msk.f32.mxu0 %vm171_vm0, %v9033_v11  ;;  %v9096_v39 = vpop.f32.mrf.mxu0  ;;  %v9098_v37 = vpop.f32.mrf.mxu1  ;;  %6865 = vmatmul.mubr.msk.f32.gmra.mxu1 %vm171_vm0, %v9086_v23  ;;  %v5628_v11 = vld [vmem:[%s10127_s1 + $0xf0] sm:$0xff] }
 0x1aa   : > { %10555 = vst [vmem:[#allocation18_spill] sm:$0xff] %v9098_v37  ;;  %6923 = vmatprep.mubr.msk.f32.mxu1 %vm171_vm0, %v10556_v36  ;;  %v2114_v36 = vadd.f32 %v8815_v41, %v8828_v18  ;;  %v10563_v41 = vld [vmem:[#allocation7_spill] sm:$0xff] }
 0x1ab   : > { %v9104_v32 = vpop.f32.mrf.mxu0  ;;  %v9108_v50 = vpop.f32.mrf.mxu1 }
 0x1ac   : > { %10557 = vst [vmem:[#allocation67_spill] sm:$0xff] %v9104_v32  ;;  %6813 = vmatmul.mubr.msk.f32.gmra.mxu0 %vm171_vm0, %v9035_v35  ;;  %10558 = vst [vmem:[#allocation20_spill] sm:$0xff] %v9108_v50  ;;  %v10562_v50 = vld [vmem:[#allocation5_spill] sm:$0xff] }
 0x1ad   : > { %6871 = vmatprep.mubr.msk.f32.mxu0 %vm171_vm0, %v10559_v53  ;;  %v9115_v37 = vpop.f32.mrf.mxu0  ;;  %v6613_v23 = vpop.f32.mrf.mxu1  ;;  %6924 = vmatmul.mubr.msk.f32.vlgmr.msra.gmra.mxu1 %vm171_vm0, %v10561_v16  ;;  %v5594_v53 = vld [vmem:[%s10127_s1 + $0xe0] sm:$0xff]  ;;  %v2109_v16 = vadd.f32 %v8832_v31, %v8840_v49  ;;  %v10564_v49 = vld [vmem:[#allocation4_spill] sm:$0xff] }
 0x1ae   : > { %10560 = vst [vmem:[#allocation68_spill] sm:$0xff] %v9115_v37  ;;  %7024 = vmatpush3.msra.mxu1 %v8859_v55  ;;  %6926 = vmatprep.mubr.msk.f32.mxu1 %vm171_vm0, %v7386_v0 }
 0x1af   : > { %v6561_v35 = vpop.f32.mrf.mxu0  ;;  %v2605_v37 = vpop.f32.mrf.mxu1  ;;  %7025 = vmatprep.subr.mxu1 %v5628_v11 }
 0x1b0   : > { %6872 = vmatmul.mubr.msk.f32.vlgmr.msra.gmra.mxu0 %vm171_vm0, %v10562_v50  ;;  %v2496_v32 = vadd.f32 %v6561_v35, %v2114_v36  ;;  %v2124_v50 = vadd.f32 %v8842_v40, %v8861_v57  ;;  %7026 = vmatpush3.msra.mxu1 %v5628_v11  ;;  %v2119_v35 = vadd.f32 %v8865_v29, %v8872_v14  ;;  %v10565_v57 = vld [vmem:[#allocation6_spill] sm:$0xff] }
 0x1b1   : > { %6972 = vmatpush3.msra.mxu0 %v8849_v5  ;;  %6874 = vmatprep.mubr.msk.f32.mxu0 %vm171_vm0, %v10563_v41  ;;  %v2336_v18 = vpop.f32.mrf.mxu0  ;;  %v6616_v55 = vpop.f32.mrf.mxu1 }
 0x1b2   : > { %6927 = vmatmul.mubr.msk.f32.gmra.mxu1 %vm171_vm0, %v7398_v4  ;;  %6973 = vmatprep.subr.mxu0 %v5594_v53  ;;  %v2765_v0 = vadd.f32 %v6613_v23, %v2496_v32  ;;  %v2495_v15 = vadd.f32 %v2336_v18, %v2109_v16  ;;  %v2129_v16 = vadd.f32 %v8885_v8, %v8889_v61  ;;  %v10567_v18 = vld [vmem:[#allocation11_spill] sm:$0xff] }
 0x1b3   : > { %6929 = vmatprep.mubr.msk.f32.mxu1 %vm171_vm0, %v10460_v13  ;;  %6974 = vmatpush3.msra.mxu0 %v5594_v53  ;;  %v6564_v31 = vpop.f32.mrf.mxu0  ;;  %v2615_v5 = vpop.f32.mrf.mxu1  ;;  %v2134_v53 = vadd.f32 %v8874_v30, %v8881_v20 }
 0x1b4   : > { %6875 = vmatmul.mubr.msk.f32.gmra.mxu0 %vm171_vm0, %v10564_v49  ;;  %v2804_v36 = vadd.f32 %v8470_v58, %v2765_v0  ;;  %v2764_v4 = vadd.f32 %v2605_v37, %v2495_v15  ;;  %v2498_v40 = vadd.f32 %v6564_v31, %v2124_v50  ;;  %v10566_v15 = vld [vmem:[#allocation8_spill] sm:$0xff]  ;;  %v2144_v31 = vadd.f32 %v8891_v3, %v8897_v25 }
 0x1b5   : > { %6877 = vmatprep.mubr.msk.f32.mxu0 %vm171_vm0, %v10565_v57  ;;  %v2346_v23 = vpop.f32.mrf.mxu0  ;;  %v6619_v32 = vpop.f32.mrf.mxu1 }
 0x1b6   : > { %6930 = vmatmul.mubr.msk.f32.gmra.mxu1 %vm171_vm0, %v7421_v12  ;;  %5326 = vst.msk [vmem:[%s8495_s25 + $0x108] sm:$0xff] %vm1633_vm4, %v2804_v36  ;;  %v2803_v29 = vadd.f32 %v8470_v58, %v2764_v4  ;;  %v2767_v14 = vadd.f32 %v6616_v55, %v2498_v40  ;;  %v2497_v0 = vadd.f32 %v2346_v23, %v2119_v35  ;;  %v10568_v36 = vld [vmem:[#allocation15_spill] sm:$0xff] }
 0x1b7   : > { %6932 = vmatprep.mubr.msk.f32.mxu1 %vm171_vm0, %v10464_v51  ;;  %v6567_v37 = vpop.f32.mrf.mxu0  ;;  %v2625_v11 = vpop.f32.mrf.mxu1  ;;  %v2139_v23 = vadd.f32 %v8901_v38, %v8905_v28 }
 0x1b8   : > { %6878 = vmatmul.mubr.msk.f32.gmra.mxu0 %vm171_vm0, %v10566_v15  ;;  %5325 = vst.msk [vmem:[%s8495_s25 + $0x100] sm:$0xff] %vm1633_vm4, %v2803_v29  ;;  %v2806_v30 = vadd.f32 %v8470_v58, %v2767_v14  ;;  %v2766_v20 = vadd.f32 %v2615_v5, %v2497_v0  ;;  %v2500_v4 = vadd.f32 %v6567_v37, %v2134_v53  ;;  %v10569_v53 = vld [vmem:[#allocation17_spill] sm:$0xff] }
 0x1b9   : > { %6880 = vmatprep.mubr.msk.f32.mxu0 %vm171_vm0, %v10567_v18  ;;  %v2356_v55 = vpop.f32.mrf.mxu0  ;;  %v6622_v50 = vpop.f32.mrf.mxu1  ;;  %v2154_v0 = vadd.f32 %v8907_v33, %v8913_v48 }
 0x1ba   : > { %6933 = vmatmul.mubr.msk.f32.gmra.mxu1 %vm171_vm0, %v7451_v27  ;;  %5328 = vst.msk [vmem:[%s8495_s25 + $0x118] sm:$0xff] %vm1633_vm4, %v2806_v30  ;;  %v2805_v8 = vadd.f32 %v8470_v58, %v2766_v20  ;;  %v2769_v61 = vadd.f32 %v6619_v32, %v2500_v4  ;;  %v2499_v5 = vadd.f32 %v2356_v55, %v2129_v16  ;;  %v10570_v16 = vld [vmem:[#allocation53_spill] sm:$0xff]  ;;  %v10571_v55 = vld [vmem:[#allocation19_spill] sm:$0xff] }
 0x1bb   : > { %6935 = vmatprep.mubr.msk.f32.mxu1 %vm171_vm0, %v10466_v24  ;;  %v6570_v35 = vpop.f32.mrf.mxu0  ;;  %v2635_v40 = vpop.f32.mrf.mxu1  ;;  %v2149_v20 = vadd.f32 %v8917_v60, %v8921_v56  ;;  %v2164_v60 = vadd.f32 %v8923_v2, %v8929_v6 }
 0x1bc   : > { %6881 = vmatmul.mubr.msk.f32.gmra.mxu0 %vm171_vm0, %v10568_v36  ;;  %5327 = vst.msk [vmem:[%s8495_s25 + $0x110] sm:$0xff] %vm1633_vm4, %v2805_v8  ;;  %v2808_v3 = vadd.f32 %v8470_v58, %v2769_v61  ;;  %v2768_v25 = vadd.f32 %v2625_v11, %v2499_v5  ;;  %v2502_v32 = vadd.f32 %v6570_v35, %v2144_v31  ;;  %v10572_v5 = vld [vmem:[#allocation22_spill] sm:$0xff] }
 0x1bd   : > { %6883 = vmatprep.mubr.msk.f32.mxu0 %vm171_vm0, %v10569_v53  ;;  %v2366_v29 = vpop.f32.mrf.mxu0  ;;  %v6625_v14 = vpop.f32.mrf.mxu1 }
 0x1be   : > { %6936 = vmatmul.mubr.msk.f32.gmra.mxu1 %vm171_vm0, %v7487_v42  ;;  %5330 = vst.msk [vmem:[%s8495_s25 + $0x128] sm:$0xff] %vm1633_vm4, %v2808_v3  ;;  %v2807_v38 = vadd.f32 %v8470_v58, %v2768_v25  ;;  %v2771_v28 = vadd.f32 %v6622_v50, %v2502_v32  ;;  %v2501_v37 = vadd.f32 %v2366_v29, %v2139_v23  ;;  %v9201_v58 = vld [vmem:[%s10128_s2] ss:$0 sm:$0xff] }
 0x1bf   : > { %6938 = vmatprep.mubr.msk.f32.mxu1 %vm171_vm0, %v10468_v7  ;;  %v6573_v11 = vpop.f32.mrf.mxu0  ;;  %v2645_v30 = vpop.f32.mrf.mxu1  ;;  %v2159_v3 = vadd.f32 %v8933_v26, %v8937_v43  ;;  %v10574_v32 = vld [vmem:[#allocation21_spill] sm:$0xff] }
 0x1c0   : > { %6884 = vmatmul.mubr.msk.f32.gmra.mxu0 %vm171_vm0, %v10570_v16  ;;  %5329 = vst.msk [vmem:[%s8495_s25 + $0x120] sm:$0xff] %vm1633_vm4, %v2807_v38  ;;  %v2810_v33 = vadd.f32 %v9201_v58, %v2771_v28  ;;  %v2770_v48 = vadd.f32 %v2635_v40, %v2501_v37  ;;  %v2504_v4 = vadd.f32 %v6573_v11, %v2154_v0  ;;  %v10573_v40 = vld [vmem:[#allocation54_spill] sm:$0xff]  ;;  %v10575_v0 = vld [vmem:[#allocation24_spill] sm:$0xff]  ;;  %v10576_v37 = vld [vmem:[#allocation25_spill] sm:$0xff] }
 0x1c1   : > { %6886 = vmatprep.mubr.msk.f32.mxu0 %vm171_vm0, %v10571_v55  ;;  %v2376_v50 = vpop.f32.mrf.mxu0  ;;  %v6628_v31 = vpop.f32.mrf.mxu1  ;;  %v2174_v38 = vadd.f32 %v8939_v34, %v8945_v59 }
 0x1c2   : > { %6939 = vmatmul.mubr.msk.f32.gmra.mxu1 %vm171_vm0, %v7510_v62  ;;  %5332 = vst.msk [vmem:[%s8495_s25 + $0x138] sm:$0xff] %vm1633_vm4, %v2810_v33  ;;  %v2809_v56 = vadd.f32 %v9201_v58, %v2770_v48  ;;  %v2773_v8 = vadd.f32 %v6625_v14, %v2504_v4  ;;  %v2503_v61 = vadd.f32 %v2376_v50, %v2149_v20  ;;  %v10578_v4 = vld [vmem:[#allocation23_spill] sm:$0xff] }
 0x1c3   : > { %6941 = vmatprep.mubr.msk.f32.mxu1 %vm171_vm0, %v10572_v5  ;;  %v6576_v35 = vpop.f32.mrf.mxu0  ;;  %v2655_v23 = vpop.f32.mrf.mxu1  ;;  %v2169_v33 = vadd.f32 %v8949_v22, %v8953_v47 }
 0x1c4   : > { %6887 = vmatmul.mubr.msk.f32.gmra.mxu0 %vm171_vm0, %v10573_v40  ;;  %5331 = vst.msk [vmem:[%s8495_s25 + $0x130] sm:$0xff] %vm1633_vm4, %v2809_v56  ;;  %v2812_v2 = vadd.f32 %v9201_v58, %v2773_v8  ;;  %v2772_v6 = vadd.f32 %v2645_v30, %v2503_v61  ;;  %v2506_v25 = vadd.f32 %v6576_v35, %v2164_v60  ;;  %v10577_v30 = vld [vmem:[#allocation55_spill] sm:$0xff]  ;;  %v10580_v61 = vld [vmem:[#allocation28_spill] sm:$0xff] }
 0x1c5   : > { %6889 = vmatprep.mubr.msk.f32.mxu0 %vm171_vm0, %v10574_v32  ;;  %v2386_v29 = vpop.f32.mrf.mxu0  ;;  %v6631_v14 = vpop.f32.mrf.mxu1  ;;  %v10579_v60 = vld [vmem:[#allocation27_spill] sm:$0xff]  ;;  %v2184_v56 = vadd.f32 %v8955_v21, %v8961_v46 }
 0x1c6   : > { %6942 = vmatmul.mubr.msk.f32.gmra.mxu1 %vm171_vm0, %v10575_v0  ;;  %5334 = vst.msk [vmem:[%s8495_s25 + $0x148] sm:$0xff] %vm1633_vm4, %v2812_v2  ;;  %v2811_v26 = vadd.f32 %v9201_v58, %v2772_v6  ;;  %v2775_v43 = vadd.f32 %v6628_v31, %v2506_v25  ;;  %v2505_v28 = vadd.f32 %v2386_v29, %v2159_v3  ;;  %v10582_v2 = vld [vmem:[#allocation73_spill] sm:$0xff]  ;;  %v10583_v29 = vld [vmem:[#allocation26_spill] sm:$0xff] }
 0x1c7   : > { %6944 = vmatprep.mubr.msk.f32.mxu1 %vm171_vm0, %v10576_v37  ;;  %v6579_v11 = vpop.f32.mrf.mxu0  ;;  %v2665_v20 = vpop.f32.mrf.mxu1  ;;  %v2179_v6 = vadd.f32 %v10582_v2, %v8969_v54 }
 0x1c8   : > { %6890 = vmatmul.mubr.msk.f32.gmra.mxu0 %vm171_vm0, %v10577_v30  ;;  %5333 = vst.msk [vmem:[%s8495_s25 + $0x140] sm:$0xff] %vm1633_vm4, %v2811_v26  ;;  %v2814_v34 = vadd.f32 %v9201_v58, %v2775_v43  ;;  %v2774_v59 = vadd.f32 %v2655_v23, %v2505_v28  ;;  %v2508_v48 = vadd.f32 %v6579_v11, %v2174_v38  ;;  %v10581_v23 = vld [vmem:[#allocation56_spill] sm:$0xff]  ;;  %v10584_v26 = vld [vmem:[#allocation30_spill] sm:$0xff] }
 0x1c9   : > { %6892 = vmatprep.mubr.msk.f32.mxu0 %vm171_vm0, %v10578_v4  ;;  %v2396_v50 = vpop.f32.mrf.mxu0  ;;  %v6634_v31 = vpop.f32.mrf.mxu1  ;;  %v10585_v43 = vld [vmem:[#allocation74_spill] sm:$0xff] }
 0x1ca   : > { %6945 = vmatmul.mubr.msk.f32.gmra.mxu1 %vm171_vm0, %v10579_v60  ;;  %5336 = vst.msk [vmem:[%s8495_s25 + $0x158] sm:$0xff] %vm1633_vm4, %v2814_v34  ;;  %v2813_v22 = vadd.f32 %v9201_v58, %v2774_v59  ;;  %v2777_v47 = vadd.f32 %v6631_v14, %v2508_v48  ;;  %v2507_v8 = vadd.f32 %v2396_v50, %v2169_v33  ;;  %v10586_v33 = vld [vmem:[#allocation31_spill] sm:$0xff]  ;;  %v10587_v59 = vld [vmem:[#allocation57_spill] sm:$0xff]  ;;  %v10588_v50 = vld [vmem:[#allocation78_spill] sm:$0xff] }
 0x1cb   : > { %6947 = vmatprep.mubr.msk.f32.mxu1 %vm171_vm0, %v10580_v61  ;;  %v6582_v35 = vpop.f32.mrf.mxu0  ;;  %v2675_v3 = vpop.f32.mrf.mxu1  ;;  %v2194_v28 = vadd.f32 %v10585_v43, %v8977_v52 }
 0x1cc   : > { %6893 = vmatmul.mubr.msk.f32.gmra.mxu0 %vm171_vm0, %v10581_v23  ;;  %5335 = vst.msk [vmem:[%s8495_s25 + $0x150] sm:$0xff] %vm1633_vm4, %v2813_v22  ;;  %v2816_v21 = vadd.f32 %v9201_v58, %v2777_v47  ;;  %v2776_v46 = vadd.f32 %v2665_v20, %v2507_v8  ;;  %v2510_v25 = vadd.f32 %v6582_v35, %v2184_v56  ;;  %v10589_v56 = vld [vmem:[#allocation75_spill] sm:$0xff]  ;;  %v10590_v8 = vld [vmem:[#allocation29_spill] sm:$0xff] }
 0x1cd   : > { %6895 = vmatprep.mubr.msk.f32.mxu0 %vm171_vm0, %v10583_v29  ;;  %v2406_v14 = vpop.f32.mrf.mxu0  ;;  %v6637_v38 = vpop.f32.mrf.mxu1  ;;  %v2189_v22 = vadd.f32 %v10589_v56, %v10588_v50  ;;  %v10596_v50 = vld [vmem:[#allocation32_spill] sm:$0xff] }
 0x1ce   : > { %6948 = vmatmul.mubr.msk.f32.gmra.mxu1 %vm171_vm0, %v10584_v26  ;;  %5338 = vst.msk [vmem:[%s8495_s25 + $0x168] sm:$0xff] %vm1633_vm4, %v2816_v21  ;;  %v2815_v54 = vadd.f32 %v9201_v58, %v2776_v46  ;;  %v2779_v11 = vadd.f32 %v6634_v31, %v2510_v25  ;;  %v2509_v20 = vadd.f32 %v2406_v14, %v2179_v6  ;;  %v10591_v6 = vld [vmem:[#allocation35_spill] sm:$0xff]  ;;  %v10592_v14 = vld [vmem:[#allocation36_spill] sm:$0xff] }
 0x1cf   : > { %6950 = vmatprep.mubr.msk.f32.mxu1 %vm171_vm0, %v10586_v33  ;;  %v6585_v34 = vpop.f32.mrf.mxu0  ;;  %v2685_v48 = vpop.f32.mrf.mxu1  ;;  %v2204_v21 = vadd.f32 %v8987_v19, %v8993_v10 }
 0x1d0   : > { %6896 = vmatmul.mubr.msk.f32.gmra.mxu0 %vm171_vm0, %v10587_v59  ;;  %5337 = vst.msk [vmem:[%s8495_s25 + $0x160] sm:$0xff] %vm1633_vm4, %v2815_v54  ;;  %v2818_v52 = vadd.f32 %v9201_v58, %v2779_v11  ;;  %v2778_v47 = vadd.f32 %v2675_v3, %v2509_v20  ;;  %v2512_v31 = vadd.f32 %v6585_v34, %v2194_v28  ;;  %v10593_v28 = vld [vmem:[#allocation58_spill] sm:$0xff]  ;;  %v10594_v11 = vld [vmem:[#allocation77_spill] sm:$0xff]  ;;  %v10595_v20 = vld [vmem:[#allocation76_spill] sm:$0xff] }
 0x1d1   : > { %6898 = vmatprep.mubr.msk.f32.mxu0 %vm171_vm0, %v10590_v8  ;;  %v2416_v35 = vpop.f32.mrf.mxu0  ;;  %v6640_v2 = vpop.f32.mrf.mxu1  ;;  %v2199_v34 = vadd.f32 %v10595_v20, %v10594_v11  ;;  %v10601_v11 = vld [vmem:[#allocation79_spill] sm:$0xff] }
 0x1d2   : > { %6951 = vmatmul.mubr.msk.f32.gmra.mxu1 %vm171_vm0, %v10591_v6  ;;  %5340 = vst.msk [vmem:[%s8495_s25 + $0x178] sm:$0xff] %vm1633_vm4, %v2818_v52  ;;  %v2817_v46 = vadd.f32 %v9201_v58, %v2778_v47  ;;  %v2781_v25 = vadd.f32 %v6637_v38, %v2512_v31  ;;  %v2511_v3 = vadd.f32 %v2416_v35, %v2189_v22  ;;  %v10597_v52 = vld [vmem:[#allocation39_spill] sm:$0xff] }
 0x1d3   : > { %6953 = vmatprep.mubr.msk.f32.mxu1 %vm171_vm0, %v10592_v14  ;;  %v6588_v43 = vpop.f32.mrf.mxu0  ;;  %v2695_v54 = vpop.f32.mrf.mxu1  ;;  %v2214_v47 = vadd.f32 %v9003_v17, %v9009_v45 }
 0x1d4   : > { %6899 = vmatmul.mubr.msk.f32.gmra.mxu0 %vm171_vm0, %v10593_v28  ;;  %5339 = vst.msk [vmem:[%s8495_s25 + $0x170] sm:$0xff] %vm1633_vm4, %v2817_v46  ;;  %v2820_v10 = vadd.f32 %v9201_v58, %v2781_v25  ;;  %v2780_v19 = vadd.f32 %v2685_v48, %v2511_v3  ;;  %v2514_v38 = vadd.f32 %v6588_v43, %v2204_v21  ;;  %v10598_v46 = vld [vmem:[#allocation40_spill] sm:$0xff]  ;;  %v10599_v25 = vld [vmem:[#allocation59_spill] sm:$0xff] }
 0x1d5   : > { %6901 = vmatprep.mubr.msk.f32.mxu0 %vm171_vm0, %v10596_v50  ;;  %v2426_v56 = vpop.f32.mrf.mxu0  ;;  %v6643_v22 = vpop.f32.mrf.mxu1  ;;  %v10600_v43 = vld [vmem:[#allocation80_spill] sm:$0xff] }
 0x1d6   : > { %6954 = vmatmul.mubr.msk.f32.gmra.mxu1 %vm171_vm0, %v10597_v52  ;;  %5342 = vst.msk [vmem:[%s8495_s25 + $0x188] sm:$0xff] %vm1633_vm4, %v2820_v10  ;;  %v2819_v31 = vadd.f32 %v9201_v58, %v2780_v19  ;;  %v2783_v35 = vadd.f32 %v6640_v2, %v2514_v38  ;;  %v2513_v48 = vadd.f32 %v2426_v56, %v2199_v34  ;;  %v10602_v10 = vld [vmem:[#allocation37_spill] sm:$0xff]  ;;  %v10603_v38 = vld [vmem:[#allocation42_spill] sm:$0xff] }
 0x1d7   : > { %6956 = vmatprep.mubr.msk.f32.mxu1 %vm171_vm0, %v10598_v46  ;;  %v6591_v21 = vpop.f32.mrf.mxu0  ;;  %v2705_v3 = vpop.f32.mrf.mxu1  ;;  %v2209_v20 = vadd.f32 %v10601_v11, %v10600_v43  ;;  %v10604_v56 = vld [vmem:[#allocation34_spill] sm:$0xff]  ;;  %v10605_v46 = vld [vmem:[#allocation33_spill] sm:$0xff]  ;;  %v10608_v11 = vld [vmem:[#allocation84_spill] sm:$0xff] }
 0x1d8   : > { %6902 = vmatmul.mubr.msk.f32.gmra.mxu0 %vm171_vm0, %v10599_v25  ;;  %5341 = vst.msk [vmem:[%s8495_s25 + $0x180] sm:$0xff] %vm1633_vm4, %v2819_v31  ;;  %v2822_v45 = vadd.f32 %v9201_v58, %v2783_v35  ;;  %v2782_v17 = vadd.f32 %v2695_v54, %v2513_v48  ;;  %v2516_v2 = vadd.f32 %v6591_v21, %v2214_v47  ;;  %v10606_v35 = vld [vmem:[#allocation43_spill] sm:$0xff]  ;;  %v10607_v48 = vld [vmem:[#allocation60_spill] sm:$0xff] }
 0x1d9   : > { %6904 = vmatprep.mubr.msk.f32.mxu0 %vm171_vm0, %v10602_v10  ;;  %v2436_v34 = vpop.f32.mrf.mxu0  ;;  %v6646_v19 = vpop.f32.mrf.mxu1  ;;  %v2224_v52 = vadd.f32 %v10605_v46, %v10604_v56  ;;  %v10612_v56 = vld [vmem:[#allocation85_spill] sm:$0xff] }
 0x1da   : > { %6957 = vmatmul.mubr.msk.f32.gmra.mxu1 %vm171_vm0, %v10603_v38  ;;  %5344 = vst.msk [vmem:[%s8495_s25 + $0x198] sm:$0xff] %vm1633_vm4, %v2822_v45  ;;  %v2821_v31 = vadd.f32 %v9201_v58, %v2782_v17  ;;  %v2785_v43 = vadd.f32 %v6643_v22, %v2516_v2  ;;  %v2515_v54 = vadd.f32 %v2436_v34, %v2209_v20  ;;  %v10609_v38 = vld [vmem:[#allocation81_spill] sm:$0xff] }
 0x1db   : > { %6959 = vmatprep.mubr.msk.f32.mxu1 %vm171_vm0, %v10606_v35  ;;  %v6594_v47 = vpop.f32.mrf.mxu0  ;;  %v2715_v21 = vpop.f32.mrf.mxu1  ;;  %v2219_v10 = vadd.f32 %v10609_v38, %v10608_v11  ;;  %v10610_v17 = vld [vmem:[#allocation41_spill] sm:$0xff]  ;;  %v10613_v35 = vld [vmem:[#allocation87_spill] sm:$0xff]  ;;  %v10616_v11 = vld [vmem:[#allocation90_spill] sm:$0xff] }
 0x1dc   : > { %6905 = vmatmul.mubr.msk.f32.gmra.mxu0 %vm171_vm0, %v10607_v48  ;;  %5343 = vst.msk [vmem:[%s8495_s25 + $0x190] sm:$0xff] %vm1633_vm4, %v2821_v31  ;;  %v2824_v46 = vadd.f32 %v9201_v58, %v2785_v43  ;;  %v2784_v45 = vadd.f32 %v2705_v3, %v2515_v54  ;;  %v2518_v22 = vadd.f32 %v6594_v47, %v2224_v52  ;;  %v10611_v34 = vld [vmem:[#allocation45_spill] sm:$0xff]  ;;  %v10614_v43 = vld [vmem:[#allocation46_spill] sm:$0xff] }
 0x1dd   : > { %6907 = vmatprep.mubr.msk.f32.mxu0 %vm171_vm0, %v10610_v17  ;;  %v2446_v20 = vpop.f32.mrf.mxu0  ;;  %v6649_v2 = vpop.f32.mrf.mxu1  ;;  %v2234_v48 = vadd.f32 %v10613_v35, %v10612_v56  ;;  %v10615_v54 = vld [vmem:[#allocation61_spill] sm:$0xff]  ;;  %v10620_v56 = vld [vmem:[#allocation64_spill] sm:$0xff] }
 0x1de   : > { %6960 = vmatmul.mubr.msk.f32.gmra.mxu1 %vm171_vm0, %v10611_v34  ;;  %5346 = vst.msk [vmem:[%s8495_s25 + $0x1a8] sm:$0xff] %vm1633_vm4, %v2824_v46  ;;  %v2823_v38 = vadd.f32 %v9201_v58, %v2784_v45  ;;  %v2787_v31 = vadd.f32 %v6646_v19, %v2518_v22  ;;  %v2517_v3 = vadd.f32 %v2446_v20, %v2219_v10  ;;  %v10617_v34 = vld [vmem:[#allocation88_spill] sm:$0xff] }
 0x1df   : > { %6962 = vmatprep.mubr.msk.f32.mxu1 %vm171_vm0, %v10614_v43  ;;  %v6597_v52 = vpop.f32.mrf.mxu0  ;;  %v2725_v47 = vpop.f32.mrf.mxu1  ;;  %v2229_v17 = vadd.f32 %v10617_v34, %v10616_v11  ;;  %v10618_v45 = vld [vmem:[#allocation44_spill] sm:$0xff]  ;;  %v2244_v43 = vadd.f32 %v10620_v56, %v9066_v63  ;;  %v2239_v11 = vadd.f32 %v9070_v9, %v9077_v44  ;;  %v10625_v56 = vld [vmem:[#allocation65_spill] sm:$0xff] }
 0x1e0   : > { %6908 = vmatmul.mubr.msk.f32.gmra.mxu0 %vm171_vm0, %v10615_v54  ;;  %5345 = vst.msk [vmem:[%s8495_s25 + $0x1a0] sm:$0xff] %vm1633_vm4, %v2823_v38  ;;  %v2826_v35 = vadd.f32 %v9201_v58, %v2787_v31  ;;  %v2786_v46 = vadd.f32 %v2715_v21, %v2517_v3  ;;  %v2520_v19 = vadd.f32 %v6597_v52, %v2234_v48  ;;  %v10619_v20 = vld [vmem:[#allocation48_spill] sm:$0xff]  ;;  %v10621_v31 = vld [vmem:[#allocation49_spill] sm:$0xff]  ;;  %v10622_v3 = vld [vmem:[#allocation62_spill] sm:$0xff] }
 0x1e1   : > { %6910 = vmatprep.mubr.msk.f32.mxu0 %vm171_vm0, %v10618_v45  ;;  %v2456_v10 = vpop.f32.mrf.mxu0  ;;  %v6652_v22 = vpop.f32.mrf.mxu1 }
 0x1e2   : > { %6963 = vmatmul.mubr.msk.f32.gmra.mxu1 %vm171_vm0, %v10619_v20  ;;  %5348 = vst.msk [vmem:[%s8495_s25 + $0x1b8] sm:$0xff] %vm1633_vm4, %v2826_v35  ;;  %v2825_v34 = vadd.f32 %v9201_v58, %v2786_v46  ;;  %v2789_v38 = vadd.f32 %v6649_v2, %v2520_v19  ;;  %v2519_v21 = vadd.f32 %v2456_v10, %v2229_v17  ;;  %v10623_v46 = vld [vmem:[#allocation47_spill] sm:$0xff]  ;;  %v10624_v10 = vld [vmem:[#allocation50_spill] sm:$0xff] }
 0x1e3   : > { %6965 = vmatprep.mubr.msk.f32.mxu1 %vm171_vm0, %v10621_v31  ;;  %v6600_v48 = vpop.f32.mrf.mxu0  ;;  %v2735_v52 = vpop.f32.mrf.mxu1  ;;  %v2254_v31 = vadd.f32 %v10625_v56, %v9088_v1  ;;  %v10631_v56 = vld [vmem:[#allocation67_spill] sm:$0xff] }
 0x1e4   : > { %6911 = vmatmul.mubr.msk.f32.gmra.mxu0 %vm171_vm0, %v10622_v3  ;;  %5347 = vst.msk [vmem:[%s8495_s25 + $0x1b0] sm:$0xff] %vm1633_vm4, %v2825_v34  ;;  %v2828_v63 = vadd.f32 %v9201_v58, %v2789_v38  ;;  %v2788_v35 = vadd.f32 %v2725_v47, %v2519_v21  ;;  %v2522_v2 = vadd.f32 %v6600_v48, %v2244_v43  ;;  %v10626_v34 = vld [vmem:[#allocation51_spill] sm:$0xff]  ;;  %v10628_v48 = vld [vmem:[#allocation66_spill] sm:$0xff] }
 0x1e5   : > { %6913 = vmatprep.mubr.msk.f32.mxu0 %vm171_vm0, %v10623_v46  ;;  %v2466_v17 = vpop.f32.mrf.mxu0  ;;  %v6655_v19 = vpop.f32.mrf.mxu1  ;;  %v10627_v38 = vld [vmem:[#allocation63_spill] sm:$0xff] }
 0x1e6   : > { %6966 = vmatmul.mubr.msk.f32.gmra.mxu1 %vm171_vm0, %v10624_v10  ;;  %5350 = vst.msk [vmem:[%s8495_s25 + $0x1c8] sm:$0xff] %vm1633_vm4, %v2828_v63  ;;  %v2827_v44 = vadd.f32 %v9201_v58, %v2788_v35  ;;  %v2791_v9 = vadd.f32 %v6652_v22, %v2522_v2  ;;  %v2521_v47 = vadd.f32 %v2466_v17, %v2239_v11  ;;  %v10629_v35 = vld [vmem:[#allocation38_spill] sm:$0xff]  ;;  %v10630_v17 = vld [vmem:[#allocation52_spill] sm:$0xff] }
 0x1e7   : > { %6968 = vmatprep.mubr.msk.f32.mxu1 %vm171_vm0, %v10626_v34  ;;  %v6603_v43 = vpop.f32.mrf.mxu0  ;;  %v2745_v21 = vpop.f32.mrf.mxu1  ;;  %v2249_v10 = vadd.f32 %v10628_v48, %v9096_v39  ;;  %v10632_v34 = vld [vmem:[#allocation18_spill] sm:$0xff]  ;;  %v10635_v48 = vld [vmem:[#allocation20_spill] sm:$0xff] }
 0x1e8   : > { %6914 = vmatmul.mubr.msk.f32.gmra.mxu0 %vm171_vm0, %v10627_v38  ;;  %5349 = vst.msk [vmem:[%s8495_s25 + $0x1c0] sm:$0xff] %vm1633_vm4, %v2827_v44  ;;  %v2830_v1 = vadd.f32 %v9201_v58, %v2791_v9  ;;  %v2790_v63 = vadd.f32 %v2735_v52, %v2521_v47  ;;  %v2524_v22 = vadd.f32 %v6603_v43, %v2254_v31  ;;  %v10633_v9 = vld [vmem:[#allocation83_spill] sm:$0xff]  ;;  %v10634_v43 = vld [vmem:[#allocation68_spill] sm:$0xff] }
 0x1e9   : > { %6916 = vmatprep.mubr.msk.f32.mxu0 %vm171_vm0, %v10629_v35  ;;  %v2476_v11 = vpop.f32.mrf.mxu0  ;;  %v6658_v2 = vpop.f32.mrf.mxu1  ;;  %v2264_v38 = vadd.f32 %v10632_v34, %v10631_v56 }
 0x1ea   : > { %6969 = vmatmul.mubr.msk.f32.gmra.mxu1 %vm171_vm0, %v10630_v17  ;;  %5352 = vst.msk [vmem:[%s8495_s25 + $0x1d8] sm:$0xff] %vm1633_vm4, %v2830_v1  ;;  %v2829_v39 = vadd.f32 %v9201_v58, %v2790_v63  ;;  %v2793_v44 = vadd.f32 %v6655_v19, %v2524_v22  ;;  %v2523_v52 = vadd.f32 %v2476_v11, %v2249_v10  ;;  %v10636_v19 = vld [vmem:[#allocation12_spill] sm:$0xff] }
 0x1eb   : > { %7027 = vmatprep.mubr.msk.f32.mxu1 %vm171_vm0, %v10563_v41  ;;  %v6606_v31 = vpop.f32.mrf.mxu0  ;;  %v2755_v47 = vpop.f32.mrf.mxu1  ;;  %v2259_v17 = vadd.f32 %v10635_v48, %v10634_v43  ;;  %v10640_v43 = vld [vmem:[#allocation40_spill] sm:$0xff] }
 0x1ec   : > { %6917 = vmatmul.mubr.msk.f32.gmra.mxu0 %vm171_vm0, %v10633_v9  ;;  %5351 = vst.msk [vmem:[%s8495_s25 + $0x1d0] sm:$0xff] %vm1633_vm4, %v2829_v39  ;;  %v2832_v34 = vadd.f32 %v9201_v58, %v2793_v44  ;;  %v2792_v1 = vadd.f32 %v2745_v21, %v2523_v52  ;;  %v2526_v63 = vadd.f32 %v6606_v31, %v2264_v38  ;;  %v10637_v21 = vld [vmem:[#allocation13_spill] sm:$0xff] }
 0x1ed   : > { %6975 = vmatprep.mubr.msk.f32.mxu0 %vm171_vm0, %v10636_v19  ;;  %v2486_v10 = vpop.f32.mrf.mxu0  ;;  %v9404_v41 = vpop.f32.mrf.mxu1 }
 0x1ee   : > { %7028 = vmatmul.mubr.msk.f32.vlgmr.msra.gmra.mxu1 %vm171_vm0, %v10564_v49  ;;  %5354 = vst.msk [vmem:[%s8495_s25 + $0x1e8] sm:$0xff] %vm1633_vm4, %v2832_v34  ;;  %v2831_v22 = vadd.f32 %v9201_v58, %v2792_v1  ;;  %v2795_v11 = vadd.f32 %v6658_v2, %v2526_v63  ;;  %v2525_v56 = vadd.f32 %v2486_v10, %v2259_v17  ;;  %v10641_v34 = vld [vmem:[#allocation60_spill] sm:$0xff]  ;;  %v10643_v63 = vld [vmem:[#allocation42_spill] sm:$0xff]  ;;  %v10644_v10 = vld [vmem:[#allocation43_spill] sm:$0xff] }
 0x1ef   : > { %7030 = vmatprep.mubr.msk.f32.mxu1 %vm171_vm0, %v10565_v57  ;;  %v9413_v38 = vpop.f32.mrf.mxu0  ;;  %v9417_v39 = vpop.f32.mrf.mxu1 }
 0x1f0   : > { %6976 = vmatmul.mubr.msk.f32.vlgmr.msra.gmra.mxu0 %vm171_vm0, %v10637_v21  ;;  %5353 = vst.msk [vmem:[%s8495_s25 + $0x1e0] sm:$0xff] %vm1633_vm4, %v2831_v22  ;;  %v2834_v49 = vadd.f32 %v9201_v58, %v2795_v11  ;;  %v2794_v44 = vadd.f32 %v2755_v47, %v2525_v56  ;;  %v10639_v47 = vld [vmem:[#allocation39_spill] sm:$0xff]  ;;  %v10645_v21 = vld [vmem:[#allocation45_spill] sm:$0xff] }
 0x1f1   : > { %6978 = vmatprep.mubr.msk.f32.mxu0 %vm171_vm0, %v10460_v13  ;;  %v9424_v2 = vpop.f32.mrf.mxu0  ;;  %v9426_v17 = vpop.f32.mrf.mxu1 }
 0x1f2   : > { %7031 = vmatmul.mubr.msk.f32.gmra.mxu1 %vm171_vm0, %v10566_v15  ;;  %5356 = vst.msk [vmem:[%s8495_s25 + $0x1f8] sm:$0xff] %vm1633_vm4, %v2834_v49  ;;  %v2833_v57 = vadd.f32 %v9201_v58, %v2794_v44  ;;  %v10646_v44 = vld [vmem:[#allocation46_spill] sm:$0xff] }
 0x1f3   : > { %7033 = vmatprep.mubr.msk.f32.mxu1 %vm171_vm0, %v10567_v18  ;;  %v9435_v52 = vpop.f32.mrf.mxu0  ;;  %v9439_v13 = vpop.f32.mrf.mxu1 }
 0x1f4   : > { %6979 = vmatmul.mubr.msk.f32.gmra.mxu0 %vm171_vm0, %v7421_v12  ;;  %5355 = vst.msk [vmem:[%s8495_s25 + $0x1f0] sm:$0xff] %vm1633_vm4, %v2833_v57 }
 0x1f5   : > { %6981 = vmatprep.mubr.msk.f32.mxu0 %vm171_vm0, %v10464_v51  ;;  %v9445_v15 = vpop.f32.mrf.mxu0  ;;  %v9447_v31 = vpop.f32.mrf.mxu1 }
 0x1f6   : > { %7034 = vmatmul.mubr.msk.f32.gmra.mxu1 %vm171_vm0, %v10568_v36 }
 0x1f7   : > { %7036 = vmatprep.mubr.msk.f32.mxu1 %vm171_vm0, %v10569_v53  ;;  %v9453_v18 = vpop.f32.mrf.mxu0  ;;  %v9457_v12 = vpop.f32.mrf.mxu1 }
 0x1f8   : > { %6982 = vmatmul.mubr.msk.f32.gmra.mxu0 %vm171_vm0, %v7451_v27 }
 0x1f9   : > { %6984 = vmatprep.mubr.msk.f32.mxu0 %vm171_vm0, %v10466_v24  ;;  %v9461_v51 = vpop.f32.mrf.mxu0  ;;  %v9463_v58 = vpop.f32.mrf.mxu1 }
 0x1fa   : > { %7037 = vmatmul.mubr.msk.f32.gmra.mxu1 %vm171_vm0, %v10570_v16 }
 0x1fb   : > { %7039 = vmatprep.mubr.msk.f32.mxu1 %vm171_vm0, %v10571_v55  ;;  %v9469_v36 = vpop.f32.mrf.mxu0  ;;  %v9473_v27 = vpop.f32.mrf.mxu1 }
 0x1fc   : > { %6985 = vmatmul.mubr.msk.f32.gmra.mxu0 %vm171_vm0, %v7487_v42 }
 0x1fd   : > { %6987 = vmatprep.mubr.msk.f32.mxu0 %vm171_vm0, %v10468_v7  ;;  %v9477_v24 = vpop.f32.mrf.mxu0  ;;  %v9479_v53 = vpop.f32.mrf.mxu1 }
 0x1fe   : > { %7040 = vmatmul.mubr.msk.f32.gmra.mxu1 %vm171_vm0, %v10573_v40 }
 0x1ff   : > { %7042 = vmatprep.mubr.msk.f32.mxu1 %vm171_vm0, %v10574_v32  ;;  %v9485_v16 = vpop.f32.mrf.mxu0  ;;  %v9489_v42 = vpop.f32.mrf.mxu1 }
 0x200   : > { %6988 = vmatmul.mubr.msk.f32.gmra.mxu0 %vm171_vm0, %v7510_v62 }
 0x201   : > { %6990 = vmatprep.mubr.msk.f32.mxu0 %vm171_vm0, %v10572_v5  ;;  %v9493_v7 = vpop.f32.mrf.mxu0  ;;  %v9495_v55 = vpop.f32.mrf.mxu1 }
 0x202   : > { %7043 = vmatmul.mubr.msk.f32.gmra.mxu1 %vm171_vm0, %v10577_v30 }
 0x203   : > { %7045 = vmatprep.mubr.msk.f32.mxu1 %vm171_vm0, %v10578_v4  ;;  %v9501_v40 = vpop.f32.mrf.mxu0  ;;  %v9505_v62 = vpop.f32.mrf.mxu1 }
 0x204   : > { %6991 = vmatmul.mubr.msk.f32.gmra.mxu0 %vm171_vm0, %v10575_v0 }
 0x205   : > { %6993 = vmatprep.mubr.msk.f32.mxu0 %vm171_vm0, %v10576_v37  ;;  %v9509_v5 = vpop.f32.mrf.mxu0  ;;  %v9511_v32 = vpop.f32.mrf.mxu1 }
 0x206   : > { %7046 = vmatmul.mubr.msk.f32.gmra.mxu1 %vm171_vm0, %v10581_v23 }
 0x207   : > { %7048 = vmatprep.mubr.msk.f32.mxu1 %vm171_vm0, %v10583_v29  ;;  %v9517_v30 = vpop.f32.mrf.mxu0  ;;  %v9521_v0 = vpop.f32.mrf.mxu1 }
 0x208   : > { %6994 = vmatmul.mubr.msk.f32.gmra.mxu0 %vm171_vm0, %v10579_v60 }
 0x209   : > { %6996 = vmatprep.mubr.msk.f32.mxu0 %vm171_vm0, %v10580_v61  ;;  %v9525_v37 = vpop.f32.mrf.mxu0  ;;  %v9527_v4 = vpop.f32.mrf.mxu1 }
 0x20a   : > { %7049 = vmatmul.mubr.msk.f32.gmra.mxu1 %vm171_vm0, %v10587_v59 }
 0x20b   : > { %7051 = vmatprep.mubr.msk.f32.mxu1 %vm171_vm0, %v10590_v8  ;;  %v9533_v23 = vpop.f32.mrf.mxu0  ;;  %v9537_v60 = vpop.f32.mrf.mxu1 }
 0x20c   : > { %6997 = vmatmul.mubr.msk.f32.gmra.mxu0 %vm171_vm0, %v10584_v26 }
 0x20d   : > { %6999 = vmatprep.mubr.msk.f32.mxu0 %vm171_vm0, %v10586_v33  ;;  %v9541_v61 = vpop.f32.mrf.mxu0  ;;  %v9543_v29 = vpop.f32.mrf.mxu1 }
 0x20e   : > { %7052 = vmatmul.mubr.msk.f32.gmra.mxu1 %vm171_vm0, %v10593_v28  ;;  %v10638_v28 = vld [vmem:[#allocation37_spill] sm:$0xff] }
 0x20f   : > { %7054 = vmatprep.mubr.msk.f32.mxu1 %vm171_vm0, %v10596_v50  ;;  %v9549_v59 = vpop.f32.mrf.mxu0  ;;  %v9553_v26 = vpop.f32.mrf.mxu1 }
 0x210   : > { %7000 = vmatmul.mubr.msk.f32.gmra.mxu0 %vm171_vm0, %v10591_v6 }
 0x211   : > { %7002 = vmatprep.mubr.msk.f32.mxu0 %vm171_vm0, %v10592_v14  ;;  %v9557_v33 = vpop.f32.mrf.mxu0  ;;  %v9559_v8 = vpop.f32.mrf.mxu1 }
 0x212   : > { %7055 = vmatmul.mubr.msk.f32.gmra.mxu1 %vm171_vm0, %v10599_v25  ;;  %v10642_v25 = vld [vmem:[#allocation41_spill] sm:$0xff] }
 0x213   : > { %7057 = vmatprep.mubr.msk.f32.mxu1 %vm171_vm0, %v10638_v28  ;;  %v9565_v50 = vpop.f32.mrf.mxu0  ;;  %v9569_v6 = vpop.f32.mrf.mxu1 }
 0x214   : > { %7003 = vmatmul.mubr.msk.f32.gmra.mxu0 %vm171_vm0, %v10639_v47 }
 0x215   : > { %7005 = vmatprep.mubr.msk.f32.mxu0 %vm171_vm0, %v10640_v43  ;;  %v9573_v14 = vpop.f32.mrf.mxu0  ;;  %v9575_v48 = vpop.f32.mrf.mxu1 }
 0x216   : > { %7058 = vmatmul.mubr.msk.f32.gmra.mxu1 %vm171_vm0, %v10641_v34  ;;  %v10650_v34 = vld [vmem:[#allocation86_spill] sm:$0xff] }
 0x217   : > { %7060 = vmatprep.mubr.msk.f32.mxu1 %vm171_vm0, %v10642_v25  ;;  %v9581_v1 = vpop.f32.mrf.mxu0  ;;  %v9585_v19 = vpop.f32.mrf.mxu1  ;;  %v4649_v25 = vrot.slane %v10650_v34, 2 }
 0x218   : > { %7006 = vmatmul.mubr.msk.f32.gmra.mxu0 %vm171_vm0, %v10643_v63  ;;  %v10651_v63 = vld [vmem:[#allocation49_spill] sm:$0xff] }
 0x219   : > { %7008 = vmatprep.mubr.msk.f32.mxu0 %vm171_vm0, %v10644_v10  ;;  %v9589_v22 = vpop.f32.mrf.mxu0  ;;  %v9591_v11 = vpop.f32.mrf.mxu1 }
 0x21a   : > { %7061 = vmatmul.mubr.msk.f32.gmra.mxu1 %vm171_vm0, %v10615_v54  ;;  %v10648_v54 = vld [vmem:[#allocation82_spill] sm:$0xff] }
 0x21b   : > { %7063 = vmatprep.mubr.msk.f32.mxu1 %vm171_vm0, %v10618_v45  ;;  %v9597_v56 = vpop.f32.mrf.mxu0  ;;  %v9601_v49 = vpop.f32.mrf.mxu1  ;;  %v4648_v45 = vrot.slane %v10648_v54, 2  ;;  %v10657_v54 = vld [vmem:[#allocation50_spill] sm:$0xff] }
 0x21c   : > { %7009 = vmatmul.mubr.msk.f32.gmra.mxu0 %vm171_vm0, %v10645_v21  ;;  %v10654_v21 = vld [vmem:[#allocation63_spill] sm:$0xff] }
 0x21d   : > { %7011 = vmatprep.mubr.msk.f32.mxu0 %vm171_vm0, %v10646_v44  ;;  %v9605_v57 = vpop.f32.mrf.mxu0  ;;  %v9607_v28 = vpop.f32.mrf.mxu1 }
 0x21e   : > { %10647 = vst [vmem:[#allocation69_spill] sm:$0xff] %v9607_v28  ;;  %7064 = vmatmul.mubr.msk.f32.gmra.mxu1 %vm171_vm0, %v10622_v3  ;;  %v3191_v28 = vadd.f32 %v9447_v31, %v9453_v18  ;;  %v3201_v18 = vadd.f32 %v9463_v58, %v9469_v36  ;;  %v3211_v36 = vadd.f32 %v9479_v53, %v9485_v16 }
 0x21f   : > { %7066 = vmatprep.mubr.msk.f32.mxu1 %vm171_vm0, %v10623_v46  ;;  %v9614_v47 = vpop.f32.mrf.mxu0  ;;  %v9618_v43 = vpop.f32.mrf.mxu1  ;;  %v10655_v46 = vld [vmem:[#allocation89_spill] sm:$0xff]  ;;  %v3221_v16 = vadd.f32 %v9495_v55, %v9501_v40  ;;  %v3231_v40 = vadd.f32 %v9511_v32, %v9517_v30  ;;  %v3241_v30 = vadd.f32 %v9527_v4, %v9533_v23  ;;  %v3251_v23 = vadd.f32 %v9543_v29, %v9549_v59 }
 0x220   : > { %7012 = vmatmul.mubr.msk.f32.gmra.mxu0 %vm171_vm0, %v10619_v20  ;;  %10649 = vst [vmem:[#allocation70_spill] sm:$0xff] %v9618_v43  ;;  %v4651_v44 = vrot.slane %v10655_v46, 2  ;;  %v10659_v43 = vld [vmem:[#allocation51_spill] sm:$0xff]  ;;  %v3261_v59 = vadd.f32 %v9559_v8, %v9565_v50  ;;  %v3271_v50 = vadd.f32 %v9575_v48, %v9581_v1  ;;  %v3281_v1 = vadd.f32 %v9591_v11, %v9597_v56 }
 0x221   : > { %7014 = vmatprep.mubr.msk.f32.mxu0 %vm171_vm0, %v10651_v63  ;;  %v9623_v10 = vpop.f32.mrf.mxu0  ;;  %v9625_v3 = vpop.f32.mrf.mxu1  ;;  %v4650_v63 = vsel %vm1669_vm3, %v4648_v45, %v4649_v25 }
 0x222   : > { %10652 = vst [vmem:[#allocation71_spill] sm:$0xff] %v9623_v10  ;;  %10653 = vst [vmem:[#allocation72_spill] sm:$0xff] %v9625_v3  ;;  %7067 = vmatmul.mubr.msk.f32.gmra.mxu1 %vm171_vm0, %v10654_v21 }
 0x223   : > { %7069 = vmatprep.mubr.msk.f32.mxu1 %vm171_vm0, %v10629_v35  ;;  %v9632_v20 = vpop.f32.mrf.mxu0  ;;  %v9636_v34 = vpop.f32.mrf.mxu1  ;;  %v4652_v35 = vsel %vm1669_vm3, %v4649_v25, %v4651_v44 }
 0x224   : > { %10656 = vst [vmem:[#allocation9_spill] sm:$0xff] %v9632_v20  ;;  %7015 = vmatmul.mubr.msk.f32.gmra.mxu0 %vm171_vm0, %v10657_v54  ;;  %10658 = vst [vmem:[#allocation3_spill] sm:$0xff] %v9636_v34  ;;  %v10663_v54 = vld [vmem:[#allocation52_spill] sm:$0xff]  ;;  %v10665_v34 = vld [vmem:[#allocation14_spill] sm:$0xff] }
 0x225   : > { %7017 = vmatprep.mubr.msk.f32.mxu0 %vm171_vm0, %v10659_v43  ;;  %v9641_v3 = vpop.f32.mrf.mxu0  ;;  %v9643_v21 = vpop.f32.mrf.mxu1  ;;  %v10672_v56 = vld [vmem:[#allocation69_spill] sm:$0xff] }
 0x226   : > { %10660 = vst [vmem:[#allocation10_spill] sm:$0xff] %v9641_v3  ;;  %10661 = vst [vmem:[#allocation5_spill] sm:$0xff] %v9643_v21  ;;  %7070 = vmatmul.mubr.msk.f32.gmra.mxu1 %vm171_vm0, %v10633_v9 }
 0x227   : > { %7072 = vmatprep.mubr.msk.f32.mxu1 %vm171_vm0, %v4650_v63  ;;  %v9649_v46 = vpop.f32.mrf.mxu0  ;;  %v9653_v45 = vpop.f32.mrf.mxu1  ;;  %v10669_v63 = vld [vmem:[#allocation16_spill] sm:$0xff] }
 0x228   : > { %10662 = vst [vmem:[#allocation7_spill] sm:$0xff] %v9649_v46  ;;  %7018 = vmatmul.mubr.msk.f32.gmra.mxu0 %vm171_vm0, %v10663_v54  ;;  %10664 = vst [vmem:[#allocation4_spill] sm:$0xff] %v9653_v45  ;;  %v3171_v45 = vadd.f32 %v9404_v41, %v9413_v38 }
 0x229   : > { %7020 = vmatprep.mubr.msk.f32.mxu0 %vm171_vm0, %v10665_v34  ;;  %v9657_v43 = vpop.f32.mrf.mxu0  ;;  %v9659_v21 = vpop.f32.mrf.mxu1 }
 0x22a   : > { %10666 = vst [vmem:[#allocation6_spill] sm:$0xff] %v9657_v43  ;;  %10667 = vst [vmem:[#allocation8_spill] sm:$0xff] %v9659_v21  ;;  %7073 = vmatmul.mubr.msk.f32.gmra.mxu1 %vm171_vm0, %v4652_v35  ;;  %v3166_v21 = vadd.f32 %v9417_v39, %v9424_v2  ;;  %v9677_v35 = vld [vmem:[%s10128_s2] ss:$0 sm:$0xff]  ;;  %v3176_v39 = vadd.f32 %v9439_v13, %v9445_v15  ;;  %v3186_v13 = vadd.f32 %v9457_v12, %v9461_v51 }
 0x22b   : > { %v9662_v9 = vpop.f32.mrf.mxu0  ;;  %v9666_v25 = vpop.f32.mrf.mxu1  ;;  %v3196_v51 = vadd.f32 %v9473_v27, %v9477_v24  ;;  %v3206_v24 = vadd.f32 %v9489_v42, %v9493_v7  ;;  %v3216_v7 = vadd.f32 %v9505_v62, %v9509_v5  ;;  %v3226_v5 = vadd.f32 %v9521_v0, %v9525_v37 }
 0x22c   : > { %10668 = vst [vmem:[#allocation11_spill] sm:$0xff] %v9662_v9  ;;  %7021 = vmatmul.mubr.msk.f32.gmra.mxu0 %vm171_vm0, %v10669_v63  ;;  %10670 = vst [vmem:[#allocation15_spill] sm:$0xff] %v9666_v25  ;;  %v3236_v37 = vadd.f32 %v9537_v60, %v9541_v61  ;;  %v3246_v61 = vadd.f32 %v9553_v26, %v9557_v33  ;;  %v3256_v33 = vadd.f32 %v9569_v6, %v9573_v14 }
 0x22d   : > { %v9668_v44 = vpop.f32.mrf.mxu0  ;;  %v6821_v54 = vpop.f32.mrf.mxu1  ;;  %v3266_v14 = vadd.f32 %v9585_v19, %v9589_v22  ;;  %v3276_v22 = vadd.f32 %v9601_v49, %v9605_v57  ;;  %v10673_v57 = vld [vmem:[#allocation71_spill] sm:$0xff] }
 0x22e   : > { %10671 = vst [vmem:[#allocation17_spill] sm:$0xff] %v9668_v44  ;;  %v3181_v44 = vadd.f32 %v9426_v17, %v9435_v52 }
 0x22f   : > { %v6769_v34 = vpop.f32.mrf.mxu0  ;;  %v3669_v46 = vpop.f32.mrf.mxu1 }
 0x230   : > { %v3559_v43 = vadd.f32 %v6769_v34, %v3171_v45 }
 0x231   : > { %v3399_v63 = vpop.f32.mrf.mxu0  ;;  %v6824_v25 = vpop.f32.mrf.mxu1 }
 0x232   : > { %v3829_v9 = vadd.f32 %v6821_v54, %v3559_v43  ;;  %v3558_v3 = vadd.f32 %v3399_v63, %v3166_v21 }
 0x233   : > { %v3679_v38 = vpop.f32.mrf.mxu1 }
 0x234   : > { %v6772_v41 = vpop.f32.mrf.mxu0  ;;  %v3868_v2 = vadd.f32 %v9677_v35, %v3829_v9  ;;  %v3828_v45 = vadd.f32 %v3669_v46, %v3558_v3 }
 0x235   : > { %v3561_v34 = vadd.f32 %v6772_v41, %v3181_v44  ;;  %v6827_v10 = vpop.f32.mrf.mxu1 }
 0x236   : > { %v3409_v20 = vpop.f32.mrf.mxu0  ;;  %5495 = vst.msk [vmem:[%s8495_s25 + $0x208] sm:$0xff] %vm1633_vm4, %v3868_v2  ;;  %v3867_v17 = vadd.f32 %v9677_v35, %v3828_v45 }
 0x237   : > { %v3831_v52 = vadd.f32 %v6824_v25, %v3561_v34  ;;  %v3560_v21 = vadd.f32 %v3409_v20, %v3176_v39  ;;  %v3689_v54 = vpop.f32.mrf.mxu1 }
 0x238   : > { %v6775_v43 = vpop.f32.mrf.mxu0  ;;  %5494 = vst.msk [vmem:[%s8495_s25 + $0x200] sm:$0xff] %vm1633_vm4, %v3867_v17 }
 0x239   : > { %v3870_v15 = vadd.f32 %v9677_v35, %v3831_v52  ;;  %v3830_v3 = vadd.f32 %v3679_v38, %v3560_v21  ;;  %v3563_v46 = vadd.f32 %v6775_v43, %v3191_v28  ;;  %v6830_v31 = vpop.f32.mrf.mxu1 }
 0x23a   : > { %v3419_v9 = vpop.f32.mrf.mxu0 }
 0x23b   : > { %5497 = vst.msk [vmem:[%s8495_s25 + $0x218] sm:$0xff] %vm1633_vm4, %v3870_v15  ;;  %v3869_v20 = vadd.f32 %v9677_v35, %v3830_v3  ;;  %v3833_v25 = vadd.f32 %v6827_v10, %v3563_v46  ;;  %v3562_v44 = vadd.f32 %v3419_v9, %v3186_v13  ;;  %v3699_v12 = vpop.f32.mrf.mxu1 }
 0x23c   : > { %v6778_v63 = vpop.f32.mrf.mxu0 }
 0x23d   : > { %5496 = vst.msk [vmem:[%s8495_s25 + $0x210] sm:$0xff] %vm1633_vm4, %v3869_v20  ;;  %v3872_v28 = vadd.f32 %v9677_v35, %v3833_v25  ;;  %v3832_v41 = vadd.f32 %v3689_v54, %v3562_v44  ;;  %v3565_v38 = vadd.f32 %v6778_v63, %v3201_v18  ;;  %v6833_v58 = vpop.f32.mrf.mxu1 }
 0x23e   : > { %v3429_v39 = vpop.f32.mrf.mxu0 }
 0x23f   : > { %5499 = vst.msk [vmem:[%s8495_s25 + $0x228] sm:$0xff] %vm1633_vm4, %v3872_v28  ;;  %v3871_v10 = vadd.f32 %v9677_v35, %v3832_v41  ;;  %v3835_v2 = vadd.f32 %v6830_v31, %v3565_v38  ;;  %v3564_v45 = vadd.f32 %v3429_v39, %v3196_v51  ;;  %v3709_v27 = vpop.f32.mrf.mxu1 }
 0x240   : > { %v6781_v34 = vpop.f32.mrf.mxu0 }
 0x241   : > { %5498 = vst.msk [vmem:[%s8495_s25 + $0x220] sm:$0xff] %vm1633_vm4, %v3871_v10  ;;  %v3874_v17 = vadd.f32 %v9677_v35, %v3835_v2  ;;  %v3834_v52 = vadd.f32 %v3699_v12, %v3564_v45  ;;  %v3567_v21 = vadd.f32 %v6781_v34, %v3211_v36  ;;  %v6836_v53 = vpop.f32.mrf.mxu1 }
 0x242   : > { %v3439_v43 = vpop.f32.mrf.mxu0 }
 0x243   : > { %5501 = vst.msk [vmem:[%s8495_s25 + $0x238] sm:$0xff] %vm1633_vm4, %v3874_v17  ;;  %v3873_v54 = vadd.f32 %v9677_v35, %v3834_v52  ;;  %v3837_v13 = vadd.f32 %v6833_v58, %v3567_v21  ;;  %v3566_v15 = vadd.f32 %v3439_v43, %v3206_v24  ;;  %v3719_v42 = vpop.f32.mrf.mxu1 }
 0x244   : > { %v6784_v3 = vpop.f32.mrf.mxu0 }
 0x245   : > { %5500 = vst.msk [vmem:[%s8495_s25 + $0x230] sm:$0xff] %vm1633_vm4, %v3873_v54  ;;  %v3876_v46 = vadd.f32 %v9677_v35, %v3837_v13  ;;  %v3836_v9 = vadd.f32 %v3709_v27, %v3566_v15  ;;  %v3569_v31 = vadd.f32 %v6784_v3, %v3221_v16  ;;  %v6839_v55 = vpop.f32.mrf.mxu1 }
 0x246   : > { %v3449_v18 = vpop.f32.mrf.mxu0 }
 0x247   : > { %5503 = vst.msk [vmem:[%s8495_s25 + $0x248] sm:$0xff] %vm1633_vm4, %v3876_v46  ;;  %v3875_v20 = vadd.f32 %v9677_v35, %v3836_v9  ;;  %v3839_v25 = vadd.f32 %v6836_v53, %v3569_v31  ;;  %v3568_v44 = vadd.f32 %v3449_v18, %v3216_v7  ;;  %v3729_v62 = vpop.f32.mrf.mxu1 }
 0x248   : > { %v6787_v63 = vpop.f32.mrf.mxu0 }
 0x249   : > { %5502 = vst.msk [vmem:[%s8495_s25 + $0x240] sm:$0xff] %vm1633_vm4, %v3875_v20  ;;  %v3878_v12 = vadd.f32 %v9677_v35, %v3839_v25  ;;  %v3838_v51 = vadd.f32 %v3719_v42, %v3568_v44  ;;  %v3571_v28 = vadd.f32 %v6787_v63, %v3231_v40  ;;  %v6842_v32 = vpop.f32.mrf.mxu1 }
 0x24a   : > { %v3459_v41 = vpop.f32.mrf.mxu0 }
 0x24b   : > { %5505 = vst.msk [vmem:[%s8495_s25 + $0x258] sm:$0xff] %vm1633_vm4, %v3878_v12  ;;  %v3877_v38 = vadd.f32 %v9677_v35, %v3838_v51  ;;  %v3841_v39 = vadd.f32 %v6839_v55, %v3571_v28  ;;  %v3570_v58 = vadd.f32 %v3459_v41, %v3226_v5  ;;  %v3739_v0 = vpop.f32.mrf.mxu1 }
 0x24c   : > { %v6790_v36 = vpop.f32.mrf.mxu0 }
 0x24d   : > { %5504 = vst.msk [vmem:[%s8495_s25 + $0x250] sm:$0xff] %vm1633_vm4, %v3877_v38  ;;  %v3880_v10 = vadd.f32 %v9677_v35, %v3841_v39  ;;  %v3840_v2 = vadd.f32 %v3729_v62, %v3570_v58  ;;  %v3573_v45 = vadd.f32 %v6790_v36, %v3241_v30  ;;  %v6845_v4 = vpop.f32.mrf.mxu1  ;;  %v3291_v38 = vadd.f32 %v10672_v56, %v9614_v47 }
 0x24e   : > { %v3469_v34 = vpop.f32.mrf.mxu0 }
 0x24f   : > { %5507 = vst.msk [vmem:[%s8495_s25 + $0x268] sm:$0xff] %vm1633_vm4, %v3880_v10  ;;  %v3879_v27 = vadd.f32 %v9677_v35, %v3840_v2  ;;  %v3843_v24 = vadd.f32 %v6842_v32, %v3573_v45  ;;  %v3572_v17 = vadd.f32 %v3469_v34, %v3236_v37  ;;  %v3749_v60 = vpop.f32.mrf.mxu1  ;;  %v10674_v37 = vld [vmem:[#allocation70_spill] sm:$0xff] }
 0x250   : > { %v6793_v52 = vpop.f32.mrf.mxu0  ;;  %v3286_v10 = vadd.f32 %v10674_v37, %v10673_v57 }
 0x251   : > { %5506 = vst.msk [vmem:[%s8495_s25 + $0x260] sm:$0xff] %vm1633_vm4, %v3879_v27  ;;  %v3882_v21 = vadd.f32 %v9677_v35, %v3843_v24  ;;  %v3842_v43 = vadd.f32 %v3739_v0, %v3572_v17  ;;  %v3575_v53 = vadd.f32 %v6793_v52, %v3251_v23  ;;  %v6848_v29 = vpop.f32.mrf.mxu1  ;;  %v10675_v23 = vld [vmem:[#allocation9_spill] sm:$0xff]  ;;  %v10676_v27 = vld [vmem:[#allocation72_spill] sm:$0xff] }
 0x252   : > { %v3479_v16 = vpop.f32.mrf.mxu0  ;;  %v3301_v24 = vadd.f32 %v10676_v27, %v10675_v23 }
 0x253   : > { %5509 = vst.msk [vmem:[%s8495_s25 + $0x278] sm:$0xff] %vm1633_vm4, %v3882_v21  ;;  %v3881_v54 = vadd.f32 %v9677_v35, %v3842_v43  ;;  %v3845_v13 = vadd.f32 %v6845_v4, %v3575_v53  ;;  %v3574_v15 = vadd.f32 %v3479_v16, %v3246_v61  ;;  %v3759_v26 = vpop.f32.mrf.mxu1  ;;  %v10677_v43 = vld [vmem:[#allocation10_spill] sm:$0xff]  ;;  %v10678_v53 = vld [vmem:[#allocation3_spill] sm:$0xff] }
 0x254   : > { %v6796_v3 = vpop.f32.mrf.mxu0  ;;  %v3296_v16 = vadd.f32 %v10678_v53, %v10677_v43 }
 0x255   : > { %5508 = vst.msk [vmem:[%s8495_s25 + $0x270] sm:$0xff] %vm1633_vm4, %v3881_v54  ;;  %v3884_v42 = vadd.f32 %v9677_v35, %v3845_v13  ;;  %v3844_v7 = vadd.f32 %v3749_v60, %v3574_v15  ;;  %v3577_v46 = vadd.f32 %v6796_v3, %v3261_v59  ;;  %v6851_v8 = vpop.f32.mrf.mxu1  ;;  %v10679_v3 = vld [vmem:[#allocation7_spill] sm:$0xff] }
 0x256   : > { %v3489_v9 = vpop.f32.mrf.mxu0 }
 0x257   : > { %5511 = vst.msk [vmem:[%s8495_s25 + $0x288] sm:$0xff] %vm1633_vm4, %v3884_v42  ;;  %v3883_v31 = vadd.f32 %v9677_v35, %v3844_v7  ;;  %v3847_v18 = vadd.f32 %v6848_v29, %v3577_v46  ;;  %v3576_v55 = vadd.f32 %v3489_v9, %v3256_v33  ;;  %v3769_v6 = vpop.f32.mrf.mxu1 }
 0x258   : > { %v6799_v40 = vpop.f32.mrf.mxu0 }
 0x259   : > { %5510 = vst.msk [vmem:[%s8495_s25 + $0x280] sm:$0xff] %vm1633_vm4, %v3883_v31  ;;  %v3886_v20 = vadd.f32 %v9677_v35, %v3847_v18  ;;  %v3846_v25 = vadd.f32 %v3759_v26, %v3576_v55  ;;  %v3579_v44 = vadd.f32 %v6799_v40, %v3271_v50  ;;  %v6854_v48 = vpop.f32.mrf.mxu1  ;;  %v10680_v26 = vld [vmem:[#allocation5_spill] sm:$0xff]  ;;  %v10681_v50 = vld [vmem:[#allocation6_spill] sm:$0xff]  ;;  %v10682_v31 = vld [vmem:[#allocation4_spill] sm:$0xff] }
 0x25a   : > { %v3499_v63 = vpop.f32.mrf.mxu0  ;;  %v3311_v33 = vadd.f32 %v10680_v26, %v10679_v3  ;;  %v3306_v18 = vadd.f32 %v10682_v31, %v10681_v50 }
 0x25b   : > { %5513 = vst.msk [vmem:[%s8495_s25 + $0x298] sm:$0xff] %vm1633_vm4, %v3886_v20  ;;  %v3885_v62 = vadd.f32 %v9677_v35, %v3846_v25  ;;  %v3849_v5 = vadd.f32 %v6851_v8, %v3579_v44  ;;  %v3578_v12 = vadd.f32 %v3499_v63, %v3266_v14  ;;  %v3779_v19 = vpop.f32.mrf.mxu1  ;;  %v10683_v25 = vld [vmem:[#allocation11_spill] sm:$0xff]  ;;  %v10684_v44 = vld [vmem:[#allocation8_spill] sm:$0xff] }
 0x25c   : > { %v6802_v51 = vpop.f32.mrf.mxu0  ;;  %v3321_v63 = vadd.f32 %v10684_v44, %v10683_v25 }
 0x25d   : > { %5512 = vst.msk [vmem:[%s8495_s25 + $0x290] sm:$0xff] %vm1633_vm4, %v3885_v62  ;;  %v3888_v28 = vadd.f32 %v9677_v35, %v3849_v5  ;;  %v3848_v41 = vadd.f32 %v3769_v6, %v3578_v12  ;;  %v3581_v32 = vadd.f32 %v6802_v51, %v3281_v1  ;;  %v6857_v11 = vpop.f32.mrf.mxu1  ;;  %v10685_v51 = vld [vmem:[#allocation17_spill] sm:$0xff] }
 0x25e   : > { %v3509_v30 = vpop.f32.mrf.mxu0 }
 0x25f   : > { %5515 = vst.msk [vmem:[%s8495_s25 + $0x2a8] sm:$0xff] %vm1633_vm4, %v3888_v28  ;;  %v3887_v39 = vadd.f32 %v9677_v35, %v3848_v41  ;;  %v3851_v58 = vadd.f32 %v6854_v48, %v3581_v32  ;;  %v3580_v36 = vadd.f32 %v3509_v30, %v3276_v22  ;;  %v3789_v49 = vpop.f32.mrf.mxu1 }
 0x260   : > { %v6805_v0 = vpop.f32.mrf.mxu0 }
 0x261   : > { %5514 = vst.msk [vmem:[%s8495_s25 + $0x2a0] sm:$0xff] %vm1633_vm4, %v3887_v39  ;;  %v3890_v2 = vadd.f32 %v9677_v35, %v3851_v58  ;;  %v3850_v45 = vadd.f32 %v3779_v19, %v3580_v36  ;;  %v3583_v34 = vadd.f32 %v6805_v0, %v3291_v38  ;;  %v6860_v47 = vpop.f32.mrf.mxu1  ;;  %v10686_v19 = vld [vmem:[#allocation15_spill] sm:$0xff] }
 0x262   : > { %v3519_v4 = vpop.f32.mrf.mxu0  ;;  %v3316_v22 = vadd.f32 %v10686_v19, %v10685_v51 }
 0x263   : > { %5517 = vst.msk [vmem:[%s8495_s25 + $0x2b8] sm:$0xff] %vm1633_vm4, %v3890_v2  ;;  %v3889_v17 = vadd.f32 %v9677_v35, %v3850_v45  ;;  %v3853_v52 = vadd.f32 %v6857_v11, %v3583_v34  ;;  %v3582_v60 = vadd.f32 %v3519_v4, %v3286_v10  ;;  %v3799_v21 = vpop.f32.mrf.mxu1 }
 0x264   : > { %v6808_v61 = vpop.f32.mrf.mxu0 }
 0x265   : > { %5516 = vst.msk [vmem:[%s8495_s25 + $0x2b0] sm:$0xff] %vm1633_vm4, %v3889_v17  ;;  %v3892_v29 = vadd.f32 %v9677_v35, %v3853_v52  ;;  %v3852_v59 = vadd.f32 %v3789_v49, %v3582_v60  ;;  %v3585_v54 = vadd.f32 %v6808_v61, %v3301_v24  ;;  %v6863_v15 = vpop.f32.mrf.mxu1 }
 0x266   : > { %v3529_v13 = vpop.f32.mrf.mxu0 }
 0x267   : > { %5519 = vst.msk [vmem:[%s8495_s25 + $0x2c8] sm:$0xff] %vm1633_vm4, %v3892_v29  ;;  %v3891_v42 = vadd.f32 %v9677_v35, %v3852_v59  ;;  %v3855_v7 = vadd.f32 %v6860_v47, %v3585_v54  ;;  %v3584_v46 = vadd.f32 %v3529_v13, %v3296_v16  ;;  %v3809_v8 = vpop.f32.mrf.mxu1 }
 0x268   : > { %v6811_v9 = vpop.f32.mrf.mxu0 }
 0x269   : > { %5518 = vst.msk [vmem:[%s8495_s25 + $0x2c0] sm:$0xff] %vm1633_vm4, %v3891_v42  ;;  %v3894_v55 = vadd.f32 %v9677_v35, %v3855_v7  ;;  %v3854_v40 = vadd.f32 %v3799_v21, %v3584_v46  ;;  %v3587_v6 = vadd.f32 %v6811_v9, %v3311_v33  ;;  %v6866_v20 = vpop.f32.mrf.mxu1 }
 0x26a   : > { %v3539_v14 = vpop.f32.mrf.mxu0 }
 0x26b   : > { %5521 = vst.msk [vmem:[%s8495_s25 + $0x2d8] sm:$0xff] %vm1633_vm4, %v3894_v55  ;;  %v3893_v48 = vadd.f32 %v9677_v35, %v3854_v40  ;;  %v3857_v1 = vadd.f32 %v6863_v15, %v3587_v6  ;;  %v3586_v62 = vadd.f32 %v3539_v14, %v3306_v18  ;;  %v3819_v12 = vpop.f32.mrf.mxu1 }
 0x26c   : > { %v6814_v5 = vpop.f32.mrf.mxu0 }
 0x26d   : > { %5520 = vst.msk [vmem:[%s8495_s25 + $0x2d0] sm:$0xff] %vm1633_vm4, %v3893_v48  ;;  %v3896_v28 = vadd.f32 %v9677_v35, %v3857_v1  ;;  %v3856_v41 = vadd.f32 %v3809_v8, %v3586_v62  ;;  %v3589_v32 = vadd.f32 %v6814_v5, %v3321_v63  ;;  %v9824_v11 = vpop.f32.mrf.mxu1 }
 0x26e   : > { %v3549_v30 = vpop.f32.mrf.mxu0 }
 0x26f   : > { %5523 = vst.msk [vmem:[%s8495_s25 + $0x2e8] sm:$0xff] %vm1633_vm4, %v3896_v28  ;;  %v3895_v56 = vadd.f32 %v9677_v35, %v3856_v41  ;;  %v3859_v38 = vadd.f32 %v6866_v20, %v3589_v32  ;;  %v3588_v39 = vadd.f32 %v3549_v30, %v3316_v22  ;;  %v9831_v36 = vpop.f32.mrf.mxu1 }
 0x270   : > { %v9829_v58 = vpop.f32.mrf.mxu0 }
 0x271   : > { %5522 = vst.msk [vmem:[%s8495_s25 + $0x2e0] sm:$0xff] %vm1633_vm4, %v3895_v56  ;;  %v3898_v0 = vadd.f32 %v9677_v35, %v3859_v38  ;;  %v3858_v49 = vadd.f32 %v3819_v12, %v3588_v39 }
 0x272   : > { %v9836_v57 = vpop.f32.mrf.mxu0  ;;  %v9838_v37 = vpop.f32.mrf.mxu1 }
 0x273   : > { %5525 = vst.msk [vmem:[%s8495_s25 + $0x2f8] sm:$0xff] %vm1633_vm4, %v3898_v0  ;;  %v3897_v10 = vadd.f32 %v9677_v35, %v3858_v49 }
 0x274   : > { %v9843_v2 = vpop.f32.mrf.mxu0  ;;  %v9845_v45 = vpop.f32.mrf.mxu1 }
 0x275   : > { %5524 = vst.msk [vmem:[%s8495_s25 + $0x2f0] sm:$0xff] %vm1633_vm4, %v3897_v10 }
 0x276   : > { %v9849_v34 = vpop.f32.mrf.mxu0  ;;  %v9851_v4 = vpop.f32.mrf.mxu1 }
 0x278   : > { %v9853_v47 = vpop.f32.mrf.mxu0  ;;  %v9855_v23 = vpop.f32.mrf.mxu1 }
 0x27a   : > { %v9857_v27 = vpop.f32.mrf.mxu0  ;;  %v9859_v24 = vpop.f32.mrf.mxu1 }
 0x27c   : > { %v9861_v17 = vpop.f32.mrf.mxu0  ;;  %v9863_v52 = vpop.f32.mrf.mxu1 }
 0x27e   : > { %v9865_v60 = vpop.f32.mrf.mxu0  ;;  %v9867_v61 = vpop.f32.mrf.mxu1 }
 0x280   : > { %v9869_v21 = vpop.f32.mrf.mxu0  ;;  %v9871_v43 = vpop.f32.mrf.mxu1 }
 0x282   : > { %v9873_v53 = vpop.f32.mrf.mxu0  ;;  %v9875_v16 = vpop.f32.mrf.mxu1 }
 0x284   : > { %v9877_v29 = vpop.f32.mrf.mxu0  ;;  %v9879_v59 = vpop.f32.mrf.mxu1 }
 0x286   : > { %v9881_v54 = vpop.f32.mrf.mxu0  ;;  %v9883_v13 = vpop.f32.mrf.mxu1 }
 0x288   : > { %v9885_v15 = vpop.f32.mrf.mxu0  ;;  %v9887_v3 = vpop.f32.mrf.mxu1 }
 0x28a   : > { %v9889_v26 = vpop.f32.mrf.mxu0  ;;  %v9891_v33 = vpop.f32.mrf.mxu1 }
 0x28c   : > { %v9893_v42 = vpop.f32.mrf.mxu0  ;;  %v9895_v7 = vpop.f32.mrf.mxu1 }
 0x28e   : > { %v9897_v46 = vpop.f32.mrf.mxu0  ;;  %v9899_v9 = vpop.f32.mrf.mxu1 }
 0x290   : > { %v9901_v8 = vpop.f32.mrf.mxu0  ;;  %v9903_v50 = vpop.f32.mrf.mxu1 }
 0x292   : > { %v9905_v31 = vpop.f32.mrf.mxu0  ;;  %v9907_v18 = vpop.f32.mrf.mxu1 }
 0x294   : > { %v9909_v55 = vpop.f32.mrf.mxu0  ;;  %v9911_v40 = vpop.f32.mrf.mxu1 }
 0x296   : > { %v9913_v6 = vpop.f32.mrf.mxu0  ;;  %v9915_v14 = vpop.f32.mrf.mxu1 }
 0x298   : > { %v9917_v20 = vpop.f32.mrf.mxu0  ;;  %v9919_v25 = vpop.f32.mrf.mxu1 }
 0x29a   : > { %v9921_v44 = vpop.f32.mrf.mxu0  ;;  %v9923_v63 = vpop.f32.mrf.mxu1 }
 0x29c   : > { %v9925_v48 = vpop.f32.mrf.mxu0  ;;  %v9927_v1 = vpop.f32.mrf.mxu1 }
 0x29e   : > { %v9929_v62 = vpop.f32.mrf.mxu0  ;;  %v9931_v5 = vpop.f32.mrf.mxu1 }
 0x29f   : > { %10687 = vst [vmem:[#allocation53_spill] sm:$0xff] %v9931_v5 }
 0x2a0   : > { %v9933_v12 = vpop.f32.mrf.mxu0  ;;  %v9935_v51 = vpop.f32.mrf.mxu1 }
 0x2a1   : > { %10688 = vst [vmem:[#allocation19_spill] sm:$0xff] %v9933_v12  ;;  %10689 = vst [vmem:[#allocation22_spill] sm:$0xff] %v9935_v51 }
 0x2a2   : > { %v9937_v19 = vpop.f32.mrf.mxu0  ;;  %v9939_v22 = vpop.f32.mrf.mxu1 }
 0x2a3   : > { %10690 = vst [vmem:[#allocation54_spill] sm:$0xff] %v9937_v19  ;;  %10691 = vst [vmem:[#allocation21_spill] sm:$0xff] %v9939_v22 }
 0x2a4   : > { %v9941_v28 = vpop.f32.mrf.mxu0  ;;  %v9943_v41 = vpop.f32.mrf.mxu1 }
 0x2a5   : > { %10692 = vst [vmem:[#allocation24_spill] sm:$0xff] %v9941_v28  ;;  %10693 = vst [vmem:[#allocation25_spill] sm:$0xff] %v9943_v41  ;;  %v4235_v41 = vadd.f32 %v9824_v11, %v9829_v58  ;;  %v4240_v11 = vadd.f32 %v9845_v45, %v9849_v34  ;;  %v4250_v45 = vadd.f32 %v9855_v23, %v9857_v27 }
 0x2a6   : > { %v9945_v32 = vpop.f32.mrf.mxu0  ;;  %v9947_v30 = vpop.f32.mrf.mxu1  ;;  %v4260_v27 = vadd.f32 %v9863_v52, %v9865_v60  ;;  %v4270_v60 = vadd.f32 %v9871_v43, %v9873_v53  ;;  %v4280_v53 = vadd.f32 %v9879_v59, %v9881_v54  ;;  %v4290_v54 = vadd.f32 %v9887_v3, %v9889_v26 }
 0x2a7   : > { %10694 = vst [vmem:[#allocation55_spill] sm:$0xff] %v9945_v32  ;;  %10695 = vst [vmem:[#allocation23_spill] sm:$0xff] %v9947_v30  ;;  %v4300_v26 = vadd.f32 %v9895_v7, %v9897_v46  ;;  %v4310_v46 = vadd.f32 %v9903_v50, %v9905_v31  ;;  %v4320_v31 = vadd.f32 %v9911_v40, %v9913_v6 }
 0x2a8   : > { %v9949_v56 = vpop.f32.mrf.mxu0  ;;  %v9951_v38 = vpop.f32.mrf.mxu1  ;;  %v4330_v6 = vadd.f32 %v9919_v25, %v9921_v44  ;;  %v4340_v44 = vadd.f32 %v9927_v1, %v9929_v62 }
 0x2a9   : > { %10696 = vst [vmem:[#allocation27_spill] sm:$0xff] %v9949_v56  ;;  %10697 = vst [vmem:[#allocation28_spill] sm:$0xff] %v9951_v38  ;;  %v4230_v56 = vadd.f32 %v9831_v36, %v9836_v57 }
 0x2aa   : > { %v9953_v39 = vpop.f32.mrf.mxu0  ;;  %v9955_v0 = vpop.f32.mrf.mxu1  ;;  %v10705_v62 = vld [vmem:[#allocation54_spill] sm:$0xff] }
 0x2ab   : > { %10698 = vst [vmem:[#allocation56_spill] sm:$0xff] %v9953_v39  ;;  %10699 = vst [vmem:[#allocation73_spill] sm:$0xff] %v9955_v0  ;;  %v4245_v0 = vadd.f32 %v9838_v37, %v9843_v2 }
 0x2ac   : > { %v9957_v49 = vpop.f32.mrf.mxu0  ;;  %v9959_v10 = vpop.f32.mrf.mxu1 }
 0x2ad   : > { %10700 = vst [vmem:[#allocation26_spill] sm:$0xff] %v9957_v49  ;;  %10701 = vst [vmem:[#allocation30_spill] sm:$0xff] %v9959_v10 }
 0x2ae   : > { %v9961_v22 = vpop.f32.mrf.mxu0  ;;  %v7029_v28 = vpop.f32.mrf.mxu1 }
 0x2af   : > { %10702 = vst [vmem:[#allocation74_spill] sm:$0xff] %v9961_v22 }
 0x2b0   : > { %v6977_v32 = vpop.f32.mrf.mxu0  ;;  %v4726_v30 = vpop.f32.mrf.mxu1 }
 0x2b1   : > { %v4617_v38 = vadd.f32 %v6977_v32, %v4235_v41  ;;  %v4255_v41 = vadd.f32 %v9851_v4, %v9853_v47  ;;  %v4265_v47 = vadd.f32 %v9859_v24, %v9861_v17  ;;  %v4275_v17 = vadd.f32 %v9867_v61, %v9869_v21 }
 0x2b2   : > { %v4457_v39 = vpop.f32.mrf.mxu0  ;;  %v7032_v51 = vpop.f32.mrf.mxu1  ;;  %v4285_v21 = vadd.f32 %v9875_v16, %v9877_v29  ;;  %v4295_v29 = vadd.f32 %v9883_v13, %v9885_v15  ;;  %v4305_v15 = vadd.f32 %v9891_v33, %v9893_v42  ;;  %v4315_v42 = vadd.f32 %v9899_v9, %v9901_v8 }
 0x2b3   : > { %v4886_v49 = vadd.f32 %v7029_v28, %v4617_v38  ;;  %v4616_v10 = vadd.f32 %v4457_v39, %v4230_v56  ;;  %v4325_v8 = vadd.f32 %v9907_v18, %v9909_v55  ;;  %v4335_v55 = vadd.f32 %v9915_v14, %v9917_v20 }
 0x2b4   : > { %v6980_v19 = vpop.f32.mrf.mxu0  ;;  %v4736_v22 = vpop.f32.mrf.mxu1  ;;  %v4345_v20 = vadd.f32 %v9923_v63, %v9925_v48  ;;  %v10703_v48 = vld [vmem:[#allocation19_spill] sm:$0xff] }
 0x2b5   : > { %v4925_v58 = vadd.f32 %v9677_v35, %v4886_v49  ;;  %v4885_v5 = vadd.f32 %v4726_v30, %v4616_v10  ;;  %v4619_v12 = vadd.f32 %v6980_v19, %v4245_v0 }
 0x2b6   : > { %v4467_v36 = vpop.f32.mrf.mxu0  ;;  %v7035_v57 = vpop.f32.mrf.mxu1 }
 0x2b7   : > { %5664 = vst.msk [vmem:[%s8495_s25 + $0x308] sm:$0xff] %vm1633_vm4, %v4925_v58  ;;  %v4924_v37 = vadd.f32 %v9677_v35, %v4885_v5  ;;  %v4888_v2 = vadd.f32 %v7032_v51, %v4619_v12  ;;  %v4618_v28 = vadd.f32 %v4467_v36, %v4240_v11 }
 0x2b8   : > { %v6983_v32 = vpop.f32.mrf.mxu0  ;;  %v4746_v56 = vpop.f32.mrf.mxu1 }
 0x2b9   : > { %5663 = vst.msk [vmem:[%s8495_s25 + $0x300] sm:$0xff] %vm1633_vm4, %v4924_v37  ;;  %v4927_v34 = vadd.f32 %v9677_v35, %v4888_v2  ;;  %v4887_v19 = vadd.f32 %v4736_v22, %v4618_v28  ;;  %v4621_v30 = vadd.f32 %v6983_v32, %v4255_v41 }
 0x2ba   : > { %v4477_v38 = vpop.f32.mrf.mxu0  ;;  %v7038_v4 = vpop.f32.mrf.mxu1 }
 0x2bb   : > { %5666 = vst.msk [vmem:[%s8495_s25 + $0x318] sm:$0xff] %vm1633_vm4, %v4927_v34  ;;  %v4926_v5 = vadd.f32 %v9677_v35, %v4887_v19  ;;  %v4890_v12 = vadd.f32 %v7035_v57, %v4621_v30  ;;  %v4620_v51 = vadd.f32 %v4477_v38, %v4250_v45 }
 0x2bc   : > { %v6986_v39 = vpop.f32.mrf.mxu0  ;;  %v4756_v23 = vpop.f32.mrf.mxu1 }
 0x2bd   : > { %5665 = vst.msk [vmem:[%s8495_s25 + $0x310] sm:$0xff] %vm1633_vm4, %v4926_v5  ;;  %v4929_v22 = vadd.f32 %v9677_v35, %v4890_v12  ;;  %v4889_v0 = vadd.f32 %v4746_v56, %v4620_v51  ;;  %v4623_v49 = vadd.f32 %v6986_v39, %v4265_v47 }
 0x2be   : > { %v4487_v10 = vpop.f32.mrf.mxu0  ;;  %v7041_v24 = vpop.f32.mrf.mxu1 }
 0x2bf   : > { %5668 = vst.msk [vmem:[%s8495_s25 + $0x328] sm:$0xff] %vm1633_vm4, %v4929_v22  ;;  %v4928_v11 = vadd.f32 %v9677_v35, %v4889_v0  ;;  %v4892_v58 = vadd.f32 %v7038_v4, %v4623_v49  ;;  %v4622_v36 = vadd.f32 %v4487_v10, %v4260_v27 }
 0x2c0   : > { %v6989_v57 = vpop.f32.mrf.mxu0  ;;  %v4766_v52 = vpop.f32.mrf.mxu1 }
 0x2c1   : > { %5667 = vst.msk [vmem:[%s8495_s25 + $0x320] sm:$0xff] %vm1633_vm4, %v4928_v11  ;;  %v4931_v41 = vadd.f32 %v9677_v35, %v4892_v58  ;;  %v4891_v37 = vadd.f32 %v4756_v23, %v4622_v36  ;;  %v4625_v2 = vadd.f32 %v6989_v57, %v4275_v17 }
 0x2c2   : > { %v4497_v28 = vpop.f32.mrf.mxu0  ;;  %v7044_v61 = vpop.f32.mrf.mxu1 }
 0x2c3   : > { %5670 = vst.msk [vmem:[%s8495_s25 + $0x338] sm:$0xff] %vm1633_vm4, %v4931_v41  ;;  %v4930_v32 = vadd.f32 %v9677_v35, %v4891_v37  ;;  %v4894_v56 = vadd.f32 %v7041_v24, %v4625_v2  ;;  %v4624_v45 = vadd.f32 %v4497_v28, %v4270_v60 }
 0x2c4   : > { %v6992_v34 = vpop.f32.mrf.mxu0  ;;  %v4776_v43 = vpop.f32.mrf.mxu1 }
 0x2c5   : > { %5669 = vst.msk [vmem:[%s8495_s25 + $0x330] sm:$0xff] %vm1633_vm4, %v4930_v32  ;;  %v4933_v19 = vadd.f32 %v9677_v35, %v4894_v56  ;;  %v4893_v30 = vadd.f32 %v4766_v52, %v4624_v45  ;;  %v4627_v38 = vadd.f32 %v6992_v34, %v4285_v21 }
 0x2c6   : > { %v4507_v4 = vpop.f32.mrf.mxu0  ;;  %v7047_v16 = vpop.f32.mrf.mxu1 }
 0x2c7   : > { %5672 = vst.msk [vmem:[%s8495_s25 + $0x348] sm:$0xff] %vm1633_vm4, %v4933_v19  ;;  %v4932_v47 = vadd.f32 %v9677_v35, %v4893_v30  ;;  %v4896_v5 = vadd.f32 %v7044_v61, %v4627_v38  ;;  %v4626_v12 = vadd.f32 %v4507_v4, %v4280_v53 }
 0x2c8   : > { %v6995_v51 = vpop.f32.mrf.mxu0  ;;  %v4786_v59 = vpop.f32.mrf.mxu1 }
 0x2c9   : > { %5671 = vst.msk [vmem:[%s8495_s25 + $0x340] sm:$0xff] %vm1633_vm4, %v4932_v47  ;;  %v4935_v39 = vadd.f32 %v9677_v35, %v4896_v5  ;;  %v4895_v23 = vadd.f32 %v4776_v43, %v4626_v12  ;;  %v4629_v27 = vadd.f32 %v6995_v51, %v4295_v29 }
 0x2ca   : > { %v4517_v22 = vpop.f32.mrf.mxu0  ;;  %v7050_v13 = vpop.f32.mrf.mxu1 }
 0x2cb   : > { %5674 = vst.msk [vmem:[%s8495_s25 + $0x358] sm:$0xff] %vm1633_vm4, %v4935_v39  ;;  %v4934_v0 = vadd.f32 %v9677_v35, %v4895_v23  ;;  %v4898_v49 = vadd.f32 %v7047_v16, %v4629_v27  ;;  %v4628_v10 = vadd.f32 %v4517_v22, %v4290_v54 }
 0x2cc   : > { %v6998_v24 = vpop.f32.mrf.mxu0  ;;  %v4796_v3 = vpop.f32.mrf.mxu1 }
 0x2cd   : > { %5673 = vst.msk [vmem:[%s8495_s25 + $0x350] sm:$0xff] %vm1633_vm4, %v4934_v0  ;;  %v4937_v17 = vadd.f32 %v9677_v35, %v4898_v49  ;;  %v4897_v11 = vadd.f32 %v4786_v59, %v4628_v10  ;;  %v4631_v58 = vadd.f32 %v6998_v24, %v4305_v15  ;;  %v10704_v15 = vld [vmem:[#allocation53_spill] sm:$0xff] }
 0x2ce   : > { %v4527_v36 = vpop.f32.mrf.mxu0  ;;  %v7053_v33 = vpop.f32.mrf.mxu1  ;;  %v4355_v0 = vadd.f32 %v10704_v15, %v10703_v48 }
 0x2cf   : > { %5676 = vst.msk [vmem:[%s8495_s25 + $0x368] sm:$0xff] %vm1633_vm4, %v4937_v17  ;;  %v4936_v57 = vadd.f32 %v9677_v35, %v4897_v11  ;;  %v4900_v52 = vadd.f32 %v7050_v13, %v4631_v58  ;;  %v4630_v60 = vadd.f32 %v4527_v36, %v4300_v26  ;;  %v10706_v26 = vld [vmem:[#allocation22_spill] sm:$0xff] }
 0x2d0   : > { %v7001_v41 = vpop.f32.mrf.mxu0  ;;  %v4806_v7 = vpop.f32.mrf.mxu1  ;;  %v4350_v17 = vadd.f32 %v10706_v26, %v10705_v62 }
 0x2d1   : > { %5675 = vst.msk [vmem:[%s8495_s25 + $0x360] sm:$0xff] %vm1633_vm4, %v4936_v57  ;;  %v4939_v37 = vadd.f32 %v9677_v35, %v4900_v52  ;;  %v4899_v2 = vadd.f32 %v4796_v3, %v4630_v60  ;;  %v4633_v28 = vadd.f32 %v7001_v41, %v4315_v42  ;;  %v10707_v57 = vld [vmem:[#allocation24_spill] sm:$0xff]  ;;  %v10708_v52 = vld [vmem:[#allocation21_spill] sm:$0xff] }
 0x2d2   : > { %v4537_v61 = vpop.f32.mrf.mxu0  ;;  %v7056_v9 = vpop.f32.mrf.mxu1  ;;  %v4365_v60 = vadd.f32 %v10708_v52, %v10707_v57 }
 0x2d3   : > { %5678 = vst.msk [vmem:[%s8495_s25 + $0x378] sm:$0xff] %vm1633_vm4, %v4939_v37  ;;  %v4938_v21 = vadd.f32 %v9677_v35, %v4899_v2  ;;  %v4902_v32 = vadd.f32 %v7053_v33, %v4633_v28  ;;  %v4632_v56 = vadd.f32 %v4537_v61, %v4310_v46  ;;  %v10709_v28 = vld [vmem:[#allocation55_spill] sm:$0xff]  ;;  %v10710_v61 = vld [vmem:[#allocation25_spill] sm:$0xff] }
 0x2d4   : > { %v7004_v45 = vpop.f32.mrf.mxu0  ;;  %v4816_v50 = vpop.f32.mrf.mxu1 }
 0x2d5   : > { %5677 = vst.msk [vmem:[%s8495_s25 + $0x370] sm:$0xff] %vm1633_vm4, %v4938_v21  ;;  %v4941_v34 = vadd.f32 %v9677_v35, %v4902_v32  ;;  %v4901_v43 = vadd.f32 %v4806_v7, %v4632_v56  ;;  %v4635_v53 = vadd.f32 %v7004_v45, %v4325_v8 }
 0x2d6   : > { %v4547_v19 = vpop.f32.mrf.mxu0  ;;  %v7059_v18 = vpop.f32.mrf.mxu1 }
 0x2d7   : > { %5680 = vst.msk [vmem:[%s8495_s25 + $0x388] sm:$0xff] %vm1633_vm4, %v4941_v34  ;;  %v4940_v30 = vadd.f32 %v9677_v35, %v4901_v43  ;;  %v4904_v38 = vadd.f32 %v7056_v9, %v4635_v53  ;;  %v4634_v4 = vadd.f32 %v4547_v19, %v4320_v31  ;;  %v4360_v9 = vadd.f32 %v10710_v61, %v10709_v28  ;;  %v10712_v31 = vld [vmem:[#allocation23_spill] sm:$0xff] }
 0x2d8   : > { %v7007_v16 = vpop.f32.mrf.mxu0  ;;  %v4826_v40 = vpop.f32.mrf.mxu1 }
 0x2d9   : > { %5679 = vst.msk [vmem:[%s8495_s25 + $0x380] sm:$0xff] %vm1633_vm4, %v4940_v30  ;;  %v4943_v29 = vadd.f32 %v9677_v35, %v4904_v38  ;;  %v4903_v47 = vadd.f32 %v4816_v50, %v4634_v4  ;;  %v4637_v5 = vadd.f32 %v7007_v16, %v4335_v55  ;;  %v10711_v50 = vld [vmem:[#allocation27_spill] sm:$0xff]  ;;  %v10713_v30 = vld [vmem:[#allocation56_spill] sm:$0xff] }
 0x2da   : > { %v4557_v12 = vpop.f32.mrf.mxu0  ;;  %v7062_v14 = vpop.f32.mrf.mxu1  ;;  %v4375_v34 = vadd.f32 %v10712_v31, %v10711_v50  ;;  %v10714_v38 = vld [vmem:[#allocation28_spill] sm:$0xff] }
 0x2db   : > { %5682 = vst.msk [vmem:[%s8495_s25 + $0x398] sm:$0xff] %vm1633_vm4, %v4943_v29  ;;  %v4942_v51 = vadd.f32 %v9677_v35, %v4903_v47  ;;  %v4906_v59 = vadd.f32 %v7059_v18, %v4637_v5  ;;  %v4636_v54 = vadd.f32 %v4557_v12, %v4330_v6  ;;  %v4370_v4 = vadd.f32 %v10714_v38, %v10713_v30  ;;  %v10715_v47 = vld [vmem:[#allocation26_spill] sm:$0xff]  ;;  %v10716_v5 = vld [vmem:[#allocation73_spill] sm:$0xff] }
 0x2dc   : > { %v7010_v39 = vpop.f32.mrf.mxu0  ;;  %v4836_v25 = vpop.f32.mrf.mxu1  ;;  %v4385_v12 = vadd.f32 %v10716_v5, %v10715_v47 }
 0x2dd   : > { %5681 = vst.msk [vmem:[%s8495_s25 + $0x390] sm:$0xff] %vm1633_vm4, %v4942_v51  ;;  %v4945_v23 = vadd.f32 %v9677_v35, %v4906_v59  ;;  %v4905_v27 = vadd.f32 %v4826_v40, %v4636_v54  ;;  %v4639_v22 = vadd.f32 %v7010_v39, %v4345_v20  ;;  %v10717_v39 = vld [vmem:[#allocation74_spill] sm:$0xff] }
 0x2de   : > { %v4567_v13 = vpop.f32.mrf.mxu0  ;;  %v7065_v63 = vpop.f32.mrf.mxu1 }
 0x2df   : > { %5684 = vst.msk [vmem:[%s8495_s25 + $0x3a8] sm:$0xff] %vm1633_vm4, %v4945_v23  ;;  %v4944_v49 = vadd.f32 %v9677_v35, %v4905_v27  ;;  %v4908_v10 = vadd.f32 %v7062_v14, %v4639_v22  ;;  %v4638_v24 = vadd.f32 %v4567_v13, %v4340_v44 }
 0x2e0   : > { %v7013_v3 = vpop.f32.mrf.mxu0  ;;  %v4846_v1 = vpop.f32.mrf.mxu1 }
 0x2e1   : > { %5683 = vst.msk [vmem:[%s8495_s25 + $0x3a0] sm:$0xff] %vm1633_vm4, %v4944_v49  ;;  %v4947_v11 = vadd.f32 %v9677_v35, %v4908_v10  ;;  %v4907_v58 = vadd.f32 %v4836_v25, %v4638_v24  ;;  %v4641_v36 = vadd.f32 %v7013_v3, %v4355_v0  ;;  %v10718_v25 = vld [vmem:[#allocation30_spill] sm:$0xff] }
 0x2e2   : > { %v4577_v33 = vpop.f32.mrf.mxu0  ;;  %v7068_v42 = vpop.f32.mrf.mxu1  ;;  %v4380_v44 = vadd.f32 %v10718_v25, %v10717_v39 }
 0x2e3   : > { %5686 = vst.msk [vmem:[%s8495_s25 + $0x3b8] sm:$0xff] %vm1633_vm4, %v4947_v11  ;;  %v4946_v41 = vadd.f32 %v9677_v35, %v4907_v58  ;;  %v4910_v7 = vadd.f32 %v7065_v63, %v4641_v36  ;;  %v4640_v46 = vadd.f32 %v4577_v33, %v4350_v17 }
 0x2e4   : > { %v7016_v37 = vpop.f32.mrf.mxu0  ;;  %v4856_v2 = vpop.f32.mrf.mxu1 }
 0x2e5   : > { %5685 = vst.msk [vmem:[%s8495_s25 + $0x3b0] sm:$0xff] %vm1633_vm4, %v4946_v41  ;;  %v4949_v8 = vadd.f32 %v9677_v35, %v4910_v7  ;;  %v4909_v21 = vadd.f32 %v4846_v1, %v4640_v46  ;;  %v4643_v32 = vadd.f32 %v7016_v37, %v4365_v60 }
 0x2e6   : > { %v4587_v56 = vpop.f32.mrf.mxu0  ;;  %v7071_v45 = vpop.f32.mrf.mxu1 }
 0x2e7   : > { %5688 = vst.msk [vmem:[%s8495_s25 + $0x3c8] sm:$0xff] %vm1633_vm4, %v4949_v8  ;;  %v4948_v43 = vadd.f32 %v9677_v35, %v4909_v21  ;;  %v4912_v53 = vadd.f32 %v7068_v42, %v4643_v32  ;;  %v4642_v19 = vadd.f32 %v4587_v56, %v4360_v9 }
 0x2e8   : > { %v7019_v18 = vpop.f32.mrf.mxu0  ;;  %v4866_v55 = vpop.f32.mrf.mxu1 }
 0x2e9   : > { %5687 = vst.msk [vmem:[%s8495_s25 + $0x3c0] sm:$0xff] %vm1633_vm4, %v4948_v43  ;;  %v4951_v16 = vadd.f32 %v9677_v35, %v4912_v53  ;;  %v4911_v40 = vadd.f32 %v4856_v2, %v4642_v19  ;;  %v4645_v6 = vadd.f32 %v7019_v18, %v4375_v34 }
 0x2ea   : > { %v4597_v29 = vpop.f32.mrf.mxu0  ;;  %v7074_v54 = vpop.f32.mrf.mxu1 }
 0x2eb   : > { %5690 = vst.msk [vmem:[%s8495_s25 + $0x3d8] sm:$0xff] %vm1633_vm4, %v4951_v16  ;;  %v4950_v14 = vadd.f32 %v9677_v35, %v4911_v40  ;;  %v4914_v20 = vadd.f32 %v7071_v45, %v4645_v6  ;;  %v4644_v51 = vadd.f32 %v4597_v29, %v4370_v4 }
 0x2ec   : > { %v7022_v59 = vpop.f32.mrf.mxu0  ;;  %v4876_v0 = vpop.f32.mrf.mxu1 }
 0x2ed   : > { %5689 = vst.msk [vmem:[%s8495_s25 + $0x3d0] sm:$0xff] %vm1633_vm4, %v4950_v14  ;;  %v4953_v23 = vadd.f32 %v9677_v35, %v4914_v20  ;;  %v4913_v27 = vadd.f32 %v4866_v55, %v4644_v51  ;;  %v4647_v22 = vadd.f32 %v7022_v59, %v4385_v12 }
 0x2ee   : > { %v4607_v13 = vpop.f32.mrf.mxu0 }
 0x2ef   : > { %5692 = vst.msk [vmem:[%s8495_s25 + $0x3e8] sm:$0xff] %vm1633_vm4, %v4953_v23  ;;  %v4952_v63 = vadd.f32 %v9677_v35, %v4913_v27  ;;  %v4916_v48 = vadd.f32 %v7074_v54, %v4647_v22  ;;  %v4646_v15 = vadd.f32 %v4607_v13, %v4380_v44 }
 0x2f1   : > { %5691 = vst.msk [vmem:[%s8495_s25 + $0x3e0] sm:$0xff] %vm1633_vm4, %v4952_v63  ;;  %v4955_v49 = vadd.f32 %v9677_v35, %v4916_v48  ;;  %v4915_v10 = vadd.f32 %v4876_v0, %v4646_v15 }
 0x2f3   : > { %5694 = vst.msk [vmem:[%s8495_s25 + $0x3f8] sm:$0xff] %vm1633_vm4, %v4955_v49  ;;  %v4954_v24 = vadd.f32 %v9677_v35, %v4915_v10 }
 0x2f5   : > { %5693 = vst.msk [vmem:[%s8495_s25 + $0x3f0] sm:$0xff] %vm1633_vm4, %v4954_v24 }
 0x2f6 PF: > { %s13_s12 = sadd.s32 1, %s7123_s12  }
 0x2f7   : > { %p10_p4 = scmp.ge.s32.totalorder %s13_s12, 4  }
 0x2f9   :  { %12 = sbr.rel (!%p10_p4) target bundleno = 1 (0x1), region = 81 }

// kernel: decoder_forward.2
= control target key start
LH: loop header
LB: loop body
LE: loop exit
PB: predicated region body
PF: predicated region fallthrough
CT: control target
= control target key end

     0   :  { %12 = vsyncpa [#allocation5], 0  ;;  %s10737_s0 = inlined_call_operand.vmem [shape: f32[2,8,8,4], index: 0, kind: input, shape index: {}]   ;;  %s10738_s1 = inlined_call_operand.hbm [shape: f32[9,4,32], index: 1, kind: input, shape index: {}]   ;;  %s10739_s2 = inlined_call_operand.hbm [shape: f32[1,32], index: 2, kind: input, shape index: {}]   ;;  %s10740_s3 = inlined_call_operand.vmem [shape: f32[2,9,32,8], index: 3, kind: input, shape index: {}]   ;;  %s10741_s4 = inlined_call_operand.hbm [shape: f32[2,8,32], index: 4, kind: input, shape index: {}]   ;;  %s10742_s5 = inlined_call_operand.vmem [shape: f32[4,4,32,16], index: 5, kind: input, shape index: {}]   ;;  %s10743_s6 = inlined_call_operand.hbm [shape: f32[1,16], index: 6, kind: input, shape index: {}]   ;;  %s10744_s7 = inlined_call_operand.vmem [shape: f32[2,4,64,16], index: 7, kind: output, shape index: {}]  }
   0x1   :  { %13 = vsyncpa [#allocation7], 0 }
   0x2   :  { %14 = vsyncpa [#allocation10], 0  ;;  %s8697_s24 = smov 0  }
   0x3 LB: > { %s8648_s25 = smov [#allocation6]   ;;  %s8703_s27 = sadd.s32 4294967295, %s8646_s24   ;;  %s8646_s24 = sphi %s8697_s24, %s20_s24  }
   0x4   : > { %s229_s26 = sshll.u32 %s8648_s25, 4  ;;  %p6581_p0 = scmp.ge.s32.totalorder %s8646_s24, 1  ;;  %s230_s26 = int_to_ptr.vmem [resolvable:$true] %s229_s26 }
   0x5   : > { %p203_p1 = scmp.lt.s32.totalorder %s8646_s24, 3  ;;  %p8498_p2 = scmp.eq.s32.totalorder %s8703_s27, 0 }
   0x6   : > { %s8649_s29 = smov [#allocation4]   ;;  %s8650_s9 = smov [#allocation8]  }
   0x7   : > { %p8708_p3 = pnand %p6581_p0, %p203_p1  ;;  %s215_s30 = sshll.u32 %s8649_s29, 4  ;;  %s8714_s30 = int_to_ptr.vmem [resolvable:$true] %s215_s30 }
   0x8   : > { %s242_s10 = sshll.u32 %s8650_s9, 4  ;;  %s8535_s11 = scalar_lea.vmem %s230_s26, 16  ;;  %s8722_s10 = int_to_ptr.vmem [resolvable:$true] %s242_s10 }
   0x9   : > { %p8485_p4 = pneg %p8708_p3  ;;  %p8536_p7 = scmp.ne.s32.totalorder %s230_s26, %s8535_s11 }
   0xa   : > { %s8542_s12 = scalar_lea.vmem %s230_s26, 32  ;;  %p8543_p10 = scmp.lt.s32.totalorder %s230_s26, %s230_s26 }
   0xb   : > { %p8718_p5 = pnand %p8498_p2, %p8485_p4  ;;  %p8544_p11 = scmp.lt.s32.totalorder %s8542_s12, %s8535_s11 }
   0xd   : > { %p8526_p6 = pneg %p8718_p5  ;;  %p8545_p12 = por %p8544_p11, %p8543_p10 }
   0xf   : > { %p8538_p8 = pnand %p8536_p7, %p8526_p6 }
  0x11   : > { %p8539_p9 = pneg %p8538_p8 }
  0x13   : > { %p8546_p13 = pnand %p8545_p12, %p8539_p9 }
  0x15   : > { %8549 = shalt.err (!%p8546_p13)
}
  0x16   : > { %8491 = dma.hbm_to_vmem [thread:$0]  (!%p8718_p5), %s10739_s2, 16, %s230_s26, [#allocation7]  }
  0x17   : > { %s8561_s15 = scalar_lea.vmem %s8714_s30, 576  ;;  %p8569_p7 = scmp.lt.s32.totalorder %s8714_s30, %s8714_s30 }
  0x18   : > { %p8562_p0 = scmp.ne.s32.totalorder %s8714_s30, %s8561_s15  ;;  %p8570_p8 = scmp.lt.s32.totalorder %s8561_s15, %s8561_s15 }
  0x1a   : > { %p8564_p1 = pnand %p8562_p0, %p8526_p6  ;;  %p8571_p9 = por %p8570_p8, %p8569_p7 }
  0x1c   : > { %p8565_p4 = pneg %p8564_p1 }
  0x1e   : > { %p8572_p10 = pnand %p8571_p9, %p8565_p4 }
  0x20   : > { %8575 = shalt.err (!%p8572_p10)
}
  0x21   : > { %s8651_s16 = smov 64   ;;  %s8652_s17 = smov 4  }
  0x22   : > { %8488 = dma.hbm_to_vmem [thread:$0]  (!%p8718_p5), %s10738_s1, 576, %s8714_s30, [#allocation5], %s8651_s16, %s8651_s16, %s8652_s17  }
  0x23   : > { %s8587_s20 = scalar_lea.vmem %s8722_s10, 256  ;;  %p8595_p0 = scmp.lt.s32.totalorder %s8722_s10, %s8722_s10 }
  0x24   : > { %p8588_p11 = scmp.ne.s32.totalorder %s8722_s10, %s8587_s20  ;;  %p8596_p1 = scmp.lt.s32.totalorder %s8587_s20, %s8587_s20 }
  0x26   : > { %p8590_p12 = pnand %p8588_p11, %p8526_p6  ;;  %p8597_p4 = por %p8596_p1, %p8595_p0 }
  0x28   : > { %p8591_p13 = pneg %p8590_p12 }
  0x2a   : > { %p8598_p7 = pnand %p8597_p4, %p8591_p13 }
  0x2c   : > { %8601 = shalt.err (!%p8598_p7)
}
  0x2d   : > { %s8653_s21 = smov 128   ;;  %s8654_s22 = smov 8  }
  0x2e   : > { %8494 = dma.hbm_to_vmem [thread:$0]  (!%p8718_p5), %s10741_s4, 256, %s8722_s10, [#allocation7], %s8653_s21, %s8653_s21, %s8654_s22  }
  0x2f   : > { %s8655_s26 = smov [#allocation9]  }
  0x30   : > { %s259_s29 = sshll.u32 %s8655_s26, 4  ;;  %s260_s29 = int_to_ptr.vmem [resolvable:$true] %s259_s29 }
  0x31   : > { %s8613_s30 = scalar_lea.vmem %s260_s29, 16  ;;  %s8620_s9 = scalar_lea.vmem %s260_s29, 32 }
  0x32   : > { %p8614_p8 = scmp.ne.s32.totalorder %s260_s29, %s8613_s30  ;;  %p8621_p11 = scmp.lt.s32.totalorder %s260_s29, %s260_s29 }
  0x33   : > { %p8622_p12 = scmp.lt.s32.totalorder %s8620_s9, %s8613_s30 }
  0x34   : > { %p8616_p9 = pnand %p8614_p8, %p8526_p6 }
  0x35   : > { %p8623_p13 = por %p8622_p12, %p8621_p11 }
  0x36   : > { %p8617_p10 = pneg %p8616_p9 }
  0x38   : > { %p8624_p0 = pnand %p8623_p13, %p8617_p10 }
  0x3a   : > { %8627 = shalt.err (!%p8624_p0)
}
  0x3b   : > { %8497 = dma.hbm_to_vmem [thread:$0]  (!%p8718_p5), %s10743_s6, 16, %s260_s29, [#allocation10]  }
  0x3c   : > { %280 = sbr.rel (%p8708_p3) target bundleno = 1640 (0x668), region = 48 }
  0x41   : > { %8633 = dma.done.wait (%p8498_p2), [#allocation5], 576  }
  0x42   : > { %8635 = vsyncadd (%p8498_p2), [#allocation5], 4294966720 }
  0x43   : > { %8637 = dma.done.wait (%p8498_p2), [#allocation7], 272  }
  0x44   : > { %8639 = vsyncadd (%p8498_p2), [#allocation7], 4294967024 }
  0x45   : > { %8641 = dma.done.wait (%p8498_p2), [#allocation10], 16  }
  0x46   : > { %8643 = vsyncadd (%p8498_p2), [#allocation10], 4294967280  ;;  %vm334_vm0 = vcmask 31744   ;;  %vm336_vm1 = vcmask 25600   ;;  %v8656_v0 = vmov 0.0   ;;  %p324_p2 = scmp.lt.s32.totalorder %s8703_s27, 1 }
  0x47   : > { %335 = vst.msk [vmem:[#allocation2] sm:$0xff] %vm334_vm0, %v8656_v0  ;;  %338 = vst.msk [vmem:[#allocation2 + $0x10] sm:$0xff] %vm334_vm0, %v8656_v0  ;;  %vm475_vm2 = vcmask 1043456   ;;  %v458_v1 = vld [vmem:[#allocation4 + $0x4] sm:$0xf]  ;;  %vm432_vm3 = vcmask 1046528  }
  0x48   : > { %337 = vst.msk [vmem:[#allocation2 + $0x8] sm:$0x3] %vm336_vm1, %v8656_v0  ;;  %339 = vst.msk [vmem:[#allocation2 + $0x18] sm:$0x3] %vm336_vm1, %v8656_v0  ;;  %s10829_s27 = smov (!%p324_p2, %s8703_s27), 1  ;;  %8467 = vmatprep.subr.msk.mxu1 %vm475_vm2, %v458_v1  ;;  %7633 = vmatprep.subr.msk.mxu0 %vm475_vm2, %v458_v1  ;;  %vm708_vm4 = vcmask 1045504  }
  0x49   : > { %340 = vst.msk [vmem:[#allocation2 + $0x20] sm:$0xff] %vm334_vm0, %v8656_v0  ;;  %342 = vst.msk [vmem:[#allocation2 + $0x30] sm:$0xff] %vm334_vm0, %v8656_v0  ;;  %s7124_s28 = sshll.u32 %s10829_s27, 6  ;;  %v8833_v3 = vld [vmem:[#allocation4] sm:$0xf]  ;;  %8468 = vmatpush3.msk.msra.mxu1 %vm475_vm2, %v458_v1  ;;  %7634 = vmatpush3.msk.msra.mxu0 %vm475_vm2, %v458_v1  ;;  %vm356_vm5 = vcmask 261120  }
  0x4a   : > { %341 = vst.msk [vmem:[#allocation2 + $0x28] sm:$0x3] %vm336_vm1, %v8656_v0  ;;  %343 = vst.msk [vmem:[#allocation2 + $0x38] sm:$0x3] %vm336_vm1, %v8656_v0  ;;  %s8830_s13 = scalar_lea.vmem %s10737_s0, %s7124_s28  ;;  %v734_v10 = vld [vmem:[#allocation4 + $0x8] sm:$0xf]  ;;  %7647 = vmatprep.subr.msk.mxu1 %vm475_vm2, %v8833_v3 }
  0x4b   : > { %344 = vst.msk [vmem:[#allocation2 + $0x40] sm:$0xff] %vm334_vm0, %v8656_v0  ;;  %346 = vst.msk [vmem:[#allocation2 + $0x50] sm:$0xff] %vm334_vm0, %v8656_v0  ;;  %v381_v2 = vld [vmem:[%s8830_s13 + $0x18] sm:$0xff]  ;;  %v378_v6 = vld [vmem:[%s8830_s13] sm:$0xff]  ;;  %7661 = vmatprep.subr.msk.mxu0 %vm475_vm2, %v734_v10  ;;  %vm358_vm6 = vcmask 254976   ;;  %vm2849_vm7 = vcmask 64512  }
  0x4c   : > { %345 = vst.msk [vmem:[#allocation2 + $0x48] sm:$0x3] %vm336_vm1, %v8656_v0  ;;  %347 = vst.msk [vmem:[#allocation2 + $0x58] sm:$0x3] %vm336_vm1, %v8656_v0  ;;  %v382_v9 = vld [vmem:[%s8830_s13 + $0x20] sm:$0xff]  ;;  %v379_v11 = vld [vmem:[%s8830_s13 + $0x8] sm:$0xff] }
  0x4d   : > { %348 = vst.msk [vmem:[#allocation2 + $0x60] sm:$0xff] %vm334_vm0, %v8656_v0  ;;  %350 = vst.msk [vmem:[#allocation2 + $0x70] sm:$0xff] %vm334_vm0, %v8656_v0  ;;  %v383_v12 = vld [vmem:[%s8830_s13 + $0x28] sm:$0xff]  ;;  %v380_v13 = vld [vmem:[%s8830_s13 + $0x10] sm:$0xff]  ;;  %vm4951_vm8 = vcmask 130048  }
  0x4e   : > { %349 = vst.msk [vmem:[#allocation2 + $0x68] sm:$0x3] %vm336_vm1, %v8656_v0  ;;  %351 = vst.msk [vmem:[#allocation2 + $0x78] sm:$0x3] %vm336_vm1, %v8656_v0  ;;  %v8837_v4 = vld [vmem:[#allocation2] sm:$0xff]  ;;  %v384_v15 = vld [vmem:[%s8830_s13 + $0x30] sm:$0xff] }
  0x4f   : > { %352 = vst.msk [vmem:[#allocation2 + $0x80] sm:$0xff] %vm334_vm0, %v8656_v0  ;;  %354 = vst.msk [vmem:[#allocation2 + $0x90] sm:$0xff] %vm334_vm0, %v8656_v0  ;;  %v8839_v5 = vld [vmem:[#allocation2 + $0x8] sm:$0x3]  ;;  %v433_v7 = vrot.slane %v8837_v4, 1  ;;  %v385_v16 = vld [vmem:[%s8830_s13 + $0x38] sm:$0xff] }
  0x50   : > { %353 = vst.msk [vmem:[#allocation2 + $0x88] sm:$0x3] %vm336_vm1, %v8656_v0  ;;  %355 = vst.msk [vmem:[#allocation2 + $0x98] sm:$0x3] %vm336_vm1, %v8656_v0  ;;  %v434_v8 = vrot.slane %v8839_v5, 1  ;;  %v710_v19 = vrot.slane %v8839_v5, 2 }
  0x51   : > { %390 = vst.msk [vmem:[#allocation2 + $0x41] sm:$0xff] %vm334_vm0, %v381_v2  ;;  %387 = vst.msk [vmem:[#allocation2 + $0x11] sm:$0xff] %vm334_vm0, %v378_v6  ;;  %v709_v28 = vrot.slane %v8837_v4, 2  ;;  %v868_v35 = vld [vmem:[#allocation4 + $0xc] sm:$0xf]  ;;  %s7125_s13 = sshll.u32 %s10829_s27, 8 }
  0x52   : > { %391 = vst.msk [vmem:[#allocation2 + $0x51] sm:$0xff] %vm334_vm0, %v382_v9  ;;  %v435_v14 = vsel %vm432_vm3, %v433_v7, %v434_v8  ;;  %388 = vst.msk [vmem:[#allocation2 + $0x21] sm:$0xff] %vm334_vm0, %v379_v11  ;;  %v993_v42 = vld [vmem:[#allocation4 + $0x10] sm:$0xf]  ;;  %v1116_v5 = vld [vmem:[#allocation4 + $0x14] sm:$0xf]  ;;  %s10637_s16 = scalar_lea.vmem %s10744_s7, %s7125_s13 }
  0x53   : > { %392 = vst.msk [vmem:[#allocation2 + $0x61] sm:$0xff] %vm334_vm0, %v383_v12  ;;  %389 = vst.msk [vmem:[#allocation2 + $0x31] sm:$0xff] %vm334_vm0, %v380_v13  ;;  %7635 = vmatprep.mubr.msk.f32.mxu0 %vm334_vm0, %v435_v14  ;;  %v711_v56 = vsel %vm708_vm4, %v709_v28, %v710_v19  ;;  %v1236_v8 = vld [vmem:[#allocation4 + $0x18] sm:$0xf]  ;;  %v1484_v19 = vld [vmem:[#allocation4 + $0x20] sm:$0xf] }
  0x54   : > { %393 = vst.msk [vmem:[#allocation2 + $0x71] sm:$0xff] %vm334_vm0, %v384_v15  ;;  %394 = vst.msk [vmem:[#allocation2 + $0x81] sm:$0xff] %vm334_vm0, %v385_v16 }
  0x55   : > { %362 = vst.msk [vmem:[#allocation3 + $0x20] sm:$0xff] %vm356_vm5, %v8656_v0  ;;  %357 = vst.msk [vmem:[#allocation3] sm:$0xff] %vm356_vm5, %v8656_v0 }
  0x56   : > { %363 = vst.msk [vmem:[#allocation3 + $0x28] sm:$0x3] %vm358_vm6, %v8656_v0  ;;  %359 = vst.msk [vmem:[#allocation3 + $0x8] sm:$0x3] %vm358_vm6, %v8656_v0 }
  0x57   : > { %v414_v28 = vld [vmem:[#allocation2 + $0x98] sm:$0x3]  ;;  %360 = vst.msk [vmem:[#allocation3 + $0x10] sm:$0xff] %vm356_vm5, %v8656_v0  ;;  %364 = vst.msk [vmem:[#allocation3 + $0x30] sm:$0xff] %vm356_vm5, %v8656_v0 }
  0x58   : > { %v8865_v17 = vld [vmem:[#allocation2 + $0x40] sm:$0xff]  ;;  %v8867_v18 = vld [vmem:[#allocation2 + $0x48] sm:$0x3]  ;;  %v8872_v22 = vld [vmem:[#allocation2 + $0x10] sm:$0xff]  ;;  %361 = vst.msk [vmem:[#allocation3 + $0x18] sm:$0x3] %vm358_vm6, %v8656_v0 }
  0x59   : > { %v445_v20 = vrot.slane %v8865_v17, 1  ;;  %v446_v21 = vrot.slane %v8867_v18, 1  ;;  %v398_v23 = vld [vmem:[#allocation2 + $0x18] sm:$0x3]  ;;  %v436_v24 = vrot.slane %v8872_v22, 1  ;;  %v8875_v26 = vld [vmem:[#allocation2 + $0x50] sm:$0xff] }
  0x5a   : > { %v437_v25 = vrot.slane %v398_v23, 1  ;;  %v8877_v27 = vld [vmem:[#allocation2 + $0x58] sm:$0x3]  ;;  %v448_v30 = vrot.slane %v8875_v26, 1  ;;  %v8885_v32 = vld [vmem:[#allocation2 + $0x20] sm:$0xff]  ;;  %v8898_v41 = vld [vmem:[#allocation2 + $0x30] sm:$0xff] }
  0x5b   : > { %v8881_v29 = vsel %vm432_vm3, %v445_v20, %v446_v21  ;;  %v449_v31 = vrot.slane %v8877_v27, 1  ;;  %v400_v33 = vld [vmem:[#allocation2 + $0x28] sm:$0x3]  ;;  %v8887_v34 = vld [vmem:[#allocation2 + $0x60] sm:$0xff]  ;;  %v439_v37 = vrot.slane %v8885_v32, 1  ;;  %v713_v43 = vrot.slane %v398_v23, 2 }
  0x5c   : > { %7641 = vmatprep.mubr.msk.f32.mxu1 %vm334_vm0, %v8881_v29  ;;  %v8892_v36 = vsel %vm432_vm3, %v436_v24, %v437_v25  ;;  %v440_v38 = vrot.slane %v400_v33, 1  ;;  %v8895_v39 = vld [vmem:[#allocation2 + $0x68] sm:$0x3]  ;;  %v451_v40 = vrot.slane %v8887_v34, 1  ;;  %v402_v46 = vld [vmem:[#allocation2 + $0x38] sm:$0x3] }
  0x5d   : > { %7636 = vmatmul.mubr.msk.f32.vlgmr.msra.gmra.mxu0 %vm334_vm0, %v8892_v36  ;;  %v8903_v44 = vsel %vm432_vm3, %v448_v30, %v449_v31  ;;  %v452_v45 = vrot.slane %v8895_v39, 1  ;;  %v442_v47 = vrot.slane %v8898_v41, 1  ;;  %v8907_v48 = vld [vmem:[#allocation2 + $0x70] sm:$0xff]  ;;  %v443_v50 = vrot.slane %v402_v46, 1  ;;  %v410_v51 = vld [vmem:[#allocation2 + $0x78] sm:$0x3] }
  0x5e   : > { %7642 = vmatmul.mubr.msk.f32.vlgmr.msra.gmra.mxu1 %vm334_vm0, %v8903_v44  ;;  %7662 = vmatpush3.msk.msra.mxu0 %vm475_vm2, %v734_v10  ;;  %v8913_v49 = vsel %vm432_vm3, %v439_v37, %v440_v38  ;;  %v454_v52 = vrot.slane %v8907_v48, 1  ;;  %v712_v53 = vrot.slane %v8872_v22, 2  ;;  %v455_v55 = vrot.slane %v410_v51, 1  ;;  %v411_v20 = vld [vmem:[#allocation2 + $0x80] sm:$0xff]  ;;  %v412_v21 = vld [vmem:[#allocation2 + $0x88] sm:$0x3] }
  0x5f   : > { %7648 = vmatpush3.msk.msra.mxu1 %vm475_vm2, %v8833_v3  ;;  %7638 = vmatprep.mubr.msk.f32.mxu0 %vm334_vm0, %v8913_v49  ;;  %v8922_v54 = vsel %vm432_vm3, %v451_v40, %v452_v45  ;;  %v8928_v57 = vsel %vm432_vm3, %v442_v47, %v443_v50  ;;  %v715_v59 = vrot.slane %v8885_v32, 2  ;;  %v716_v60 = vrot.slane %v400_v33, 2  ;;  %365 = vst.msk [vmem:[#allocation3 + $0x38] sm:$0x3] %vm358_vm6, %v8656_v0  ;;  %v6681_v37 = vld [vmem:[%s10740_s3 + $0x38] sm:$0xff]  ;;  %v6680_v38 = vld [vmem:[%s10740_s3 + $0x30] sm:$0xff] }
  0x60   : > { %7644 = vmatprep.mubr.msk.f32.mxu1 %vm334_vm0, %v8922_v54  ;;  %7675 = vmatprep.subr.msk.mxu1 %vm475_vm2, %v868_v35  ;;  %v8934_v58 = vsel %vm432_vm3, %v454_v52, %v455_v55  ;;  %v8942_v61 = vsel %vm708_vm4, %v712_v53, %v713_v43  ;;  %v718_v62 = vrot.slane %v8898_v41, 2  ;;  %v719_v63 = vrot.slane %v402_v46, 2  ;;  %366 = vst.msk [vmem:[#allocation3 + $0x40] sm:$0xff] %vm356_vm5, %v8656_v0  ;;  %v6679_v40 = vld [vmem:[%s10740_s3 + $0x28] sm:$0xff]  ;;  %v6678_v45 = vld [vmem:[%s10740_s3 + $0x20] sm:$0xff]  ;;  %v9180_v47 = vld [vmem:[%s10740_s3 + $0x58] sm:$0xff] }
  0x61   : > { %7639 = vmatmul.mubr.msk.f32.gmra.mxu0 %vm334_vm0, %v8928_v57  ;;  %7689 = vmatprep.subr.msk.mxu0 %vm475_vm2, %v993_v42  ;;  %v721_v1 = vrot.slane %v8865_v17, 2  ;;  %v722_v2 = vrot.slane %v8867_v18, 2  ;;  %v8952_v3 = vsel %vm708_vm4, %v715_v59, %v716_v60  ;;  %v725_v7 = vrot.slane %v8877_v27, 2  ;;  %v1361_v18 = vld [vmem:[#allocation4 + $0x1c] sm:$0xf]  ;;  %368 = vst.msk [vmem:[#allocation3 + $0x50] sm:$0xff] %vm356_vm5, %v8656_v0 }
  0x62   : > { %7645 = vmatmul.mubr.msk.f32.gmra.mxu1 %vm334_vm0, %v8934_v58  ;;  %7663 = vmatprep.mubr.msk.f32.mxu0 %vm334_vm0, %v711_v56  ;;  %v8958_v6 = vsel %vm708_vm4, %v718_v62, %v719_v63  ;;  %v727_v10 = vrot.slane %v8887_v34, 2  ;;  %v728_v11 = vrot.slane %v8895_v39, 2  ;;  %v730_v13 = vrot.slane %v8907_v48, 2  ;;  %367 = vst.msk [vmem:[#allocation3 + $0x48] sm:$0x3] %vm358_vm6, %v8656_v0  ;;  %v1655_v39 = vld [vmem:[%s10740_s3] sm:$0xff] }
  0x63   : > { %7649 = vmatprep.mubr.msk.f32.mxu1 %vm334_vm0, %v8837_v4  ;;  %v724_v4 = vrot.slane %v8875_v26, 2  ;;  %v8966_v9 = vsel %vm708_vm4, %v721_v1, %v722_v2  ;;  %v731_v14 = vrot.slane %v410_v51, 2  ;;  %v990_v23 = vrot.slane %v412_v21, 1  ;;  %369 = vst.msk [vmem:[#allocation3 + $0x58] sm:$0x3] %vm358_vm6, %v8656_v0 }
  0x64   : > { %v8987_v15 = vsel %vm708_vm4, %v727_v10, %v728_v11  ;;  %v1112_v25 = vrot.slane %v411_v20, 2  ;;  %v1113_v27 = vrot.slane %v412_v21, 2  ;;  %v1481_v31 = vrot.slane %v414_v28, 2  ;;  %370 = vst.msk [vmem:[#allocation3 + $0x60] sm:$0xff] %vm356_vm5, %v8656_v0  ;;  %372 = vst.msk [vmem:[#allocation3 + $0x70] sm:$0xff] %vm356_vm5, %v8656_v0 }
  0x65   : > { %7664 = vmatmul.mubr.msk.f32.vlgmr.msra.gmra.mxu0 %vm334_vm0, %v8942_v61  ;;  %v8981_v12 = vsel %vm708_vm4, %v724_v4, %v725_v7  ;;  %v8996_v16 = vsel %vm708_vm4, %v730_v13, %v731_v14  ;;  %v1358_v33 = vrot.slane %v414_v28, 1  ;;  %371 = vst.msk [vmem:[#allocation3 + $0x68] sm:$0x3] %vm358_vm6, %v8656_v0  ;;  %373 = vst.msk [vmem:[#allocation3 + $0x78] sm:$0x3] %vm358_vm6, %v8656_v0 }
  0x66   : > { %7650 = vmatmul.mubr.msk.f32.vlgmr.msra.gmra.mxu1 %vm334_vm0, %v8872_v22  ;;  %7690 = vmatpush3.msk.msra.mxu0 %vm475_vm2, %v993_v42  ;;  %374 = vst.msk [vmem:[#allocation3 + $0x80] sm:$0xff] %vm356_vm5, %v8656_v0  ;;  %376 = vst.msk [vmem:[#allocation3 + $0x90] sm:$0xff] %vm356_vm5, %v8656_v0  ;;  %v9164_v42 = vld [vmem:[#allocation3 + $0x8] sm:$0x3] }
  0x67   : > { %7676 = vmatpush3.msk.msra.mxu1 %vm475_vm2, %v868_v35  ;;  %7652 = vmatprep.mubr.msk.f32.mxu1 %vm334_vm0, %v8885_v32  ;;  %375 = vst.msk [vmem:[#allocation3 + $0x88] sm:$0x3] %vm358_vm6, %v8656_v0  ;;  %377 = vst.msk [vmem:[#allocation3 + $0x98] sm:$0x3] %vm358_vm6, %v8656_v0  ;;  %v1658_v35 = vld [vmem:[%s10740_s3 + $0x18] sm:$0xff]  ;;  %v1656_v0 = vld [vmem:[%s10740_s3 + $0x8] sm:$0xff] }
  0x68   : > { %7666 = vmatprep.mubr.msk.f32.mxu0 %vm334_vm0, %v8952_v3  ;;  %7703 = vmatprep.subr.msk.mxu1 %vm475_vm2, %v1116_v5  ;;  %10774 = vst [vmem:[#allocation15_spill] sm:$0xff] %v9164_v42 }
  0x69   : > { %7667 = vmatmul.mubr.msk.f32.gmra.mxu0 %vm334_vm0, %v8958_v6  ;;  %7717 = vmatprep.subr.msk.mxu0 %vm475_vm2, %v1236_v8 }
  0x6a   : > { %7653 = vmatmul.mubr.msk.f32.gmra.mxu1 %vm334_vm0, %v8898_v41  ;;  %7669 = vmatprep.mubr.msk.f32.mxu0 %vm334_vm0, %v8966_v9 }
  0x6b   : > { %7655 = vmatprep.mubr.msk.f32.mxu1 %vm334_vm0, %v8865_v17 }
  0x6d   : > { %7670 = vmatmul.mubr.msk.f32.gmra.mxu0 %vm334_vm0, %v8981_v12 }
  0x6e   : > { %7656 = vmatmul.mubr.msk.f32.gmra.mxu1 %vm334_vm0, %v8875_v26  ;;  %7672 = vmatprep.mubr.msk.f32.mxu0 %vm334_vm0, %v8987_v15 }
  0x6f   : > { %7658 = vmatprep.mubr.msk.f32.mxu1 %vm334_vm0, %v8887_v34 }
  0x71   : > { %7673 = vmatmul.mubr.msk.f32.gmra.mxu0 %vm334_vm0, %v8996_v16 }
  0x72   : > { %7659 = vmatmul.mubr.msk.f32.gmra.mxu1 %vm334_vm0, %v8907_v48  ;;  %7691 = vmatprep.mubr.msk.f32.mxu0 %vm334_vm0, %v8892_v36  ;;  %v1657_v36 = vld [vmem:[%s10740_s3 + $0x10] sm:$0xff] }
  0x73   : > { %7677 = vmatprep.mubr.msk.f32.mxu1 %vm334_vm0, %v8872_v22  ;;  %v989_v22 = vrot.slane %v411_v20, 1 }
  0x75   : > { %7692 = vmatmul.mubr.msk.f32.vlgmr.msra.gmra.mxu0 %vm334_vm0, %v8913_v49  ;;  %v991_v24 = vsel %vm432_vm3, %v989_v22, %v990_v23 }
  0x76   : > { %7678 = vmatmul.mubr.msk.f32.vlgmr.msra.gmra.mxu1 %vm334_vm0, %v8885_v32  ;;  %7718 = vmatpush3.msk.msra.mxu0 %vm475_vm2, %v1236_v8 }
  0x77   : > { %7704 = vmatpush3.msk.msra.mxu1 %vm475_vm2, %v1116_v5  ;;  %7680 = vmatprep.mubr.msk.f32.mxu1 %vm334_vm0, %v8898_v41 }
  0x78   : > { %7694 = vmatprep.mubr.msk.f32.mxu0 %vm334_vm0, %v8928_v57  ;;  %7731 = vmatprep.subr.msk.mxu1 %vm475_vm2, %v1361_v18 }
  0x79   : > { %7695 = vmatmul.mubr.msk.f32.gmra.mxu0 %vm334_vm0, %v8881_v29  ;;  %7745 = vmatprep.subr.msk.mxu0 %vm475_vm2, %v1484_v19 }
  0x7a   : > { %7681 = vmatmul.mubr.msk.f32.gmra.mxu1 %vm334_vm0, %v8865_v17  ;;  %7697 = vmatprep.mubr.msk.f32.mxu0 %vm334_vm0, %v8903_v44 }
  0x7b   : > { %7683 = vmatprep.mubr.msk.f32.mxu1 %vm334_vm0, %v8875_v26 }
  0x7d   : > { %7698 = vmatmul.mubr.msk.f32.gmra.mxu0 %vm334_vm0, %v8922_v54 }
  0x7e   : > { %7684 = vmatmul.mubr.msk.f32.gmra.mxu1 %vm334_vm0, %v8887_v34  ;;  %7700 = vmatprep.mubr.msk.f32.mxu0 %vm334_vm0, %v8934_v58 }
  0x7f   : > { %7686 = vmatprep.mubr.msk.f32.mxu1 %vm334_vm0, %v8907_v48 }
  0x81   : > { %7701 = vmatmul.mubr.msk.f32.gmra.mxu0 %vm334_vm0, %v991_v24 }
  0x82   : > { %7687 = vmatmul.mubr.msk.f32.gmra.mxu1 %vm334_vm0, %v411_v20  ;;  %7719 = vmatprep.mubr.msk.f32.mxu0 %vm334_vm0, %v8885_v32 }
  0x83   : > { %7705 = vmatprep.mubr.msk.f32.mxu1 %vm334_vm0, %v8942_v61 }
  0x85   : > { %7720 = vmatmul.mubr.msk.f32.vlgmr.msra.gmra.mxu0 %vm334_vm0, %v8898_v41  ;;  %v9162_v41 = vld [vmem:[#allocation3] sm:$0xff] }
  0x86   : > { %7706 = vmatmul.mubr.msk.f32.vlgmr.msra.gmra.mxu1 %vm334_vm0, %v8952_v3  ;;  %7746 = vmatpush3.msk.msra.mxu0 %vm475_vm2, %v1484_v19  ;;  %10773 = vst [vmem:[#allocation14_spill] sm:$0xff] %v9162_v41  ;;  %v10745_v43 = vrot.slane %v9162_v41, 1 }
  0x87   : > { %7732 = vmatpush3.msk.msra.mxu1 %vm475_vm2, %v1361_v18  ;;  %7708 = vmatprep.mubr.msk.f32.mxu1 %vm334_vm0, %v8958_v6 }
  0x88   : > { %7722 = vmatprep.mubr.msk.f32.mxu0 %vm334_vm0, %v8865_v17  ;;  %v413_v17 = vld [vmem:[#allocation2 + $0x90] sm:$0xff]  ;;  %7779 = vmatprep.subr.mxu0 %v1658_v35 }
  0x89   : > { %7723 = vmatmul.mubr.msk.f32.gmra.mxu0 %vm334_vm0, %v8875_v26  ;;  %v1114_v26 = vsel %vm708_vm4, %v1112_v25, %v1113_v27  ;;  %v1480_v30 = vrot.slane %v413_v17, 2  ;;  %v1357_v32 = vrot.slane %v413_v17, 1  ;;  %7759 = vmatprep.subr.mxu1 %v6681_v37 }
  0x8a   : > { %7709 = vmatmul.mubr.msk.f32.gmra.mxu1 %vm334_vm0, %v8966_v9  ;;  %7725 = vmatprep.mubr.msk.f32.mxu0 %vm334_vm0, %v8887_v34 }
  0x8b   : > { %7711 = vmatprep.mubr.msk.f32.mxu1 %vm334_vm0, %v8981_v12  ;;  %v1359_v34 = vsel %vm432_vm3, %v1357_v32, %v1358_v33 }
  0x8d   : > { %7726 = vmatmul.mubr.msk.f32.gmra.mxu0 %vm334_vm0, %v8907_v48  ;;  %v9186_v48 = vld [vmem:[%s10740_s3 + $0x78] sm:$0xff] }
  0x8e   : > { %7712 = vmatmul.mubr.msk.f32.gmra.mxu1 %vm334_vm0, %v8987_v15  ;;  %7728 = vmatprep.mubr.msk.f32.mxu0 %vm334_vm0, %v411_v20 }
  0x8f   : > { %7714 = vmatprep.mubr.msk.f32.mxu1 %vm334_vm0, %v8996_v16 }
  0x91   : > { %7729 = vmatmul.mubr.msk.f32.gmra.mxu0 %vm334_vm0, %v413_v17 }
  0x92   : > { %7715 = vmatmul.mubr.msk.f32.gmra.mxu1 %vm334_vm0, %v1114_v26  ;;  %7747 = vmatprep.mubr.msk.f32.mxu0 %vm334_vm0, %v8952_v3 }
  0x93   : > { %7733 = vmatprep.mubr.msk.f32.mxu1 %vm334_vm0, %v8913_v49 }
  0x95   : > { %7748 = vmatmul.mubr.msk.f32.vlgmr.msra.gmra.mxu0 %vm334_vm0, %v8958_v6 }
  0x96   : > { %7734 = vmatmul.mubr.msk.f32.vlgmr.msra.gmra.mxu1 %vm334_vm0, %v8928_v57  ;;  %7750 = vmatprep.mubr.msk.f32.mxu0 %vm334_vm0, %v8966_v9 }
  0x97   : > { %7736 = vmatprep.mubr.msk.f32.mxu1 %vm334_vm0, %v8881_v29  ;;  %v1482_v29 = vsel %vm708_vm4, %v1480_v30, %v1481_v31  ;;  %7780 = vmatpush3.msra.mxu0 %v1658_v35 }
  0x98   : > { %7781 = vmatprep.subr.mxu0 %v1657_v36  ;;  %7760 = vmatpush3.msra.mxu1 %v6681_v37 }
  0x99   : > { %7751 = vmatmul.mubr.msk.f32.gmra.mxu0 %vm334_vm0, %v8981_v12  ;;  %7761 = vmatprep.subr.mxu1 %v6680_v38 }
  0x9a   : > { %7737 = vmatmul.mubr.msk.f32.gmra.mxu1 %vm334_vm0, %v8903_v44  ;;  %7753 = vmatprep.mubr.msk.f32.mxu0 %vm334_vm0, %v8987_v15  ;;  %v1676_v44 = vrot.slane %v9164_v42, 1 }
  0x9b   : > { %7739 = vmatprep.mubr.msk.f32.mxu1 %vm334_vm0, %v8922_v54  ;;  %7782 = vmatpush3.msra.mxu0 %v1657_v36 }
  0x9c   : > { %7783 = vmatprep.subr.mxu0 %v1656_v0  ;;  %7762 = vmatpush3.msra.mxu1 %v6680_v38  ;;  %v1677_v46 = vsel %vm432_vm3, %v10745_v43, %v1676_v44 }
  0x9d   : > { %7754 = vmatmul.mubr.msk.f32.gmra.mxu0 %vm334_vm0, %v8996_v16  ;;  %7763 = vmatprep.subr.mxu1 %v6679_v40 }
  0x9e   : > { %7740 = vmatmul.mubr.msk.f32.gmra.mxu1 %vm334_vm0, %v8934_v58  ;;  %7756 = vmatprep.mubr.msk.f32.mxu0 %vm334_vm0, %v1114_v26 }
  0x9f   : > { %7742 = vmatprep.mubr.msk.f32.mxu1 %vm334_vm0, %v991_v24  ;;  %7784 = vmatpush3.msra.mxu0 %v1656_v0 }
  0xa0   : > { %7785 = vmatprep.subr.mxu0 %v1655_v39  ;;  %7764 = vmatpush3.msra.mxu1 %v6679_v40 }
  0xa1   : > { %7757 = vmatmul.mubr.msk.f32.gmra.mxu0 %vm334_vm0, %v1482_v29  ;;  %7765 = vmatprep.subr.mxu1 %v6678_v45 }
  0xa2   : > { %7743 = vmatmul.mubr.msk.f32.gmra.mxu1 %vm334_vm0, %v1359_v34  ;;  %7786 = vmatpush3.msra.mxu0 %v1655_v39 }
  0xa3   : > { %7787 = vmatprep.mubr.msk.f32.mxu0 %vm356_vm5, %v9162_v41  ;;  %7766 = vmatpush3.msra.mxu1 %v6678_v45 }
  0xa4   : > { %7767 = vmatprep.mubr.msk.f32.mxu1 %vm356_vm5, %v1677_v46  ;;  %7799 = vmatprep.subr.mxu1 %v9180_v47 }
  0xa5   : > { %7819 = vmatprep.subr.mxu0 %v9186_v48 }
 0x11d   : > { %v7637_v49 = vpop.f32.mrf.mxu0 }
 0x11e   : > { %v7643_v50 = vpop.f32.mrf.mxu1 }
 0x11f   : > { %v545_v51 = vpop.f32.mrf.mxu0 }
 0x120   : > { %v565_v52 = vpop.f32.mrf.mxu1 }
 0x121   : > { %v7640_v53 = vpop.f32.mrf.mxu0 }
 0x122   : > { %v7646_v54 = vpop.f32.mrf.mxu1 }
 0x123   : > { %v555_v55 = vpop.f32.mrf.mxu0 }
 0x124   : > { %v9189_v56 = vpop.f32.mrf.mxu1 }
 0x125   : > { %v7665_v57 = vpop.f32.mrf.mxu0 }
 0x126   : > { %v7651_v58 = vpop.f32.mrf.mxu1 }
 0x127   : > { %v820_v59 = vpop.f32.mrf.mxu0  ;;  %v675_v17 = vadd.f32 %v7651_v58, %v7637_v49 }
 0x128   : > { %v669_v60 = vpop.f32.mrf.mxu1 }
 0x129   : > { %v7668_v61 = vpop.f32.mrf.mxu0  ;;  %v670_v30 = vadd.f32 %v669_v60, %v545_v51  ;;  %v860_v33 = vadd.f32 %v7665_v57, %v675_v17 }
 0x12a   : > { %v7654_v62 = vpop.f32.mrf.mxu1 }
 0x12b   : > { %v830_v63 = vpop.f32.mrf.mxu0  ;;  %v685_v29 = vadd.f32 %v7654_v62, %v7640_v53  ;;  %v859_v36 = vadd.f32 %v820_v59, %v670_v30 }
 0x12c   : > { %v679_v1 = vpop.f32.mrf.mxu1 }
 0x12d   : > { %v7671_v2 = vpop.f32.mrf.mxu0  ;;  %v680_v37 = vadd.f32 %v679_v1, %v555_v55  ;;  %v862_v44 = vadd.f32 %v7668_v61, %v685_v29 }
 0x12e   : > { %v7657_v3 = vpop.f32.mrf.mxu1 }
 0x12f   : > { %v840_v5 = vpop.f32.mrf.mxu0  ;;  %v695_v39 = vadd.f32 %v7657_v3, %v7643_v50  ;;  %v861_v58 = vadd.f32 %v830_v63, %v680_v37 }
 0x130   : > { %v689_v6 = vpop.f32.mrf.mxu1 }
 0x131   : > { %v7674_v4 = vpop.f32.mrf.mxu0  ;;  %v690_v43 = vadd.f32 %v689_v6, %v565_v52  ;;  %v864_v41 = vadd.f32 %v7671_v2, %v695_v39 }
 0x132   : > { %v7660_v7 = vpop.f32.mrf.mxu1 }
 0x133   : > { %v9191_v8 = vpop.f32.mrf.mxu0  ;;  %v705_v57 = vadd.f32 %v7660_v7, %v7646_v54  ;;  %v863_v1 = vadd.f32 %v840_v5, %v690_v43 }
 0x134   : > { %v699_v9 = vpop.f32.mrf.mxu1 }
 0x135   : > { %v7693_v10 = vpop.f32.mrf.mxu0  ;;  %v700_v50 = vadd.f32 %v699_v9, %v9189_v56  ;;  %v866_v6 = vadd.f32 %v7674_v4, %v705_v57 }
 0x136   : > { %v7679_v11 = vpop.f32.mrf.mxu1 }
 0x137   : > { %v1065_v12 = vpop.f32.mrf.mxu0  ;;  %v981_v0 = vadd.f32 %v7679_v11, %v860_v33  ;;  %v865_v7 = vadd.f32 %v9191_v8, %v700_v50 }
 0x138   : > { %v941_v13 = vpop.f32.mrf.mxu1 }
 0x139   : > { %v7696_v14 = vpop.f32.mrf.mxu0  ;;  %v980_v45 = vadd.f32 %v941_v13, %v859_v36  ;;  %v1105_v42 = vadd.f32 %v7693_v10, %v981_v0 }
 0x13a   : > { %v7682_v15 = vpop.f32.mrf.mxu1 }
 0x13b   : > { %v1075_v16 = vpop.f32.mrf.mxu0  ;;  %v983_v51 = vadd.f32 %v7682_v15, %v862_v44  ;;  %v1104_v62 = vadd.f32 %v1065_v12, %v980_v45 }
 0x13c   : > { %v951_v18 = vpop.f32.mrf.mxu1 }
 0x13d   : > { %v7699_v19 = vpop.f32.mrf.mxu0  ;;  %v982_v17 = vadd.f32 %v951_v18, %v861_v58  ;;  %v1107_v11 = vadd.f32 %v7696_v14, %v983_v51 }
 0x13e   : > { %v7685_v20 = vpop.f32.mrf.mxu1 }
 0x13f   : > { %v1085_v21 = vpop.f32.mrf.mxu0  ;;  %v985_v3 = vadd.f32 %v7685_v20, %v864_v41  ;;  %v1106_v15 = vadd.f32 %v1075_v16, %v982_v17 }
 0x140   : > { %v961_v22 = vpop.f32.mrf.mxu1 }
 0x141   : > { %v9193_v23 = vpop.f32.mrf.mxu0  ;;  %v984_v63 = vadd.f32 %v961_v22, %v863_v1  ;;  %v1109_v12 = vadd.f32 %v7699_v19, %v985_v3 }
 0x142   : > { %v7688_v24 = vpop.f32.mrf.mxu1 }
 0x143   : > { %v9195_v25 = vpop.f32.mrf.mxu0  ;;  %v1108_v9 = vadd.f32 %v1085_v21, %v984_v63 }
 0x144   : > { %v971_v27 = vpop.f32.mrf.mxu1 }
 0x145   : > { %v7721_v26 = vpop.f32.mrf.mxu0  ;;  %v986_v14 = vadd.f32 %v971_v27, %v865_v7 }
 0x146   : > { %v7707_v28 = vpop.f32.mrf.mxu1 }
 0x147   : > { %v1309_v31 = vpop.f32.mrf.mxu0  ;;  %v1228_v59 = vadd.f32 %v7707_v28, %v1105_v42  ;;  %v987_v42 = vadd.f32 %v7688_v24, %v866_v6  ;;  %v9199_v28 = vld [vmem:[#allocation6] ss:$0 sm:$0xff]  ;;  %v1110_v27 = vadd.f32 %v9195_v25, %v986_v14 }
 0x148   : > { %v1188_v32 = vpop.f32.mrf.mxu1 }
 0x149   : > { %v7724_v34 = vpop.f32.mrf.mxu0  ;;  %v1227_v13 = vadd.f32 %v1188_v32, %v1104_v62  ;;  %v1349_v30 = vadd.f32 %v7721_v26, %v1228_v59  ;;  %v1111_v33 = vadd.f32 %v9193_v23, %v987_v42 }
 0x14a   : > { %v7710_v35 = vpop.f32.mrf.mxu1 }
 0x14b   : > { %v1319_v38 = vpop.f32.mrf.mxu0  ;;  %v1230_v2 = vadd.f32 %v7710_v35, %v1107_v11  ;;  %v1348_v43 = vadd.f32 %v1309_v31, %v1227_v13 }
 0x14c   : > { %v1198_v40 = vpop.f32.mrf.mxu1 }
 0x14d   : > { %v7727_v46 = vpop.f32.mrf.mxu0  ;;  %v1229_v5 = vadd.f32 %v1198_v40, %v1106_v15  ;;  %v1351_v22 = vadd.f32 %v7724_v34, %v1230_v2 }
 0x14e   : > { %v7713_v49 = vpop.f32.mrf.mxu1 }
 0x14f   : > { %v1329_v60 = vpop.f32.mrf.mxu0  ;;  %v1232_v20 = vadd.f32 %v7713_v49, %v1109_v12  ;;  %v1350_v24 = vadd.f32 %v1319_v38, %v1229_v5 }
 0x150   : > { %v1208_v53 = vpop.f32.mrf.mxu1 }
 0x151   : > { %v7730_v55 = vpop.f32.mrf.mxu0  ;;  %v1231_v8 = vadd.f32 %v1208_v53, %v1108_v9  ;;  %v1353_v36 = vadd.f32 %v7727_v46, %v1232_v20  ;;  %v6712_v9 = vld [vmem:[%s10740_s3 + $0x70] sm:$0xff] }
 0x152   : > { %v7716_v61 = vpop.f32.mrf.mxu1 }
 0x153   : > { %v1339_v52 = vpop.f32.mrf.mxu0  ;;  %v1234_v37 = vadd.f32 %v7716_v61, %v1111_v33  ;;  %v1352_v38 = vadd.f32 %v1329_v60, %v1231_v8  ;;  %v6700_v33 = vld [vmem:[%s10740_s3 + $0x50] sm:$0xff] }
 0x154   : > { %v1218_v10 = vpop.f32.mrf.mxu1 }
 0x155   : > { %v7749_v54 = vpop.f32.mrf.mxu0  ;;  %v1233_v45 = vadd.f32 %v1218_v10, %v1110_v27  ;;  %v1355_v53 = vadd.f32 %v7730_v55, %v1234_v37  ;;  %v6699_v27 = vld [vmem:[%s10740_s3 + $0x48] sm:$0xff] }
 0x156   : > { %v7735_v18 = vpop.f32.mrf.mxu1 }
 0x157   : > { %v1473_v56 = vadd.f32 %v7735_v18, %v1349_v30  ;;  %v1556_v41 = vpop.f32.mrf.mxu0  ;;  %v1354_v50 = vadd.f32 %v1339_v52, %v1233_v45 }
 0x158   : > { %v1433_v4 = vpop.f32.mrf.mxu1 }
 0x159   : > { %v1596_v16 = vadd.f32 %v7749_v54, %v1473_v56  ;;  %v1472_v26 = vadd.f32 %v1433_v4, %v1348_v43  ;;  %v7752_v32 = vpop.f32.mrf.mxu0 }
 0x15a   : > { %v7738_v19 = vpop.f32.mrf.mxu1 }
 0x15b   : > { %v9203_v31 = vadd.f32 %v9199_v28, %v1596_v16  ;;  %v1595_v29 = vadd.f32 %v1556_v41, %v1472_v26  ;;  %v1475_v35 = vadd.f32 %v7738_v19, %v1351_v22  ;;  %v1566_v21 = vpop.f32.mrf.mxu0 }
 0x15c   : > { %v1443_v0 = vpop.f32.mrf.mxu1 }
 0x15d   : > { %10775 = vst [vmem:[#allocation16_spill] sm:$0xff] %v9203_v31  ;;  %v1619_v34 = vmax.f32 %v9203_v31, 0.0  ;;  %v9208_v39 = vadd.f32 %v9199_v28, %v1595_v29  ;;  %v1598_v23 = vadd.f32 %v7752_v32, %v1475_v35  ;;  %v1474_v40 = vadd.f32 %v1443_v0, %v1350_v24  ;;  %v7755_v44 = vpop.f32.mrf.mxu0  ;;  %v6711_v0 = vld [vmem:[%s10740_s3 + $0x68] sm:$0xff] }
 0x15e   : > { %v7741_v49 = vpop.f32.mrf.mxu1 }
 0x15f   : > { %10776 = vst [vmem:[#allocation17_spill] sm:$0xff] %v9208_v39  ;;  %1628 = vst.msk [vmem:[#allocation3 + $0x21] sm:$0xff] %vm356_vm5, %v1619_v34  ;;  %v1618_v58 = vmax.f32 %v9208_v39, 0.0  ;;  %v9213_v25 = vadd.f32 %v9199_v28, %v1598_v23  ;;  %v1597_v46 = vadd.f32 %v1566_v21, %v1474_v40  ;;  %v1477_v51 = vadd.f32 %v7741_v49, %v1353_v36  ;;  %v1576_v57 = vpop.f32.mrf.mxu0 }
 0x160   : > { %v1453_v62 = vpop.f32.mrf.mxu1 }
 0x161   : > { %10777 = vst [vmem:[#allocation18_spill] sm:$0xff] %v9213_v25  ;;  %1627 = vst.msk [vmem:[#allocation3 + $0x11] sm:$0xff] %vm356_vm5, %v1618_v58  ;;  %v1621_v17 = vmax.f32 %v9213_v25, 0.0  ;;  %v9218_v60 = vadd.f32 %v9199_v28, %v1597_v46  ;;  %v1600_v59 = vadd.f32 %v7755_v44, %v1477_v51  ;;  %v1476_v1 = vadd.f32 %v1453_v62, %v1352_v38  ;;  %v7758_v61 = vpop.f32.mrf.mxu0  ;;  %v6698_v58 = vld [vmem:[%s10740_s3 + $0x40] sm:$0xff]  ;;  %v10783_v46 = vld [vmem:[#allocation14_spill] sm:$0xff] }
 0x162   : > { %v7744_v3 = vpop.f32.mrf.mxu1  ;;  %v10751_v51 = vrot.slane %v10783_v46, 2 }
 0x163   : > { %10778 = vst [vmem:[#allocation19_spill] sm:$0xff] %v9218_v60  ;;  %1630 = vst.msk [vmem:[#allocation3 + $0x41] sm:$0xff] %vm356_vm5, %v1621_v17  ;;  %v1620_v11 = vmax.f32 %v9218_v60, 0.0  ;;  %v9223_v13 = vadd.f32 %v9199_v28, %v1600_v59  ;;  %v1599_v55 = vadd.f32 %v1576_v57, %v1476_v1  ;;  %v1479_v6 = vadd.f32 %v7744_v3, %v1355_v53  ;;  %v1586_v2 = vpop.f32.mrf.mxu0  ;;  %v6710_v57 = vld [vmem:[%s10740_s3 + $0x60] sm:$0xff] }
 0x164   : > { %v1463_v63 = vpop.f32.mrf.mxu1  ;;  %v10784_v53 = vld [vmem:[#allocation15_spill] sm:$0xff] }
 0x165   : > { %10779 = vst [vmem:[#allocation20_spill] sm:$0xff] %v9223_v13  ;;  %1629 = vst.msk [vmem:[#allocation3 + $0x31] sm:$0xff] %vm356_vm5, %v1620_v11  ;;  %v1623_v10 = vmax.f32 %v9223_v13, 0.0  ;;  %v9228_v15 = vadd.f32 %v9199_v28, %v1599_v55  ;;  %v1602_v52 = vadd.f32 %v7758_v61, %v1479_v6  ;;  %v1478_v30 = vadd.f32 %v1463_v63, %v1354_v50  ;;  %v6725_v11 = vld [vmem:[%s10740_s3 + $0x98] sm:$0xff] }
 0x166   : > { %v9230_v54 = vld [vmem:[#allocation3 + $0x20] sm:$0xff]  ;;  %v9232_v7 = vld [vmem:[#allocation3 + $0x28] sm:$0x3]  ;;  %v1947_v62 = vrot.slane %v10784_v53, 2  ;;  %v6737_v6 = vld [vmem:[%s10740_s3 + $0xb8] sm:$0xff] }
 0x167   : > { %10780 = vst [vmem:[#allocation21_spill] sm:$0xff] %v9228_v15  ;;  %1632 = vst.msk [vmem:[#allocation3 + $0x61] sm:$0xff] %vm356_vm5, %v1623_v10  ;;  %v1622_v12 = vmax.f32 %v9228_v15, 0.0  ;;  %v9237_v42 = vadd.f32 %v9199_v28, %v1602_v52  ;;  %v1601_v18 = vadd.f32 %v1586_v2, %v1478_v30  ;;  %v1681_v56 = vrot.slane %v9230_v54, 1  ;;  %v6746_v53 = vld [vmem:[%s10740_s3 + $0xc0] sm:$0xff] }
 0x168   : > { %v9239_v43 = vld [vmem:[#allocation3 + $0x10] sm:$0xff]  ;;  %v9241_v5 = vld [vmem:[#allocation3 + $0x18] sm:$0x3]  ;;  %v1682_v41 = vrot.slane %v9232_v7, 1  ;;  %v1948_v55 = vsel %vm708_vm4, %v10751_v51, %v1947_v62  ;;  %v1952_v30 = vrot.slane %v9230_v54, 2  ;;  %v1953_v2 = vrot.slane %v9232_v7, 2 }
 0x169   : > { %10781 = vst [vmem:[#allocation22_spill] sm:$0xff] %v9237_v42  ;;  %1631 = vst.msk [vmem:[#allocation3 + $0x51] sm:$0xff] %vm356_vm5, %v1622_v12  ;;  %v1625_v14 = vmax.f32 %v9237_v42, 0.0  ;;  %v9251_v20 = vadd.f32 %v9199_v28, %v1601_v18  ;;  %7788 = vmatmul.mubr.msk.f32.vlgmr.msra.gmra.mxu0 %vm356_vm5, %v9239_v43  ;;  %v1678_v4 = vrot.slane %v9239_v43, 1  ;;  %v1679_v22 = vrot.slane %v9241_v5, 1  ;;  %v6736_v12 = vld [vmem:[%s10740_s3 + $0xb0] sm:$0xff] }
 0x16a   : > { %7790 = vmatprep.mubr.msk.f32.mxu0 %vm356_vm5, %v9230_v54  ;;  %v9259_v16 = vld [vmem:[#allocation3 + $0x40] sm:$0xff]  ;;  %v9261_v26 = vld [vmem:[#allocation3 + $0x48] sm:$0x3]  ;;  %7820 = vmatpush3.msra.mxu0 %v9186_v48  ;;  %v9275_v8 = vsel %vm432_vm3, %v1681_v56, %v1682_v41  ;;  %v1949_v10 = vrot.slane %v9239_v43, 2  ;;  %v1950_v52 = vrot.slane %v9241_v5, 2  ;;  %v9387_v56 = vsel %vm708_vm4, %v1952_v30, %v1953_v2  ;;  %v9521_v30 = vld [vmem:[#allocation3 + $0x90] sm:$0xff] }
 0x16b   : > { %10782 = vst [vmem:[#allocation23_spill] sm:$0xff] %v9251_v20  ;;  %1634 = vst.msk [vmem:[#allocation3 + $0x81] sm:$0xff] %vm356_vm5, %v1625_v14  ;;  %v1624_v28 = vmax.f32 %v9251_v20, 0.0  ;;  %v9267_v32 = vsel %vm432_vm3, %v1678_v4, %v1679_v22  ;;  %7821 = vmatprep.subr.mxu0 %v6712_v9  ;;  %v1687_v24 = vrot.slane %v9259_v16, 1  ;;  %v1688_v29 = vrot.slane %v9261_v26, 1  ;;  %v6723_v14 = vld [vmem:[%s10740_s3 + $0x88] sm:$0xff] }
 0x16c   : > { %7768 = vmatmul.mubr.msk.f32.vlgmr.msra.gmra.mxu1 %vm356_vm5, %v9267_v32  ;;  %v9277_v19 = vld [vmem:[#allocation3 + $0x30] sm:$0xff]  ;;  %v9279_v48 = vld [vmem:[#allocation3 + $0x38] sm:$0x3]  ;;  %7822 = vmatpush3.msra.mxu0 %v6712_v9  ;;  %v1951_v18 = vsel %vm708_vm4, %v1949_v10, %v1950_v52  ;;  %v1958_v41 = vrot.slane %v9259_v16, 2  ;;  %v1959_v9 = vrot.slane %v9261_v26, 2  ;;  %10785 = vst [vmem:[#allocation15_spill] sm:$0xff] %v9521_v30 }
 0x16d   : > { %1633 = vst.msk [vmem:[#allocation3 + $0x71] sm:$0xff] %vm356_vm5, %v1624_v28  ;;  %7800 = vmatpush3.msra.mxu1 %v9180_v47  ;;  %7770 = vmatprep.mubr.msk.f32.mxu1 %vm356_vm5, %v9275_v8  ;;  %v1684_v35 = vrot.slane %v9277_v19, 1  ;;  %v1685_v21 = vrot.slane %v9279_v48, 1  ;;  %v9309_v34 = vsel %vm432_vm3, %v1687_v24, %v1688_v29  ;;  %v1955_v7 = vrot.slane %v9277_v19, 2  ;;  %v6722_v28 = vld [vmem:[%s10740_s3 + $0x80] sm:$0xff]  ;;  %v6735_v29 = vld [vmem:[%s10740_s3 + $0xa8] sm:$0xff] }
 0x16e   : > { %7791 = vmatmul.mubr.msk.f32.gmra.mxu0 %vm356_vm5, %v9277_v19  ;;  %7801 = vmatprep.subr.mxu1 %v6700_v33  ;;  %v9294_v36 = vld [vmem:[#allocation3 + $0x60] sm:$0xff]  ;;  %v9296_v37 = vld [vmem:[#allocation3 + $0x68] sm:$0x3]  ;;  %v1956_v5 = vrot.slane %v9279_v48, 2  ;;  %v6773_v10 = vld [vmem:[%s10740_s3 + $0x118] sm:$0xff] }
 0x16f   : > { %7793 = vmatprep.mubr.msk.f32.mxu0 %vm356_vm5, %v9259_v16  ;;  %v9301_v47 = vsel %vm432_vm3, %v1684_v35, %v1685_v21  ;;  %7802 = vmatpush3.msra.mxu1 %v6700_v33  ;;  %v1693_v44 = vrot.slane %v9294_v36, 1  ;;  %v1694_v38 = vrot.slane %v9296_v37, 1  ;;  %v9411_v33 = vsel %vm708_vm4, %v1958_v41, %v1959_v9  ;;  %v6734_v21 = vld [vmem:[%s10740_s3 + $0xa0] sm:$0xff]  ;;  %v1654_v2 = vld [vmem:[#allocation3 + $0x98] sm:$0x3] }
 0x170   : > { %7771 = vmatmul.mubr.msk.f32.gmra.mxu1 %vm356_vm5, %v9301_v47  ;;  %v9311_v23 = vld [vmem:[#allocation3 + $0x50] sm:$0xff]  ;;  %7803 = vmatprep.subr.mxu1 %v6699_v27  ;;  %v9313_v40 = vld [vmem:[#allocation3 + $0x58] sm:$0x3]  ;;  %v9401_v4 = vsel %vm708_vm4, %v1955_v7, %v1956_v5  ;;  %v1964_v48 = vrot.slane %v9294_v36, 2  ;;  %v1965_v24 = vrot.slane %v9296_v37, 2 }
 0x171   : > { %7773 = vmatprep.mubr.msk.f32.mxu1 %vm356_vm5, %v9309_v34  ;;  %v1690_v45 = vrot.slane %v9311_v23, 1  ;;  %v1691_v49 = vrot.slane %v9313_v40, 1  ;;  %7804 = vmatpush3.msra.mxu1 %v6699_v27  ;;  %v9339_v59 = vsel %vm432_vm3, %v1693_v44, %v1694_v38  ;;  %v1961_v22 = vrot.slane %v9311_v23, 2  ;;  %v6749_v44 = vld [vmem:[%s10740_s3 + $0xd8] sm:$0xff] }
 0x172   : > { %7794 = vmatmul.mubr.msk.f32.gmra.mxu0 %vm356_vm5, %v9311_v23  ;;  %7823 = vmatprep.subr.mxu0 %v6711_v0  ;;  %v1962_v26 = vrot.slane %v9313_v40, 2  ;;  %v9439_v40 = vld [vmem:[#allocation3 + $0x80] sm:$0xff] }
 0x173   : > { %7796 = vmatprep.mubr.msk.f32.mxu0 %vm356_vm5, %v9294_v36  ;;  %v9334_v17 = vsel %vm432_vm3, %v1690_v45, %v1691_v49  ;;  %7824 = vmatpush3.msra.mxu0 %v6711_v0  ;;  %v9435_v0 = vsel %vm708_vm4, %v1964_v48, %v1965_v24  ;;  %v6761_v45 = vld [vmem:[%s10740_s3 + $0xf8] sm:$0xff]  ;;  %v6760_v49 = vld [vmem:[%s10740_s3 + $0xf0] sm:$0xff]  ;;  %v2349_v62 = vrot.slane %v9439_v40, 2 }
 0x174   : > { %7774 = vmatmul.mubr.msk.f32.gmra.mxu1 %vm356_vm5, %v9334_v17  ;;  %v9341_v1 = vld [vmem:[#allocation3 + $0x70] sm:$0xff]  ;;  %7805 = vmatprep.subr.mxu1 %v6698_v58  ;;  %v9343_v50 = vld [vmem:[#allocation3 + $0x78] sm:$0x3]  ;;  %v9425_v35 = vsel %vm708_vm4, %v1961_v22, %v1962_v26 }
 0x175   : > { %7776 = vmatprep.mubr.msk.f32.mxu1 %vm356_vm5, %v9339_v59  ;;  %7825 = vmatprep.subr.mxu0 %v6710_v57  ;;  %v1696_v3 = vrot.slane %v9341_v1, 1  ;;  %v1697_v61 = vrot.slane %v9343_v50, 1  ;;  %v1967_v27 = vrot.slane %v9341_v1, 2  ;;  %v1968_v37 = vrot.slane %v9343_v50, 2 }
 0x176   : > { %7797 = vmatmul.mubr.msk.f32.gmra.mxu0 %vm356_vm5, %v9341_v1  ;;  %7806 = vmatpush3.msra.mxu1 %v6698_v58  ;;  %v6748_v58 = vld [vmem:[%s10740_s3 + $0xd0] sm:$0xff] }
 0x177   : > { %7827 = vmatprep.mubr.msk.f32.mxu0 %vm356_vm5, %v9239_v43  ;;  %v9363_v63 = vsel %vm432_vm3, %v1696_v3, %v1697_v61  ;;  %7826 = vmatpush3.msra.mxu0 %v6710_v57  ;;  %v6724_v43 = vld [vmem:[%s10740_s3 + $0x90] sm:$0xff]  ;;  %v9448_v38 = vsel %vm708_vm4, %v1967_v27, %v1968_v37  ;;  %v1652_v57 = vld [vmem:[#allocation3 + $0x88] sm:$0x3]  ;;  %v6758_v61 = vld [vmem:[%s10740_s3 + $0xe0] sm:$0xff] }
 0x178   : > { %7777 = vmatmul.mubr.msk.f32.gmra.mxu1 %vm356_vm5, %v9363_v63  ;;  %7839 = vmatprep.subr.mxu1 %v6725_v11  ;;  %v2350_v50 = vrot.slane %v1652_v57, 2  ;;  %v6759_v3 = vld [vmem:[%s10740_s3 + $0xe8] sm:$0xff] }
 0x179   : > { %7807 = vmatprep.mubr.msk.f32.mxu1 %vm356_vm5, %v1948_v55  ;;  %7859 = vmatprep.subr.mxu0 %v6737_v6  ;;  %v2227_v55 = vrot.slane %v1652_v57, 1 }
 0x17a   : > { %7828 = vmatmul.mubr.msk.f32.vlgmr.msra.gmra.mxu0 %vm356_vm5, %v9230_v54 }
 0x17b   : > { %7830 = vmatprep.mubr.msk.f32.mxu0 %vm356_vm5, %v9277_v19  ;;  %7860 = vmatpush3.msra.mxu0 %v6737_v6  ;;  %v2351_v6 = vsel %vm708_vm4, %v2349_v62, %v2350_v50 }
 0x17c   : > { %7808 = vmatmul.mubr.msk.f32.vlgmr.msra.gmra.mxu1 %vm356_vm5, %v1951_v18  ;;  %7861 = vmatprep.subr.mxu0 %v6736_v12 }
 0x17d   : > { %7840 = vmatpush3.msra.mxu1 %v6725_v11  ;;  %7810 = vmatprep.mubr.msk.f32.mxu1 %vm356_vm5, %v9387_v56  ;;  %v2226_v11 = vrot.slane %v9439_v40, 1 }
 0x17e   : > { %7831 = vmatmul.mubr.msk.f32.gmra.mxu0 %vm356_vm5, %v9259_v16  ;;  %7841 = vmatprep.subr.mxu1 %v6724_v43 }
 0x17f   : > { %7833 = vmatprep.mubr.msk.f32.mxu0 %vm356_vm5, %v9311_v23  ;;  %7842 = vmatpush3.msra.mxu1 %v6724_v43  ;;  %v2228_v52 = vsel %vm432_vm3, %v2226_v11, %v2227_v55 }
 0x180   : > { %7811 = vmatmul.mubr.msk.f32.gmra.mxu1 %vm356_vm5, %v9401_v4  ;;  %7843 = vmatprep.subr.mxu1 %v6723_v14 }
 0x181   : > { %7813 = vmatprep.mubr.msk.f32.mxu1 %vm356_vm5, %v9411_v33  ;;  %7844 = vmatpush3.msra.mxu1 %v6723_v14 }
 0x182   : > { %7834 = vmatmul.mubr.msk.f32.gmra.mxu0 %vm356_vm5, %v9294_v36  ;;  %7845 = vmatprep.subr.mxu1 %v6722_v28 }
 0x183   : > { %7836 = vmatprep.mubr.msk.f32.mxu0 %vm356_vm5, %v9341_v1  ;;  %7862 = vmatpush3.msra.mxu0 %v6736_v12 }
 0x184   : > { %7814 = vmatmul.mubr.msk.f32.gmra.mxu1 %vm356_vm5, %v9425_v35  ;;  %7863 = vmatprep.subr.mxu0 %v6735_v29 }
 0x185   : > { %7816 = vmatprep.mubr.msk.f32.mxu1 %vm356_vm5, %v9435_v0  ;;  %7864 = vmatpush3.msra.mxu0 %v6735_v29 }
 0x186   : > { %7837 = vmatmul.mubr.msk.f32.gmra.mxu0 %vm356_vm5, %v9439_v40  ;;  %7865 = vmatprep.subr.mxu0 %v6734_v21 }
 0x187   : > { %7867 = vmatprep.mubr.msk.f32.mxu0 %vm356_vm5, %v1951_v18  ;;  %7846 = vmatpush3.msra.mxu1 %v6722_v28 }
 0x188   : > { %7817 = vmatmul.mubr.msk.f32.gmra.mxu1 %vm356_vm5, %v9448_v38  ;;  %7866 = vmatpush3.msra.mxu0 %v6734_v21 }
 0x189   : > { %7847 = vmatprep.mubr.msk.f32.mxu1 %vm356_vm5, %v9267_v32  ;;  %7879 = vmatprep.subr.mxu1 %v6749_v44  ;;  %v6747_v32 = vld [vmem:[%s10740_s3 + $0xc8] sm:$0xff] }
 0x18a   : > { %7868 = vmatmul.mubr.msk.f32.vlgmr.msra.gmra.mxu0 %vm356_vm5, %v9387_v56  ;;  %7899 = vmatprep.subr.mxu0 %v6761_v45 }
 0x18b   : > { %7870 = vmatprep.mubr.msk.f32.mxu0 %vm356_vm5, %v9401_v4  ;;  %7900 = vmatpush3.msra.mxu0 %v6761_v45 }
 0x18c   : > { %7848 = vmatmul.mubr.msk.f32.vlgmr.msra.gmra.mxu1 %vm356_vm5, %v9275_v8  ;;  %7901 = vmatprep.subr.mxu0 %v6760_v49 }
 0x18d   : > { %7880 = vmatpush3.msra.mxu1 %v6749_v44  ;;  %7850 = vmatprep.mubr.msk.f32.mxu1 %vm356_vm5, %v9301_v47 }
 0x18e   : > { %7871 = vmatmul.mubr.msk.f32.gmra.mxu0 %vm356_vm5, %v9411_v33  ;;  %7881 = vmatprep.subr.mxu1 %v6748_v58 }
 0x18f   : > { %7873 = vmatprep.mubr.msk.f32.mxu0 %vm356_vm5, %v9425_v35  ;;  %7882 = vmatpush3.msra.mxu1 %v6748_v58 }
 0x190   : > { %7851 = vmatmul.mubr.msk.f32.gmra.mxu1 %vm356_vm5, %v9309_v34  ;;  %7883 = vmatprep.subr.mxu1 %v6747_v32 }
 0x191   : > { %7853 = vmatprep.mubr.msk.f32.mxu1 %vm356_vm5, %v9334_v17  ;;  %7884 = vmatpush3.msra.mxu1 %v6747_v32 }
 0x192   : > { %7874 = vmatmul.mubr.msk.f32.gmra.mxu0 %vm356_vm5, %v9435_v0  ;;  %7885 = vmatprep.subr.mxu1 %v6746_v53 }
 0x193   : > { %7876 = vmatprep.mubr.msk.f32.mxu0 %vm356_vm5, %v9448_v38  ;;  %7902 = vmatpush3.msra.mxu0 %v6760_v49 }
 0x194   : > { %7854 = vmatmul.mubr.msk.f32.gmra.mxu1 %vm356_vm5, %v9339_v59  ;;  %7903 = vmatprep.subr.mxu0 %v6759_v3 }
 0x195   : > { %7856 = vmatprep.mubr.msk.f32.mxu1 %vm356_vm5, %v9363_v63  ;;  %7904 = vmatpush3.msra.mxu0 %v6759_v3 }
 0x196   : > { %7877 = vmatmul.mubr.msk.f32.gmra.mxu0 %vm356_vm5, %v2351_v6  ;;  %7905 = vmatprep.subr.mxu0 %v6758_v61 }
 0x197   : > { %7907 = vmatprep.mubr.msk.f32.mxu0 %vm356_vm5, %v9275_v8  ;;  %7886 = vmatpush3.msra.mxu1 %v6746_v53  ;;  %v6772_v8 = vld [vmem:[%s10740_s3 + $0x110] sm:$0xff] }
 0x198   : > { %7857 = vmatmul.mubr.msk.f32.gmra.mxu1 %vm356_vm5, %v2228_v52  ;;  %7906 = vmatpush3.msra.mxu0 %v6758_v61 }
 0x199   : > { %7887 = vmatprep.mubr.msk.f32.mxu1 %vm356_vm5, %v9230_v54  ;;  %7919 = vmatprep.subr.mxu1 %v6773_v10  ;;  %v6771_v54 = vld [vmem:[%s10740_s3 + $0x108] sm:$0xff] }
 0x19a   : > { %7908 = vmatmul.mubr.msk.f32.vlgmr.msra.gmra.mxu0 %vm356_vm5, %v9301_v47  ;;  %v10750_v47 = vrot.slane %v9521_v30, 1 }
 0x19b   : > { %7910 = vmatprep.mubr.msk.f32.mxu0 %vm356_vm5, %v9309_v34  ;;  %v2595_v34 = vrot.slane %v1654_v2, 1 }
 0x19c   : > { %7888 = vmatmul.mubr.msk.f32.vlgmr.msra.gmra.mxu1 %vm356_vm5, %v9277_v19  ;;  %v6770_v19 = vld [vmem:[%s10740_s3 + $0x100] sm:$0xff] }
 0x19d   : > { %7920 = vmatpush3.msra.mxu1 %v6773_v10  ;;  %7890 = vmatprep.mubr.msk.f32.mxu1 %vm356_vm5, %v9259_v16  ;;  %v2596_v16 = vsel %vm432_vm3, %v10750_v47, %v2595_v34 }
 0x19e   : > { %7911 = vmatmul.mubr.msk.f32.gmra.mxu0 %vm356_vm5, %v9334_v17  ;;  %7921 = vmatprep.subr.mxu1 %v6772_v8 }
 0x19f   : > { %7913 = vmatprep.mubr.msk.f32.mxu0 %vm356_vm5, %v9339_v59  ;;  %7922 = vmatpush3.msra.mxu1 %v6772_v8  ;;  %v2848_v59 = vld [vmem:[#allocation8] sm:$0xff] }
 0x1a0   : > { %7891 = vmatmul.mubr.msk.f32.gmra.mxu1 %vm356_vm5, %v9311_v23  ;;  %7923 = vmatprep.subr.mxu1 %v6771_v54  ;;  %v2718_v23 = vrot.slane %v1654_v2, 2 }
 0x1a1   : > { %7893 = vmatprep.mubr.msk.f32.mxu1 %vm356_vm5, %v9294_v36  ;;  %7924 = vmatpush3.msra.mxu1 %v6771_v54  ;;  %v10749_v36 = vrot.slane %v9521_v30, 2 }
 0x1a2   : > { %7914 = vmatmul.mubr.msk.f32.gmra.mxu0 %vm356_vm5, %v9363_v63  ;;  %7925 = vmatprep.subr.mxu1 %v6770_v19 }
 0x1a3   : > { %7916 = vmatprep.mubr.msk.f32.mxu0 %vm356_vm5, %v2228_v52  ;;  %7926 = vmatpush3.msra.mxu1 %v6770_v19  ;;  %v2719_v17 = vsel %vm708_vm4, %v10749_v36, %v2718_v23 }
 0x1a4   : > { %7894 = vmatmul.mubr.msk.f32.gmra.mxu1 %vm356_vm5, %v9341_v1  ;;  %7939 = vmatprep.subr.mxu0 %v2848_v59 }
 0x1a5   : > { %7896 = vmatprep.mubr.msk.f32.mxu1 %vm356_vm5, %v9439_v40  ;;  %7940 = vmatpush3.msra.mxu0 %v2848_v59 }
 0x1a6   : > { %7917 = vmatmul.mubr.msk.f32.gmra.mxu0 %vm356_vm5, %v2596_v16 }
 0x1a8   : > { %7897 = vmatmul.mubr.msk.f32.gmra.mxu1 %vm356_vm5, %v9521_v30 }
 0x1a9   : > { %7927 = vmatprep.mubr.msk.f32.mxu1 %vm356_vm5, %v9387_v56 }
 0x1ac   : > { %7928 = vmatmul.mubr.msk.f32.vlgmr.msra.gmra.mxu1 %vm356_vm5, %v9401_v4 }
 0x1ad   : > { %7930 = vmatprep.mubr.msk.f32.mxu1 %vm356_vm5, %v9411_v33 }
 0x1b0   : > { %7931 = vmatmul.mubr.msk.f32.gmra.mxu1 %vm356_vm5, %v9425_v35 }
 0x1b1   : > { %7933 = vmatprep.mubr.msk.f32.mxu1 %vm356_vm5, %v9435_v0 }
 0x1b4   : > { %7934 = vmatmul.mubr.msk.f32.gmra.mxu1 %vm356_vm5, %v9448_v38 }
 0x1b5   : > { %7936 = vmatprep.mubr.msk.f32.mxu1 %vm356_vm5, %v2351_v6 }
 0x1b8   : > { %7937 = vmatmul.mubr.msk.f32.gmra.mxu1 %vm356_vm5, %v2719_v17 }
 0x229   : > { %v7789_v1 = vpop.f32.mrf.mxu0 }
 0x22b   : > { %v1907_v63 = vpop.f32.mrf.mxu0 }
 0x22c   : > { %v7769_v12 = vpop.f32.mrf.mxu1 }
 0x22d   : > { %v1913_v16 = vadd.f32 %v7789_v1, %v7769_v12 }
 0x22e   : > { %v7792_v18 = vpop.f32.mrf.mxu0  ;;  %v1786_v43 = vpop.f32.mrf.mxu1 }
 0x22f   : > { %v1908_v17 = vadd.f32 %v1907_v63, %v1786_v43 }
 0x230   : > { %v1917_v7 = vpop.f32.mrf.mxu0  ;;  %v7772_v5 = vpop.f32.mrf.mxu1 }
 0x231   : > { %v1923_v30 = vadd.f32 %v7792_v18, %v7772_v5 }
 0x232   : > { %v7795_v56 = vpop.f32.mrf.mxu0  ;;  %v1796_v41 = vpop.f32.mrf.mxu1 }
 0x233   : > { %v1918_v42 = vadd.f32 %v1917_v7, %v1796_v41 }
 0x234   : > { %v1927_v9 = vpop.f32.mrf.mxu0  ;;  %v7775_v14 = vpop.f32.mrf.mxu1 }
 0x235   : > { %v1933_v46 = vadd.f32 %v7795_v56, %v7775_v14 }
 0x236   : > { %v9571_v4 = vpop.f32.mrf.mxu0  ;;  %v1806_v22 = vpop.f32.mrf.mxu1 }
 0x238   : > { %v9573_v26 = vpop.f32.mrf.mxu0  ;;  %v7778_v28 = vpop.f32.mrf.mxu1 }
 0x239   : > { %v1943_v18 = vadd.f32 %v9571_v4, %v7778_v28 }
 0x23a   : > { %v7829_v33 = vpop.f32.mrf.mxu0  ;;  %v1816_v48 = vpop.f32.mrf.mxu1 }
 0x23b   : > { %v1938_v41 = vadd.f32 %v9573_v26, %v1816_v48 }
 0x23c   : > { %v2178_v24 = vpop.f32.mrf.mxu0  ;;  %v7809_v29 = vpop.f32.mrf.mxu1 }
 0x23d   : > { %v2097_v59 = vadd.f32 %v7809_v29, %v1913_v16 }
 0x23e   : > { %v7832_v35 = vpop.f32.mrf.mxu0  ;;  %v2057_v21 = vpop.f32.mrf.mxu1 }
 0x23f   : > { %v2096_v51 = vadd.f32 %v2057_v21, %v1908_v17  ;;  %v2218_v13 = vadd.f32 %v7829_v33, %v2097_v59 }
 0x240   : > { %v2188_v27 = vpop.f32.mrf.mxu0  ;;  %v7812_v37 = vpop.f32.mrf.mxu1 }
 0x241   : > { %v2099_v15 = vadd.f32 %v7812_v37, %v1923_v30  ;;  %v2217_v31 = vadd.f32 %v2178_v24, %v2096_v51 }
 0x242   : > { %v7835_v0 = vpop.f32.mrf.mxu0  ;;  %v2067_v40 = vpop.f32.mrf.mxu1 }
 0x243   : > { %v2098_v39 = vadd.f32 %v2067_v40, %v1918_v42  ;;  %v2220_v63 = vadd.f32 %v7832_v35, %v2099_v15 }
 0x244   : > { %v2198_v44 = vpop.f32.mrf.mxu0  ;;  %v7815_v38 = vpop.f32.mrf.mxu1 }
 0x245   : > { %v2101_v12 = vadd.f32 %v7815_v38, %v1933_v46  ;;  %v2219_v21 = vadd.f32 %v2188_v27, %v2098_v39 }
 0x246   : > { %v9575_v45 = vpop.f32.mrf.mxu0  ;;  %v2077_v49 = vpop.f32.mrf.mxu1 }
 0x248   : > { %v9577_v58 = vpop.f32.mrf.mxu0  ;;  %v7818_v32 = vpop.f32.mrf.mxu1 }
 0x249   : > { %v2103_v56 = vadd.f32 %v7818_v32, %v1943_v18 }
 0x24a   : > { %v7869_v57 = vpop.f32.mrf.mxu0  ;;  %v2087_v53 = vpop.f32.mrf.mxu1 }
 0x24b   : > { %v2102_v46 = vadd.f32 %v2087_v53, %v1938_v41  ;;  %v2224_v28 = vadd.f32 %v9575_v45, %v2103_v56 }
 0x24c   : > { %v2425_v62 = vpop.f32.mrf.mxu0  ;;  %v7849_v50 = vpop.f32.mrf.mxu1 }
 0x24d   : > { %v2223_v40 = vadd.f32 %v9577_v58, %v2102_v46  ;;  %v6796_v46 = vld [vmem:[%s10740_s3 + $0x150] sm:$0xff] }
 0x24e   : > { %v7872_v3 = vpop.f32.mrf.mxu0  ;;  %v2302_v61 = vpop.f32.mrf.mxu1 }
 0x24f   : > { %v2341_v1 = vadd.f32 %v2302_v61, %v2217_v31 }
 0x250   : > { %v2435_v11 = vpop.f32.mrf.mxu0  ;;  %v7852_v55 = vpop.f32.mrf.mxu1 }
 0x251   : > { %v2344_v7 = vadd.f32 %v7852_v55, %v2220_v63  ;;  %v2464_v51 = vadd.f32 %v2425_v62, %v2341_v1 }
 0x252   : > { %v9579_v6 = vpop.f32.mrf.mxu0  ;;  %v2312_v10 = vpop.f32.mrf.mxu1 }
 0x253   : > { %v2343_v42 = vadd.f32 %v2312_v10, %v2219_v21  ;;  %v2467_v24 = vadd.f32 %v7872_v3, %v2344_v7 }
 0x254   : > { %v9581_v52 = vpop.f32.mrf.mxu0  ;;  %v7855_v8 = vpop.f32.mrf.mxu1 }
 0x255   : > { %10786 = vst [vmem:[#allocation24_spill] sm:$0xff] %v9581_v52  ;;  %v1928_v52 = vadd.f32 %v1927_v9, %v1806_v22  ;;  %v2466_v4 = vadd.f32 %v2435_v11, %v2343_v42 }
 0x256   : > { %v9583_v2 = vpop.f32.mrf.mxu0  ;;  %v2322_v54 = vpop.f32.mrf.mxu1 }
 0x257   : > { %10787 = vst [vmem:[#allocation25_spill] sm:$0xff] %v9583_v2  ;;  %v2342_v2 = vadd.f32 %v7849_v50, %v2218_v13  ;;  %v2100_v16 = vadd.f32 %v2077_v49, %v1928_v52  ;;  %v2222_v13 = vadd.f32 %v7835_v0, %v2101_v12 }
 0x258   : > { %v9585_v19 = vpop.f32.mrf.mxu0  ;;  %v7858_v34 = vpop.f32.mrf.mxu1 }
 0x259   : > { %10788 = vst [vmem:[#allocation26_spill] sm:$0xff] %v9585_v19  ;;  %v2465_v30 = vadd.f32 %v7869_v57, %v2342_v2  ;;  %v2221_v15 = vadd.f32 %v2198_v44, %v2100_v16  ;;  %v2346_v33 = vadd.f32 %v7855_v8, %v2222_v13  ;;  %v2348_v38 = vadd.f32 %v7858_v34, %v2224_v28  ;;  %v10792_v28 = vld [vmem:[#allocation14_spill] sm:$0xff] }
 0x25a   : > { %v2332_v23 = vpop.f32.mrf.mxu1  ;;  %v7909_v36 = vpop.f32.mrf.mxu0 }
 0x25b   : > { %v2345_v35 = vadd.f32 %v2322_v54, %v2221_v15  ;;  %v2469_v49 = vadd.f32 %v9579_v6, %v2346_v33  ;;  %v2347_v32 = vadd.f32 %v2332_v23, %v2223_v40  ;;  %v6792_v15 = vld [vmem:[%s10740_s3 + $0x130] sm:$0xff]  ;;  %v6795_v33 = vld [vmem:[%s10740_s3 + $0x148] sm:$0xff] }
 0x25c   : > { %v7889_v47 = vpop.f32.mrf.mxu1  ;;  %v2670_v60 = vpop.f32.mrf.mxu0  ;;  %v10789_v57 = vld [vmem:[#allocation24_spill] sm:$0xff] }
 0x25d   : > { %v2586_v14 = vadd.f32 %v7889_v47, %v2465_v30  ;;  %v2468_v53 = vadd.f32 %v10789_v57, %v2345_v35 }
 0x25e   : > { %v2546_v20 = vpop.f32.mrf.mxu1  ;;  %v7912_v43 = vpop.f32.mrf.mxu0  ;;  %v10790_v58 = vld [vmem:[#allocation25_spill] sm:$0xff] }
 0x25f   : > { %v2585_v22 = vadd.f32 %v2546_v20, %v2464_v51  ;;  %v2710_v26 = vadd.f32 %v7909_v36, %v2586_v14  ;;  %v2471_v55 = vadd.f32 %v10790_v58, %v2348_v38  ;;  %v8523_v14 = vld [vmem:[#allocation3] sm:$0xff] }
 0x260   : > { %v7892_v25 = vpop.f32.mrf.mxu1  ;;  %v2680_v9 = vpop.f32.mrf.mxu0  ;;  %v10791_v8 = vld [vmem:[#allocation26_spill] sm:$0xff] }
 0x261   : > { %v2588_v27 = vadd.f32 %v7892_v25, %v2467_v24  ;;  %v2709_v47 = vadd.f32 %v2670_v60, %v2585_v22  ;;  %v2470_v2 = vadd.f32 %v10791_v8, %v2347_v32  ;;  %v6791_v22 = vld [vmem:[%s10740_s3 + $0x128] sm:$0xff]  ;;  %v6790_v24 = vld [vmem:[%s10740_s3 + $0x120] sm:$0xff] }
 0x262   : > { %v2556_v19 = vpop.f32.mrf.mxu1  ;;  %v7915_v37 = vpop.f32.mrf.mxu0 }
 0x263   : > { %v2587_v0 = vadd.f32 %v2556_v19, %v2466_v4  ;;  %v2712_v45 = vadd.f32 %v7912_v43, %v2588_v27  ;;  %v6794_v4 = vld [vmem:[%s10740_s3 + $0x140] sm:$0xff]  ;;  %v10793_v27 = vrot.slane %v10792_v28, 1 }
 0x264   : > { %v7895_v29 = vpop.f32.mrf.mxu1  ;;  %v2690_v50 = vpop.f32.mrf.mxu0 }
 0x265   : > { %v2590_v3 = vadd.f32 %v7895_v29, %v2469_v49  ;;  %v2711_v11 = vadd.f32 %v2680_v9, %v2587_v0  ;;  %v6797_v9 = vld [vmem:[%s10740_s3 + $0x158] sm:$0xff]  ;;  %v10794_v0 = vld [vmem:[#allocation16_spill] sm:$0xff] }
 0x266   : > { %v2566_v5 = vpop.f32.mrf.mxu1  ;;  %v7918_v60 = vpop.f32.mrf.mxu0  ;;  %7953 = vmatprep.subr.mxu1 %v6797_v9 }
 0x267   : > { %v2589_v36 = vadd.f32 %v2566_v5, %v2468_v53  ;;  %v2714_v34 = vadd.f32 %v7915_v37, %v2590_v3  ;;  %7954 = vmatpush3.msra.mxu1 %v6797_v9  ;;  %v10798_v53 = vld [vmem:[#allocation18_spill] sm:$0xff] }
 0x268   : > { %v7898_v31 = vpop.f32.mrf.mxu1  ;;  %v2700_v12 = vpop.f32.mrf.mxu0  ;;  %7955 = vmatprep.subr.mxu1 %v6796_v46 }
 0x269   : > { %v2592_v19 = vadd.f32 %v7898_v31, %v2471_v55  ;;  %v2713_v1 = vadd.f32 %v2690_v50, %v2589_v36  ;;  %v6793_v31 = vld [vmem:[%s10740_s3 + $0x138] sm:$0xff]  ;;  %7956 = vmatpush3.msra.mxu1 %v6796_v46 }
 0x26a   : > { %v2576_v39 = vpop.f32.mrf.mxu1  ;;  %7973 = vmatprep.subr.mxu0 %v6793_v31  ;;  %7957 = vmatprep.subr.mxu1 %v6795_v33 }
 0x26b   : > { %v2591_v17 = vadd.f32 %v2576_v39, %v2470_v2  ;;  %v2716_v21 = vadd.f32 %v7918_v60, %v2592_v19  ;;  %v9625_v39 = vld [vmem:[#allocation3 + $0x8] sm:$0x3]  ;;  %7958 = vmatpush3.msra.mxu1 %v6795_v33  ;;  %v10806_v19 = vld [vmem:[#allocation22_spill] sm:$0xff] }
 0x26c   : > { %v7929_v48 = vpop.f32.mrf.mxu1  ;;  %v3045_v35 = vrot.slane %v9625_v39, 1  ;;  %7959 = vmatprep.subr.mxu1 %v6794_v4 }
 0x26d   : > { %v2833_v44 = vadd.f32 %v7929_v48, %v2710_v26  ;;  %v2715_v7 = vadd.f32 %v2700_v12, %v2591_v17  ;;  %7960 = vmatpush3.msra.mxu1 %v6794_v4  ;;  %v6817_v26 = vld [vmem:[%s10740_s3 + $0x178] sm:$0xff] }
 0x26e   : > { %v2793_v20 = vpop.f32.mrf.mxu1  ;;  %v3046_v37 = vsel %vm432_vm3, %v10793_v27, %v3045_v35  ;;  %7993 = vmatprep.subr.mxu1 %v6817_v26  ;;  %v6829_v48 = vld [vmem:[%s10740_s3 + $0x198] sm:$0xff]  ;;  %v6827_v35 = vld [vmem:[%s10740_s3 + $0x188] sm:$0xff] }
 0x26f   : > { %v2832_v62 = vadd.f32 %v2793_v20, %v2709_v47  ;;  %v2841_v10 = vmax.f32 %v2833_v44, 0.0  ;;  %7961 = vmatprep.mubr.msk.f32.mxu1 %vm356_vm5, %v3046_v37  ;;  %v10796_v44 = vld [vmem:[#allocation17_spill] sm:$0xff] }
 0x270   : > { %v7932_v25 = vpop.f32.mrf.mxu1 }
 0x271   : > { %v2840_v61 = vmax.f32 %v2832_v62, 0.0  ;;  %v2835_v52 = vadd.f32 %v7932_v25, %v2712_v45  ;;  %v10800_v45 = vld [vmem:[#allocation19_spill] sm:$0xff] }
 0x272   : > { %v2803_v6 = vpop.f32.mrf.mxu1 }
 0x273   : > { %v2834_v54 = vadd.f32 %v2803_v6, %v2711_v11  ;;  %7941 = vmatprep.mubr.msk.f32.mxu0 %vm2849_vm7, %v2840_v61  ;;  %v2843_v63 = vmax.f32 %v2835_v52, 0.0  ;;  %v10802_v11 = vld [vmem:[#allocation20_spill] sm:$0xff] }
 0x274   : > { %v7935_v23 = vpop.f32.mrf.mxu1  ;;  %7942 = vmatmul.mubr.msk.f32.vlgmr.msra.gmra.mxu0 %vm2849_vm7, %v2841_v10  ;;  %v10804_v10 = vld [vmem:[#allocation21_spill] sm:$0xff] }
 0x275   : > { %v2842_v59 = vmax.f32 %v2834_v54, 0.0  ;;  %v2837_v43 = vadd.f32 %v7935_v23, %v2714_v34  ;;  %7974 = vmatpush3.msra.mxu0 %v6793_v31 }
 0x276   : > { %v2813_v29 = vpop.f32.mrf.mxu1  ;;  %7975 = vmatprep.subr.mxu0 %v6792_v15 }
 0x277   : > { %v2836_v16 = vadd.f32 %v2813_v29, %v2713_v1  ;;  %7944 = vmatprep.mubr.msk.f32.mxu0 %vm2849_vm7, %v2842_v59  ;;  %v2845_v5 = vmax.f32 %v2837_v43, 0.0  ;;  %7976 = vmatpush3.msra.mxu0 %v6792_v15  ;;  %v10808_v29 = vld [vmem:[#allocation23_spill] sm:$0xff]  ;;  %v6815_v15 = vld [vmem:[%s10740_s3 + $0x168] sm:$0xff] }
 0x278   : > { %v7938_v18 = vpop.f32.mrf.mxu1  ;;  %7945 = vmatmul.mubr.msk.f32.gmra.mxu0 %vm2849_vm7, %v2843_v63  ;;  %7977 = vmatprep.subr.mxu0 %v6791_v22  ;;  %v6828_v63 = vld [vmem:[%s10740_s3 + $0x190] sm:$0xff] }
 0x279   : > { %v2844_v30 = vmax.f32 %v2836_v16, 0.0  ;;  %v2839_v41 = vadd.f32 %v7938_v18, %v2716_v21  ;;  %7978 = vmatpush3.msra.mxu0 %v6791_v22 }
 0x27a   : > { %v2823_v42 = vpop.f32.mrf.mxu1  ;;  %7979 = vmatprep.subr.mxu0 %v6790_v24 }
 0x27b   : > { %v2838_v51 = vadd.f32 %v2823_v42, %v2715_v7  ;;  %7947 = vmatprep.mubr.msk.f32.mxu0 %vm2849_vm7, %v2844_v30  ;;  %v2847_v13 = vmax.f32 %v2839_v41, 0.0  ;;  %7980 = vmatpush3.msra.mxu0 %v6790_v24  ;;  %v6816_v42 = vld [vmem:[%s10740_s3 + $0x170] sm:$0xff] }
 0x27c   : > { %7948 = vmatmul.mubr.msk.f32.gmra.mxu0 %vm2849_vm7, %v2845_v5  ;;  %8013 = vmatprep.subr.mxu0 %v6829_v48 }
 0x27d   : > { %v2846_v56 = vmax.f32 %v2838_v51, 0.0 }
 0x27f   : > { %7950 = vmatprep.mubr.msk.f32.mxu0 %vm2849_vm7, %v2846_v56 }
 0x280   : > { %7951 = vmatmul.mubr.msk.f32.gmra.mxu0 %vm2849_vm7, %v2847_v13 }
 0x281   : > { %7981 = vmatprep.mubr.msk.f32.mxu0 %vm356_vm5, %v8523_v14 }
 0x334   : > { %v7943_v40 = vpop.f32.mrf.mxu0 }
 0x335   : > { %v9642_v47 = vadd.f32 %v7943_v40, %v10794_v0 }
 0x336   : > { %v2940_v38 = vpop.f32.mrf.mxu0 }
 0x337   : > { %10795 = vst [vmem:[#allocation24_spill] sm:$0xff] %v9642_v47  ;;  %v2988_v49 = vmax.f32 %v9642_v47, 0.0  ;;  %v9646_v20 = vadd.f32 %v2940_v38, %v10796_v44  ;;  %v6814_v38 = vld [vmem:[%s10740_s3 + $0x160] sm:$0xff]  ;;  %v3316_v44 = vrot.slane %v9625_v39, 2 }
 0x338   : > { %v7946_v32 = vpop.f32.mrf.mxu0 }
 0x339   : > { %10797 = vst [vmem:[#allocation25_spill] sm:$0xff] %v9646_v20  ;;  %2996 = vst.msk [vmem:[#allocation3 + $0x21] sm:$0xff] %vm356_vm5, %v2988_v49  ;;  %v2987_v57 = vmax.f32 %v9646_v20, 0.0  ;;  %v9651_v62 = vadd.f32 %v7946_v32, %v10798_v53  ;;  %v6826_v49 = vld [vmem:[%s10740_s3 + $0x180] sm:$0xff] }
 0x33a   : > { %v2950_v50 = vpop.f32.mrf.mxu0 }
 0x33b   : > { %10799 = vst [vmem:[#allocation26_spill] sm:$0xff] %v9651_v62  ;;  %2995 = vst.msk [vmem:[#allocation3 + $0x11] sm:$0xff] %vm356_vm5, %v2987_v57  ;;  %v2990_v3 = vmax.f32 %v9651_v62, 0.0  ;;  %v9656_v25 = vadd.f32 %v2950_v50, %v10800_v45  ;;  %v6841_v45 = vld [vmem:[%s10740_s3 + $0x1b8] sm:$0xff] }
 0x33c   : > { %v7949_v36 = vpop.f32.mrf.mxu0 }
 0x33d   : > { %10801 = vst [vmem:[#allocation14_spill] sm:$0xff] %v9656_v25  ;;  %2998 = vst.msk [vmem:[#allocation3 + $0x41] sm:$0xff] %vm356_vm5, %v2990_v3  ;;  %v2989_v61 = vmax.f32 %v9656_v25, 0.0  ;;  %v9661_v58 = vadd.f32 %v7949_v36, %v10802_v11  ;;  %v10810_v36 = vrot.slane %v10792_v28, 2  ;;  %v6853_v11 = vld [vmem:[%s10740_s3 + $0x1d8] sm:$0xff] }
 0x33e   : > { %v2960_v55 = vpop.f32.mrf.mxu0 }
 0x33f   : > { %10803 = vst [vmem:[#allocation16_spill] sm:$0xff] %v9661_v58  ;;  %2997 = vst.msk [vmem:[#allocation3 + $0x31] sm:$0xff] %vm356_vm5, %v2989_v61  ;;  %v2992_v60 = vmax.f32 %v9661_v58, 0.0  ;;  %v9666_v52 = vadd.f32 %v2960_v55, %v10804_v10  ;;  %v3317_v61 = vsel %vm708_vm4, %v10810_v36, %v3316_v44 }
 0x340   : > { %v7952_v6 = vpop.f32.mrf.mxu0  ;;  %v9668_v8 = vld [vmem:[#allocation3 + $0x20] sm:$0xff]  ;;  %v9670_v2 = vld [vmem:[#allocation3 + $0x28] sm:$0x3] }
 0x341   : > { %10805 = vst [vmem:[#allocation17_spill] sm:$0xff] %v9666_v52  ;;  %3000 = vst.msk [vmem:[#allocation3 + $0x61] sm:$0xff] %vm356_vm5, %v2992_v60  ;;  %v2991_v54 = vmax.f32 %v9666_v52, 0.0  ;;  %v9675_v34 = vadd.f32 %v7952_v6, %v10806_v19  ;;  %v3050_v1 = vrot.slane %v9668_v8, 1  ;;  %v3051_v12 = vrot.slane %v9670_v2, 1 }
 0x342   : > { %v2970_v23 = vpop.f32.mrf.mxu0  ;;  %v9677_v17 = vld [vmem:[#allocation3 + $0x10] sm:$0xff]  ;;  %v9679_v59 = vld [vmem:[#allocation3 + $0x18] sm:$0x3]  ;;  %v3321_v28 = vrot.slane %v9668_v8, 2  ;;  %v3322_v6 = vrot.slane %v9670_v2, 2 }
 0x343   : > { %10807 = vst [vmem:[#allocation18_spill] sm:$0xff] %v9675_v34  ;;  %2999 = vst.msk [vmem:[#allocation3 + $0x51] sm:$0xff] %vm356_vm5, %v2991_v54  ;;  %v2994_v43 = vmax.f32 %v9675_v34, 0.0  ;;  %v9689_v16 = vadd.f32 %v2970_v23, %v10808_v29  ;;  %7982 = vmatmul.mubr.msk.f32.vlgmr.msra.gmra.mxu0 %vm356_vm5, %v9677_v17  ;;  %v3047_v21 = vrot.slane %v9677_v17, 1  ;;  %v3048_v18 = vrot.slane %v9679_v59, 1  ;;  %v6852_v54 = vld [vmem:[%s10740_s3 + $0x1d0] sm:$0xff] }
 0x344   : > { %7984 = vmatprep.mubr.msk.f32.mxu0 %vm356_vm5, %v9668_v8  ;;  %v9697_v7 = vld [vmem:[#allocation3 + $0x40] sm:$0xff]  ;;  %v9699_v30 = vld [vmem:[#allocation3 + $0x48] sm:$0x3]  ;;  %8014 = vmatpush3.msra.mxu0 %v6829_v48  ;;  %v9712_v51 = vsel %vm432_vm3, %v3050_v1, %v3051_v12  ;;  %v3318_v60 = vrot.slane %v9677_v17, 2  ;;  %v3319_v10 = vrot.slane %v9679_v59, 2  ;;  %v6840_v23 = vld [vmem:[%s10740_s3 + $0x1b0] sm:$0xff]  ;;  %v9822_v59 = vsel %vm708_vm4, %v3321_v28, %v3322_v6 }
 0x345   : > { %10809 = vst [vmem:[#allocation19_spill] sm:$0xff] %v9689_v16  ;;  %3002 = vst.msk [vmem:[#allocation3 + $0x81] sm:$0xff] %vm356_vm5, %v2994_v43  ;;  %v2993_v5 = vmax.f32 %v9689_v16, 0.0  ;;  %v9704_v41 = vsel %vm432_vm3, %v3047_v21, %v3048_v18  ;;  %8015 = vmatprep.subr.mxu0 %v6828_v63  ;;  %v3056_v14 = vrot.slane %v9697_v7, 1  ;;  %v3057_v9 = vrot.slane %v9699_v30, 1  ;;  %v6838_v18 = vld [vmem:[%s10740_s3 + $0x1a0] sm:$0xff] }
 0x346   : > { %7962 = vmatmul.mubr.msk.f32.vlgmr.msra.gmra.mxu1 %vm356_vm5, %v9704_v41  ;;  %v9714_v56 = vld [vmem:[#allocation3 + $0x30] sm:$0xff]  ;;  %v9716_v13 = vld [vmem:[#allocation3 + $0x38] sm:$0x3]  ;;  %8016 = vmatpush3.msra.mxu0 %v6828_v63  ;;  %v3320_v19 = vsel %vm708_vm4, %v3318_v60, %v3319_v10  ;;  %v3327_v1 = vrot.slane %v9697_v7, 2  ;;  %v3328_v12 = vrot.slane %v9699_v30, 2  ;;  %v6839_v63 = vld [vmem:[%s10740_s3 + $0x1a8] sm:$0xff] }
 0x347   : > { %3001 = vst.msk [vmem:[#allocation3 + $0x71] sm:$0xff] %vm356_vm5, %v2993_v5  ;;  %7994 = vmatpush3.msra.mxu1 %v6817_v26  ;;  %7964 = vmatprep.mubr.msk.f32.mxu1 %vm356_vm5, %v9712_v51  ;;  %v3053_v31 = vrot.slane %v9714_v56, 1  ;;  %v3054_v46 = vrot.slane %v9716_v13, 1  ;;  %v9745_v4 = vsel %vm432_vm3, %v3056_v14, %v3057_v9  ;;  %v3324_v2 = vrot.slane %v9714_v56, 2  ;;  %v6850_v9 = vld [vmem:[%s10740_s3 + $0x1c0] sm:$0xff] }
 0x348   : > { %7985 = vmatmul.mubr.msk.f32.gmra.mxu0 %vm356_vm5, %v9714_v56  ;;  %7995 = vmatprep.subr.mxu1 %v6816_v42  ;;  %v9730_v22 = vld [vmem:[#allocation3 + $0x60] sm:$0xff]  ;;  %v9732_v33 = vld [vmem:[#allocation3 + $0x68] sm:$0x3]  ;;  %v9846_v30 = vsel %vm708_vm4, %v3327_v1, %v3328_v12  ;;  %v3022_v60 = vld [vmem:[#allocation3 + $0x98] sm:$0x3] }
 0x349   : > { %7987 = vmatprep.mubr.msk.f32.mxu0 %vm356_vm5, %v9697_v7  ;;  %v9737_v24 = vsel %vm432_vm3, %v3053_v31, %v3054_v46  ;;  %7996 = vmatpush3.msra.mxu1 %v6816_v42  ;;  %v3062_v26 = vrot.slane %v9730_v22, 1  ;;  %v3063_v48 = vrot.slane %v9732_v33, 1  ;;  %v3333_v5 = vrot.slane %v9730_v22, 2 }
 0x34a   : > { %7965 = vmatmul.mubr.msk.f32.gmra.mxu1 %vm356_vm5, %v9737_v24  ;;  %v9747_v27 = vld [vmem:[#allocation3 + $0x50] sm:$0xff]  ;;  %7997 = vmatprep.subr.mxu1 %v6815_v15  ;;  %v9749_v37 = vld [vmem:[#allocation3 + $0x58] sm:$0x3]  ;;  %v3334_v42 = vrot.slane %v9732_v33, 2 }
 0x34b   : > { %7967 = vmatprep.mubr.msk.f32.mxu1 %vm356_vm5, %v9745_v4  ;;  %v3059_v40 = vrot.slane %v9747_v27, 1  ;;  %v3060_v0 = vrot.slane %v9749_v37, 1  ;;  %7998 = vmatpush3.msra.mxu1 %v6815_v15  ;;  %v9774_v57 = vsel %vm432_vm3, %v3062_v26, %v3063_v48  ;;  %v3330_v29 = vrot.slane %v9747_v27, 2  ;;  %v6877_v26 = vld [vmem:[%s10740_s3 + $0x218] sm:$0xff]  ;;  %v6876_v48 = vld [vmem:[%s10740_s3 + $0x210] sm:$0xff] }
 0x34c   : > { %7988 = vmatmul.mubr.msk.f32.gmra.mxu0 %vm356_vm5, %v9747_v27  ;;  %8017 = vmatprep.subr.mxu0 %v6827_v35  ;;  %v3331_v21 = vrot.slane %v9749_v37, 2  ;;  %v9870_v15 = vsel %vm708_vm4, %v3333_v5, %v3334_v42  ;;  %v9874_v33 = vld [vmem:[#allocation3 + $0x80] sm:$0xff] }
 0x34d   : > { %7990 = vmatprep.mubr.msk.f32.mxu0 %vm356_vm5, %v9730_v22  ;;  %v9769_v32 = vsel %vm432_vm3, %v3059_v40, %v3060_v0  ;;  %8018 = vmatpush3.msra.mxu0 %v6827_v35  ;;  %v6865_v35 = vld [vmem:[%s10740_s3 + $0x1f8] sm:$0xff]  ;;  %v6864_v40 = vld [vmem:[%s10740_s3 + $0x1f0] sm:$0xff]  ;;  %v3020_v0 = vld [vmem:[#allocation3 + $0x88] sm:$0x3] }
 0x34e   : > { %7968 = vmatmul.mubr.msk.f32.gmra.mxu1 %vm356_vm5, %v9769_v32  ;;  %v9776_v53 = vld [vmem:[#allocation3 + $0x70] sm:$0xff]  ;;  %7999 = vmatprep.subr.mxu1 %v6814_v38  ;;  %v9778_v50 = vld [vmem:[#allocation3 + $0x78] sm:$0x3]  ;;  %v9860_v14 = vsel %vm708_vm4, %v3330_v29, %v3331_v21  ;;  %v3719_v44 = vrot.slane %v3020_v0, 2 }
 0x34f   : > { %7970 = vmatprep.mubr.msk.f32.mxu1 %vm356_vm5, %v9774_v57  ;;  %8019 = vmatprep.subr.mxu0 %v6826_v49  ;;  %v3065_v39 = vrot.slane %v9776_v53, 1  ;;  %v3066_v3 = vrot.slane %v9778_v50, 1  ;;  %v3336_v31 = vrot.slane %v9776_v53, 2  ;;  %v3337_v46 = vrot.slane %v9778_v50, 2  ;;  %v6875_v50 = vld [vmem:[%s10740_s3 + $0x208] sm:$0xff] }
 0x350   : > { %7991 = vmatmul.mubr.msk.f32.gmra.mxu0 %vm356_vm5, %v9776_v53  ;;  %8000 = vmatpush3.msra.mxu1 %v6814_v38  ;;  %v6862_v38 = vld [vmem:[%s10740_s3 + $0x1e0] sm:$0xff] }
 0x351   : > { %8021 = vmatprep.mubr.msk.f32.mxu0 %vm356_vm5, %v9677_v17  ;;  %v9798_v55 = vsel %vm432_vm3, %v3065_v39, %v3066_v3  ;;  %8020 = vmatpush3.msra.mxu0 %v6826_v49  ;;  %v3325_v17 = vrot.slane %v9716_v13, 2  ;;  %v6851_v13 = vld [vmem:[%s10740_s3 + $0x1c8] sm:$0xff]  ;;  %v9883_v37 = vsel %vm708_vm4, %v3336_v31, %v3337_v46  ;;  %v3718_v49 = vrot.slane %v9874_v33, 2  ;;  %v6874_v39 = vld [vmem:[%s10740_s3 + $0x200] sm:$0xff] }
 0x352   : > { %7971 = vmatmul.mubr.msk.f32.gmra.mxu1 %vm356_vm5, %v9798_v55  ;;  %8033 = vmatprep.subr.mxu1 %v6841_v45  ;;  %v3595_v3 = vrot.slane %v9874_v33, 1 }
 0x353   : > { %8001 = vmatprep.mubr.msk.f32.mxu1 %vm356_vm5, %v3317_v61  ;;  %8053 = vmatprep.subr.mxu0 %v6853_v11  ;;  %v9836_v43 = vsel %vm708_vm4, %v3324_v2, %v3325_v17  ;;  %v3720_v36 = vsel %vm708_vm4, %v3718_v49, %v3719_v44  ;;  %v6889_v61 = vld [vmem:[%s10740_s3 + $0x238] sm:$0xff] }
 0x354   : > { %8022 = vmatmul.mubr.msk.f32.vlgmr.msra.gmra.mxu0 %vm356_vm5, %v9668_v8 }
 0x355   : > { %8024 = vmatprep.mubr.msk.f32.mxu0 %vm356_vm5, %v9714_v56  ;;  %8054 = vmatpush3.msra.mxu0 %v6853_v11 }
 0x356   : > { %8002 = vmatmul.mubr.msk.f32.vlgmr.msra.gmra.mxu1 %vm356_vm5, %v3320_v19  ;;  %8055 = vmatprep.subr.mxu0 %v6852_v54 }
 0x357   : > { %8034 = vmatpush3.msra.mxu1 %v6841_v45  ;;  %8004 = vmatprep.mubr.msk.f32.mxu1 %vm356_vm5, %v9822_v59  ;;  %v3596_v45 = vrot.slane %v3020_v0, 1 }
 0x358   : > { %8025 = vmatmul.mubr.msk.f32.gmra.mxu0 %vm356_vm5, %v9697_v7  ;;  %8035 = vmatprep.subr.mxu1 %v6840_v23 }
 0x359   : > { %8027 = vmatprep.mubr.msk.f32.mxu0 %vm356_vm5, %v9747_v27  ;;  %8036 = vmatpush3.msra.mxu1 %v6840_v23  ;;  %v3597_v11 = vsel %vm432_vm3, %v3595_v3, %v3596_v45 }
 0x35a   : > { %8005 = vmatmul.mubr.msk.f32.gmra.mxu1 %vm356_vm5, %v9836_v43  ;;  %8037 = vmatprep.subr.mxu1 %v6839_v63 }
 0x35b   : > { %8007 = vmatprep.mubr.msk.f32.mxu1 %vm356_vm5, %v9846_v30  ;;  %8038 = vmatpush3.msra.mxu1 %v6839_v63 }
 0x35c   : > { %8028 = vmatmul.mubr.msk.f32.gmra.mxu0 %vm356_vm5, %v9730_v22  ;;  %8039 = vmatprep.subr.mxu1 %v6838_v18 }
 0x35d   : > { %8030 = vmatprep.mubr.msk.f32.mxu0 %vm356_vm5, %v9776_v53  ;;  %8056 = vmatpush3.msra.mxu0 %v6852_v54 }
 0x35e   : > { %8008 = vmatmul.mubr.msk.f32.gmra.mxu1 %vm356_vm5, %v9860_v14  ;;  %8057 = vmatprep.subr.mxu0 %v6851_v13 }
 0x35f   : > { %8010 = vmatprep.mubr.msk.f32.mxu1 %vm356_vm5, %v9870_v15  ;;  %8058 = vmatpush3.msra.mxu0 %v6851_v13 }
 0x360   : > { %8031 = vmatmul.mubr.msk.f32.gmra.mxu0 %vm356_vm5, %v9874_v33  ;;  %8059 = vmatprep.subr.mxu0 %v6850_v9 }
 0x361   : > { %8061 = vmatprep.mubr.msk.f32.mxu0 %vm356_vm5, %v3320_v19  ;;  %8040 = vmatpush3.msra.mxu1 %v6838_v18 }
 0x362   : > { %8011 = vmatmul.mubr.msk.f32.gmra.mxu1 %vm356_vm5, %v9883_v37  ;;  %8060 = vmatpush3.msra.mxu0 %v6850_v9 }
 0x363   : > { %8041 = vmatprep.mubr.msk.f32.mxu1 %vm356_vm5, %v9704_v41  ;;  %8073 = vmatprep.subr.mxu1 %v6865_v35  ;;  %v6863_v41 = vld [vmem:[%s10740_s3 + $0x1e8] sm:$0xff] }
 0x364   : > { %8062 = vmatmul.mubr.msk.f32.vlgmr.msra.gmra.mxu0 %vm356_vm5, %v9822_v59  ;;  %8093 = vmatprep.subr.mxu0 %v6877_v26 }
 0x365   : > { %8064 = vmatprep.mubr.msk.f32.mxu0 %vm356_vm5, %v9836_v43  ;;  %8094 = vmatpush3.msra.mxu0 %v6877_v26 }
 0x366   : > { %8042 = vmatmul.mubr.msk.f32.vlgmr.msra.gmra.mxu1 %vm356_vm5, %v9712_v51  ;;  %8095 = vmatprep.subr.mxu0 %v6876_v48 }
 0x367   : > { %8074 = vmatpush3.msra.mxu1 %v6865_v35  ;;  %8044 = vmatprep.mubr.msk.f32.mxu1 %vm356_vm5, %v9737_v24 }
 0x368   : > { %8065 = vmatmul.mubr.msk.f32.gmra.mxu0 %vm356_vm5, %v9846_v30  ;;  %8075 = vmatprep.subr.mxu1 %v6864_v40 }
 0x369   : > { %8067 = vmatprep.mubr.msk.f32.mxu0 %vm356_vm5, %v9860_v14  ;;  %8076 = vmatpush3.msra.mxu1 %v6864_v40 }
 0x36a   : > { %8045 = vmatmul.mubr.msk.f32.gmra.mxu1 %vm356_vm5, %v9745_v4  ;;  %8077 = vmatprep.subr.mxu1 %v6863_v41 }
 0x36b   : > { %8047 = vmatprep.mubr.msk.f32.mxu1 %vm356_vm5, %v9769_v32  ;;  %8078 = vmatpush3.msra.mxu1 %v6863_v41 }
 0x36c   : > { %8068 = vmatmul.mubr.msk.f32.gmra.mxu0 %vm356_vm5, %v9870_v15  ;;  %8079 = vmatprep.subr.mxu1 %v6862_v38 }
 0x36d   : > { %8070 = vmatprep.mubr.msk.f32.mxu0 %vm356_vm5, %v9883_v37  ;;  %8096 = vmatpush3.msra.mxu0 %v6876_v48 }
 0x36e   : > { %8048 = vmatmul.mubr.msk.f32.gmra.mxu1 %vm356_vm5, %v9774_v57  ;;  %8097 = vmatprep.subr.mxu0 %v6875_v50 }
 0x36f   : > { %8050 = vmatprep.mubr.msk.f32.mxu1 %vm356_vm5, %v9798_v55  ;;  %8098 = vmatpush3.msra.mxu0 %v6875_v50 }
 0x370   : > { %8071 = vmatmul.mubr.msk.f32.gmra.mxu0 %vm356_vm5, %v3720_v36  ;;  %8099 = vmatprep.subr.mxu0 %v6874_v39 }
 0x371   : > { %8101 = vmatprep.mubr.msk.f32.mxu0 %vm356_vm5, %v9712_v51  ;;  %8080 = vmatpush3.msra.mxu1 %v6862_v38  ;;  %v6888_v51 = vld [vmem:[%s10740_s3 + $0x230] sm:$0xff] }
 0x372   : > { %8051 = vmatmul.mubr.msk.f32.gmra.mxu1 %vm356_vm5, %v3597_v11  ;;  %8100 = vmatpush3.msra.mxu0 %v6874_v39 }
 0x373   : > { %8081 = vmatprep.mubr.msk.f32.mxu1 %vm356_vm5, %v9668_v8  ;;  %8113 = vmatprep.subr.mxu1 %v6889_v61  ;;  %v6887_v8 = vld [vmem:[%s10740_s3 + $0x228] sm:$0xff] }
 0x374   : > { %8102 = vmatmul.mubr.msk.f32.vlgmr.msra.gmra.mxu0 %vm356_vm5, %v9737_v24  ;;  %v3964_v24 = vrot.slane %v3022_v60, 1 }
 0x375   : > { %8104 = vmatprep.mubr.msk.f32.mxu0 %vm356_vm5, %v9745_v4 }
 0x376   : > { %8082 = vmatmul.mubr.msk.f32.vlgmr.msra.gmra.mxu1 %vm356_vm5, %v9714_v56  ;;  %v6886_v56 = vld [vmem:[%s10740_s3 + $0x220] sm:$0xff] }
 0x377   : > { %8114 = vmatpush3.msra.mxu1 %v6889_v61  ;;  %8084 = vmatprep.mubr.msk.f32.mxu1 %vm356_vm5, %v9697_v7  ;;  %v10811_v7 = vld [vmem:[#allocation15_spill] sm:$0xff] }
 0x378   : > { %8105 = vmatmul.mubr.msk.f32.gmra.mxu0 %vm356_vm5, %v9769_v32  ;;  %8115 = vmatprep.subr.mxu1 %v6888_v51  ;;  %v10812_v4 = vrot.slane %v10811_v7, 1 }
 0x379   : > { %8107 = vmatprep.mubr.msk.f32.mxu0 %vm356_vm5, %v9774_v57  ;;  %8116 = vmatpush3.msra.mxu1 %v6888_v51 }
 0x37a   : > { %8085 = vmatmul.mubr.msk.f32.gmra.mxu1 %vm356_vm5, %v9747_v27  ;;  %8117 = vmatprep.subr.mxu1 %v6887_v8  ;;  %v3965_v32 = vsel %vm432_vm3, %v10812_v4, %v3964_v24  ;;  %v10813_v27 = vrot.slane %v10811_v7, 2 }
 0x37b   : > { %8087 = vmatprep.mubr.msk.f32.mxu1 %vm356_vm5, %v9730_v22  ;;  %8118 = vmatpush3.msra.mxu1 %v6887_v8  ;;  %v4087_v22 = vrot.slane %v3022_v60, 2 }
 0x37c   : > { %8108 = vmatmul.mubr.msk.f32.gmra.mxu0 %vm356_vm5, %v9798_v55  ;;  %8119 = vmatprep.subr.mxu1 %v6886_v56 }
 0x37d   : > { %8110 = vmatprep.mubr.msk.f32.mxu0 %vm356_vm5, %v3597_v11  ;;  %8120 = vmatpush3.msra.mxu1 %v6886_v56  ;;  %v4088_v57 = vsel %vm708_vm4, %v10813_v27, %v4087_v22 }
 0x37e   : > { %8088 = vmatmul.mubr.msk.f32.gmra.mxu1 %vm356_vm5, %v9776_v53  ;;  %v4218_v53 = vld [vmem:[#allocation8 + $0x8] sm:$0xff] }
 0x37f   : > { %8090 = vmatprep.mubr.msk.f32.mxu1 %vm356_vm5, %v9874_v33  ;;  %8133 = vmatprep.subr.mxu0 %v4218_v53 }
 0x380   : > { %8111 = vmatmul.mubr.msk.f32.gmra.mxu0 %vm356_vm5, %v3965_v32 }
 0x381   : > { %8134 = vmatpush3.msra.mxu0 %v4218_v53 }
 0x382   : > { %8091 = vmatmul.mubr.msk.f32.gmra.mxu1 %vm356_vm5, %v10811_v7 }
 0x383   : > { %8121 = vmatprep.mubr.msk.f32.mxu1 %vm356_vm5, %v9822_v59 }
 0x386   : > { %8122 = vmatmul.mubr.msk.f32.vlgmr.msra.gmra.mxu1 %vm356_vm5, %v9836_v43 }
 0x387   : > { %8124 = vmatprep.mubr.msk.f32.mxu1 %vm356_vm5, %v9846_v30 }
 0x38a   : > { %8125 = vmatmul.mubr.msk.f32.gmra.mxu1 %vm356_vm5, %v9860_v14 }
 0x38b   : > { %8127 = vmatprep.mubr.msk.f32.mxu1 %vm356_vm5, %v9870_v15 }
 0x38e   : > { %8128 = vmatmul.mubr.msk.f32.gmra.mxu1 %vm356_vm5, %v9883_v37 }
 0x38f   : > { %8130 = vmatprep.mubr.msk.f32.mxu1 %vm356_vm5, %v3720_v36 }
 0x392   : > { %8131 = vmatmul.mubr.msk.f32.gmra.mxu1 %vm356_vm5, %v4088_v57 }
 0x403   : > { %v7983_v55 = vpop.f32.mrf.mxu0 }
 0x405   : > { %v3276_v10 = vpop.f32.mrf.mxu0 }
 0x406   : > { %v7963_v28 = vpop.f32.mrf.mxu1 }
 0x407   : > { %v3282_v56 = vadd.f32 %v7983_v55, %v7963_v28 }
 0x408   : > { %v7986_v6 = vpop.f32.mrf.mxu0  ;;  %v3155_v54 = vpop.f32.mrf.mxu1 }
 0x409   : > { %v3277_v7 = vadd.f32 %v3276_v10, %v3155_v54 }
 0x40a   : > { %v3286_v19 = vpop.f32.mrf.mxu0  ;;  %v7966_v23 = vpop.f32.mrf.mxu1 }
 0x40b   : > { %v3292_v57 = vadd.f32 %v7986_v6, %v7966_v23 }
 0x40c   : > { %v7989_v2 = vpop.f32.mrf.mxu0  ;;  %v3165_v17 = vpop.f32.mrf.mxu1 }
 0x40d   : > { %v3287_v16 = vadd.f32 %v3286_v19, %v3165_v17 }
 0x40e   : > { %v3296_v59 = vpop.f32.mrf.mxu0  ;;  %v7969_v1 = vpop.f32.mrf.mxu1 }
 0x40f   : > { %v3302_v47 = vadd.f32 %v7989_v2, %v7969_v1 }
 0x410   : > { %v10002_v12 = vpop.f32.mrf.mxu0  ;;  %v3175_v63 = vpop.f32.mrf.mxu1 }
 0x412   : > { %v10004_v43 = vpop.f32.mrf.mxu0  ;;  %v7972_v29 = vpop.f32.mrf.mxu1 }
 0x413   : > { %v3312_v6 = vadd.f32 %v10002_v12, %v7972_v29 }
 0x414   : > { %v8023_v21 = vpop.f32.mrf.mxu0  ;;  %v3185_v18 = vpop.f32.mrf.mxu1 }
 0x416   : > { %v3547_v30 = vpop.f32.mrf.mxu0  ;;  %v8003_v5 = vpop.f32.mrf.mxu1 }
 0x417   : > { %v3466_v4 = vadd.f32 %v8003_v5, %v3282_v56 }
 0x418   : > { %v8026_v42 = vpop.f32.mrf.mxu0  ;;  %v3426_v13 = vpop.f32.mrf.mxu1 }
 0x419   : > { %v3465_v27 = vadd.f32 %v3426_v13, %v3277_v7  ;;  %v3587_v52 = vadd.f32 %v8023_v21, %v3466_v4  ;;  %v3307_v21 = vadd.f32 %v10004_v43, %v3185_v18 }
 0x41a   : > { %v3557_v14 = vpop.f32.mrf.mxu0  ;;  %v8006_v9 = vpop.f32.mrf.mxu1 }
 0x41b   : > { %v3468_v34 = vadd.f32 %v8006_v9, %v3292_v57  ;;  %v3586_v20 = vadd.f32 %v3547_v30, %v3465_v27 }
 0x41c   : > { %v8029_v31 = vpop.f32.mrf.mxu0  ;;  %v3436_v46 = vpop.f32.mrf.mxu1 }
 0x41d   : > { %v3467_v62 = vadd.f32 %v3436_v46, %v3287_v16  ;;  %v3589_v10 = vadd.f32 %v8026_v42, %v3468_v34 }
 0x41e   : > { %v3567_v15 = vpop.f32.mrf.mxu0  ;;  %v8009_v33 = vpop.f32.mrf.mxu1 }
 0x41f   : > { %v3470_v28 = vadd.f32 %v8009_v33, %v3302_v47  ;;  %v3588_v13 = vadd.f32 %v3557_v14, %v3467_v62 }
 0x420   : > { %v10006_v35 = vpop.f32.mrf.mxu0  ;;  %v3446_v37 = vpop.f32.mrf.mxu1 }
 0x422   : > { %v10008_v26 = vpop.f32.mrf.mxu0  ;;  %v8012_v48 = vpop.f32.mrf.mxu1 }
 0x423   : > { %v3472_v2 = vadd.f32 %v8012_v48, %v3312_v6 }
 0x424   : > { %v8063_v40 = vpop.f32.mrf.mxu0  ;;  %v3456_v41 = vpop.f32.mrf.mxu1 }
 0x425   : > { %v3471_v47 = vadd.f32 %v3456_v41, %v3307_v21  ;;  %v3593_v29 = vadd.f32 %v10006_v35, %v3472_v2 }
 0x426   : > { %v3794_v0 = vpop.f32.mrf.mxu0  ;;  %v8043_v38 = vpop.f32.mrf.mxu1 }
 0x428   : > { %v8066_v49 = vpop.f32.mrf.mxu0  ;;  %v3671_v44 = vpop.f32.mrf.mxu1 }
 0x429   : > { %v3710_v55 = vadd.f32 %v3671_v44, %v3586_v20 }
 0x42a   : > { %v3804_v50 = vpop.f32.mrf.mxu0  ;;  %v8046_v39 = vpop.f32.mrf.mxu1 }
 0x42b   : > { %v3713_v19 = vadd.f32 %v8046_v39, %v3589_v10  ;;  %v3833_v30 = vadd.f32 %v3794_v0, %v3710_v55 }
 0x42c   : > { %v10010_v3 = vpop.f32.mrf.mxu0  ;;  %v3681_v45 = vpop.f32.mrf.mxu1 }
 0x42d   : > { %v3712_v16 = vadd.f32 %v3681_v45, %v3588_v13  ;;  %v3836_v9 = vadd.f32 %v8066_v49, %v3713_v19 }
 0x42e   : > { %v10012_v36 = vpop.f32.mrf.mxu0  ;;  %v8049_v61 = vpop.f32.mrf.mxu1 }
 0x42f   : > { %10814 = vst [vmem:[#allocation20_spill] sm:$0xff] %v10012_v36  ;;  %v3297_v36 = vadd.f32 %v3296_v59, %v3175_v63  ;;  %v3835_v12 = vadd.f32 %v3804_v50, %v3712_v16 }
 0x430   : > { %v10014_v11 = vpop.f32.mrf.mxu0  ;;  %v3691_v51 = vpop.f32.mrf.mxu1 }
 0x431   : > { %10815 = vst [vmem:[#allocation21_spill] sm:$0xff] %v10014_v11  ;;  %v3711_v11 = vadd.f32 %v8043_v38, %v3587_v52  ;;  %v3469_v56 = vadd.f32 %v3446_v37, %v3297_v36  ;;  %v3591_v52 = vadd.f32 %v8029_v31, %v3470_v28  ;;  %v3592_v37 = vadd.f32 %v10008_v26, %v3471_v47  ;;  %v4394_v47 = vld [vmem:[%s10742_s5 + $0x10] sm:$0xff] }
 0x432   : > { %v10016_v60 = vpop.f32.mrf.mxu0  ;;  %v8052_v8 = vpop.f32.mrf.mxu1 }
 0x433   : > { %10816 = vst [vmem:[#allocation22_spill] sm:$0xff] %v10016_v60  ;;  %v3834_v23 = vadd.f32 %v8063_v40, %v3711_v11  ;;  %v3590_v34 = vadd.f32 %v3567_v15, %v3469_v56  ;;  %v3715_v42 = vadd.f32 %v8049_v61, %v3591_v52  ;;  %v3717_v40 = vadd.f32 %v8052_v8, %v3593_v29  ;;  %v6906_v29 = vld [vmem:[%s10742_s5 + $0x20] sm:$0xff] }
 0x434   : > { %v3701_v24 = vpop.f32.mrf.mxu1  ;;  %v8103_v32 = vpop.f32.mrf.mxu0 }
 0x435   : > { %v3714_v14 = vadd.f32 %v3691_v51, %v3590_v34  ;;  %v3838_v41 = vadd.f32 %v10010_v3, %v3715_v42  ;;  %v3716_v38 = vadd.f32 %v3701_v24, %v3592_v37  ;;  %v4393_v34 = vld [vmem:[%s10742_s5 + $0x8] sm:$0xff]  ;;  %v4392_v42 = vld [vmem:[%s10742_s5] sm:$0xff] }
 0x436   : > { %v8083_v22 = vpop.f32.mrf.mxu1  ;;  %v4039_v58 = vpop.f32.mrf.mxu0  ;;  %v10817_v49 = vld [vmem:[#allocation20_spill] sm:$0xff] }
 0x437   : > { %v3955_v1 = vadd.f32 %v8083_v22, %v3834_v23  ;;  %v3837_v44 = vadd.f32 %v10817_v49, %v3714_v14 }
 0x438   : > { %v3915_v53 = vpop.f32.mrf.mxu1  ;;  %v8106_v54 = vpop.f32.mrf.mxu0  ;;  %v10818_v51 = vld [vmem:[#allocation21_spill] sm:$0xff] }
 0x439   : > { %v3954_v63 = vadd.f32 %v3915_v53, %v3833_v30  ;;  %v4079_v43 = vadd.f32 %v8103_v32, %v3955_v1  ;;  %v3840_v26 = vadd.f32 %v10818_v51, %v3717_v40  ;;  %v6909_v1 = vld [vmem:[%s10742_s5 + $0x38] sm:$0xff]  ;;  %v10820_v40 = vld [vmem:[#allocation24_spill] sm:$0xff] }
 0x43a   : > { %v8086_v25 = vpop.f32.mrf.mxu1  ;;  %v4049_v59 = vpop.f32.mrf.mxu0  ;;  %v10819_v3 = vld [vmem:[#allocation22_spill] sm:$0xff]  ;;  %8147 = vmatprep.subr.mxu1 %v6909_v1 }
 0x43b   : > { %v3957_v46 = vadd.f32 %v8086_v25, %v3836_v9  ;;  %v4078_v48 = vadd.f32 %v4039_v58, %v3954_v63  ;;  %v3839_v4 = vadd.f32 %v10819_v3, %v3716_v38  ;;  %8148 = vmatpush3.msra.mxu1 %v6909_v1  ;;  %v6907_v63 = vld [vmem:[%s10742_s5 + $0x28] sm:$0xff]  ;;  %v4372_v9 = vld [vmem:[#allocation3] sm:$0xff]  ;;  %v10821_v38 = vld [vmem:[#allocation25_spill] sm:$0xff] }
 0x43c   : > { %v3925_v60 = vpop.f32.mrf.mxu1  ;;  %v8109_v33 = vpop.f32.mrf.mxu0  ;;  %v4412_v14 = vrot.slane %v4372_v9, 1 }
 0x43d   : > { %v3956_v31 = vadd.f32 %v3925_v60, %v3835_v12  ;;  %v4081_v35 = vadd.f32 %v8106_v54, %v3957_v46 }
 0x43e   : > { %v8089_v5 = vpop.f32.mrf.mxu1  ;;  %v4059_v50 = vpop.f32.mrf.mxu0 }
 0x43f   : > { %v3959_v45 = vadd.f32 %v8089_v5, %v3838_v41  ;;  %v4080_v11 = vadd.f32 %v4049_v59, %v3956_v31  ;;  %v4395_v59 = vld [vmem:[%s10742_s5 + $0x18] sm:$0xff] }
 0x440   : > { %v3935_v17 = vpop.f32.mrf.mxu1  ;;  %v8112_v60 = vpop.f32.mrf.mxu0  ;;  %8167 = vmatprep.subr.mxu0 %v4395_v59 }
 0x441   : > { %v3958_v36 = vadd.f32 %v3935_v17, %v3837_v44  ;;  %v4083_v22 = vadd.f32 %v8109_v33, %v3959_v45  ;;  %v10067_v33 = vld [vmem:[%s10742_s5 + $0x58] sm:$0xff] }
 0x442   : > { %v8092_v20 = vpop.f32.mrf.mxu1  ;;  %v4069_v28 = vpop.f32.mrf.mxu0 }
 0x443   : > { %v3961_v24 = vadd.f32 %v8092_v20, %v3840_v26  ;;  %v4082_v55 = vadd.f32 %v4059_v50, %v3958_v36  ;;  %v6908_v20 = vld [vmem:[%s10742_s5 + $0x30] sm:$0xff]  ;;  %v10822_v50 = vld [vmem:[#allocation26_spill] sm:$0xff]  ;;  %v10824_v26 = vld [vmem:[#allocation16_spill] sm:$0xff] }
 0x444   : > { %v3945_v62 = vpop.f32.mrf.mxu1  ;;  %8149 = vmatprep.subr.mxu1 %v6908_v20  ;;  %v10823_v36 = vld [vmem:[#allocation14_spill] sm:$0xff] }
 0x445   : > { %v3960_v57 = vadd.f32 %v3945_v62, %v3839_v4  ;;  %v4085_v13 = vadd.f32 %v8112_v60, %v3961_v24  ;;  %8150 = vmatpush3.msra.mxu1 %v6908_v20  ;;  %v4373_v62 = vld [vmem:[#allocation3 + $0x8] sm:$0x3] }
 0x446   : > { %v8123_v18 = vpop.f32.mrf.mxu1  ;;  %8151 = vmatprep.subr.mxu1 %v6907_v63  ;;  %v4413_v12 = vrot.slane %v4373_v62, 1  ;;  %v4966_v37 = vrot.slane %v4373_v62, 2 }
 0x447   : > { %v4202_v15 = vadd.f32 %v8123_v18, %v4079_v43  ;;  %v4084_v19 = vadd.f32 %v4069_v28, %v3960_v57  ;;  %8152 = vmatpush3.msra.mxu1 %v6907_v63  ;;  %v6941_v43 = vld [vmem:[%s10742_s5 + $0x78] sm:$0xff]  ;;  %v4965_v18 = vrot.slane %v4372_v9, 2 }
 0x448   : > { %v4162_v0 = vpop.f32.mrf.mxu1  ;;  %8153 = vmatprep.subr.mxu1 %v6906_v29  ;;  %v10060_v46 = vsel %vm432_vm3, %v4412_v14, %v4413_v12  ;;  %v6939_v12 = vld [vmem:[%s10742_s5 + $0x68] sm:$0xff] }
 0x449   : > { %v4201_v39 = vadd.f32 %v4162_v0, %v4078_v48  ;;  %v4210_v58 = vmax.f32 %v4202_v15, 0.0  ;;  %8154 = vmatpush3.msra.mxu1 %v6906_v29  ;;  %8155 = vmatprep.mubr.msk.f32.mxu1 %vm356_vm5, %v10060_v46  ;;  %v10074_v31 = vsel %vm708_vm4, %v4965_v18, %v4966_v37 }
 0x44a   : > { %v8126_v25 = vpop.f32.mrf.mxu1  ;;  %8187 = vmatprep.subr.mxu1 %v10067_v33 }
 0x44b   : > { %v4209_v61 = vmax.f32 %v4201_v39, 0.0  ;;  %v4204_v8 = vadd.f32 %v8126_v25, %v4081_v35 }
 0x44c   : > { %v4172_v7 = vpop.f32.mrf.mxu1 }
 0x44d   : > { %v4203_v32 = vadd.f32 %v4172_v7, %v4080_v11  ;;  %8135 = vmatprep.mubr.msk.f32.mxu0 %vm2849_vm7, %v4209_v61  ;;  %v4212_v10 = vmax.f32 %v4204_v8, 0.0  ;;  %v10825_v7 = vld [vmem:[#allocation17_spill] sm:$0xff] }
 0x44e   : > { %v8129_v27 = vpop.f32.mrf.mxu1  ;;  %8136 = vmatmul.mubr.msk.f32.vlgmr.msra.gmra.mxu0 %vm2849_vm7, %v4210_v58 }
 0x44f   : > { %v4211_v53 = vmax.f32 %v4203_v32, 0.0  ;;  %v4206_v54 = vadd.f32 %v8129_v27, %v4083_v22  ;;  %8168 = vmatpush3.msra.mxu0 %v4395_v59  ;;  %v10826_v27 = vld [vmem:[#allocation18_spill] sm:$0xff] }
 0x450   : > { %v4182_v5 = vpop.f32.mrf.mxu1  ;;  %8169 = vmatprep.subr.mxu0 %v4394_v47 }
 0x451   : > { %v4205_v56 = vadd.f32 %v4182_v5, %v4082_v55  ;;  %8138 = vmatprep.mubr.msk.f32.mxu0 %vm2849_vm7, %v4211_v53  ;;  %v4214_v17 = vmax.f32 %v4206_v54, 0.0  ;;  %8170 = vmatpush3.msra.mxu0 %v4394_v47  ;;  %v6940_v5 = vld [vmem:[%s10742_s5 + $0x70] sm:$0xff] }
 0x452   : > { %v8132_v6 = vpop.f32.mrf.mxu1  ;;  %8139 = vmatmul.mubr.msk.f32.gmra.mxu0 %vm2849_vm7, %v4212_v10  ;;  %8171 = vmatprep.subr.mxu0 %v4393_v34 }
 0x453   : > { %v4213_v23 = vmax.f32 %v4205_v56, 0.0  ;;  %v4208_v21 = vadd.f32 %v8132_v6, %v4085_v13  ;;  %8172 = vmatpush3.msra.mxu0 %v4393_v34  ;;  %v10827_v13 = vld [vmem:[#allocation19_spill] sm:$0xff] }
 0x454   : > { %v4192_v16 = vpop.f32.mrf.mxu1  ;;  %8173 = vmatprep.subr.mxu0 %v4392_v42 }
 0x455   : > { %v4207_v30 = vadd.f32 %v4192_v16, %v4084_v19  ;;  %8141 = vmatprep.mubr.msk.f32.mxu0 %vm2849_vm7, %v4213_v23  ;;  %v4216_v52 = vmax.f32 %v4208_v21, 0.0  ;;  %8174 = vmatpush3.msra.mxu0 %v4392_v42  ;;  %v6927_v42 = vld [vmem:[%s10742_s5 + $0x48] sm:$0xff] }
 0x456   : > { %8142 = vmatmul.mubr.msk.f32.gmra.mxu0 %vm2849_vm7, %v4214_v17  ;;  %8207 = vmatprep.subr.mxu0 %v6941_v43 }
 0x457   : > { %v4215_v2 = vmax.f32 %v4207_v30, 0.0 }
 0x459   : > { %8144 = vmatprep.mubr.msk.f32.mxu0 %vm2849_vm7, %v4215_v2  ;;  %v6928_v2 = vld [vmem:[%s10742_s5 + $0x50] sm:$0xff] }
 0x45a   : > { %8145 = vmatmul.mubr.msk.f32.gmra.mxu0 %vm2849_vm7, %v4216_v52 }
 0x45b   : > { %8175 = vmatprep.mubr.msk.f32.mxu0 %vm356_vm5, %v4372_v9 }
 0x50e   : > { %v8137_v48 = vpop.f32.mrf.mxu0 }
 0x50f   : > { %v4349_v41 = vadd.f32 %v8137_v48, %v10820_v40 }
 0x510   : > { %v4309_v15 = vpop.f32.mrf.mxu0 }
 0x511   : > { %v4357_v0 = vmax.f32 %v4349_v41, 0.0  ;;  %v4348_v49 = vadd.f32 %v4309_v15, %v10821_v38  ;;  %v6926_v41 = vld [vmem:[%s10742_s5 + $0x40] sm:$0xff] }
 0x512   : > { %v8140_v44 = vpop.f32.mrf.mxu0  ;;  %v6938_v15 = vld [vmem:[%s10742_s5 + $0x60] sm:$0xff] }
 0x513   : > { %4365 = vst.msk [vmem:[#allocation3 + $0x21] sm:$0xff] %vm356_vm5, %v4357_v0  ;;  %v4356_v39 = vmax.f32 %v4348_v49, 0.0  ;;  %v4351_v45 = vadd.f32 %v8140_v44, %v10822_v50 }
 0x514   : > { %v4319_v35 = vpop.f32.mrf.mxu0 }
 0x515   : > { %4364 = vst.msk [vmem:[#allocation3 + $0x11] sm:$0xff] %vm356_vm5, %v4356_v39  ;;  %v4359_v25 = vmax.f32 %v4351_v45, 0.0  ;;  %v4350_v61 = vadd.f32 %v4319_v35, %v10823_v36  ;;  %v6958_v45 = vld [vmem:[%s10742_s5 + $0xb8] sm:$0xff]  ;;  %v6953_v36 = vld [vmem:[%s10742_s5 + $0x90] sm:$0xff] }
 0x516   : > { %v8143_v11 = vpop.f32.mrf.mxu0  ;;  %v6954_v35 = vld [vmem:[%s10742_s5 + $0x98] sm:$0xff] }
 0x517   : > { %4367 = vst.msk [vmem:[#allocation3 + $0x41] sm:$0xff] %vm356_vm5, %v4359_v25  ;;  %v4358_v51 = vmax.f32 %v4350_v61, 0.0  ;;  %v4353_v60 = vadd.f32 %v8143_v11, %v10824_v26  ;;  %v6957_v61 = vld [vmem:[%s10742_s5 + $0xb0] sm:$0xff]  ;;  %v6956_v11 = vld [vmem:[%s10742_s5 + $0xa8] sm:$0xff] }
 0x518   : > { %v4329_v58 = vpop.f32.mrf.mxu0 }
 0x519   : > { %4366 = vst.msk [vmem:[#allocation3 + $0x31] sm:$0xff] %vm356_vm5, %v4358_v51  ;;  %v4361_v8 = vmax.f32 %v4353_v60, 0.0  ;;  %v4352_v3 = vadd.f32 %v4329_v58, %v10825_v7  ;;  %v6952_v60 = vld [vmem:[%s10742_s5 + $0x88] sm:$0xff]  ;;  %v6955_v7 = vld [vmem:[%s10742_s5 + $0xa0] sm:$0xff] }
 0x51a   : > { %v8146_v4 = vpop.f32.mrf.mxu0  ;;  %v10086_v32 = vld [vmem:[#allocation3 + $0x20] sm:$0xff]  ;;  %v10088_v24 = vld [vmem:[#allocation3 + $0x28] sm:$0x3] }
 0x51b   : > { %4369 = vst.msk [vmem:[#allocation3 + $0x61] sm:$0xff] %vm356_vm5, %v4361_v8  ;;  %v4360_v22 = vmax.f32 %v4352_v3, 0.0  ;;  %v4355_v57 = vadd.f32 %v8146_v4, %v10826_v27  ;;  %v4418_v28 = vrot.slane %v10086_v32, 1  ;;  %v4419_v54 = vrot.slane %v10088_v24, 1  ;;  %v6951_v3 = vld [vmem:[%s10742_s5 + $0x80] sm:$0xff] }
 0x51c   : > { %v4339_v53 = vpop.f32.mrf.mxu0  ;;  %v10092_v55 = vld [vmem:[#allocation3 + $0x10] sm:$0xff]  ;;  %v10095_v10 = vld [vmem:[#allocation3 + $0x18] sm:$0x3] }
 0x51d   : > { %4368 = vst.msk [vmem:[#allocation3 + $0x51] sm:$0xff] %vm356_vm5, %v4360_v22  ;;  %v4363_v56 = vmax.f32 %v4355_v57, 0.0  ;;  %v4354_v6 = vadd.f32 %v4339_v53, %v10827_v13  ;;  %8176 = vmatmul.mubr.msk.f32.vlgmr.msra.gmra.mxu0 %vm356_vm5, %v10092_v55  ;;  %v4415_v19 = vrot.slane %v10092_v55, 1  ;;  %v4416_v23 = vrot.slane %v10095_v10, 1  ;;  %v6978_v22 = vld [vmem:[%s10742_s5 + $0xd8] sm:$0xff] }
 0x51e   : > { %8178 = vmatprep.mubr.msk.f32.mxu0 %vm356_vm5, %v10086_v32  ;;  %v10109_v17 = vld [vmem:[#allocation3 + $0x40] sm:$0xff]  ;;  %8208 = vmatpush3.msra.mxu0 %v6941_v43  ;;  %v10111_v21 = vld [vmem:[#allocation3 + $0x48] sm:$0x3]  ;;  %v10123_v52 = vsel %vm432_vm3, %v4418_v28, %v4419_v54  ;;  %v4968_v27 = vrot.slane %v10092_v55, 2  ;;  %v4969_v57 = vrot.slane %v10095_v10, 2  ;;  %v6990_v53 = vld [vmem:[%s10742_s5 + $0xf8] sm:$0xff] }
 0x51f   : > { %4371 = vst.msk [vmem:[#allocation3 + $0x81] sm:$0xff] %vm356_vm5, %v4363_v56  ;;  %v4362_v16 = vmax.f32 %v4354_v6, 0.0  ;;  %v10115_v30 = vsel %vm432_vm3, %v4415_v19, %v4416_v23  ;;  %8209 = vmatprep.subr.mxu0 %v6940_v5  ;;  %v4424_v59 = vrot.slane %v10109_v17, 1  ;;  %v4425_v47 = vrot.slane %v10111_v21, 1  ;;  %v6989_v10 = vld [vmem:[%s10742_s5 + $0xf0] sm:$0xff]  ;;  %v6976_v19 = vld [vmem:[%s10742_s5 + $0xc8] sm:$0xff] }
 0x520   : > { %8156 = vmatmul.mubr.msk.f32.vlgmr.msra.gmra.mxu1 %vm356_vm5, %v10115_v30  ;;  %v10125_v1 = vld [vmem:[#allocation3 + $0x30] sm:$0xff]  ;;  %v10128_v20 = vld [vmem:[#allocation3 + $0x38] sm:$0x3]  ;;  %8210 = vmatpush3.msra.mxu0 %v6940_v5  ;;  %v4971_v28 = vrot.slane %v10086_v32, 2  ;;  %v4972_v54 = vrot.slane %v10088_v24, 2  ;;  %v4977_v13 = vrot.slane %v10109_v17, 2 }
 0x521   : > { %4370 = vst.msk [vmem:[#allocation3 + $0x71] sm:$0xff] %vm356_vm5, %v4362_v16  ;;  %8188 = vmatpush3.msra.mxu1 %v10067_v33  ;;  %8158 = vmatprep.mubr.msk.f32.mxu1 %vm356_vm5, %v10123_v52  ;;  %v4421_v34 = vrot.slane %v10125_v1, 1  ;;  %v4422_v63 = vrot.slane %v10128_v20, 1  ;;  %v10157_v29 = vsel %vm432_vm3, %v4424_v59, %v4425_v47  ;;  %v4974_v24 = vrot.slane %v10125_v1, 2  ;;  %v6988_v47 = vld [vmem:[%s10742_s5 + $0xe8] sm:$0xff] }
 0x522   : > { %8179 = vmatmul.mubr.msk.f32.gmra.mxu0 %vm356_vm5, %v10125_v1  ;;  %8189 = vmatprep.subr.mxu1 %v6928_v2  ;;  %v10142_v9 = vld [vmem:[#allocation3 + $0x60] sm:$0xff]  ;;  %v10144_v62 = vld [vmem:[#allocation3 + $0x68] sm:$0x3]  ;;  %v4975_v5 = vrot.slane %v10128_v20, 2  ;;  %v10299_v56 = vsel %vm708_vm4, %v4971_v28, %v4972_v54  ;;  %v4978_v6 = vrot.slane %v10111_v21, 2 }
 0x523   : > { %8181 = vmatprep.mubr.msk.f32.mxu0 %vm356_vm5, %v10109_v17  ;;  %v10149_v14 = vsel %vm432_vm3, %v4421_v34, %v4422_v63  ;;  %8190 = vmatpush3.msra.mxu1 %v6928_v2  ;;  %v4430_v43 = vrot.slane %v10142_v9, 1  ;;  %v4431_v37 = vrot.slane %v10144_v62, 1  ;;  %v4983_v59 = vrot.slane %v10142_v9, 2  ;;  %v6975_v34 = vld [vmem:[%s10742_s5 + $0xc0] sm:$0xff]  ;;  %v7070_v28 = vld [vmem:[%s10742_s5 + $0x1a8] sm:$0xff] }
 0x524   : > { %8159 = vmatmul.mubr.msk.f32.gmra.mxu1 %vm356_vm5, %v10149_v14  ;;  %v10159_v33 = vld [vmem:[#allocation3 + $0x50] sm:$0xff]  ;;  %8191 = vmatprep.subr.mxu1 %v6927_v42  ;;  %v10162_v18 = vld [vmem:[#allocation3 + $0x58] sm:$0x3]  ;;  %v10313_v23 = vsel %vm708_vm4, %v4974_v24, %v4975_v5  ;;  %v10320_v2 = vsel %vm708_vm4, %v4977_v13, %v4978_v6  ;;  %v4984_v20 = vrot.slane %v10144_v62, 2  ;;  %v7102_v24 = vld [vmem:[%s10742_s5 + $0x1e8] sm:$0xff] }
 0x525   : > { %8161 = vmatprep.mubr.msk.f32.mxu1 %vm356_vm5, %v10157_v29  ;;  %v4427_v48 = vrot.slane %v10159_v33, 1  ;;  %v4428_v40 = vrot.slane %v10162_v18, 1  ;;  %8192 = vmatpush3.msra.mxu1 %v6927_v42  ;;  %v10185_v38 = vsel %vm432_vm3, %v4430_v43, %v4431_v37  ;;  %v4980_v21 = vrot.slane %v10159_v33, 2  ;;  %v6987_v42 = vld [vmem:[%s10742_s5 + $0xe0] sm:$0xff] }
 0x526   : > { %8182 = vmatmul.mubr.msk.f32.gmra.mxu0 %vm356_vm5, %v10159_v33  ;;  %8211 = vmatprep.subr.mxu0 %v6939_v12  ;;  %v10231_v51 = vld [vmem:[#allocation3 + $0x80] sm:$0xff]  ;;  %v10233_v26 = vld [vmem:[#allocation3 + $0x88] sm:$0x3]  ;;  %v4981_v16 = vrot.slane %v10162_v18, 2  ;;  %v10347_v43 = vsel %vm708_vm4, %v4983_v59, %v4984_v20  ;;  %v7015_v18 = vld [vmem:[%s10742_s5 + $0x138] sm:$0xff] }
 0x527   : > { %8184 = vmatprep.mubr.msk.f32.mxu0 %vm356_vm5, %v10142_v9  ;;  %v10180_v0 = vsel %vm432_vm3, %v4427_v48, %v4428_v40  ;;  %8212 = vmatpush3.msra.mxu0 %v6939_v12  ;;  %v4805_v58 = vrot.slane %v10231_v51, 1  ;;  %v4806_v8 = vrot.slane %v10233_v26, 1  ;;  %v7011_v48 = vld [vmem:[%s10742_s5 + $0x118] sm:$0xff]  ;;  %v7010_v40 = vld [vmem:[%s10742_s5 + $0x110] sm:$0xff]  ;;  %v7089_v5 = vld [vmem:[%s10742_s5 + $0x1c0] sm:$0xff] }
 0x528   : > { %8162 = vmatmul.mubr.msk.f32.gmra.mxu1 %vm356_vm5, %v10180_v0  ;;  %v10187_v49 = vld [vmem:[#allocation3 + $0x70] sm:$0xff]  ;;  %8193 = vmatprep.subr.mxu1 %v6926_v41  ;;  %v10189_v44 = vld [vmem:[#allocation3 + $0x78] sm:$0x3]  ;;  %v10337_v63 = vsel %vm708_vm4, %v4980_v21, %v4981_v16  ;;  %v7101_v13 = vld [vmem:[%s10742_s5 + $0x1e0] sm:$0xff] }
 0x529   : > { %8164 = vmatprep.mubr.msk.f32.mxu1 %vm356_vm5, %v10185_v38  ;;  %v4433_v39 = vrot.slane %v10187_v49, 1  ;;  %8213 = vmatprep.subr.mxu0 %v6938_v15  ;;  %v4434_v50 = vrot.slane %v10189_v44, 1  ;;  %v10261_v4 = vsel %vm432_vm3, %v4805_v58, %v4806_v8  ;;  %v4986_v62 = vrot.slane %v10187_v49, 2  ;;  %v7045_v58 = vld [vmem:[%s10742_s5 + $0x168] sm:$0xff]  ;;  %v7032_v8 = vld [vmem:[%s10742_s5 + $0x140] sm:$0xff] }
 0x52a   : > { %8185 = vmatmul.mubr.msk.f32.gmra.mxu0 %vm356_vm5, %v10187_v49  ;;  %8194 = vmatpush3.msra.mxu1 %v6926_v41  ;;  %v4987_v12 = vrot.slane %v10189_v44, 2  ;;  %v7014_v41 = vld [vmem:[%s10742_s5 + $0x130] sm:$0xff]  ;;  %v7009_v44 = vld [vmem:[%s10742_s5 + $0x108] sm:$0xff] }
 0x52b   : > { %8215 = vmatprep.mubr.msk.f32.mxu0 %vm356_vm5, %v10115_v30  ;;  %v10206_v25 = vsel %vm432_vm3, %v4433_v39, %v4434_v50  ;;  %8214 = vmatpush3.msra.mxu0 %v6938_v15  ;;  %v7013_v15 = vld [vmem:[%s10742_s5 + $0x128] sm:$0xff]  ;;  %v5338_v39 = vrot.slane %v10231_v51, 2  ;;  %v5339_v50 = vrot.slane %v10233_v26, 2  ;;  %v7046_v26 = vld [vmem:[%s10742_s5 + $0x170] sm:$0xff] }
 0x52c   : > { %8165 = vmatmul.mubr.msk.f32.gmra.mxu1 %vm356_vm5, %v10206_v25  ;;  %8227 = vmatprep.subr.mxu1 %v6958_v45  ;;  %v10359_v37 = vsel %vm708_vm4, %v4986_v62, %v4987_v12 }
 0x52d   : > { %8195 = vmatprep.mubr.msk.f32.mxu1 %vm356_vm5, %v10092_v55  ;;  %8247 = vmatprep.subr.mxu0 %v6954_v35 }
 0x52e   : > { %8216 = vmatmul.mubr.msk.f32.vlgmr.msra.gmra.mxu0 %vm356_vm5, %v10123_v52 }
 0x52f   : > { %8218 = vmatprep.mubr.msk.f32.mxu0 %vm356_vm5, %v10149_v14  ;;  %8248 = vmatpush3.msra.mxu0 %v6954_v35  ;;  %v7008_v35 = vld [vmem:[%s10742_s5 + $0x100] sm:$0xff] }
 0x530   : > { %8196 = vmatmul.mubr.msk.f32.vlgmr.msra.gmra.mxu1 %vm356_vm5, %v10086_v32  ;;  %8249 = vmatprep.subr.mxu0 %v6953_v36 }
 0x531   : > { %8228 = vmatpush3.msra.mxu1 %v6958_v45  ;;  %8198 = vmatprep.mubr.msk.f32.mxu1 %vm356_vm5, %v10125_v1  ;;  %v7012_v45 = vld [vmem:[%s10742_s5 + $0x120] sm:$0xff] }
 0x532   : > { %8219 = vmatmul.mubr.msk.f32.gmra.mxu0 %vm356_vm5, %v10157_v29  ;;  %8229 = vmatprep.subr.mxu1 %v6957_v61 }
 0x533   : > { %8221 = vmatprep.mubr.msk.f32.mxu0 %vm356_vm5, %v10180_v0  ;;  %8230 = vmatpush3.msra.mxu1 %v6957_v61  ;;  %v7035_v61 = vld [vmem:[%s10742_s5 + $0x158] sm:$0xff] }
 0x534   : > { %8199 = vmatmul.mubr.msk.f32.gmra.mxu1 %vm356_vm5, %v10109_v17  ;;  %8250 = vmatpush3.msra.mxu0 %v6953_v36  ;;  %v10413_v36 = vsel %vm708_vm4, %v5338_v39, %v5339_v50 }
 0x535   : > { %8201 = vmatprep.mubr.msk.f32.mxu1 %vm356_vm5, %v10159_v33  ;;  %8231 = vmatprep.subr.mxu1 %v6956_v11 }
 0x536   : > { %8222 = vmatmul.mubr.msk.f32.gmra.mxu0 %vm356_vm5, %v10185_v38  ;;  %8232 = vmatpush3.msra.mxu1 %v6956_v11  ;;  %v7047_v11 = vld [vmem:[%s10742_s5 + $0x178] sm:$0xff] }
 0x537   : > { %8224 = vmatprep.mubr.msk.f32.mxu0 %vm356_vm5, %v10206_v25  ;;  %8251 = vmatprep.subr.mxu0 %v6952_v60 }
 0x538   : > { %8202 = vmatmul.mubr.msk.f32.gmra.mxu1 %vm356_vm5, %v10142_v9  ;;  %8252 = vmatpush3.msra.mxu0 %v6952_v60  ;;  %v7033_v60 = vld [vmem:[%s10742_s5 + $0x148] sm:$0xff] }
 0x539   : > { %8204 = vmatprep.mubr.msk.f32.mxu1 %vm356_vm5, %v10187_v49  ;;  %8233 = vmatprep.subr.mxu1 %v6955_v7 }
 0x53a   : > { %8225 = vmatmul.mubr.msk.f32.gmra.mxu0 %vm356_vm5, %v10261_v4  ;;  %8253 = vmatprep.subr.mxu0 %v6951_v3 }
 0x53b   : > { %8234 = vmatpush3.msra.mxu1 %v6955_v7  ;;  %8254 = vmatpush3.msra.mxu0 %v6951_v3  ;;  %v7044_v7 = vld [vmem:[%s10742_s5 + $0x160] sm:$0xff]  ;;  %v7072_v3 = vld [vmem:[%s10742_s5 + $0x1b8] sm:$0xff] }
 0x53c   : > { %8205 = vmatmul.mubr.msk.f32.gmra.mxu1 %vm356_vm5, %v10231_v51  ;;  %8255 = vmatprep.mubr.msk.f32.mxu0 %vm356_vm5, %v10060_v46  ;;  %v10289_v46 = vsel %vm708_vm4, %v4968_v27, %v4969_v57  ;;  %v7067_v27 = vld [vmem:[%s10742_s5 + $0x190] sm:$0xff] }
 0x53d   : > { %8235 = vmatprep.mubr.msk.f32.mxu1 %vm356_vm5, %v10074_v31  ;;  %8267 = vmatprep.subr.mxu1 %v6978_v22  ;;  %v6977_v31 = vld [vmem:[%s10742_s5 + $0xd0] sm:$0xff] }
 0x53e   : > { %8256 = vmatmul.mubr.msk.f32.vlgmr.msra.gmra.mxu0 %vm356_vm5, %v10115_v30  ;;  %8287 = vmatprep.subr.mxu0 %v6990_v53  ;;  %v7071_v57 = vld [vmem:[%s10742_s5 + $0x1b0] sm:$0xff] }
 0x53f   : > { %8258 = vmatprep.mubr.msk.f32.mxu0 %vm356_vm5, %v10123_v52  ;;  %8288 = vmatpush3.msra.mxu0 %v6990_v53  ;;  %v10499_v53 = vld [vmem:[#allocation3 + $0x98] sm:$0x3] }
 0x540   : > { %8236 = vmatmul.mubr.msk.f32.vlgmr.msra.gmra.mxu1 %vm356_vm5, %v10289_v46  ;;  %8289 = vmatprep.subr.mxu0 %v6989_v10  ;;  %v5836_v54 = vrot.slane %v10499_v53, 1 }
 0x541   : > { %8268 = vmatpush3.msra.mxu1 %v6978_v22  ;;  %8238 = vmatprep.mubr.msk.f32.mxu1 %vm356_vm5, %v10299_v56  ;;  %v7068_v22 = vld [vmem:[%s10742_s5 + $0x198] sm:$0xff] }
 0x542   : > { %8259 = vmatmul.mubr.msk.f32.gmra.mxu0 %vm356_vm5, %v10149_v14  ;;  %8269 = vmatprep.subr.mxu1 %v6977_v31 }
 0x543   : > { %8261 = vmatprep.mubr.msk.f32.mxu0 %vm356_vm5, %v10157_v29  ;;  %8270 = vmatpush3.msra.mxu1 %v6977_v31  ;;  %v7092_v31 = vld [vmem:[%s10742_s5 + $0x1d8] sm:$0xff] }
 0x544   : > { %8239 = vmatmul.mubr.msk.f32.gmra.mxu1 %vm356_vm5, %v10313_v23  ;;  %8290 = vmatpush3.msra.mxu0 %v6989_v10  ;;  %v7069_v10 = vld [vmem:[%s10742_s5 + $0x1a0] sm:$0xff] }
 0x545   : > { %8241 = vmatprep.mubr.msk.f32.mxu1 %vm356_vm5, %v10320_v2  ;;  %8271 = vmatprep.subr.mxu1 %v6976_v19 }
 0x546   : > { %8262 = vmatmul.mubr.msk.f32.gmra.mxu0 %vm356_vm5, %v10180_v0  ;;  %8272 = vmatpush3.msra.mxu1 %v6976_v19 }
 0x547   : > { %8264 = vmatprep.mubr.msk.f32.mxu0 %vm356_vm5, %v10185_v38  ;;  %8291 = vmatprep.subr.mxu0 %v6988_v47 }
 0x548   : > { %8242 = vmatmul.mubr.msk.f32.gmra.mxu1 %vm356_vm5, %v10337_v63  ;;  %8292 = vmatpush3.msra.mxu0 %v6988_v47 }
 0x549   : > { %8244 = vmatprep.mubr.msk.f32.mxu1 %vm356_vm5, %v10347_v43  ;;  %8273 = vmatprep.subr.mxu1 %v6975_v34 }
 0x54a   : > { %8265 = vmatmul.mubr.msk.f32.gmra.mxu0 %vm356_vm5, %v10206_v25  ;;  %8293 = vmatprep.subr.mxu0 %v6987_v42 }
 0x54b   : > { %8295 = vmatprep.mubr.msk.f32.mxu0 %vm356_vm5, %v10289_v46  ;;  %8274 = vmatpush3.msra.mxu1 %v6975_v34 }
 0x54c   : > { %8245 = vmatmul.mubr.msk.f32.gmra.mxu1 %vm356_vm5, %v10359_v37  ;;  %8294 = vmatpush3.msra.mxu0 %v6987_v42 }
 0x54d   : > { %8275 = vmatprep.mubr.msk.f32.mxu1 %vm356_vm5, %v10115_v30  ;;  %8307 = vmatprep.subr.mxu1 %v7015_v18 }
 0x54e   : > { %8296 = vmatmul.mubr.msk.f32.vlgmr.msra.gmra.mxu0 %vm356_vm5, %v10299_v56  ;;  %8327 = vmatprep.subr.mxu0 %v7011_v48 }
 0x54f   : > { %8298 = vmatprep.mubr.msk.f32.mxu0 %vm356_vm5, %v10313_v23  ;;  %8328 = vmatpush3.msra.mxu0 %v7011_v48  ;;  %v10630_v48 = vld [vmem:[#allocation9] ss:$0 sm:$0xff] }
 0x550   : > { %8276 = vmatmul.mubr.msk.f32.vlgmr.msra.gmra.mxu1 %vm356_vm5, %v10123_v52  ;;  %8329 = vmatprep.subr.mxu0 %v7010_v40 }
 0x551   : > { %8308 = vmatpush3.msra.mxu1 %v7015_v18  ;;  %8278 = vmatprep.mubr.msk.f32.mxu1 %vm356_vm5, %v10149_v14 }
 0x552   : > { %8299 = vmatmul.mubr.msk.f32.gmra.mxu0 %vm356_vm5, %v10320_v2  ;;  %8309 = vmatprep.subr.mxu1 %v7014_v41 }
 0x553   : > { %8301 = vmatprep.mubr.msk.f32.mxu0 %vm356_vm5, %v10337_v63  ;;  %8310 = vmatpush3.msra.mxu1 %v7014_v41 }
 0x554   : > { %8279 = vmatmul.mubr.msk.f32.gmra.mxu1 %vm356_vm5, %v10157_v29  ;;  %8330 = vmatpush3.msra.mxu0 %v7010_v40 }
 0x555   : > { %8281 = vmatprep.mubr.msk.f32.mxu1 %vm356_vm5, %v10180_v0  ;;  %8311 = vmatprep.subr.mxu1 %v7013_v15 }
 0x556   : > { %8302 = vmatmul.mubr.msk.f32.gmra.mxu0 %vm356_vm5, %v10347_v43  ;;  %8312 = vmatpush3.msra.mxu1 %v7013_v15 }
 0x557   : > { %8304 = vmatprep.mubr.msk.f32.mxu0 %vm356_vm5, %v10359_v37  ;;  %8331 = vmatprep.subr.mxu0 %v7009_v44 }
 0x558   : > { %8282 = vmatmul.mubr.msk.f32.gmra.mxu1 %vm356_vm5, %v10185_v38  ;;  %8332 = vmatpush3.msra.mxu0 %v7009_v44 }
 0x559   : > { %8284 = vmatprep.mubr.msk.f32.mxu1 %vm356_vm5, %v10206_v25  ;;  %8313 = vmatprep.subr.mxu1 %v7012_v45 }
 0x55a   : > { %8305 = vmatmul.mubr.msk.f32.gmra.mxu0 %vm356_vm5, %v10413_v36  ;;  %8333 = vmatprep.subr.mxu0 %v7008_v35 }
 0x55b   : > { %8335 = vmatprep.mubr.msk.f32.mxu0 %vm356_vm5, %v10092_v55  ;;  %8314 = vmatpush3.msra.mxu1 %v7012_v45  ;;  %v7034_v55 = vld [vmem:[%s10742_s5 + $0x150] sm:$0xff] }
 0x55c   : > { %8285 = vmatmul.mubr.msk.f32.gmra.mxu1 %vm356_vm5, %v10261_v4  ;;  %8334 = vmatpush3.msra.mxu0 %v7008_v35 }
 0x55d   : > { %8315 = vmatprep.mubr.msk.f32.mxu1 %vm356_vm5, %v10115_v30  ;;  %8347 = vmatprep.subr.mxu1 %v7035_v61 }
 0x55e   : > { %8336 = vmatmul.mubr.msk.f32.vlgmr.msra.gmra.mxu0 %vm356_vm5, %v10086_v32  ;;  %8367 = vmatprep.subr.mxu0 %v7047_v11 }
 0x55f   : > { %8338 = vmatprep.mubr.msk.f32.mxu0 %vm356_vm5, %v10125_v1  ;;  %8368 = vmatpush3.msra.mxu0 %v7047_v11 }
 0x560   : > { %8316 = vmatmul.mubr.msk.f32.vlgmr.msra.gmra.mxu1 %vm356_vm5, %v10123_v52  ;;  %8369 = vmatprep.subr.mxu0 %v7046_v26 }
 0x561   : > { %8348 = vmatpush3.msra.mxu1 %v7035_v61  ;;  %8318 = vmatprep.mubr.msk.f32.mxu1 %vm356_vm5, %v10149_v14 }
 0x562   : > { %8339 = vmatmul.mubr.msk.f32.gmra.mxu0 %vm356_vm5, %v10109_v17  ;;  %8349 = vmatprep.subr.mxu1 %v7034_v55 }
 0x563   : > { %8341 = vmatprep.mubr.msk.f32.mxu0 %vm356_vm5, %v10159_v33  ;;  %8350 = vmatpush3.msra.mxu1 %v7034_v55 }
 0x564   : > { %8319 = vmatmul.mubr.msk.f32.gmra.mxu1 %vm356_vm5, %v10157_v29  ;;  %8370 = vmatpush3.msra.mxu0 %v7046_v26 }
 0x565   : > { %8321 = vmatprep.mubr.msk.f32.mxu1 %vm356_vm5, %v10180_v0  ;;  %8351 = vmatprep.subr.mxu1 %v7033_v60 }
 0x566   : > { %8342 = vmatmul.mubr.msk.f32.gmra.mxu0 %vm356_vm5, %v10142_v9  ;;  %8352 = vmatpush3.msra.mxu1 %v7033_v60 }
 0x567   : > { %8344 = vmatprep.mubr.msk.f32.mxu0 %vm356_vm5, %v10187_v49  ;;  %8371 = vmatprep.subr.mxu0 %v7045_v58 }
 0x568   : > { %8322 = vmatmul.mubr.msk.f32.gmra.mxu1 %vm356_vm5, %v10185_v38  ;;  %8372 = vmatpush3.msra.mxu0 %v7045_v58 }
 0x569   : > { %8324 = vmatprep.mubr.msk.f32.mxu1 %vm356_vm5, %v10206_v25  ;;  %8353 = vmatprep.subr.mxu1 %v7032_v8 }
 0x56a   : > { %8345 = vmatmul.mubr.msk.f32.gmra.mxu0 %vm356_vm5, %v10231_v51  ;;  %8373 = vmatprep.subr.mxu0 %v7044_v7 }
 0x56b   : > { %8375 = vmatprep.mubr.msk.f32.mxu0 %vm356_vm5, %v10123_v52  ;;  %8354 = vmatpush3.msra.mxu1 %v7032_v8 }
 0x56c   : > { %8325 = vmatmul.mubr.msk.f32.gmra.mxu1 %vm356_vm5, %v10261_v4  ;;  %8374 = vmatpush3.msra.mxu0 %v7044_v7 }
 0x56d   : > { %8355 = vmatprep.mubr.msk.f32.mxu1 %vm356_vm5, %v10086_v32  ;;  %8387 = vmatprep.subr.mxu1 %v7072_v3  ;;  %v10497_v32 = vld [vmem:[#allocation3 + $0x90] sm:$0xff] }
 0x56e   : > { %8376 = vmatmul.mubr.msk.f32.vlgmr.msra.gmra.mxu0 %vm356_vm5, %v10149_v14  ;;  %8407 = vmatprep.subr.mxu0 %v7068_v22 }
 0x56f   : > { %8378 = vmatprep.mubr.msk.f32.mxu0 %vm356_vm5, %v10157_v29  ;;  %8408 = vmatpush3.msra.mxu0 %v7068_v22 }
 0x570   : > { %8356 = vmatmul.mubr.msk.f32.vlgmr.msra.gmra.mxu1 %vm356_vm5, %v10125_v1  ;;  %8409 = vmatprep.subr.mxu0 %v7067_v27  ;;  %v5835_v1 = vrot.slane %v10497_v32, 1 }
 0x571   : > { %8388 = vmatpush3.msra.mxu1 %v7072_v3  ;;  %8358 = vmatprep.mubr.msk.f32.mxu1 %vm356_vm5, %v10109_v17  ;;  %v7066_v17 = vld [vmem:[%s10742_s5 + $0x188] sm:$0xff] }
 0x572   : > { %8379 = vmatmul.mubr.msk.f32.gmra.mxu0 %vm356_vm5, %v10180_v0  ;;  %8389 = vmatprep.subr.mxu1 %v7071_v57 }
 0x573   : > { %8381 = vmatprep.mubr.msk.f32.mxu0 %vm356_vm5, %v10185_v38  ;;  %8390 = vmatpush3.msra.mxu1 %v7071_v57 }
 0x574   : > { %8359 = vmatmul.mubr.msk.f32.gmra.mxu1 %vm356_vm5, %v10159_v33  ;;  %8410 = vmatpush3.msra.mxu0 %v7067_v27  ;;  %v10527_v33 = vsel %vm432_vm3, %v5835_v1, %v5836_v54 }
 0x575   : > { %8361 = vmatprep.mubr.msk.f32.mxu1 %vm356_vm5, %v10142_v9  ;;  %8391 = vmatprep.subr.mxu1 %v7070_v28  ;;  %v7065_v9 = vld [vmem:[%s10742_s5 + $0x180] sm:$0xff] }
 0x576   : > { %8382 = vmatmul.mubr.msk.f32.gmra.mxu0 %vm356_vm5, %v10206_v25  ;;  %8392 = vmatpush3.msra.mxu1 %v7070_v28 }
 0x577   : > { %8384 = vmatprep.mubr.msk.f32.mxu0 %vm356_vm5, %v10261_v4  ;;  %8411 = vmatprep.subr.mxu0 %v7066_v17 }
 0x578   : > { %8362 = vmatmul.mubr.msk.f32.gmra.mxu1 %vm356_vm5, %v10187_v49  ;;  %8412 = vmatpush3.msra.mxu0 %v7066_v17  ;;  %v7104_v49 = vld [vmem:[%s10742_s5 + $0x1f8] sm:$0xff] }
 0x579   : > { %8364 = vmatprep.mubr.msk.f32.mxu1 %vm356_vm5, %v10231_v51  ;;  %8393 = vmatprep.subr.mxu1 %v7069_v10  ;;  %v7103_v51 = vld [vmem:[%s10742_s5 + $0x1f0] sm:$0xff] }
 0x57a   : > { %8385 = vmatmul.mubr.msk.f32.gmra.mxu0 %vm356_vm5, %v10527_v33  ;;  %8413 = vmatprep.subr.mxu0 %v7065_v9 }
 0x57b   : > { %8415 = vmatprep.mubr.msk.f32.mxu0 %vm356_vm5, %v10115_v30  ;;  %8394 = vmatpush3.msra.mxu1 %v7069_v10  ;;  %v7091_v30 = vld [vmem:[%s10742_s5 + $0x1d0] sm:$0xff] }
 0x57c   : > { %8365 = vmatmul.mubr.msk.f32.gmra.mxu1 %vm356_vm5, %v10497_v32  ;;  %8414 = vmatpush3.msra.mxu0 %v7065_v9 }
 0x57d   : > { %8395 = vmatprep.mubr.msk.f32.mxu1 %vm356_vm5, %v10289_v46  ;;  %8427 = vmatprep.subr.mxu1 %v7092_v31  ;;  %v7090_v46 = vld [vmem:[%s10742_s5 + $0x1c8] sm:$0xff] }
 0x57e   : > { %8416 = vmatmul.mubr.msk.f32.vlgmr.msra.gmra.mxu0 %vm356_vm5, %v10123_v52  ;;  %8447 = vmatprep.subr.mxu0 %v7104_v49 }
 0x57f   : > { %8418 = vmatprep.mubr.msk.f32.mxu0 %vm356_vm5, %v10149_v14  ;;  %8448 = vmatpush3.msra.mxu0 %v7104_v49 }
 0x580   : > { %8396 = vmatmul.mubr.msk.f32.vlgmr.msra.gmra.mxu1 %vm356_vm5, %v10299_v56  ;;  %8449 = vmatprep.subr.mxu0 %v7103_v51 }
 0x581   : > { %8428 = vmatpush3.msra.mxu1 %v7092_v31  ;;  %8398 = vmatprep.mubr.msk.f32.mxu1 %vm356_vm5, %v10313_v23 }
 0x582   : > { %8419 = vmatmul.mubr.msk.f32.gmra.mxu0 %vm356_vm5, %v10157_v29  ;;  %8429 = vmatprep.subr.mxu1 %v7091_v30 }
 0x583   : > { %8421 = vmatprep.mubr.msk.f32.mxu0 %vm356_vm5, %v10180_v0  ;;  %8430 = vmatpush3.msra.mxu1 %v7091_v30 }
 0x584   : > { %8399 = vmatmul.mubr.msk.f32.gmra.mxu1 %vm356_vm5, %v10320_v2  ;;  %8450 = vmatpush3.msra.mxu0 %v7103_v51 }
 0x585   : > { %8401 = vmatprep.mubr.msk.f32.mxu1 %vm356_vm5, %v10337_v63  ;;  %8431 = vmatprep.subr.mxu1 %v7090_v46 }
 0x586   : > { %8422 = vmatmul.mubr.msk.f32.gmra.mxu0 %vm356_vm5, %v10185_v38  ;;  %8432 = vmatpush3.msra.mxu1 %v7090_v46 }
 0x587   : > { %8424 = vmatprep.mubr.msk.f32.mxu0 %vm356_vm5, %v10206_v25  ;;  %8451 = vmatprep.subr.mxu0 %v7102_v24 }
 0x588   : > { %8402 = vmatmul.mubr.msk.f32.gmra.mxu1 %vm356_vm5, %v10347_v43  ;;  %8452 = vmatpush3.msra.mxu0 %v7102_v24 }
 0x589   : > { %8404 = vmatprep.mubr.msk.f32.mxu1 %vm356_vm5, %v10359_v37  ;;  %8433 = vmatprep.subr.mxu1 %v7089_v5 }
 0x58a   : > { %8425 = vmatmul.mubr.msk.f32.gmra.mxu0 %vm356_vm5, %v10261_v4  ;;  %8453 = vmatprep.subr.mxu0 %v7101_v13 }
 0x58b   : > { %8455 = vmatprep.mubr.msk.f32.mxu0 %vm356_vm5, %v10299_v56  ;;  %8434 = vmatpush3.msra.mxu1 %v7089_v5  ;;  %v6329_v56 = vrot.slane %v10499_v53, 2 }
 0x58c   : > { %8405 = vmatmul.mubr.msk.f32.gmra.mxu1 %vm356_vm5, %v10413_v36  ;;  %8454 = vmatpush3.msra.mxu0 %v7101_v13 }
 0x58d   : > { %8435 = vmatprep.mubr.msk.f32.mxu1 %vm356_vm5, %v10123_v52  ;;  %v6328_v52 = vrot.slane %v10497_v32, 2 }
 0x58e   : > { %8456 = vmatmul.mubr.msk.f32.vlgmr.msra.gmra.mxu0 %vm356_vm5, %v10313_v23 }
 0x58f   : > { %8458 = vmatprep.mubr.msk.f32.mxu0 %vm356_vm5, %v10320_v2 }
 0x590   : > { %8436 = vmatmul.mubr.msk.f32.vlgmr.msra.gmra.mxu1 %vm356_vm5, %v10149_v14  ;;  %v6330_v14 = vsel %vm708_vm4, %v6328_v52, %v6329_v56 }
 0x591   : > { %8438 = vmatprep.mubr.msk.f32.mxu1 %vm356_vm5, %v10157_v29 }
 0x592   : > { %8459 = vmatmul.mubr.msk.f32.gmra.mxu0 %vm356_vm5, %v10337_v63 }
 0x593   : > { %8461 = vmatprep.mubr.msk.f32.mxu0 %vm356_vm5, %v10347_v43 }
 0x594   : > { %8439 = vmatmul.mubr.msk.f32.gmra.mxu1 %vm356_vm5, %v10180_v0 }
 0x595   : > { %8441 = vmatprep.mubr.msk.f32.mxu1 %vm356_vm5, %v10185_v38 }
 0x596   : > { %8462 = vmatmul.mubr.msk.f32.gmra.mxu0 %vm356_vm5, %v10359_v37 }
 0x597   : > { %8464 = vmatprep.mubr.msk.f32.mxu0 %vm356_vm5, %v10413_v36 }
 0x598   : > { %8442 = vmatmul.mubr.msk.f32.gmra.mxu1 %vm356_vm5, %v10206_v25 }
 0x599   : > { %8444 = vmatprep.mubr.msk.f32.mxu1 %vm356_vm5, %v10261_v4 }
 0x59a   : > { %8465 = vmatmul.mubr.msk.f32.gmra.mxu0 %vm356_vm5, %v6330_v14 }
 0x59c   : > { %8445 = vmatmul.mubr.msk.f32.gmra.mxu1 %vm356_vm5, %v10527_v33 }
 0x5dd   : > { %v8177_v29 = vpop.f32.mrf.mxu0 }
 0x5df   : > { %v4644_v0 = vpop.f32.mrf.mxu0 }
 0x5e0   : > { %v8157_v38 = vpop.f32.mrf.mxu1 }
 0x5e1   : > { %v4650_v62 = vadd.f32 %v8177_v29, %v8157_v38 }
 0x5e2   : > { %v8180_v6 = vpop.f32.mrf.mxu0  ;;  %v4523_v19 = vpop.f32.mrf.mxu1 }
 0x5e3   : > { %v4645_v18 = vadd.f32 %v4644_v0, %v4523_v19 }
 0x5e4   : > { %v4654_v23 = vpop.f32.mrf.mxu0  ;;  %v8160_v21 = vpop.f32.mrf.mxu1 }
 0x5e5   : > { %v4660_v15 = vadd.f32 %v8180_v6, %v8160_v21 }
 0x5e6   : > { %v8183_v16 = vpop.f32.mrf.mxu0  ;;  %v4533_v2 = vpop.f32.mrf.mxu1 }
 0x5e7   : > { %v4655_v35 = vadd.f32 %v4654_v23, %v4533_v2 }
 0x5e8   : > { %v4664_v59 = vpop.f32.mrf.mxu0  ;;  %v8163_v25 = vpop.f32.mrf.mxu1 }
 0x5e9   : > { %v4670_v26 = vadd.f32 %v8183_v16, %v8163_v25 }
 0x5ea   : > { %v8186_v20 = vpop.f32.mrf.mxu0  ;;  %v4543_v47 = vpop.f32.mrf.mxu1 }
 0x5eb   : > { %v4665_v22 = vadd.f32 %v4664_v59, %v4543_v47 }
 0x5ec   : > { %v4674_v4 = vpop.f32.mrf.mxu0  ;;  %v8166_v34 = vpop.f32.mrf.mxu1 }
 0x5ed   : > { %v4680_v54 = vadd.f32 %v8186_v20, %v8166_v34 }
 0x5ee   : > { %v8217_v63 = vpop.f32.mrf.mxu0  ;;  %v4553_v42 = vpop.f32.mrf.mxu1 }
 0x5ef   : > { %v4675_v51 = vadd.f32 %v4674_v4, %v4553_v42 }
 0x5f0   : > { %v4881_v12 = vpop.f32.mrf.mxu0  ;;  %v8197_v43 = vpop.f32.mrf.mxu1 }
 0x5f1   : > { %v4797_v37 = vadd.f32 %v8197_v43, %v4650_v62 }
 0x5f2   : > { %v8220_v40 = vpop.f32.mrf.mxu0  ;;  %v4757_v41 = vpop.f32.mrf.mxu1 }
 0x5f3   : > { %v4921_v44 = vadd.f32 %v8217_v63, %v4797_v37  ;;  %v4796_v39 = vadd.f32 %v4757_v41, %v4645_v18 }
 0x5f4   : > { %v4891_v50 = vpop.f32.mrf.mxu0  ;;  %v8200_v45 = vpop.f32.mrf.mxu1 }
 0x5f5   : > { %v4936_v36 = vadd.f32 %v10630_v48, %v4921_v44  ;;  %v4920_v61 = vadd.f32 %v4881_v12, %v4796_v39  ;;  %v4799_v11 = vadd.f32 %v8200_v45, %v4660_v15 }
 0x5f6   : > { %v8223_v55 = vpop.f32.mrf.mxu0  ;;  %v4767_v60 = vpop.f32.mrf.mxu1 }
 0x5f7   : > { %v4944_v58 = vmax.f32 %v4936_v36, 0.0  ;;  %v4935_v8 = vadd.f32 %v10630_v48, %v4920_v61  ;;  %v4923_v7 = vadd.f32 %v8220_v40, %v4799_v11  ;;  %v4798_v3 = vadd.f32 %v4767_v60, %v4655_v35 }
 0x5f8   : > { %v4901_v27 = vpop.f32.mrf.mxu0  ;;  %v8203_v57 = vpop.f32.mrf.mxu1 }
 0x5f9   : > { %4953 = vst.msk [vmem:[%s10637_s16 + $0x8] sm:$0xff] %vm4951_vm8, %v4944_v58  ;;  %v4943_v32 = vmax.f32 %v4935_v8, 0.0  ;;  %v4938_v53 = vadd.f32 %v10630_v48, %v4923_v7  ;;  %v4922_v28 = vadd.f32 %v4891_v50, %v4798_v3  ;;  %v4801_v1 = vadd.f32 %v8203_v57, %v4670_v26 }
 0x5fa   : > { %v8226_v17 = vpop.f32.mrf.mxu0  ;;  %v4777_v10 = vpop.f32.mrf.mxu1 }
 0x5fb   : > { %4952 = vst.msk [vmem:[%s10637_s16] sm:$0xff] %vm4951_vm8, %v4943_v32  ;;  %v4946_v33 = vmax.f32 %v4938_v53, 0.0  ;;  %v4937_v9 = vadd.f32 %v10630_v48, %v4922_v28  ;;  %v4925_v31 = vadd.f32 %v8223_v55, %v4801_v1  ;;  %v4800_v49 = vadd.f32 %v4777_v10, %v4665_v22 }
 0x5fc   : > { %v4911_v30 = vpop.f32.mrf.mxu0  ;;  %v8206_v46 = vpop.f32.mrf.mxu1 }
 0x5fd   : > { %4955 = vst.msk [vmem:[%s10637_s16 + $0x18] sm:$0xff] %vm4951_vm8, %v4946_v33  ;;  %v4945_v24 = vmax.f32 %v4937_v9, 0.0  ;;  %v4940_v5 = vadd.f32 %v10630_v48, %v4925_v31  ;;  %v4924_v13 = vadd.f32 %v4901_v27, %v4800_v49  ;;  %v4803_v52 = vadd.f32 %v8206_v46, %v4680_v54 }
 0x5fe   : > { %v8257_v56 = vpop.f32.mrf.mxu0  ;;  %v4787_v14 = vpop.f32.mrf.mxu1 }
 0x5ff   : > { %4954 = vst.msk [vmem:[%s10637_s16 + $0x10] sm:$0xff] %vm4951_vm8, %v4945_v24  ;;  %v4948_v29 = vmax.f32 %v4940_v5, 0.0  ;;  %v4939_v0 = vadd.f32 %v10630_v48, %v4924_v13  ;;  %v4927_v38 = vadd.f32 %v8226_v17, %v4803_v52  ;;  %v4802_v6 = vadd.f32 %v4787_v14, %v4675_v51 }
 0x600   : > { %v5181_v19 = vpop.f32.mrf.mxu0  ;;  %v8237_v23 = vpop.f32.mrf.mxu1 }
 0x601   : > { %4957 = vst.msk [vmem:[%s10637_s16 + $0x28] sm:$0xff] %vm4951_vm8, %v4948_v29  ;;  %v4947_v21 = vmax.f32 %v4939_v0, 0.0  ;;  %v4942_v16 = vadd.f32 %v10630_v48, %v4927_v38  ;;  %v4926_v2 = vadd.f32 %v4911_v30, %v4802_v6  ;;  %v5187_v39 = vadd.f32 %v8257_v56, %v8237_v23 }
 0x602   : > { %v8260_v59 = vpop.f32.mrf.mxu0  ;;  %v5076_v25 = vpop.f32.mrf.mxu1 }
 0x603   : > { %4956 = vst.msk [vmem:[%s10637_s16 + $0x20] sm:$0xff] %vm4951_vm8, %v4947_v21  ;;  %v4950_v20 = vmax.f32 %v4942_v16, 0.0  ;;  %v4941_v47 = vadd.f32 %v10630_v48, %v4926_v2  ;;  %v5182_v35 = vadd.f32 %v5181_v19, %v5076_v25 }
 0x604   : > { %v5191_v4 = vpop.f32.mrf.mxu0  ;;  %v8240_v34 = vpop.f32.mrf.mxu1 }
 0x605   : > { %4959 = vst.msk [vmem:[%s10637_s16 + $0x38] sm:$0xff] %vm4951_vm8, %v4950_v20  ;;  %v4949_v63 = vmax.f32 %v4941_v47, 0.0  ;;  %v5197_v26 = vadd.f32 %v8260_v59, %v8240_v34 }
 0x606   : > { %v8263_v42 = vpop.f32.mrf.mxu0  ;;  %v5086_v62 = vpop.f32.mrf.mxu1 }
 0x607   : > { %4958 = vst.msk [vmem:[%s10637_s16 + $0x30] sm:$0xff] %vm4951_vm8, %v4949_v63  ;;  %v5192_v7 = vadd.f32 %v5191_v4, %v5086_v62 }
 0x608   : > { %v5201_v12 = vpop.f32.mrf.mxu0  ;;  %v8243_v43 = vpop.f32.mrf.mxu1 }
 0x609   : > { %v5207_v57 = vadd.f32 %v8263_v42, %v8243_v43 }
 0x60a   : > { %v8266_v18 = vpop.f32.mrf.mxu0  ;;  %v5096_v37 = vpop.f32.mrf.mxu1 }
 0x60b   : > { %v5202_v10 = vadd.f32 %v5201_v12, %v5096_v37 }
 0x60c   : > { %v5211_v40 = vpop.f32.mrf.mxu0  ;;  %v8246_v41 = vpop.f32.mrf.mxu1 }
 0x60d   : > { %v5217_v46 = vadd.f32 %v8266_v18, %v8246_v41 }
 0x60e   : > { %v8297_v15 = vpop.f32.mrf.mxu0  ;;  %v5106_v44 = vpop.f32.mrf.mxu1 }
 0x60f   : > { %v5212_v29 = vadd.f32 %v5211_v40, %v5106_v44 }
 0x610   : > { %v5414_v50 = vpop.f32.mrf.mxu0  ;;  %v8277_v45 = vpop.f32.mrf.mxu1 }
 0x611   : > { %v5331_v36 = vadd.f32 %v8277_v45, %v5187_v39 }
 0x612   : > { %v8300_v61 = vpop.f32.mrf.mxu0  ;;  %v5291_v11 = vpop.f32.mrf.mxu1 }
 0x613   : > { %v5454_v55 = vadd.f32 %v8297_v15, %v5331_v36  ;;  %v5330_v60 = vadd.f32 %v5291_v11, %v5182_v35 }
 0x614   : > { %v5424_v58 = vpop.f32.mrf.mxu0  ;;  %v8280_v8 = vpop.f32.mrf.mxu1 }
 0x615   : > { %v5469_v3 = vadd.f32 %v10630_v48, %v5454_v55  ;;  %v5453_v22 = vadd.f32 %v5414_v50, %v5330_v60  ;;  %v5333_v27 = vadd.f32 %v8280_v8, %v5197_v26 }
 0x616   : > { %v8303_v32 = vpop.f32.mrf.mxu0  ;;  %v5301_v53 = vpop.f32.mrf.mxu1 }
 0x617   : > { %v5477_v28 = vmax.f32 %v5469_v3, 0.0  ;;  %v5468_v1 = vadd.f32 %v10630_v48, %v5453_v22  ;;  %v5456_v54 = vadd.f32 %v8300_v61, %v5333_v27  ;;  %v5332_v17 = vadd.f32 %v5301_v53, %v5192_v7 }
 0x618   : > { %v5434_v33 = vpop.f32.mrf.mxu0  ;;  %v8283_v9 = vpop.f32.mrf.mxu1 }
 0x619   : > { %7001 = vst.msk [vmem:[%s10637_s16 + $0x48] sm:$0xff] %vm4951_vm8, %v5477_v28  ;;  %v5476_v31 = vmax.f32 %v5468_v1, 0.0  ;;  %v5471_v49 = vadd.f32 %v10630_v48, %v5456_v54  ;;  %v5455_v51 = vadd.f32 %v5424_v58, %v5332_v17  ;;  %v5335_v30 = vadd.f32 %v8283_v9, %v5207_v57 }
 0x61a   : > { %v8306_v24 = vpop.f32.mrf.mxu0  ;;  %v5311_v5 = vpop.f32.mrf.mxu1 }
 0x61b   : > { %7000 = vst.msk [vmem:[%s10637_s16 + $0x40] sm:$0xff] %vm4951_vm8, %v5476_v31  ;;  %v5479_v13 = vmax.f32 %v5471_v49, 0.0  ;;  %v5470_v52 = vadd.f32 %v10630_v48, %v5455_v51  ;;  %v5458_v56 = vadd.f32 %v8303_v32, %v5335_v30  ;;  %v5334_v14 = vadd.f32 %v5311_v5, %v5202_v10 }
 0x61c   : > { %v5444_v0 = vpop.f32.mrf.mxu0  ;;  %v8286_v38 = vpop.f32.mrf.mxu1 }
 0x61d   : > { %7003 = vst.msk [vmem:[%s10637_s16 + $0x58] sm:$0xff] %vm4951_vm8, %v5479_v13  ;;  %v5478_v6 = vmax.f32 %v5470_v52, 0.0  ;;  %v5473_v19 = vadd.f32 %v10630_v48, %v5458_v56  ;;  %v5457_v23 = vadd.f32 %v5434_v33, %v5334_v14  ;;  %v5337_v21 = vadd.f32 %v8286_v38, %v5217_v46 }
 0x61e   : > { %v8337_v16 = vpop.f32.mrf.mxu0  ;;  %v5321_v2 = vpop.f32.mrf.mxu1 }
 0x61f   : > { %7002 = vst.msk [vmem:[%s10637_s16 + $0x50] sm:$0xff] %vm4951_vm8, %v5478_v6  ;;  %v5481_v59 = vmax.f32 %v5473_v19, 0.0  ;;  %v5472_v25 = vadd.f32 %v10630_v48, %v5457_v23  ;;  %v5460_v20 = vadd.f32 %v8306_v24, %v5337_v21  ;;  %v5336_v47 = vadd.f32 %v5321_v2, %v5212_v29 }
 0x620   : > { %v5674_v4 = vpop.f32.mrf.mxu0  ;;  %v8317_v34 = vpop.f32.mrf.mxu1 }
 0x621   : > { %7005 = vst.msk [vmem:[%s10637_s16 + $0x68] sm:$0xff] %vm4951_vm8, %v5481_v59  ;;  %v5480_v63 = vmax.f32 %v5472_v25, 0.0  ;;  %v5475_v42 = vadd.f32 %v10630_v48, %v5460_v20  ;;  %v5459_v62 = vadd.f32 %v5444_v0, %v5336_v47  ;;  %v5680_v60 = vadd.f32 %v8337_v16, %v8317_v34 }
 0x622   : > { %v8340_v12 = vpop.f32.mrf.mxu0  ;;  %v5569_v43 = vpop.f32.mrf.mxu1 }
 0x623   : > { %7004 = vst.msk [vmem:[%s10637_s16 + $0x60] sm:$0xff] %vm4951_vm8, %v5480_v63  ;;  %v5483_v18 = vmax.f32 %v5475_v42, 0.0  ;;  %v5474_v37 = vadd.f32 %v10630_v48, %v5459_v62  ;;  %v5675_v7 = vadd.f32 %v5674_v4, %v5569_v43 }
 0x624   : > { %v5684_v40 = vpop.f32.mrf.mxu0  ;;  %v8320_v41 = vpop.f32.mrf.mxu1 }
 0x625   : > { %7007 = vst.msk [vmem:[%s10637_s16 + $0x78] sm:$0xff] %vm4951_vm8, %v5483_v18  ;;  %v5482_v15 = vmax.f32 %v5474_v37, 0.0  ;;  %v5690_v57 = vadd.f32 %v8340_v12, %v8320_v41 }
 0x626   : > { %v8343_v44 = vpop.f32.mrf.mxu0  ;;  %v5579_v39 = vpop.f32.mrf.mxu1 }
 0x627   : > { %7006 = vst.msk [vmem:[%s10637_s16 + $0x70] sm:$0xff] %vm4951_vm8, %v5482_v15  ;;  %v5685_v54 = vadd.f32 %v5684_v40, %v5579_v39 }
 0x628   : > { %v5694_v50 = vpop.f32.mrf.mxu0  ;;  %v8323_v45 = vpop.f32.mrf.mxu1 }
 0x629   : > { %v5700_v9 = vadd.f32 %v8343_v44, %v8323_v45 }
 0x62a   : > { %v8346_v35 = vpop.f32.mrf.mxu0  ;;  %v5589_v36 = vpop.f32.mrf.mxu1 }
 0x62b   : > { %v5695_v5 = vadd.f32 %v5694_v50, %v5589_v36 }
 0x62c   : > { %v5704_v61 = vpop.f32.mrf.mxu0  ;;  %v8326_v11 = vpop.f32.mrf.mxu1 }
 0x62d   : > { %v5710_v38 = vadd.f32 %v8346_v35, %v8326_v11 }
 0x62e   : > { %v8377_v26 = vpop.f32.mrf.mxu0  ;;  %v5599_v55 = vpop.f32.mrf.mxu1 }
 0x62f   : > { %v5705_v59 = vadd.f32 %v5704_v61, %v5599_v55 }
 0x630   : > { %v5911_v58 = vpop.f32.mrf.mxu0  ;;  %v8357_v8 = vpop.f32.mrf.mxu1 }
 0x631   : > { %v5827_v3 = vadd.f32 %v8357_v8, %v5680_v60 }
 0x632   : > { %v8380_v22 = vpop.f32.mrf.mxu0  ;;  %v5787_v27 = vpop.f32.mrf.mxu1 }
 0x633   : > { %v5951_v32 = vadd.f32 %v8377_v26, %v5827_v3  ;;  %v5826_v53 = vadd.f32 %v5787_v27, %v5675_v7 }
 0x634   : > { %v5921_v28 = vpop.f32.mrf.mxu0  ;;  %v8360_v1 = vpop.f32.mrf.mxu1 }
 0x635   : > { %v5966_v17 = vadd.f32 %v10630_v48, %v5951_v32  ;;  %v5950_v10 = vadd.f32 %v5911_v58, %v5826_v53  ;;  %v5829_v33 = vadd.f32 %v8360_v1, %v5690_v57 }
 0x636   : > { %v8383_v31 = vpop.f32.mrf.mxu0  ;;  %v5797_v49 = vpop.f32.mrf.mxu1 }
 0x637   : > { %v5974_v51 = vmax.f32 %v5966_v17, 0.0  ;;  %v5965_v30 = vadd.f32 %v10630_v48, %v5950_v10  ;;  %v5953_v46 = vadd.f32 %v8380_v22, %v5829_v33  ;;  %v5828_v24 = vadd.f32 %v5797_v49, %v5685_v54 }
 0x638   : > { %v5931_v13 = vpop.f32.mrf.mxu0  ;;  %v8363_v52 = vpop.f32.mrf.mxu1 }
 0x639   : > { %7058 = vst.msk [vmem:[%s10637_s16 + $0x88] sm:$0xff] %vm4951_vm8, %v5974_v51  ;;  %v5973_v56 = vmax.f32 %v5965_v30, 0.0  ;;  %v5968_v14 = vadd.f32 %v10630_v48, %v5953_v46  ;;  %v5952_v29 = vadd.f32 %v5921_v28, %v5828_v24  ;;  %v5831_v0 = vadd.f32 %v8363_v52, %v5700_v9 }
 0x63a   : > { %v8386_v6 = vpop.f32.mrf.mxu0  ;;  %v5807_v19 = vpop.f32.mrf.mxu1 }
 0x63b   : > { %7057 = vst.msk [vmem:[%s10637_s16 + $0x80] sm:$0xff] %vm4951_vm8, %v5973_v56  ;;  %v5976_v23 = vmax.f32 %v5968_v14, 0.0  ;;  %v5967_v21 = vadd.f32 %v10630_v48, %v5952_v29  ;;  %v5955_v16 = vadd.f32 %v8383_v31, %v5831_v0  ;;  %v5830_v2 = vadd.f32 %v5807_v19, %v5695_v5 }
 0x63c   : > { %v5941_v25 = vpop.f32.mrf.mxu0  ;;  %v8366_v20 = vpop.f32.mrf.mxu1 }
 0x63d   : > { %7060 = vst.msk [vmem:[%s10637_s16 + $0x98] sm:$0xff] %vm4951_vm8, %v5976_v23  ;;  %v5975_v47 = vmax.f32 %v5967_v21, 0.0  ;;  %v5970_v4 = vadd.f32 %v10630_v48, %v5955_v16  ;;  %v5954_v34 = vadd.f32 %v5931_v13, %v5830_v2  ;;  %v5833_v63 = vadd.f32 %v8366_v20, %v5710_v38 }
 0x63e   : > { %v8417_v42 = vpop.f32.mrf.mxu0  ;;  %v5817_v62 = vpop.f32.mrf.mxu1 }
 0x63f   : > { %7059 = vst.msk [vmem:[%s10637_s16 + $0x90] sm:$0xff] %vm4951_vm8, %v5975_v47  ;;  %v5978_v12 = vmax.f32 %v5970_v4, 0.0  ;;  %v5969_v43 = vadd.f32 %v10630_v48, %v5954_v34  ;;  %v5957_v18 = vadd.f32 %v8386_v6, %v5833_v63  ;;  %v5832_v37 = vadd.f32 %v5817_v62, %v5705_v59 }
 0x640   : > { %v6171_v40 = vpop.f32.mrf.mxu0  ;;  %v8397_v41 = vpop.f32.mrf.mxu1 }
 0x641   : > { %7062 = vst.msk [vmem:[%s10637_s16 + $0xa8] sm:$0xff] %vm4951_vm8, %v5978_v12  ;;  %v5977_v15 = vmax.f32 %v5969_v43, 0.0  ;;  %v5972_v44 = vadd.f32 %v10630_v48, %v5957_v18  ;;  %v5956_v39 = vadd.f32 %v5941_v25, %v5832_v37  ;;  %v6177_v53 = vadd.f32 %v8417_v42, %v8397_v41 }
 0x642   : > { %v8420_v50 = vpop.f32.mrf.mxu0  ;;  %v6066_v45 = vpop.f32.mrf.mxu1 }
 0x643   : > { %7061 = vst.msk [vmem:[%s10637_s16 + $0xa0] sm:$0xff] %vm4951_vm8, %v5977_v15  ;;  %v5980_v35 = vmax.f32 %v5972_v44, 0.0  ;;  %v5971_v36 = vadd.f32 %v10630_v48, %v5956_v39  ;;  %v6172_v54 = vadd.f32 %v6171_v40, %v6066_v45 }
 0x644   : > { %v6181_v61 = vpop.f32.mrf.mxu0  ;;  %v8400_v11 = vpop.f32.mrf.mxu1 }
 0x645   : > { %7064 = vst.msk [vmem:[%s10637_s16 + $0xb8] sm:$0xff] %vm4951_vm8, %v5980_v35  ;;  %v5979_v26 = vmax.f32 %v5971_v36, 0.0  ;;  %v6187_v9 = vadd.f32 %v8420_v50, %v8400_v11 }
 0x646   : > { %v8423_v55 = vpop.f32.mrf.mxu0  ;;  %v6076_v60 = vpop.f32.mrf.mxu1 }
 0x647   : > { %7063 = vst.msk [vmem:[%s10637_s16 + $0xb0] sm:$0xff] %vm4951_vm8, %v5979_v26  ;;  %v6182_v46 = vadd.f32 %v6181_v61, %v6076_v60 }
 0x648   : > { %v6191_v58 = vpop.f32.mrf.mxu0  ;;  %v8403_v8 = vpop.f32.mrf.mxu1 }
 0x649   : > { %v6197_v52 = vadd.f32 %v8423_v55, %v8403_v8 }
 0x64a   : > { %v8426_v7 = vpop.f32.mrf.mxu0  ;;  %v6086_v3 = vpop.f32.mrf.mxu1 }
 0x64b   : > { %v6192_v19 = vadd.f32 %v6191_v58, %v6086_v3 }
 0x64c   : > { %v6201_v22 = vpop.f32.mrf.mxu0  ;;  %v8406_v27 = vpop.f32.mrf.mxu1 }
 0x64d   : > { %v6207_v25 = vadd.f32 %v8426_v7, %v8406_v27 }
 0x64e   : > { %v8457_v57 = vpop.f32.mrf.mxu0  ;;  %v6096_v32 = vpop.f32.mrf.mxu1 }
 0x64f   : > { %v6202_v62 = vadd.f32 %v6201_v22, %v6096_v32 }
 0x650   : > { %v6404_v28 = vpop.f32.mrf.mxu0  ;;  %v8437_v1 = vpop.f32.mrf.mxu1 }
 0x651   : > { %v6321_v17 = vadd.f32 %v8437_v1, %v6177_v53 }
 0x652   : > { %v8460_v10 = vpop.f32.mrf.mxu0  ;;  %v6281_v33 = vpop.f32.mrf.mxu1 }
 0x653   : > { %v6444_v31 = vadd.f32 %v8457_v57, %v6321_v17  ;;  %v6320_v49 = vadd.f32 %v6281_v33, %v6172_v54 }
 0x654   : > { %v6414_v51 = vpop.f32.mrf.mxu0  ;;  %v8440_v30 = vpop.f32.mrf.mxu1 }
 0x655   : > { %v6459_v24 = vadd.f32 %v10630_v48, %v6444_v31  ;;  %v6443_v5 = vadd.f32 %v6404_v28, %v6320_v49  ;;  %v6323_v13 = vadd.f32 %v8440_v30, %v6187_v9 }
 0x656   : > { %v8463_v56 = vpop.f32.mrf.mxu0  ;;  %v6291_v14 = vpop.f32.mrf.mxu1 }
 0x657   : > { %v6467_v29 = vmax.f32 %v6459_v24, 0.0  ;;  %v6458_v0 = vadd.f32 %v10630_v48, %v6443_v5  ;;  %v6446_v38 = vadd.f32 %v8460_v10, %v6323_v13  ;;  %v6322_v6 = vadd.f32 %v6291_v14, %v6182_v46 }
 0x658   : > { %v8443_v23 = vpop.f32.mrf.mxu1  ;;  %v6424_v20 = vpop.f32.mrf.mxu0 }
 0x659   : > { %7115 = vst.msk [vmem:[%s10637_s16 + $0xc8] sm:$0xff] %vm4951_vm8, %v6467_v29  ;;  %v6466_v21 = vmax.f32 %v6458_v0, 0.0  ;;  %v6461_v16 = vadd.f32 %v10630_v48, %v6446_v38  ;;  %v6445_v2 = vadd.f32 %v6414_v51, %v6322_v6  ;;  %v6325_v59 = vadd.f32 %v8443_v23, %v6197_v52 }
 0x65a   : > { %v6301_v47 = vpop.f32.mrf.mxu1  ;;  %v8466_v43 = vpop.f32.mrf.mxu0 }
 0x65b   : > { %7114 = vst.msk [vmem:[%s10637_s16 + $0xc0] sm:$0xff] %vm4951_vm8, %v6466_v21  ;;  %v6469_v4 = vmax.f32 %v6461_v16, 0.0  ;;  %v6460_v34 = vadd.f32 %v10630_v48, %v6445_v2  ;;  %v6448_v63 = vadd.f32 %v8463_v56, %v6325_v59  ;;  %v6324_v42 = vadd.f32 %v6301_v47, %v6192_v19 }
 0x65c   : > { %v8446_v12 = vpop.f32.mrf.mxu1  ;;  %v6434_v35 = vpop.f32.mrf.mxu0 }
 0x65d   : > { %7117 = vst.msk [vmem:[%s10637_s16 + $0xd8] sm:$0xff] %vm4951_vm8, %v6469_v4  ;;  %v6468_v18 = vmax.f32 %v6460_v34, 0.0  ;;  %v6463_v37 = vadd.f32 %v10630_v48, %v6448_v63  ;;  %v6447_v40 = vadd.f32 %v6424_v20, %v6324_v42  ;;  %v6327_v41 = vadd.f32 %v8446_v12, %v6207_v25 }
 0x65e   : > { %v6311_v15 = vpop.f32.mrf.mxu1 }
 0x65f   : > { %7116 = vst.msk [vmem:[%s10637_s16 + $0xd0] sm:$0xff] %vm4951_vm8, %v6468_v18  ;;  %v6471_v44 = vmax.f32 %v6463_v37, 0.0  ;;  %v6462_v39 = vadd.f32 %v10630_v48, %v6447_v40  ;;  %v6450_v50 = vadd.f32 %v8466_v43, %v6327_v41  ;;  %v6326_v45 = vadd.f32 %v6311_v15, %v6202_v62 }
 0x661   : > { %7119 = vst.msk [vmem:[%s10637_s16 + $0xe8] sm:$0xff] %vm4951_vm8, %v6471_v44  ;;  %v6470_v36 = vmax.f32 %v6462_v39, 0.0  ;;  %v6465_v61 = vadd.f32 %v10630_v48, %v6450_v50  ;;  %v6449_v11 = vadd.f32 %v6434_v35, %v6326_v45 }
 0x663   : > { %7118 = vst.msk [vmem:[%s10637_s16 + $0xe0] sm:$0xff] %vm4951_vm8, %v6470_v36  ;;  %v6473_v26 = vmax.f32 %v6465_v61, 0.0  ;;  %v6464_v55 = vadd.f32 %v10630_v48, %v6449_v11 }
 0x665   : > { %7121 = vst.msk [vmem:[%s10637_s16 + $0xf8] sm:$0xff] %vm4951_vm8, %v6473_v26  ;;  %v6472_v60 = vmax.f32 %v6464_v55, 0.0 }
 0x667   : > { %7120 = vst.msk [vmem:[%s10637_s16 + $0xf0] sm:$0xff] %vm4951_vm8, %v6472_v60 }
 0x668 PF: > { %s20_s24 = sadd.s32 1, %s8646_s24  }
 0x669   : > { %p17_p3 = scmp.ge.s32.totalorder %s20_s24, 4  }
 0x66b   :  { %19 = sbr.rel (!%p17_p3) target bundleno = 3 (0x3), region = 141 }
 0x670   :  { %6504 = vsyncpa [#allocation5], 1 }
 0x671   :  { %6506 = vsyncpa [#allocation5 + $0x1], 1 }
 0x672   :  { %6507 = vsyncpa [#allocation7], 1 }
 0x673   :  { %6508 = vsyncpa [#allocation10], 1 }

</bundles_post_ra>
